<compile_context>
chip_gen: v5e
topology: v5e:2x2
jax: 0.10.0
libtpu: 0.0.40
codegen_flags: <defaults>
</compile_context>

<pallas_src>
import functools

import jax
import jax.numpy as jnp
from jax.experimental import pallas as pl
from jax.experimental.pallas import tpu as pltpu


_VMEM_LIMIT = 32 * 1024 * 1024      # scoped-VMEM request: safe on v5e/v6e/v7x
_VMEM_BUDGET = 14 * 1024 * 1024     # target per-step live set for auto tiling


def _round_up(v, m):
    return ((v + m - 1) // m) * m


def _apply_act(z, act):
    if act == "silu":
        return z * jax.nn.sigmoid(z)
    if act == "relu":
        return jnp.maximum(z, 0.0)
    if act == "lrelu":
        return jnp.where(z >= 0, z, 0.1 * z)
    raise AttributeError("Unsupported act type: {}".format(act))


# ---------------------------------------------------------------------------
# Fused conv (stride == 1): in-kernel im2col -> single big-K MXU matmul.
# ---------------------------------------------------------------------------
def _fused_kernel(x_ref, halo_ref, w_ref, s_ref, b_ref, o_ref, col_ref, *,
                  kh, kw, wp, m, cin, act):
    # Build the (m, kh*kw*Cin) bf16 im2col block: with the band flattened
    # row-major at padded width wp, the (dy, dx) conv tap for every output
    # position is the band shifted by off = dy*wp + dx; positions that run past
    # the band come from the small halo (first kh rows of the next band).
    # Wrap-around only affects padded output columns, sliced off by the wrapper.
    for dy in range(kh):
        for dx in range(kw):
            tap = dy * kw + dx
            off = dy * wp + dx
            c0 = tap * cin
            if off == 0:
                col_ref[:, c0:c0 + cin] = x_ref[0]
            else:
                col_ref[0:m - off, c0:c0 + cin] = x_ref[0, off:m, :]
                col_ref[m - off:m, c0:c0 + cin] = halo_ref[0, 0, 0:off, :]
    # One matmul covering every tap: K = kh*kw*Cin, f32 accumulation on the MXU.
    acc = jnp.dot(col_ref[...], w_ref[...], preferred_element_type=jnp.float32)
    z = acc * s_ref[...] + b_ref[...]            # BatchNorm scale/bias, f32 epilogue
    o_ref[0] = _apply_act(z, act).astype(o_ref.dtype)


def _fused_conv_stride1(x_nchw, w_oihw, scale, bias, act, *, target_rows=1024,
                        max_tile_cout=256):
    N, Cin, H, W = x_nchw.shape
    Cout, _, kh, kw = w_oihw.shape
    p_h, p_w = (kh - 1) // 2, (kw - 1) // 2
    Ho = H + 2 * p_h - kh + 1
    Wo = W + 2 * p_w - kw + 1

    wp = _round_up(W + 2 * p_w, 8)               # sublane-aligned padded width
    coutp = _round_up(Cout, 128)                 # lane-dense output channels
    tile_c = max_tile_cout if coutp % max_tile_cout == 0 else 128
    nct = coutp // tile_c
    K = kh * kw * Cin
    halo_len = max(8, (kh - 1) * wp + _round_up(kw - 1, 8))

    # Auto-scale the row band so m = bh*wp lands near `target_rows` while the
    # per-step live set stays inside the VMEM budget (v7x has only 64 MiB).
    def vmem_estimate(bh):
        m = bh * wp
        return (2 * m * Cin * 2            # input band (double buffered, bf16)
                + 2 * halo_len * Cin * 2   # halo
                + 2 * K * tile_c * 2       # weight block
                + 4 * tile_c * 4 * 2       # scale + bias
                + 2 * m * tile_c * 2       # output block (bf16)
                + m * K * 2                # im2col scratch
                + m * tile_c * 4)          # f32 matmul result before store

    bh = max(kh, min(Ho, max(1, target_rows // wp)))
    while bh > kh and vmem_estimate(bh) > _VMEM_BUDGET:
        bh = max(kh, bh // 2)

    nb = -(-Ho // bh)                            # number of row bands
    ho_pad = nb * bh
    hp = (nb + 1) * bh                           # one slack band so halo slicing
    m = bh * wp                                  # below never reads out of bounds

    # NHWC, zero-padded, bf16; flatten (H, W) into one row-major axis.
    x = jnp.transpose(x_nchw, (0, 2, 3, 1)).astype(jnp.bfloat16)
    x = jnp.pad(x, ((0, 0), (p_h, hp - H - p_h), (p_w, wp - W - p_w), (0, 0)))
    x_flat = x.reshape(N, hp * wp, Cin)
    # Per-band halo: only the first kh rows of the *next* band (instead of a
    # whole extra band) are fetched by the kernel.
    halo = x[:, bh:(nb + 1) * bh].reshape(N, nb, bh, wp, Cin)[:, :, :kh]
    halo = halo.reshape(N, nb, kh * wp, Cin)

    # (Cout, Cin, kh, kw) -> (kh*kw*Cin, coutp): one weight matrix for all taps.
    # TODO(synk): optional fp8 (e4m3) weight path for v7x not implemented.
    w_mat = jnp.transpose(w_oihw, (2, 3, 1, 0)).reshape(K, Cout)
    w_mat = jnp.pad(w_mat, ((0, 0), (0, coutp - Cout))).astype(jnp.bfloat16)
    s = jnp.pad(scale, (0, coutp - Cout)).reshape(1, coutp).astype(jnp.float32)
    b = jnp.pad(bias, (0, coutp - Cout)).reshape(1, coutp).astype(jnp.float32)

    # Grid order: bands innermost keeps the weight tile resident (input re-read
    # nct times); channel tiles innermost keeps the band resident (weight
    # re-read nb times).  Pick whichever re-reads fewer HBM bytes.
    x_bytes = N * nb * m * Cin * 2
    w_bytes = N * K * coutp * 2
    bands_inner = (nct - 1) * x_bytes <= (nb - 1) * w_bytes
    if bands_inner:
        grid = (N, nct, nb)
        x_map = lambda n, c, r: (n, r, 0)
        h_map = lambda n, c, r: (n, r, 0, 0)
        w_map = lambda n, c, r: (0, c)
        sb_map = lambda n, c, r: (0, c)
        o_map = lambda n, c, r: (n, r, c)
    else:
        grid = (N, nb, nct)
        x_map = lambda n, r, c: (n, r, 0)
        h_map = lambda n, r, c: (n, r, 0, 0)
        w_map = lambda n, r, c: (0, c)
        sb_map = lambda n, r, c: (0, c)
        o_map = lambda n, r, c: (n, r, c)

    kernel = functools.partial(_fused_kernel, kh=kh, kw=kw, wp=wp, m=m,
                               cin=Cin, act=act)
    out = pl.pallas_call(
        kernel,
        out_shape=jax.ShapeDtypeStruct((N, ho_pad * wp, coutp), jnp.bfloat16),
        grid_spec=pltpu.PrefetchScalarGridSpec(
            num_scalar_prefetch=0,
            grid=grid,
            in_specs=[
                pl.BlockSpec((1, m, Cin), x_map),
                pl.BlockSpec((1, 1, halo_len, Cin), h_map),
                pl.BlockSpec((K, tile_c), w_map),
                pl.BlockSpec((1, tile_c), sb_map),
                pl.BlockSpec((1, tile_c), sb_map),
            ],
            out_specs=pl.BlockSpec((1, m, tile_c), o_map),
            scratch_shapes=[pltpu.VMEM((m, K), jnp.bfloat16)],
        ),
        compiler_params=pltpu.CompilerParams(
            dimension_semantics=("parallel", "parallel", "parallel"),
            vmem_limit_bytes=_VMEM_LIMIT),
    )(x_flat, halo, w_mat, s, b)

    out = out.reshape(N, ho_pad, wp, coutp)[:, :Ho, :Wo, :Cout]
    return jnp.transpose(out, (0, 3, 1, 2)).astype(jnp.float32)


# ---------------------------------------------------------------------------
# Fallback (stride > 1): im2col GEMM with a K-tiled f32 accumulator.
# ---------------------------------------------------------------------------
def _gemm_kernel(p_ref, w_ref, s_ref, b_ref, o_ref, acc_ref, *, act):
    @pl.when(pl.program_id(1) == 0)
    def _():
        acc_ref[...] = jnp.zeros_like(acc_ref)

    acc_ref[...] += jnp.dot(p_ref[...], w_ref[...],
                            preferred_element_type=jnp.float32)

    @pl.when(pl.program_id(1) == pl.num_programs(1) - 1)
    def _():
        z = acc_ref[...] * s_ref[...] + b_ref[...]
        o_ref[...] = _apply_act(z, act).astype(o_ref.dtype)


def _im2col_conv(x_nchw, w_oihw, scale, bias, act, stride, *, tile_m=512):
    # TODO(synk): stride>1 path still materializes im2col patches in HBM
    # (kh*kw input-read amplification); fuse like the stride-1 path later.
    N, Cin, H, W = x_nchw.shape
    Cout, _, kh, kw = w_oihw.shape
    p_h, p_w = (kh - 1) // 2, (kw - 1) // 2
    Ho = (H + 2 * p_h - kh) // stride + 1
    Wo = (W + 2 * p_w - kw) // stride + 1

    x = jnp.transpose(x_nchw, (0, 2, 3, 1)).astype(jnp.bfloat16)
    xp = jnp.pad(x, ((0, 0), (p_h, p_h), (p_w, p_w), (0, 0)))
    cols = []
    for dy in range(kh):
        for dx in range(kw):
            cols.append(xp[:, dy:dy + Ho * stride:stride,
                            dx:dx + Wo * stride:stride, :])
    patches = jnp.concatenate(cols, axis=-1).reshape(N * Ho * Wo, kh * kw * Cin)

    coutp = _round_up(Cout, 128)
    K = kh * kw * Cin
    Kp = _round_up(K, 128)
    w_mat = jnp.transpose(w_oihw, (2, 3, 1, 0)).reshape(K, Cout)
    w_mat = jnp.pad(w_mat, ((0, Kp - K), (0, coutp - Cout))).astype(jnp.bfloat16)
    s = jnp.pad(scale, (0, coutp - Cout)).reshape(1, coutp).astype(jnp.float32)
    b = jnp.pad(bias, (0, coutp - Cout)).reshape(1, coutp).astype(jnp.float32)

    M = patches.shape[0]
    tm = min(tile_m, _round_up(M, 8))
    mp = _round_up(M, tm)
    patches = jnp.pad(patches, ((0, mp - M), (0, Kp - K)))
    tk = 512 if Kp % 512 == 0 else (256 if Kp % 256 == 0 else 128)

    out = pl.pallas_call(
        functools.partial(_gemm_kernel, act=act),
        out_shape=jax.ShapeDtypeStruct((mp, coutp), jnp.bfloat16),
        grid_spec=pltpu.PrefetchScalarGridSpec(
            num_scalar_prefetch=0,
            grid=(mp // tm, Kp // tk),
            in_specs=[
                pl.BlockSpec((tm, tk), lambda i, k: (i, k)),
                pl.BlockSpec((tk, coutp), lambda i, k: (k, 0)),
                pl.BlockSpec((1, coutp), lambda i, k: (0, 0)),
                pl.BlockSpec((1, coutp), lambda i, k: (0, 0)),
            ],
            out_specs=pl.BlockSpec((tm, coutp), lambda i, k: (i, 0)),
            scratch_shapes=[pltpu.VMEM((tm, coutp), jnp.float32)],
        ),
        compiler_params=pltpu.CompilerParams(
            dimension_semantics=("parallel", "arbitrary"),
            vmem_limit_bytes=_VMEM_LIMIT),
    )(patches, w_mat, s, b)

    out = out[:M, :Cout].reshape(N, Ho, Wo, Cout)
    return jnp.transpose(out, (0, 3, 1, 2)).astype(jnp.float32)


# ---------------------------------------------------------------------------
# Public entry: BaseConv.forward
# ---------------------------------------------------------------------------
def base_conv_forward(x_nchw, w_oihw, gamma, beta, running_mean, running_var, *,
                      conv_bias=None, stride=1, groups=1, eps=1e-5, act="silu"):
    """BaseConv.forward: Conv2d(pad=(k-1)//2) -> BatchNorm2d (eval) -> act."""
    if groups != 1:
        # TODO(synk): grouped / depthwise convolution not implemented in the
        # Pallas path (BaseConv default is groups=1).
        raise NotImplementedError("groups != 1 is not supported")
    # TODO(synk): BatchNorm is folded in eval mode (running statistics only);
    # training-mode batch statistics are not computed here.
    scale = (gamma / jnp.sqrt(running_var + eps)).astype(jnp.float32)
    shift = running_mean if conv_bias is None else running_mean - conv_bias
    bias = (beta - shift * scale).astype(jnp.float32)
    if stride == 1:
        return _fused_conv_stride1(x_nchw, w_oihw, scale, bias, act)
    return _im2col_conv(x_nchw, w_oihw, scale, bias, act, stride)


# ---------------------------------------------------------------------------
# Pure-JAX reference and self-test.
# ---------------------------------------------------------------------------
def _reference_forward(x, w, gamma, beta, mean, var, *, stride=1, eps=1e-5):
    pad_h = (w.shape[2] - 1) // 2
    pad_w = (w.shape[3] - 1) // 2
    y = jax.lax.conv_general_dilated(
        x, w, (stride, stride), [(pad_h, pad_h), (pad_w, pad_w)],
        dimension_numbers=("NCHW", "OIHW", "NCHW"),
        precision=jax.lax.Precision.HIGHEST)
    s = (gamma / jnp.sqrt(var + eps)).reshape(1, -1, 1, 1)
    b = (beta - mean * gamma / jnp.sqrt(var + eps)).reshape(1, -1, 1, 1)
    z = y * s + b
    return z * jax.nn.sigmoid(z)


if __name__ == "__main__":
    def _run_case(tag, N, Cin, H, W, Cout, k, stride):
        key = jax.random.fold_in(jax.random.PRNGKey(0), tag)
        kx, kwt, kg, kb, km, kv = jax.random.split(key, 6)
        x = jax.random.normal(kx, (N, Cin, H, W), jnp.float32)
        w = jax.random.normal(kwt, (Cout, Cin, k, k), jnp.float32) * 0.1
        gamma = jax.random.normal(kg, (Cout,), jnp.float32) * 0.1 + 1.0
        beta = jax.random.normal(kb, (Cout,), jnp.float32) * 0.1
        mean = jax.random.normal(km, (Cout,), jnp.float32) * 0.1
        var = jax.random.uniform(kv, (Cout,), jnp.float32,
                                 minval=0.5, maxval=1.5)

        out = base_conv_forward(x, w, gamma, beta, mean, var, stride=stride)
        out = jax.block_until_ready(out)
        ref = _reference_forward(x, w, gamma, beta, mean, var, stride=stride)
        assert out.shape == ref.shape, (out.shape, ref.shape)
        err = float(jnp.max(jnp.abs(out - ref)))
        # bf16 activations/weights/output (f32 accumulation) vs f32 reference.
        assert err < 5e-2, err

    # BaseConv(4, 8, ksize=3, stride=1) on a 2x4x16x16 input (fused path).
    _run_case(0, N=2, Cin=4, H=16, W=16, Cout=8, k=3, stride=1)
    # Ragged shapes: Cout not a multiple of 128, odd spatial size.
    _run_case(1, N=2, Cin=6, H=20, W=20, Cout=40, k=3, stride=1)
    # stride=2 exercises the K-tiled im2col-GEMM fallback path.
    _run_case(2, N=2, Cin=4, H=16, W=16, Cout=8, k=3, stride=2)

    print("KERNEL_OK")
</pallas_src>

<mosaic_0001>
module attributes {stable_mosaic.version = 11 : i64} {
  func.func @_fused_kernel(%arg0: i32, %arg1: i32, %arg2: i32, %arg3: memref<1x384x4xbf16, #tpu.memory_space<vmem>>, %arg4: memref<1x1x56x4xbf16, #tpu.memory_space<vmem>>, %arg5: memref<36x128xbf16, #tpu.memory_space<vmem>>, %arg6: memref<1x128xf32, #tpu.memory_space<vmem>>, %arg7: memref<1x128xf32, #tpu.memory_space<vmem>>, %arg8: memref<1x384x128xbf16, #tpu.memory_space<vmem>>, %arg9: memref<384x36xbf16, #tpu.memory_space<vmem>>) attributes {dimension_semantics = [#tpu.dimension_semantics<parallel>, #tpu.dimension_semantics<parallel>, #tpu.dimension_semantics<parallel>], iteration_bounds = array<i64: 2, 1, 1>, scalar_prefetch = 0 : i64, scratch_operands = 1 : i64, tpu.core_type = #tpu.core_type<tc>, window_params = [{transform_indices = @transform_0, window_bounds = array<i64: 1, 384, 4>}, {transform_indices = @transform_1, window_bounds = array<i64: 1, 1, 56, 4>}, {transform_indices = @transform_2, window_bounds = array<i64: 36, 128>}, {transform_indices = @transform_3, window_bounds = array<i64: 1, 128>}, {transform_indices = @transform_4, window_bounds = array<i64: 1, 128>}, {transform_indices = @transform_5, window_bounds = array<i64: 1, 384, 128>}]} {
    %c0 = arith.constant 0 : index
    %c0_0 = arith.constant 0 : index
    %c0_1 = arith.constant 0 : index
    %0 = vector.load %arg3[%c0, %c0_0, %c0_1] : memref<1x384x4xbf16, #tpu.memory_space<vmem>>, vector<1x384x4xbf16>
    %1 = vector.shape_cast %0 : vector<1x384x4xbf16> to vector<384x4xbf16>
    %c0_2 = arith.constant 0 : index
    %c0_3 = arith.constant 0 : index
    %2 = vector.load %arg9[%c0_2, %c0_3] : memref<384x36xbf16, #tpu.memory_space<vmem>>, vector<384x4xbf16>
    tpu.vector_store %arg9[%c0_2, %c0_3], %1 {strides = array<i32>} : memref<384x36xbf16, #tpu.memory_space<vmem>>, vector<384x4xbf16>,
    %c0_4 = arith.constant 0 : index
    %c1 = arith.constant 1 : index
    %c0_5 = arith.constant 0 : index
    %3 = vector.load %arg3[%c0_4, %c1, %c0_5] : memref<1x384x4xbf16, #tpu.memory_space<vmem>>, vector<1x383x4xbf16>
    %4 = vector.shape_cast %3 : vector<1x383x4xbf16> to vector<383x4xbf16>
    %c0_6 = arith.constant 0 : index
    %c4 = arith.constant 4 : index
    %5 = vector.load %arg9[%c0_6, %c4] : memref<384x36xbf16, #tpu.memory_space<vmem>>, vector<383x4xbf16>
    tpu.vector_store %arg9[%c0_6, %c4], %4 {strides = array<i32>} : memref<384x36xbf16, #tpu.memory_space<vmem>>, vector<383x4xbf16>,
    %c0_7 = arith.constant 0 : index
    %c0_8 = arith.constant 0 : index
    %c0_9 = arith.constant 0 : index
    %c0_10 = arith.constant 0 : index
    %6 = vector.load %arg4[%c0_7, %c0_8, %c0_9, %c0_10] : memref<1x1x56x4xbf16, #tpu.memory_space<vmem>>, vector<1x1x1x4xbf16>
    %7 = vector.shape_cast %6 : vector<1x1x1x4xbf16> to vector<1x4xbf16>
    %c383 = arith.constant 383 : index
    %c4_11 = arith.constant 4 : index
    %8 = vector.load %arg9[%c383, %c4_11] : memref<384x36xbf16, #tpu.memory_space<vmem>>, vector<1x4xbf16>
    tpu.vector_store %arg9[%c383, %c4_11], %7 {strides = array<i32>} : memref<384x36xbf16, #tpu.memory_space<vmem>>, vector<1x4xbf16>,
    %c0_12 = arith.constant 0 : index
    %c2 = arith.constant 2 : index
    %c0_13 = arith.constant 0 : index
    %9 = vector.load %arg3[%c0_12, %c2, %c0_13] : memref<1x384x4xbf16, #tpu.memory_space<vmem>>, vector<1x382x4xbf16>
    %10 = vector.shape_cast %9 : vector<1x382x4xbf16> to vector<382x4xbf16>
    %c0_14 = arith.constant 0 : index
    %c8 = arith.constant 8 : index
    %11 = vector.load %arg9[%c0_14, %c8] : memref<384x36xbf16, #tpu.memory_space<vmem>>, vector<382x4xbf16>
    tpu.vector_store %arg9[%c0_14, %c8], %10 {strides = array<i32>} : memref<384x36xbf16, #tpu.memory_space<vmem>>, vector<382x4xbf16>,
    %c0_15 = arith.constant 0 : index
    %c0_16 = arith.constant 0 : index
    %c0_17 = arith.constant 0 : index
    %c0_18 = arith.constant 0 : index
    %12 = vector.load %arg4[%c0_15, %c0_16, %c0_17, %c0_18] : memref<1x1x56x4xbf16, #tpu.memory_space<vmem>>, vector<1x1x2x4xbf16>
    %13 = vector.shape_cast %12 : vector<1x1x2x4xbf16> to vector<2x4xbf16>
    %c382 = arith.constant 382 : index
    %c8_19 = arith.constant 8 : index
    %14 = vector.load %arg9[%c382, %c8_19] : memref<384x36xbf16, #tpu.memory_space<vmem>>, vector<2x4xbf16>
    tpu.vector_store %arg9[%c382, %c8_19], %13 {strides = array<i32>} : memref<384x36xbf16, #tpu.memory_space<vmem>>, vector<2x4xbf16>,
    %c0_20 = arith.constant 0 : index
    %c24 = arith.constant 24 : index
    %c0_21 = arith.constant 0 : index
    %15 = vector.load %arg3[%c0_20, %c24, %c0_21] : memref<1x384x4xbf16, #tpu.memory_space<vmem>>, vector<1x360x4xbf16>
    %16 = vector.shape_cast %15 : vector<1x360x4xbf16> to vector<360x4xbf16>
    %c0_22 = arith.constant 0 : index
    %c12 = arith.constant 12 : index
    %17 = vector.load %arg9[%c0_22, %c12] : memref<384x36xbf16, #tpu.memory_space<vmem>>, vector<360x4xbf16>
    tpu.vector_store %arg9[%c0_22, %c12], %16 {strides = array<i32>} : memref<384x36xbf16, #tpu.memory_space<vmem>>, vector<360x4xbf16>,
    %c0_23 = arith.constant 0 : index
    %c0_24 = arith.constant 0 : index
    %c0_25 = arith.constant 0 : index
    %c0_26 = arith.constant 0 : index
    %18 = vector.load %arg4[%c0_23, %c0_24, %c0_25, %c0_26] : memref<1x1x56x4xbf16, #tpu.memory_space<vmem>>, vector<1x1x24x4xbf16>
    %19 = vector.shape_cast %18 : vector<1x1x24x4xbf16> to vector<24x4xbf16>
    %c360 = arith.constant 360 : index
    %c12_27 = arith.constant 12 : index
    %20 = vector.load %arg9[%c360, %c12_27] : memref<384x36xbf16, #tpu.memory_space<vmem>>, vector<24x4xbf16>
    tpu.vector_store %arg9[%c360, %c12_27], %19 {strides = array<i32>} : memref<384x36xbf16, #tpu.memory_space<vmem>>, vector<24x4xbf16>,
    %c0_28 = arith.constant 0 : index
    %c25 = arith.constant 25 : index
    %c0_29 = arith.constant 0 : index
    %21 = vector.load %arg3[%c0_28, %c25, %c0_29] : memref<1x384x4xbf16, #tpu.memory_space<vmem>>, vector<1x359x4xbf16>
    %22 = vector.shape_cast %21 : vector<1x359x4xbf16> to vector<359x4xbf16>
    %c0_30 = arith.constant 0 : index
    %c16 = arith.constant 16 : index
    %23 = vector.load %arg9[%c0_30, %c16] : memref<384x36xbf16, #tpu.memory_space<vmem>>, vector<359x4xbf16>
    tpu.vector_store %arg9[%c0_30, %c16], %22 {strides = array<i32>} : memref<384x36xbf16, #tpu.memory_space<vmem>>, vector<359x4xbf16>,
    %c0_31 = arith.constant 0 : index
    %c0_32 = arith.constant 0 : index
    %c0_33 = arith.constant 0 : index
    %c0_34 = arith.constant 0 : index
    %24 = vector.load %arg4[%c0_31, %c0_32, %c0_33, %c0_34] : memref<1x1x56x4xbf16, #tpu.memory_space<vmem>>, vector<1x1x25x4xbf16>
    %25 = vector.shape_cast %24 : vector<1x1x25x4xbf16> to vector<25x4xbf16>
    %c359 = arith.constant 359 : index
    %c16_35 = arith.constant 16 : index
    %26 = vector.load %arg9[%c359, %c16_35] : memref<384x36xbf16, #tpu.memory_space<vmem>>, vector<25x4xbf16>
    tpu.vector_store %arg9[%c359, %c16_35], %25 {strides = array<i32>} : memref<384x36xbf16, #tpu.memory_space<vmem>>, vector<25x4xbf16>,
    %c0_36 = arith.constant 0 : index
    %c26 = arith.constant 26 : index
    %c0_37 = arith.constant 0 : index
    %27 = vector.load %arg3[%c0_36, %c26, %c0_37] : memref<1x384x4xbf16, #tpu.memory_space<vmem>>, vector<1x358x4xbf16>
    %28 = vector.shape_cast %27 : vector<1x358x4xbf16> to vector<358x4xbf16>
    %c0_38 = arith.constant 0 : index
    %c20 = arith.constant 20 : index
    %29 = vector.load %arg9[%c0_38, %c20] : memref<384x36xbf16, #tpu.memory_space<vmem>>, vector<358x4xbf16>
    tpu.vector_store %arg9[%c0_38, %c20], %28 {strides = array<i32>} : memref<384x36xbf16, #tpu.memory_space<vmem>>, vector<358x4xbf16>,
    %c0_39 = arith.constant 0 : index
    %c0_40 = arith.constant 0 : index
    %c0_41 = arith.constant 0 : index
    %c0_42 = arith.constant 0 : index
    %30 = vector.load %arg4[%c0_39, %c0_40, %c0_41, %c0_42] : memref<1x1x56x4xbf16, #tpu.memory_space<vmem>>, vector<1x1x26x4xbf16>
    %31 = vector.shape_cast %30 : vector<1x1x26x4xbf16> to vector<26x4xbf16>
    %c358 = arith.constant 358 : index
    %c20_43 = arith.constant 20 : index
    %32 = vector.load %arg9[%c358, %c20_43] : memref<384x36xbf16, #tpu.memory_space<vmem>>, vector<26x4xbf16>
    tpu.vector_store %arg9[%c358, %c20_43], %31 {strides = array<i32>} : memref<384x36xbf16, #tpu.memory_space<vmem>>, vector<26x4xbf16>,
    %c0_44 = arith.constant 0 : index
    %c48 = arith.constant 48 : index
    %c0_45 = arith.constant 0 : index
    %33 = vector.load %arg3[%c0_44, %c48, %c0_45] : memref<1x384x4xbf16, #tpu.memory_space<vmem>>, vector<1x336x4xbf16>
    %34 = vector.shape_cast %33 : vector<1x336x4xbf16> to vector<336x4xbf16>
    %c0_46 = arith.constant 0 : index
    %c24_47 = arith.constant 24 : index
    %35 = vector.load %arg9[%c0_46, %c24_47] : memref<384x36xbf16, #tpu.memory_space<vmem>>, vector<336x4xbf16>
    tpu.vector_store %arg9[%c0_46, %c24_47], %34 {strides = array<i32>} : memref<384x36xbf16, #tpu.memory_space<vmem>>, vector<336x4xbf16>,
    %c0_48 = arith.constant 0 : index
    %c0_49 = arith.constant 0 : index
    %c0_50 = arith.constant 0 : index
    %c0_51 = arith.constant 0 : index
    %36 = vector.load %arg4[%c0_48, %c0_49, %c0_50, %c0_51] : memref<1x1x56x4xbf16, #tpu.memory_space<vmem>>, vector<1x1x48x4xbf16>
    %37 = vector.shape_cast %36 : vector<1x1x48x4xbf16> to vector<48x4xbf16>
    %c336 = arith.constant 336 : index
    %c24_52 = arith.constant 24 : index
    %38 = vector.load %arg9[%c336, %c24_52] : memref<384x36xbf16, #tpu.memory_space<vmem>>, vector<48x4xbf16>
    tpu.vector_store %arg9[%c336, %c24_52], %37 {strides = array<i32>} : memref<384x36xbf16, #tpu.memory_space<vmem>>, vector<48x4xbf16>,
    %c0_53 = arith.constant 0 : index
    %c49 = arith.constant 49 : index
    %c0_54 = arith.constant 0 : index
    %39 = vector.load %arg3[%c0_53, %c49, %c0_54] : memref<1x384x4xbf16, #tpu.memory_space<vmem>>, vector<1x335x4xbf16>
    %40 = vector.shape_cast %39 : vector<1x335x4xbf16> to vector<335x4xbf16>
    %c0_55 = arith.constant 0 : index
    %c28 = arith.constant 28 : index
    %41 = vector.load %arg9[%c0_55, %c28] : memref<384x36xbf16, #tpu.memory_space<vmem>>, vector<335x4xbf16>
    tpu.vector_store %arg9[%c0_55, %c28], %40 {strides = array<i32>} : memref<384x36xbf16, #tpu.memory_space<vmem>>, vector<335x4xbf16>,
    %c0_56 = arith.constant 0 : index
    %c0_57 = arith.constant 0 : index
    %c0_58 = arith.constant 0 : index
    %c0_59 = arith.constant 0 : index
    %42 = vector.load %arg4[%c0_56, %c0_57, %c0_58, %c0_59] : memref<1x1x56x4xbf16, #tpu.memory_space<vmem>>, vector<1x1x49x4xbf16>
    %43 = vector.shape_cast %42 : vector<1x1x49x4xbf16> to vector<49x4xbf16>
    %c335 = arith.constant 335 : index
    %c28_60 = arith.constant 28 : index
    %44 = vector.load %arg9[%c335, %c28_60] : memref<384x36xbf16, #tpu.memory_space<vmem>>, vector<49x4xbf16>
    tpu.vector_store %arg9[%c335, %c28_60], %43 {strides = array<i32>} : memref<384x36xbf16, #tpu.memory_space<vmem>>, vector<49x4xbf16>,
    %c0_61 = arith.constant 0 : index
    %c50 = arith.constant 50 : index
    %c0_62 = arith.constant 0 : index
    %45 = vector.load %arg3[%c0_61, %c50, %c0_62] : memref<1x384x4xbf16, #tpu.memory_space<vmem>>, vector<1x334x4xbf16>
    %46 = vector.shape_cast %45 : vector<1x334x4xbf16> to vector<334x4xbf16>
    %c0_63 = arith.constant 0 : index
    %c32 = arith.constant 32 : index
    %47 = vector.load %arg9[%c0_63, %c32] : memref<384x36xbf16, #tpu.memory_space<vmem>>, vector<334x4xbf16>
    tpu.vector_store %arg9[%c0_63, %c32], %46 {strides = array<i32>} : memref<384x36xbf16, #tpu.memory_space<vmem>>, vector<334x4xbf16>,
    %c0_64 = arith.constant 0 : index
    %c0_65 = arith.constant 0 : index
    %c0_66 = arith.constant 0 : index
    %c0_67 = arith.constant 0 : index
    %48 = vector.load %arg4[%c0_64, %c0_65, %c0_66, %c0_67] : memref<1x1x56x4xbf16, #tpu.memory_space<vmem>>, vector<1x1x50x4xbf16>
    %49 = vector.shape_cast %48 : vector<1x1x50x4xbf16> to vector<50x4xbf16>
    %c334 = arith.constant 334 : index
    %c32_68 = arith.constant 32 : index
    %50 = vector.load %arg9[%c334, %c32_68] : memref<384x36xbf16, #tpu.memory_space<vmem>>, vector<50x4xbf16>
    tpu.vector_store %arg9[%c334, %c32_68], %49 {strides = array<i32>} : memref<384x36xbf16, #tpu.memory_space<vmem>>, vector<50x4xbf16>,
    %c0_69 = arith.constant 0 : index
    %c0_70 = arith.constant 0 : index
    %51 = vector.load %arg9[%c0_69, %c0_70] : memref<384x36xbf16, #tpu.memory_space<vmem>>, vector<384x36xbf16>
    %c0_71 = arith.constant 0 : index
    %c0_72 = arith.constant 0 : index
    %52 = vector.load %arg5[%c0_71, %c0_72] : memref<36x128xbf16, #tpu.memory_space<vmem>>, vector<36x128xbf16>
    %cst = arith.constant dense<0.000000e+00> : vector<384x128xf32>
    %53 = tpu.matmul %51, %52, %cst {dimension_numbers = #tpu.dot_dimension_numbers<[1], [0], [0], [1], [0, 0, 1, 1], [], []>} : vector<384x36xbf16>, vector<36x128xbf16>, vector<384x128xf32> -> vector<384x128xf32>
    %c0_73 = arith.constant 0 : index
    %c0_74 = arith.constant 0 : index
    %54 = vector.load %arg6[%c0_73, %c0_74] : memref<1x128xf32, #tpu.memory_space<vmem>>, vector<1x128xf32>
    %55 = vector.broadcast %54 : vector<1x128xf32> to vector<384x128xf32>
    %56 = arith.mulf %53, %55 : vector<384x128xf32>
    %c0_75 = arith.constant 0 : index
    %c0_76 = arith.constant 0 : index
    %57 = vector.load %arg7[%c0_75, %c0_76] : memref<1x128xf32, #tpu.memory_space<vmem>>, vector<1x128xf32>
    %58 = vector.broadcast %57 : vector<1x128xf32> to vector<384x128xf32>
    %59 = arith.addf %56, %58 : vector<384x128xf32>
    %60 = arith.negf %59 : vector<384x128xf32>
    %61 = math.exp %60 : vector<384x128xf32>
    %cst_77 = arith.constant 1.000000e+00 : f32
    %62 = vector.broadcast %cst_77 : f32 to vector<384x128xf32>
    %63 = arith.addf %62, %61 : vector<384x128xf32>
    %64 = arith.divf %62, %63 : vector<384x128xf32>
    %65 = arith.mulf %59, %64 : vector<384x128xf32>
    %66 = arith.truncf %65 : vector<384x128xf32> to vector<384x128xbf16>
    %c0_78 = arith.constant 0 : index
    %c0_79 = arith.constant 0 : index
    %c0_80 = arith.constant 0 : index
    %67 = vector.load %arg8[%c0_78, %c0_79, %c0_80] : memref<1x384x128xbf16, #tpu.memory_space<vmem>>, vector<1x384x128xbf16>
    %68 = vector.shape_cast %67 : vector<1x384x128xbf16> to vector<384x128xbf16>
    %69 = vector.shape_cast %66 : vector<384x128xbf16> to vector<1x384x128xbf16>
    tpu.vector_store %arg8[%c0_78, %c0_79, %c0_80], %69 {strides = array<i32>} : memref<1x384x128xbf16, #tpu.memory_space<vmem>>, vector<1x384x128xbf16>,
    return
  }
  func.func @transform_0(%arg0: i32, %arg1: i32, %arg2: i32) -> (i32, i32, i32) {
    %c0_i32 = arith.constant 0 : i32
    %c0_i32_0 = arith.constant 0 : i32
    return %arg0, %arg2, %c0_i32 : i32, i32, i32
  }
  func.func @transform_1(%arg0: i32, %arg1: i32, %arg2: i32) -> (i32, i32, i32, i32) {
    %c0_i32 = arith.constant 0 : i32
    %c0_i32_0 = arith.constant 0 : i32
    %c0_i32_1 = arith.constant 0 : i32
    return %arg0, %arg2, %c0_i32, %c0_i32_0 : i32, i32, i32, i32
  }
  func.func @transform_2(%arg0: i32, %arg1: i32, %arg2: i32) -> (i32, i32) {
    %c0_i32 = arith.constant 0 : i32
    %c0_i32_0 = arith.constant 0 : i32
    return %c0_i32, %arg1 : i32, i32
  }
  func.func @transform_3(%arg0: i32, %arg1: i32, %arg2: i32) -> (i32, i32) {
    %c0_i32 = arith.constant 0 : i32
    %c0_i32_0 = arith.constant 0 : i32
    return %c0_i32, %arg1 : i32, i32
  }
  func.func @transform_4(%arg0: i32, %arg1: i32, %arg2: i32) -> (i32, i32) {
    %c0_i32 = arith.constant 0 : i32
    %c0_i32_0 = arith.constant 0 : i32
    return %c0_i32, %arg1 : i32, i32
  }
  func.func @transform_5(%arg0: i32, %arg1: i32, %arg2: i32) -> (i32, i32, i32) {
    %c0_i32 = arith.constant 0 : i32
    return %arg0, %arg2, %arg1 : i32, i32, i32
  }
}

</mosaic_0001>

<bundles_post_ra>
// kernel: tpu_custom_call.1
= control target key start
LH: loop header
LB: loop body
LE: loop exit
PB: predicated region body
PF: predicated region fallthrough
CT: control target
= control target key end

     0   :  { %10 = vsyncpa [#allocation4], 0  ;;  %s10551_s0 = inlined_call_operand.vmem [shape: bf16[2,768,4], index: 0, kind: input, shape index: {}]   ;;  %s10552_s1 = inlined_call_operand.vmem [shape: bf16[2,1,72,4], index: 1, kind: input, shape index: {}]   ;;  %s10553_s2 = inlined_call_operand.vmem [shape: bf16[36,128], index: 2, kind: input, shape index: {}]   ;;  %s10554_s3 = inlined_call_operand.vmem [shape: f32[1,128], index: 3, kind: input, shape index: {}]   ;;  %s10555_s4 = inlined_call_operand.vmem [shape: f32[1,128], index: 4, kind: input, shape index: {}]   ;;  %s10556_s5 = inlined_call_operand.hbm [shape: bf16[2,384,128], index: 5, kind: output, shape index: {}]  }
   0x1   :  { %12 = vsyncpa [#allocation4 + $0x1], 0  ;;  %s7030_s18 = smov 0   ;;  %s7032_s19 = smov 0  }
   0x2   :  { %s7034_s20 = smov 0   ;;  %s7036_s21 = smov 0  }
   0x3   :  { %s7038_s22 = smov 0   ;;  %s7040_s23 = smov 0  }
   0x4 LB: > { %s6275_s24 = sadd.s32 4294967295, %s6989_s23   ;;  %s6276_s25 = sadd.s32 4294967294, %s6989_s23   ;;  %s6989_s23 = sphi %s7040_s23, %s18_s23   ;;  %s6985_s22 = sphi %s7038_s22, %s10631_s22   ;;  %s6981_s21 = sphi %s7036_s21, %s10630_s21   ;;  %s6977_s20 = sphi %s7034_s20, %s10629_s20   ;;  %s6973_s19 = sphi %s7032_s19, %s10628_s19   ;;  %s6969_s18 = sphi %s7030_s18, %s10627_s18  }
   0x5   : > { %s37_s26 = sadd.s32 1, %s6985_s22  ;;  %s182_s27 = sadd.s32 1, %s6977_s20 }
   0x6   : > { %p39_p0 = scmp.ge.s32.totalorder %s37_s26, 2  ;;  %p192_p1 = scmp.ne.s32.totalorder %s6977_s20, %s6973_s19 }
   0x7   : > { %p193_p2 = scmp.eq.s32.totalorder %s6275_s24, 1  ;;  %p198_p3 = scmp.ne.s32.totalorder %s6973_s19, %s6969_s18 }
   0x8   : > { %s10633_s26 = smov (%p39_p0, %s37_s26), 0  ;;  %p199_p5 = scmp.eq.s32.totalorder %s6276_s25, 1 }
   0x9   : > { %p7070_p4 = por %p193_p2, %p192_p1  ;;  %s175_s29 = ssub.s32 %s6985_s22, %s10633_s26 }
   0xa   : > { %p6282_p6 = scmp.ge.s32.totalorder %s6989_s23, 1  ;;  %p180_p7 = scmp.eq.s32.totalorder %s175_s29, 0 }
   0xb   : > { %p7077_p8 = por %p199_p5, %p198_p3  ;;  %p261_p9 = scmp.lt.s32.totalorder %s6989_s23, 3 }
   0xc   : > { %s7083_s6 = scalar_select %p180_p7, %s6977_s20, %s182_s27  }
   0xd   : > { %p262_p10 = pnand %p6282_p6, %p261_p9 }
   0xe   : > { %p313_p11 = scmp.lt.s32.totalorder (!%p262_p10), %s6981_s21, 1  ;;  %s6991_s12 = smov (!%p262_p10), 4  }
   0xf   : > { %265 = sbr.rel (%p262_p10) target bundleno = 1369 (0x559), region = 40  ;;  %s6992_s17 = smov (!%p262_p10), 8  }
  0x10   : > { %s6993_s24 = smov (!%p262_p10), 12   ;;  %s6994_s25 = smov (!%p262_p10), 16  }
  0x11   : > { %s6995_s27 = smov (!%p262_p10), 20   ;;  %s6996_s29 = smov (!%p262_p10), 24  }
  0x14   : > { %s7087_s7 = scalar_select %p313_p11, %s6981_s21, 1  ;;  %vm488_vm0 = vsmask.f32 3328  ;;  %vm489_vm1 = vsmask.f32 7440  ;;  %vm391_vm3 = vcmask 27648  }
  0x15   : > { %vm7103_vm2 = vmor %vm488_vm0, %vm489_vm1  ;;  %vm1114_vm4 = vcmask 60448   ;;  %vm1277_vm5 = vcmask 1042432   ;;  %vm1278_vm6 = vcmask 1046532   ;;  %vm1567_vm9 = vcmask 93248   ;;  %v9391_v24 = vld [vmem:[%s10554_s3] ss:$0 sm:$0xff] }
  0x16   : > { %s6646_s8 = smul.u32 384, %s7087_s7  ;;  %vm7362_vm7 = vmor %vm1277_vm5, %vm1278_vm6  ;;  %vm1175_vm10 = vcmask 60451   ;;  %vm1176_vm11 = vsmask.f32 7950  ;;  %vm1850_vm13 = vcmask 126048   ;;  %vm1623_vm14 = vcmask 93251  }
  0x17   : > { %s6647_s13 = smul.u32 36, %s7087_s7  ;;  %vm1163_vm8 = vmand %vm1114_vm4, %vm488_vm0  ;;  %vm1615_vm15 = vcmask 92224   ;;  %vm2543_vm1 = vcmask 158848   ;;  %vm2643_vm5 = vcmask 158851   ;;  %s6997_s7 = smov 28  }
  0x18   : > { %s7093_s11 = scalar_lea.vmem %s10551_s0, %s6646_s8  ;;  %vm1177_vm12 = vmand %vm1175_vm10, %vm1176_vm11  ;;  %vm3087_vm10 = vcmask 191651   ;;  %s6998_s8 = smov 32  }
  0x19   : > { %v442_v0 = vld [vmem:[%s7093_s11 + $0x8] sm:$0xf]  ;;  %v443_v1 = vld [vmem:[%s7093_s11 + $0xc] sm:$0xf]  ;;  %v440_v2 = vld [vmem:[%s7093_s11] sm:$0xf]  ;;  %s7342_s16 = scalar_lea.vmem %s10552_s1, %s6647_s13 }
  0x1a   : > { %v511_v3 = vshll.u32 %v442_v0, 16  ;;  %v515_v4 = vshrl.u32 %v442_v0, 16  ;;  %v521_v5 = vshll.u32 %v443_v1, 16  ;;  %v525_v6 = vshrl.u32 %v443_v1, 16  ;;  %v441_v7 = vld [vmem:[%s7093_s11 + $0x4] sm:$0xf]  ;;  %vm2644_vm6 = vmand %vm2643_vm5, %vm1176_vm11 }
  0x1b   : > { %v492_v8 = vshrl.u32 %v440_v2, 16  ;;  %v495_v9 = vshll.u32 %v440_v2, 16  ;;  %v501_v10 = vshll.u32 %v441_v7, 16  ;;  %v505_v11 = vshrl.u32 %v441_v7, 16  ;;  %v444_v12 = vld [vmem:[%s7093_s11 + $0x10] sm:$0xf] }
  0x1c   : > { %v513_v13 = vrot.slane %v511_v3, 5  ;;  %v517_v14 = vrot.slane %v515_v4, 4  ;;  %v523_v15 = vrot.slane %v521_v5, 5  ;;  %v527_v16 = vrot.slane %v525_v6, 4  ;;  %v447_v17 = vld [vmem:[%s7093_s11 + $0x1c] sm:$0xf] }
  0x1d   : > { %v494_v18 = vrot.slane %v492_v8, 4  ;;  %v497_v19 = vrot.slane %v495_v9, 5  ;;  %v507_v20 = vrot.slane %v505_v11, 4  ;;  %v531_v23 = vshll.u32 %v444_v12, 16  ;;  %v446_v29 = vld [vmem:[%s7093_s11 + $0x18] sm:$0xf] }
  0x1e   : > { %v518_v21 = vor.u32 %v517_v14, %v513_v13  ;;  %v528_v22 = vor.u32 %v527_v16, %v523_v15  ;;  %v503_v26 = vrot.slane %v501_v10, 5  ;;  %v561_v27 = vshll.u32 %v447_v17, 16  ;;  %v445_v33 = vld [vmem:[%s7093_s11 + $0x14] sm:$0xf]  ;;  %v448_v42 = vld [vmem:[%s7093_s11 + $0x20] sm:$0xf] }
  0x1f   : > { %v498_v25 = vor.u32 %v497_v19, %v494_v18  ;;  %v565_v28 = vshrl.u32 %v447_v17, 16  ;;  %v533_v36 = vrot.slane %v531_v23, 5  ;;  %v551_v37 = vshll.u32 %v446_v29, 16  ;;  %v450_v49 = vld [vmem:[%s7093_s11 + $0x28] sm:$0xf] }
  0x20   : > { %v519_v30 = vrot.slane %v518_v21, 4  ;;  %v508_v32 = vor.u32 %v507_v20, %v503_v26  ;;  %v529_v35 = vrot.slane %v528_v22, 4  ;;  %v563_v39 = vrot.slane %v561_v27, 5  ;;  %v449_v52 = vld [vmem:[%s7093_s11 + $0x24] sm:$0xf] }
  0x21   : > { %v499_v31 = vrot.slane %v498_v25, 4  ;;  %v567_v40 = vrot.slane %v565_v28, 4  ;;  %v555_v41 = vshrl.u32 %v446_v29, 16  ;;  %v535_v43 = vshrl.u32 %v444_v12, 16  ;;  %v451_v6 = vld [vmem:[%s7093_s11 + $0x2c] sm:$0xf] }
  0x22   : > { %v524_v34 = vsel %vm7103_vm2, %v519_v30, %v523_v15  ;;  %v541_v44 = vshll.u32 %v445_v33, 16  ;;  %v545_v45 = vshrl.u32 %v445_v33, 16  ;;  %v509_v46 = vrot.slane %v508_v32, 4  ;;  %v453_v12 = vld [vmem:[%s7093_s11 + $0x34] sm:$0xf] }
  0x23   : > { %974 = vrot.lane.b32.xlu1 %v524_v34, %s6991_s12  ;;  %v504_v38 = vsel %vm7103_vm2, %v499_v31, %v503_v26  ;;  %v553_v47 = vrot.slane %v551_v37, 5  ;;  %v557_v48 = vrot.slane %v555_v41, 4  ;;  %v537_v50 = vrot.slane %v535_v43, 4  ;;  %v452_v14 = vld [vmem:[%s7093_s11 + $0x30] sm:$0xf] }
  0x24   : > { %970 = vrot.lane.b32.xlu0 %v504_v38, %s6991_s12  ;;  %v547_v51 = vrot.slane %v545_v45, 4  ;;  %v534_v53 = vsel %vm7103_vm2, %v529_v35, %v533_v36  ;;  %v568_v54 = vor.u32 %v567_v40, %v563_v39  ;;  %v571_v55 = vshll.u32 %v448_v42, 16  ;;  %v454_v31 = vld [vmem:[%s7093_s11 + $0x38] sm:$0xf]  ;;  %v456_v37 = vld [vmem:[%s7093_s11 + $0x40] sm:$0xf] }
  0x25   : > { %v538_v56 = vor.u32 %v537_v50, %v533_v36  ;;  %v543_v57 = vrot.slane %v541_v44, 5  ;;  %v591_v58 = vshll.u32 %v450_v49, 16  ;;  %v595_v59 = vshrl.u32 %v450_v49, 16 }
  0x26   : > { %v514_v60 = vsel %vm7103_vm2, %v509_v46, %v513_v13  ;;  %v558_v61 = vor.u32 %v557_v48, %v553_v47  ;;  %v581_v62 = vshll.u32 %v449_v52, 16  ;;  %v585_v63 = vshrl.u32 %v449_v52, 16 }
  0x27   : > { %v539_v0 = vrot.slane %v538_v56, 4  ;;  %v548_v1 = vor.u32 %v547_v51, %v543_v57  ;;  %v573_v2 = vrot.slane %v571_v55, 5  ;;  %v575_v3 = vshrl.u32 %v448_v42, 16 }
  0x28   : > { %v569_v4 = vrot.slane %v568_v54, 4  ;;  %v593_v7 = vrot.slane %v591_v58, 5  ;;  %v597_v8 = vrot.slane %v595_v59, 4  ;;  %v559_v9 = vrot.slane %v558_v61, 4  ;;  %v457_v59 = vld [vmem:[%s7093_s11 + $0x44] sm:$0xf] }
  0x29   : > { %v544_v5 = vsel %vm7103_vm2, %v539_v0, %v543_v57  ;;  %v583_v10 = vrot.slane %v581_v62, 5  ;;  %v587_v11 = vrot.slane %v585_v63, 4  ;;  %v549_v13 = vrot.slane %v548_v1, 4  ;;  %v459_v57 = vld [vmem:[%s7093_s11 + $0x4c] sm:$0xf] }
  0x2a   : > { %978 = vrot.lane.b32.xlu2 %v544_v5, %s6991_s12  ;;  %v601_v15 = vshll.u32 %v451_v6, 16  ;;  %v577_v16 = vrot.slane %v575_v3, 4  ;;  %v574_v17 = vsel %vm7103_vm2, %v569_v4, %v573_v2  ;;  %v598_v18 = vor.u32 %v597_v8, %v593_v7  ;;  %v458_v63 = vld [vmem:[%s7093_s11 + $0x48] sm:$0xf] }
  0x2b   : > { %976 = vrot.lane.b32.xlu1 %v534_v53, %s6991_s12  ;;  %v621_v19 = vshll.u32 %v453_v12, 16  ;;  %v625_v20 = vshrl.u32 %v453_v12, 16  ;;  %v564_v21 = vsel %vm7103_vm2, %v559_v9, %v563_v39  ;;  %v588_v22 = vor.u32 %v587_v11, %v583_v10  ;;  %v455_v39 = vld [vmem:[%s7093_s11 + $0x3c] sm:$0xf] }
  0x2c   : > { %972 = vrot.lane.b32.xlu0 %v514_v60, %s6991_s12  ;;  %v611_v23 = vshll.u32 %v452_v14, 16  ;;  %v615_v25 = vshrl.u32 %v452_v14, 16  ;;  %v605_v26 = vshrl.u32 %v451_v6, 16  ;;  %v554_v27 = vsel %vm7103_vm2, %v549_v13, %v553_v47 }
  0x2d   : > { %v578_v28 = vor.u32 %v577_v16, %v573_v2  ;;  %v599_v29 = vrot.slane %v598_v18, 4  ;;  %v603_v30 = vrot.slane %v601_v15, 5  ;;  %v623_v32 = vrot.slane %v621_v19, 5 }
  0x2e   : > { %v627_v33 = vrot.slane %v625_v20, 4  ;;  %v589_v34 = vrot.slane %v588_v22, 4  ;;  %v613_v35 = vrot.slane %v611_v23, 5  ;;  %v617_v36 = vrot.slane %v615_v25, 4  ;;  %v461_v23 = vld [vmem:[%s7093_s11 + $0x54] sm:$0xf] }
  0x2f   : > { %v579_v38 = vrot.slane %v578_v28, 4  ;;  %v607_v40 = vrot.slane %v605_v26, 4  ;;  %v631_v41 = vshll.u32 %v454_v31, 16  ;;  %v604_v42 = vsel %vm7103_vm2, %v599_v29, %v603_v30 }
  0x30   : > { %v628_v43 = vor.u32 %v627_v33, %v623_v32  ;;  %v651_v44 = vshll.u32 %v456_v37, 16  ;;  %v655_v45 = vshrl.u32 %v456_v37, 16  ;;  %v594_v46 = vsel %vm7103_vm2, %v589_v34, %v593_v7 }
  0x31   : > { %v618_v47 = vor.u32 %v617_v36, %v613_v35  ;;  %v641_v48 = vshll.u32 %v455_v39, 16  ;;  %v645_v49 = vshrl.u32 %v455_v39, 16  ;;  %v635_v50 = vshrl.u32 %v454_v31, 16 }
  0x32   : > { %980 = vrot.lane.b32.xlu2 %v554_v27, %s6991_s12  ;;  %v584_v51 = vsel %vm7103_vm2, %v579_v38, %v583_v10  ;;  %v608_v52 = vor.u32 %v607_v40, %v603_v30  ;;  %v629_v53 = vrot.slane %v628_v43, 4  ;;  %v633_v54 = vrot.slane %v631_v41, 5  ;;  %v463_v40 = vld [vmem:[%s7093_s11 + $0x5c] sm:$0xf] }
  0x33   : > { %984 = vrot.lane.b32.xlu1 %v574_v17, %s6991_s12  ;;  %v653_v55 = vrot.slane %v651_v44, 5  ;;  %v657_v56 = vrot.slane %v655_v45, 4  ;;  %v619_v58 = vrot.slane %v618_v47, 4  ;;  %v643_v60 = vrot.slane %v641_v48, 5  ;;  %v460_v17 = vld [vmem:[%s7093_s11 + $0x50] sm:$0xf] }
  0x34   : > { %982 = vrot.lane.b32.xlu0 %v564_v21, %s6991_s12  ;;  %v647_v61 = vrot.slane %v645_v49, 4  ;;  %v609_v62 = vrot.slane %v608_v52, 4  ;;  %v637_v0 = vrot.slane %v635_v50, 4  ;;  %v681_v1 = vshll.u32 %v459_v57, 16  ;;  %v462_v21 = vld [vmem:[%s7093_s11 + $0x58] sm:$0xf] }
  0x35   : > { %v685_v2 = vshrl.u32 %v459_v57, 16  ;;  %v634_v3 = vsel %vm7103_vm2, %v629_v53, %v633_v54  ;;  %v658_v4 = vor.u32 %v657_v56, %v653_v55  ;;  %v661_v5 = vshll.u32 %v457_v59, 16  ;;  %v464_v48 = vld [vmem:[%s7093_s11 + $0x60] sm:$0xf] }
  0x36   : > { %v624_v6 = vsel %vm7103_vm2, %v619_v58, %v623_v32  ;;  %v648_v7 = vor.u32 %v647_v61, %v643_v60  ;;  %v671_v8 = vshll.u32 %v458_v63, 16  ;;  %v675_v9 = vshrl.u32 %v458_v63, 16 }
  0x37   : > { %v665_v10 = vshrl.u32 %v457_v59, 16  ;;  %v614_v11 = vsel %vm7103_vm2, %v609_v62, %v613_v35  ;;  %v638_v12 = vor.u32 %v637_v0, %v633_v54  ;;  %v683_v13 = vrot.slane %v681_v1, 5  ;;  %v466_v0 = vld [vmem:[%s7093_s11 + $0x68] sm:$0xf] }
  0x38   : > { %v687_v14 = vrot.slane %v685_v2, 4  ;;  %v659_v15 = vrot.slane %v658_v4, 4  ;;  %v663_v16 = vrot.slane %v661_v5, 5  ;;  %v649_v18 = vrot.slane %v648_v7, 4 }
  0x39   : > { %v673_v19 = vrot.slane %v671_v8, 5  ;;  %v677_v20 = vrot.slane %v675_v9, 4  ;;  %v639_v22 = vrot.slane %v638_v12, 4  ;;  %v667_v25 = vrot.slane %v665_v10, 4  ;;  %v467_v8 = vld [vmem:[%s7093_s11 + $0x6c] sm:$0xf] }
  0x3a   : > { %986 = vrot.lane.b32.xlu2 %v584_v51, %s6991_s12  ;;  %v688_v26 = vor.u32 %v687_v14, %v683_v13  ;;  %v691_v27 = vshll.u32 %v460_v17, 16  ;;  %v664_v28 = vsel %vm7103_vm2, %v659_v15, %v663_v16  ;;  %v711_v29 = vshll.u32 %v462_v21, 16 }
  0x3b   : > { %990 = vrot.lane.b32.xlu1 %v604_v42, %s6991_s12  ;;  %v715_v30 = vshrl.u32 %v462_v21, 16  ;;  %v654_v31 = vsel %vm7103_vm2, %v649_v18, %v653_v55  ;;  %v678_v32 = vor.u32 %v677_v20, %v673_v19  ;;  %v701_v33 = vshll.u32 %v461_v23, 16 }
  0x3c   : > { %988 = vrot.lane.b32.xlu0 %v594_v46, %s6991_s12  ;;  %v705_v34 = vshrl.u32 %v461_v23, 16  ;;  %v695_v35 = vshrl.u32 %v460_v17, 16  ;;  %v644_v36 = vsel %vm7103_vm2, %v639_v22, %v643_v60  ;;  %v668_v37 = vor.u32 %v667_v25, %v663_v16  ;;  %v465_v46 = vld [vmem:[%s7093_s11 + $0x64] sm:$0xf]  ;;  %v469_v25 = vld [vmem:[%s7093_s11 + $0x74] sm:$0xf] }
  0x3d   : > { %v689_v38 = vrot.slane %v688_v26, 4  ;;  %v693_v39 = vrot.slane %v691_v27, 5  ;;  %v713_v41 = vrot.slane %v711_v29, 5  ;;  %v717_v42 = vrot.slane %v715_v30, 4 }
  0x3e   : > { %v679_v43 = vrot.slane %v678_v32, 4  ;;  %v703_v44 = vrot.slane %v701_v33, 5  ;;  %v707_v45 = vrot.slane %v705_v34, 4  ;;  %v669_v47 = vrot.slane %v668_v37, 4  ;;  %v470_v33 = vld [vmem:[%s7093_s11 + $0x78] sm:$0xf] }
  0x3f   : > { %v697_v49 = vrot.slane %v695_v35, 4  ;;  %v694_v50 = vsel %vm7103_vm2, %v689_v38, %v693_v39  ;;  %v718_v51 = vor.u32 %v717_v42, %v713_v41  ;;  %v721_v52 = vshll.u32 %v463_v40, 16 }
  0x40   : > { %v741_v53 = vshll.u32 %v465_v46, 16  ;;  %v745_v54 = vshrl.u32 %v465_v46, 16  ;;  %v684_v55 = vsel %vm7103_vm2, %v679_v43, %v683_v13  ;;  %v708_v56 = vor.u32 %v707_v45, %v703_v44 }
  0x41   : > { %v731_v57 = vshll.u32 %v464_v48, 16  ;;  %v735_v58 = vshrl.u32 %v464_v48, 16  ;;  %v725_v59 = vshrl.u32 %v463_v40, 16  ;;  %v674_v60 = vsel %vm7103_vm2, %v669_v47, %v673_v19  ;;  %v474_v47 = vld [vmem:[%s7093_s11 + $0x88] sm:$0xf] }
  0x42   : > { %992 = vrot.lane.b32.xlu2 %v614_v11, %s6991_s12  ;;  %v698_v61 = vor.u32 %v697_v49, %v693_v39  ;;  %v719_v62 = vrot.slane %v718_v51, 4  ;;  %v723_v63 = vrot.slane %v721_v52, 5  ;;  %v743_v1 = vrot.slane %v741_v53, 5  ;;  %v473_v52 = vld [vmem:[%s7093_s11 + $0x84] sm:$0xf] }
  0x43   : > { %996 = vrot.lane.b32.xlu1 %v634_v3, %s6991_s12  ;;  %v747_v2 = vrot.slane %v745_v54, 4  ;;  %v709_v3 = vrot.slane %v708_v56, 4  ;;  %v733_v4 = vrot.slane %v731_v57, 5  ;;  %v737_v5 = vrot.slane %v735_v58, 4  ;;  %v472_v54 = vld [vmem:[%s7093_s11 + $0x80] sm:$0xf] }
  0x44   : > { %994 = vrot.lane.b32.xlu0 %v624_v6, %s6991_s12  ;;  %v468_v6 = vld [vmem:[%s7093_s11 + $0x70] sm:$0xf]  ;;  %v699_v7 = vrot.slane %v698_v61, 4  ;;  %v727_v9 = vrot.slane %v725_v59, 4  ;;  %v751_v10 = vshll.u32 %v466_v0, 16  ;;  %v724_v11 = vsel %vm7103_vm2, %v719_v62, %v723_v63 }
  0x45   : > { %v748_v12 = vor.u32 %v747_v2, %v743_v1  ;;  %v771_v13 = vshll.u32 %v468_v6, 16  ;;  %v775_v14 = vshrl.u32 %v468_v6, 16  ;;  %v714_v15 = vsel %vm7103_vm2, %v709_v3, %v713_v41 }
  0x46   : > { %v738_v16 = vor.u32 %v737_v5, %v733_v4  ;;  %v761_v17 = vshll.u32 %v467_v8, 16  ;;  %v765_v18 = vshrl.u32 %v467_v8, 16  ;;  %v755_v19 = vshrl.u32 %v466_v0, 16 }
  0x47   : > { %v704_v20 = vsel %vm7103_vm2, %v699_v7, %v703_v44  ;;  %v728_v21 = vor.u32 %v727_v9, %v723_v63  ;;  %v749_v22 = vrot.slane %v748_v12, 4  ;;  %v753_v23 = vrot.slane %v751_v10, 5  ;;  %v475_v9 = vld [vmem:[%s7093_s11 + $0x8c] sm:$0xf] }
  0x48   : > { %v773_v26 = vrot.slane %v771_v13, 5  ;;  %v777_v27 = vrot.slane %v775_v14, 4  ;;  %v763_v29 = vrot.slane %v761_v17, 5  ;;  %v767_v30 = vrot.slane %v765_v18, 4  ;;  %v477_v14 = vld [vmem:[%s7093_s11 + $0x94] sm:$0xf] }
  0x49   : > { %v729_v32 = vrot.slane %v728_v21, 4  ;;  %v757_v34 = vrot.slane %v755_v19, 4  ;;  %v781_v35 = vshll.u32 %v469_v25, 16  ;;  %v791_v42 = vshll.u32 %v470_v33, 16 }
  0x4a   : > { %998 = vrot.lane.b32.xlu2 %v644_v36, %s6991_s12  ;;  %v754_v36 = vsel %vm7103_vm2, %v749_v22, %v753_v23  ;;  %v778_v37 = vor.u32 %v777_v27, %v773_v26  ;;  %v768_v41 = vor.u32 %v767_v30, %v763_v29  ;;  %v795_v43 = vshrl.u32 %v470_v33, 16  ;;  %v478_v33 = vld [vmem:[%s7093_s11 + $0x98] sm:$0xf] }
  0x4b   : > { %1002 = vrot.lane.b32.xlu1 %v664_v28, %s6991_s12  ;;  %v739_v28 = vrot.slane %v738_v16, 4  ;;  %v785_v44 = vshrl.u32 %v469_v25, 16  ;;  %v734_v45 = vsel %vm7103_vm2, %v729_v32, %v733_v4  ;;  %v758_v46 = vor.u32 %v757_v34, %v753_v23 }
  0x4c   : > { %1000 = vrot.lane.b32.xlu0 %v654_v31, %s6991_s12  ;;  %v471_v31 = vld [vmem:[%s7093_s11 + $0x7c] sm:$0xf]  ;;  %v779_v48 = vrot.slane %v778_v37, 4  ;;  %v783_v49 = vrot.slane %v781_v35, 5  ;;  %v769_v53 = vrot.slane %v768_v41, 4  ;;  %v797_v56 = vrot.slane %v795_v43, 4 }
  0x4d   : > { %v801_v38 = vshll.u32 %v471_v31, 16  ;;  %v805_v39 = vshrl.u32 %v471_v31, 16  ;;  %v744_v40 = vsel %vm7103_vm2, %v739_v28, %v743_v1  ;;  %v759_v57 = vrot.slane %v758_v46, 4  ;;  %v479_v41 = vld [vmem:[%s7093_s11 + $0x9c] sm:$0xf] }
  0x4e   : > { %v831_v58 = vshll.u32 %v474_v47, 16  ;;  %v835_v59 = vshrl.u32 %v474_v47, 16  ;;  %v821_v61 = vshll.u32 %v473_v52, 16  ;;  %v825_v62 = vshrl.u32 %v473_v52, 16  ;;  %v345_v43 = vld [vmem:[%s7093_s11 + $0x8] sm:$0xf] }
  0x4f   : > { %v807_v51 = vrot.slane %v805_v39, 4  ;;  %v784_v63 = vsel %vm7103_vm2, %v779_v48, %v783_v49  ;;  %v811_v1 = vshll.u32 %v472_v54, 16  ;;  %v774_v2 = vsel %vm7103_vm2, %v769_v53, %v773_v26  ;;  %v480_v39 = vld [vmem:[%s7093_s11 + $0xa0] sm:$0xf]  ;;  %394 = vst.msk [vmem:[#allocation2 + $0x8] sm:$0xf] %vm391_vm3, %v345_v43 }
  0x50   : > { %v815_v3 = vshrl.u32 %v472_v54, 16  ;;  %v764_v5 = vsel %vm7103_vm2, %v759_v57, %v763_v29  ;;  %v7220_v6 = vrot.slane %v831_v58, 5  ;;  %v837_v7 = vrot.slane %v835_v59, 4  ;;  %v481_v58 = vld [vmem:[%s7093_s11 + $0xa4] sm:$0xf] }
  0x51   : > { %v7224_v10 = vrot.slane %v821_v61, 5  ;;  %v813_v13 = vrot.slane %v811_v1, 5  ;;  %v841_v18 = vshll.u32 %v475_v9, 16  ;;  %v861_v22 = vshll.u32 %v477_v14, 16 }
  0x52   : > { %1004 = vrot.lane.b32.xlu2 %v674_v60, %s6991_s12  ;;  %v787_v60 = vrot.slane %v785_v44, 4  ;;  %v838_v17 = vor.u32 %v837_v7, %v7220_v6  ;;  %v865_v23 = vshrl.u32 %v477_v14, 16  ;;  %v845_v29 = vshrl.u32 %v475_v9, 16  ;;  %v343_v44 = vld [vmem:[%s7093_s11] sm:$0xf] }
  0x53   : > { %1008 = vrot.lane.b32.xlu1 %v694_v50, %s6991_s12  ;;  %v803_v50 = vrot.slane %v801_v38, 5  ;;  %v843_v31 = vrot.slane %v841_v18, 5  ;;  %v891_v46 = vshll.u32 %v480_v39, 16  ;;  %v895_v47 = vshrl.u32 %v480_v39, 16  ;;  %392 = vst.msk [vmem:[#allocation2] sm:$0xf] %vm391_vm3, %v343_v44 }
  0x54   : > { %1006 = vrot.lane.b32.xlu0 %v684_v55, %s6991_s12  ;;  %v793_v55 = vrot.slane %v791_v42, 5  ;;  %v788_v8 = vor.u32 %v787_v60, %v783_v49  ;;  %v839_v30 = vrot.slane %v838_v17, 4  ;;  %v867_v37 = vrot.slane %v865_v23, 4  ;;  %v347_v42 = vld [vmem:[%s7093_s11 + $0x10] sm:$0xf] }
  0x55   : > { %v808_v0 = vor.u32 %v807_v51, %v803_v50  ;;  %396 = vst.msk [vmem:[#allocation2 + $0x10] sm:$0xf] %vm391_vm3, %v347_v42  ;;  %v847_v48 = vrot.slane %v845_v29, 4  ;;  %v881_v51 = vshll.u32 %v479_v41, 16  ;;  %v885_v52 = vshrl.u32 %v479_v41, 16 }
  0x56   : > { %v798_v4 = vor.u32 %v797_v56, %v793_v55  ;;  %v789_v19 = vrot.slane %v788_v8, 4  ;;  %v844_v53 = vsel %vm7103_vm2, %v839_v30, %v843_v31  ;;  %v7265_v59 = vrot.slane %v891_v46, 5  ;;  %v346_v7 = vld [vmem:[%s7093_s11 + $0xc] sm:$0xf]  ;;  %v484_v23 = vld [vmem:[%s7093_s11 + $0xb0] sm:$0xf] }
  0x57   : > { %v809_v12 = vrot.slane %v808_v0, 4  ;;  %v897_v60 = vrot.slane %v895_v47, 4  ;;  %v848_v61 = vor.u32 %v847_v48, %v843_v31  ;;  %v7268_v0 = vrot.slane %v881_v51, 5  ;;  %395 = vst.msk [vmem:[#allocation2 + $0xc] sm:$0xf] %vm391_vm3, %v346_v7 }
  0x58   : > { %v799_v16 = vrot.slane %v798_v4, 4  ;;  %v794_v32 = vsel %vm7103_vm2, %v789_v19, %v793_v55  ;;  %v875_v55 = vshrl.u32 %v478_v33, 16  ;;  %v887_v1 = vrot.slane %v885_v52, 4  ;;  %v348_v4 = vld [vmem:[%s7093_s11 + $0x14] sm:$0xf] }
  0x59   : > { %v814_v26 = vsel %vm7103_vm2, %v809_v12, %v813_v13  ;;  %397 = vst.msk [vmem:[#allocation2 + $0x14] sm:$0xf] %vm391_vm3, %v348_v4  ;;  %v898_v8 = vor.u32 %v897_v60, %v7265_v59  ;;  %v849_v9 = vrot.slane %v848_v61, 4  ;;  %v905_v19 = vshrl.u32 %v481_v58, 16  ;;  %v486_v30 = vld [vmem:[%s7093_s11 + $0xb8] sm:$0xf] }
  0x5a   : > { %1010 = vrot.lane.b32.xlu2 %v704_v20, %s6991_s12  ;;  %v817_v20 = vrot.slane %v815_v3, 4  ;;  %v804_v28 = vsel %vm7103_vm2, %v799_v16, %v803_v50  ;;  %v871_v50 = vshll.u32 %v478_v33, 16  ;;  %v482_v3 = vld [vmem:[%s7093_s11 + $0xa8] sm:$0xf]  ;;  %v888_v17 = vor.u32 %v887_v1, %v7268_v0  ;;  %v351_v33 = vld [vmem:[%s7093_s11 + $0x20] sm:$0xf] }
  0x5b   : > { %1014 = vrot.lane.b32.xlu1 %v724_v11, %s6991_s12  ;;  %v827_v11 = vrot.slane %v825_v62, 4  ;;  %v911_v14 = vshll.u32 %v482_v3, 16  ;;  %400 = vst.msk [vmem:[#allocation2 + $0x20] sm:$0xf] %vm391_vm3, %v351_v33  ;;  %v951_v43 = vshll.u32 %v486_v30, 16  ;;  %v955_v44 = vshrl.u32 %v486_v30, 16 }
  0x5c   : > { %1012 = vrot.lane.b32.xlu0 %v714_v15, %s6991_s12  ;;  %v476_v15 = vld [vmem:[%s7093_s11 + $0x90] sm:$0xf]  ;;  %v818_v34 = vor.u32 %v817_v20, %v813_v13  ;;  %v899_v20 = vrot.slane %v898_v8, 4  ;;  %v889_v31 = vrot.slane %v888_v17, 4  ;;  %v935_v48 = vshrl.u32 %v484_v23, 16 }
  0x5d   : > { %v828_v21 = vor.u32 %v827_v11, %v7224_v10  ;;  %v851_v25 = vshll.u32 %v476_v15, 16  ;;  %v855_v27 = vshrl.u32 %v476_v15, 16  ;;  %v344_v11 = vld [vmem:[%s7093_s11 + $0x4] sm:$0xf]  ;;  %v915_v15 = vshrl.u32 %v482_v3, 16 }
  0x5e   : > { %393 = vst.msk [vmem:[#allocation2 + $0x4] sm:$0xf] %vm391_vm3, %v344_v11  ;;  %v894_v47 = vsel %vm7103_vm2, %v889_v31, %v7265_v59  ;;  %v354_v59 = vld [vmem:[%s7093_s11 + $0x2c] sm:$0xf]  ;;  %v353_v60 = vld [vmem:[%s7093_s11 + $0x28] sm:$0xf] }
  0x5f   : > { %v829_v35 = vrot.slane %v828_v21, 4  ;;  %v7242_v38 = vrot.slane %v851_v25, 5  ;;  %v917_v29 = vrot.slane %v915_v15, 4  ;;  %403 = vst.msk [vmem:[#allocation2 + $0x2c] sm:$0xf] %vm391_vm3, %v354_v59 }
  0x60   : > { %v352_v61 = vld [vmem:[%s7093_s11 + $0x24] sm:$0xf]  ;;  %402 = vst.msk [vmem:[#allocation2 + $0x28] sm:$0xf] %vm391_vm3, %v353_v60  ;;  %v1184_v33 = vld [vmem:[%s7093_s11 + $0xc] sm:$0xf] }
  0x61   : > { %v834_v54 = vsel %vm7103_vm2, %v829_v35, %v7220_v6  ;;  %v901_v6 = vshll.u32 %v481_v58, 16  ;;  %v349_v35 = vld [vmem:[%s7093_s11 + $0x18] sm:$0xf]  ;;  %401 = vst.msk [vmem:[#allocation2 + $0x24] sm:$0xf] %vm391_vm3, %v352_v61 }
  0x62   : > { %1016 = vrot.lane.b32.xlu2 %v734_v45, %s6991_s12  ;;  %v819_v45 = vrot.slane %v818_v34, 4  ;;  %v350_v34 = vld [vmem:[%s7093_s11 + $0x1c] sm:$0xf]  ;;  %398 = vst.msk [vmem:[#allocation2 + $0x18] sm:$0xf] %vm391_vm3, %v349_v35 }
  0x63   : > { %1020 = vrot.lane.b32.xlu1 %v754_v36, %s6991_s12  ;;  %v7240_v36 = vrot.slane %v861_v22, 5  ;;  %v903_v21 = vrot.slane %v901_v6, 5  ;;  %v854_v22 = vsel %vm7103_vm2, %v849_v9, %v7242_v38  ;;  %399 = vst.msk [vmem:[#allocation2 + $0x1c] sm:$0xf] %vm391_vm3, %v350_v34  ;;  %v360_v30 = vld [vmem:[%s7093_s11 + $0x44] sm:$0xf] }
  0x64   : > { %1018 = vrot.lane.b32.xlu0 %v744_v40, %s6991_s12  ;;  %v857_v40 = vrot.slane %v855_v27, 4  ;;  %v824_v57 = vsel %vm7103_vm2, %v819_v45, %v7224_v10  ;;  %v877_v10 = vrot.slane %v875_v55, 4  ;;  %v953_v55 = vrot.slane %v951_v43, 5  ;;  %v1183_v34 = vld [vmem:[%s7093_s11 + $0x8] sm:$0xf] }
  0x65   : > { %v868_v49 = vor.u32 %v867_v37, %v7240_v36  ;;  %v907_v37 = vrot.slane %v905_v19, 4  ;;  %409 = vst.msk [vmem:[#allocation2 + $0x44] sm:$0xf] %vm391_vm3, %v360_v30  ;;  %v1285_v43 = vrot.slane %v1183_v34, 5  ;;  %v367_v30 = vld [vmem:[%s7093_s11 + $0x60] sm:$0xf] }
  0x66   : > { %v858_v56 = vor.u32 %v857_v40, %v7242_v38  ;;  %v904_v38 = vsel %vm7103_vm2, %v899_v20, %v903_v21  ;;  %v931_v40 = vshll.u32 %v484_v23, 16  ;;  %v1181_v20 = vld [vmem:[%s7093_s11] sm:$0xe]  ;;  %v1167_v23 = vld [vmem:[%s7342_s16] sm:$0x1] }
  0x67   : > { %v869_v62 = vrot.slane %v868_v49, 4  ;;  %416 = vst.msk [vmem:[#allocation2 + $0x60] sm:$0xf] %vm391_vm3, %v367_v30 }
  0x68   : > { %v933_v52 = vrot.slane %v931_v40, 5 }
  0x6a   : > { %1022 = vrot.lane.b32.xlu2 %v764_v5, %s6991_s12  ;;  %v859_v5 = vrot.slane %v858_v56, 4  ;;  %v957_v56 = vrot.slane %v955_v44, 4  ;;  %v1185_v44 = vld [vmem:[%s7093_s11 + $0x10] sm:$0xf] }
  0x6b   : > { %1026 = vrot.lane.b32.xlu1 %v784_v63, %s6991_s12  ;;  %v873_v63 = vrot.slane %v871_v50, 5  ;;  %v908_v50 = vor.u32 %v907_v37, %v903_v21  ;;  %v1182_v21 = vld [vmem:[%s7093_s11 + $0x4] sm:$0xf]  ;;  %v359_v37 = vld [vmem:[%s7093_s11 + $0x40] sm:$0xf] }
  0x6c   : > { %1024 = vrot.lane.b32.xlu0 %v774_v2, %s6991_s12  ;;  %v483_v2 = vld [vmem:[%s7093_s11 + $0xac] sm:$0xf]  ;;  %v864_v18 = vsel %vm7103_vm2, %v859_v5, %v7240_v36  ;;  %408 = vst.msk [vmem:[#allocation2 + $0x40] sm:$0xf] %vm391_vm3, %v359_v37 }
  0x6d   : > { %v921_v12 = vshll.u32 %v483_v2, 16  ;;  %v925_v13 = vshrl.u32 %v483_v2, 16  ;;  %v874_v16 = vsel %vm7103_vm2, %v869_v62, %v873_v63  ;;  %v878_v25 = vor.u32 %v877_v10, %v873_v63  ;;  %v357_v10 = vld [vmem:[%s7093_s11 + $0x38] sm:$0xf] }
  0x6e   : > { %v909_v62 = vrot.slane %v908_v50, 4  ;;  %v937_v63 = vrot.slane %v935_v48, 4  ;;  %v958_v2 = vor.u32 %v957_v56, %v953_v55  ;;  %406 = vst.msk [vmem:[#allocation2 + $0x38] sm:$0xf] %vm391_vm3, %v357_v10  ;;  %v1287_v48 = vrot.slane %v1285_v43, 4 }
  0x6f   : > { %v927_v27 = vrot.slane %v925_v13, 4  ;;  %v879_v36 = vrot.slane %v878_v25, 4 }
  0x70   : > { %v938_v7 = vor.u32 %v937_v63, %v933_v52  ;;  %v959_v8 = vrot.slane %v958_v2, 4 }
  0x71   : > { %v884_v49 = vsel %vm7103_vm2, %v879_v36, %v7268_v0 }
  0x72   : > { %1028 = vrot.lane.b32.xlu2 %v794_v32, %s6991_s12  ;;  %v485_v32 = vld [vmem:[%s7093_s11 + $0xb4] sm:$0xf]  ;;  %v939_v15 = vrot.slane %v938_v7, 4 }
  0x73   : > { %1032 = vrot.lane.b32.xlu1 %v814_v26, %s6991_s12  ;;  %v923_v26 = vrot.slane %v921_v12, 5  ;;  %v941_v45 = vshll.u32 %v485_v32, 16  ;;  %v945_v46 = vshrl.u32 %v485_v32, 16 }
  0x74   : > { %1030 = vrot.lane.b32.xlu0 %v804_v28, %s6991_s12  ;;  %v7292_v28 = vrot.slane %v911_v14, 5 }
  0x75   : > { %v928_v39 = vor.u32 %v927_v27, %v923_v26  ;;  %v947_v58 = vrot.slane %v945_v46, 4  ;;  %v6285_v27 = vrot.slane %v1181_v20, 9 }
  0x76   : > { %v918_v41 = vor.u32 %v917_v29, %v7292_v28  ;;  %v914_v6 = vsel %vm7103_vm2, %v909_v62, %v7292_v28  ;;  %v1282_v28 = vrot.slane %v1182_v21, 5  ;;  %v1169_v29 = vshll.u32 %v1167_v23, 16  ;;  %v1188_v62 = vld [vmem:[%s7093_s11 + $0x1c] sm:$0xf]  ;;  %v369_v21 = vld [vmem:[%s7093_s11 + $0x68] sm:$0xf] }
  0x77   : > { %v929_v51 = vrot.slane %v928_v39, 4  ;;  %v358_v39 = vld [vmem:[%s7093_s11 + $0x3c] sm:$0xf]  ;;  %v1193_v23 = vld [vmem:[%s7093_s11 + $0x30] sm:$0xf] }
  0x78   : > { %v1283_v40 = vsel %vm7362_vm7, %v6285_v27, %v1282_v28  ;;  %407 = vst.msk [vmem:[#allocation2 + $0x3c] sm:$0xf] %vm391_vm3, %v358_v39 }
  0x79   : > { %v934_v1 = vsel %vm7103_vm2, %v929_v51, %v933_v52  ;;  %v1187_v51 = vld [vmem:[%s7093_s11 + $0x18] sm:$0xf]  ;;  %v1186_v52 = vld [vmem:[%s7093_s11 + $0x14] sm:$0xf]  ;;  %418 = vst.msk [vmem:[#allocation2 + $0x68] sm:$0xf] %vm391_vm3, %v369_v21 }
  0x7a   : > { %1034 = vrot.lane.b32.xlu2 %v824_v57, %s6991_s12  ;;  %v943_v57 = vrot.slane %v941_v45, 5  ;;  %v1297_v59 = vrot.slane %v1187_v51, 5  ;;  %v1294_v60 = vrot.slane %v1186_v52, 5  ;;  %v376_v21 = vld [vmem:[%s7093_s11 + $0x84] sm:$0xf] }
  0x7b   : > { %1038 = vrot.lane.b32.xlu1 %v844_v53, %s6991_s12  ;;  %v919_v53 = vrot.slane %v918_v41, 4  ;;  %v1171_v41 = vrot.slane %v1169_v29, 5  ;;  %425 = vst.msk [vmem:[#allocation2 + $0x84] sm:$0xf] %vm391_vm3, %v376_v21 }
  0x7c   : > { %1036 = vrot.lane.b32.xlu0 %v834_v54, %s6991_s12  ;;  %v487_v54 = vld [vmem:[%s7093_s11 + $0xbc] sm:$0xf]  ;;  %v948_v5 = vor.u32 %v947_v58, %v943_v57  ;;  %v1296_v2 = vrot.slane %v1294_v60, 4 }
  0x7d   : > { %v961_v3 = vshll.u32 %v487_v54, 16  ;;  %v924_v4 = vsel %vm7103_vm2, %v919_v53, %v923_v26  ;;  %v965_v13 = vshrl.u32 %v487_v54, 16  ;;  %v944_v26 = vsel %vm7103_vm2, %v939_v15, %v943_v57  ;;  %v361_v57 = vld [vmem:[%s7093_s11 + $0x48] sm:$0xf] }
  0x7e   : > { %v949_v12 = vrot.slane %v948_v5, 4  ;;  %v1284_v54 = vrot.slane %v1282_v28, 4  ;;  %410 = vst.msk [vmem:[#allocation2 + $0x48] sm:$0xf] %vm391_vm3, %v361_v57  ;;  %v1190_v5 = vld [vmem:[%s7093_s11 + $0x24] sm:$0xf]  ;;  %v1298_v15 = vsel %vm7362_vm7, %v1296_v2, %v1297_v59 }
  0x7f   : > { %v963_v9 = vrot.slane %v961_v3, 5  ;;  %v967_v25 = vrot.slane %v965_v13, 4  ;;  %v366_v3 = vld [vmem:[%s7093_s11 + $0x5c] sm:$0xf]  ;;  %v1306_v13 = vrot.slane %v1190_v5, 5 }
  0x80   : > { %v1286_v63 = vsel %vm7362_vm7, %v1284_v54, %v1285_v43  ;;  %415 = vst.msk [vmem:[#allocation2 + $0x5c] sm:$0xf] %vm391_vm3, %v366_v3  ;;  %v368_v28 = vld [vmem:[%s7093_s11 + $0x64] sm:$0xf]  ;;  %v1196_v43 = vld [vmem:[%s7093_s11 + $0x3c] sm:$0xf] }
  0x81   : > { %v964_v19 = vsel %vm7103_vm2, %v959_v8, %v963_v9  ;;  %v968_v35 = vor.u32 %v967_v25, %v963_v9  ;;  %v365_v9 = vld [vmem:[%s7093_s11 + $0x58] sm:$0xf]  ;;  %v1192_v25 = vld [vmem:[%s7093_s11 + $0x2c] sm:$0xf]  ;;  %417 = vst.msk [vmem:[#allocation2 + $0x64] sm:$0xf] %vm391_vm3, %v368_v28 }
  0x82   : > { %1040 = vrot.lane.b32.xlu2 %v854_v22, %s6991_s12  ;;  %v954_v22 = vsel %vm7103_vm2, %v949_v12, %v953_v55  ;;  %v362_v55 = vld [vmem:[%s7093_s11 + $0x4c] sm:$0xf]  ;;  %414 = vst.msk [vmem:[#allocation2 + $0x58] sm:$0xf] %vm391_vm3, %v365_v9  ;;  %v1312_v34 = vrot.slane %v1192_v25, 5  ;;  %v1324_v51 = vrot.slane %v1196_v43, 5 }
  0x83   : > { %1044 = vrot.lane.b32.xlu1 %v874_v16, %s6991_s12  ;;  %v356_v16 = vld [vmem:[%s7093_s11 + $0x34] sm:$0xf]  ;;  %v969_v45 = vrot.slane %v968_v35, 4  ;;  %411 = vst.msk [vmem:[#allocation2 + $0x4c] sm:$0xf] %vm391_vm3, %v362_v55 }
  0x84   : > { %1042 = vrot.lane.b32.xlu0 %v864_v18, %s6991_s12  ;;  %v979_v42 = vpop.permute.xlu2 %978  ;;  %v355_v18 = vld [vmem:[%s7093_s11 + $0x30] sm:$0xf]  ;;  %405 = vst.msk [vmem:[#allocation2 + $0x34] sm:$0xf] %vm391_vm3, %v356_v16  ;;  %v1191_v16 = vld [vmem:[%s7093_s11 + $0x28] sm:$0xf] }
  0x85   : > { %1119 = vst.msk [vmem:[#allocation2 + $0x10] sm:$0xf] %vm1114_vm4, %v979_v42  ;;  %v1288_v42 = vrot.slane %v1184_v33, 5  ;;  %v1315_v33 = vrot.slane %v1193_v23, 5  ;;  %v1197_v54 = vld [vmem:[%s7093_s11 + $0x40] sm:$0xf] }
  0x86   : > { %404 = vst.msk [vmem:[#allocation2 + $0x30] sm:$0xf] %vm391_vm3, %v355_v18  ;;  %v1308_v18 = vrot.slane %v1306_v13, 4  ;;  %v1327_v57 = vrot.slane %v1197_v54, 5  ;;  %v373_v3 = vld [vmem:[%s7093_s11 + $0x78] sm:$0xf] }
  0x87   : > { %v1290_v46 = vrot.slane %v1288_v42, 4  ;;  %v1289_v61 = vsel %vm7362_vm7, %v1287_v48, %v1288_v42  ;;  %422 = vst.msk [vmem:[#allocation2 + $0x78] sm:$0xf] %vm391_vm3, %v373_v3  ;;  %v1207_v54 = vld [vmem:[%s7093_s11 + $0x68] sm:$0xf] }
  0x8a   : > { %1046 = vrot.lane.b32.xlu2 %v884_v49, %s6991_s12  ;;  %v363_v49 = vld [vmem:[%s7093_s11 + $0x50] sm:$0xf] }
  0x8b   : > { %1050 = vrot.lane.b32.xlu1 %v904_v38, %s6991_s12  ;;  %412 = vst.msk [vmem:[#allocation2 + $0x50] sm:$0xf] %vm391_vm3, %v363_v49  ;;  %v370_v49 = vld [vmem:[%s7093_s11 + $0x6c] sm:$0xf] }
  0x8c   : > { %1048 = vrot.lane.b32.xlu0 %v894_v47, %s6991_s12  ;;  %v981_v0 = vpop.permute.xlu2 %980  ;;  %v1291_v47 = vrot.slane %v1185_v44, 5  ;;  %v1195_v44 = vld [vmem:[%s7093_s11 + $0x38] sm:$0xf]  ;;  %419 = vst.msk [vmem:[#allocation2 + $0x6c] sm:$0xf] %vm391_vm3, %v370_v49 }
  0x8d   : > { %1120 = vst.msk [vmem:[#allocation2 + $0x14] sm:$0xf] %vm1114_vm4, %v981_v0  ;;  %v1299_v0 = vrot.slane %v1297_v59, 4  ;;  %v1321_v52 = vrot.slane %v1195_v44, 5  ;;  %v375_v59 = vld [vmem:[%s7093_s11 + $0x80] sm:$0xf] }
  0x8e   : > { %v1292_v58 = vsel %vm7362_vm7, %v1290_v46, %v1291_v47  ;;  %v1293_v8 = vrot.slane %v1291_v47, 4  ;;  %v371_v47 = vld [vmem:[%s7093_s11 + $0x70] sm:$0xf]  ;;  %424 = vst.msk [vmem:[#allocation2 + $0x80] sm:$0xf] %vm391_vm3, %v375_v59 }
  0x8f   : > { %420 = vst.msk [vmem:[#allocation2 + $0x70] sm:$0xf] %vm391_vm3, %v371_v47  ;;  %v382_v59 = vld [vmem:[%s7093_s11 + $0x9c] sm:$0xf] }
  0x90   : > { %431 = vst.msk [vmem:[#allocation2 + $0x9c] sm:$0xf] %vm391_vm3, %v382_v59  ;;  %v1220_v59 = vld [vmem:[%s7093_s11 + $0x9c] sm:$0xf] }
  0x92   : > { %1052 = vrot.lane.b32.xlu2 %v914_v6, %s6991_s12  ;;  %v1189_v6 = vld [vmem:[%s7093_s11 + $0x20] sm:$0xf] }
  0x93   : > { %1056 = vrot.lane.b32.xlu1 %v934_v1, %s6991_s12  ;;  %v1300_v1 = vrot.slane %v1188_v62, 5  ;;  %v1198_v62 = vld [vmem:[%s7093_s11 + $0x44] sm:$0xf] }
  0x94   : > { %1054 = vrot.lane.b32.xlu0 %v924_v4, %s6991_s12  ;;  %v987_v17 = vpop.permute.xlu2 %986 }
  0x95   : > { %v975_v11 = vpop.permute.xlu1 %974  ;;  %1123 = vst.msk [vmem:[#allocation2 + $0x20] sm:$0xf] %vm1114_vm4, %v987_v17  ;;  %v1301_v12 = vsel %vm7362_vm7, %v1299_v0, %v1300_v1  ;;  %v1295_v17 = vsel %vm7362_vm7, %v1293_v8, %v1294_v60  ;;  %v1302_v27 = vrot.slane %v1300_v1, 4  ;;  %v374_v1 = vld [vmem:[%s7093_s11 + $0x7c] sm:$0xf] }
  0x96   : > { %1117 = vst.msk [vmem:[#allocation2 + $0x8] sm:$0xf] %vm1114_vm4, %v975_v11  ;;  %v971_v14 = vpop.permute.xlu0 %970  ;;  %v364_v11 = vld [vmem:[%s7093_s11 + $0x54] sm:$0xf]  ;;  %v1200_v8 = vld [vmem:[%s7093_s11 + $0x4c] sm:$0xf] }
  0x97   : > { %1115 = vst.msk [vmem:[#allocation2] sm:$0xf] %vm1114_vm4, %v971_v14  ;;  %v1303_v14 = vrot.slane %v1189_v6, 5  ;;  %v1330_v6 = vrot.slane %v1198_v62, 5  ;;  %v1357_v62 = vrot.slane %v1207_v54, 5 }
  0x98   : > { %413 = vst.msk [vmem:[#allocation2 + $0x54] sm:$0xf] %vm391_vm3, %v364_v11  ;;  %v1336_v11 = vrot.slane %v1200_v8, 5  ;;  %v1210_v8 = vld [vmem:[%s7093_s11 + $0x74] sm:$0xf] }
  0x99   : > { %v1305_v20 = vrot.slane %v1303_v14, 4  ;;  %v1304_v37 = vsel %vm7362_vm7, %v1302_v27, %v1303_v14  ;;  %423 = vst.msk [vmem:[#allocation2 + $0x7c] sm:$0xf] %vm391_vm3, %v374_v1  ;;  %v1203_v27 = vld [vmem:[%s7093_s11 + $0x58] sm:$0xf] }
  0x9a   : > { %1058 = vrot.lane.b32.xlu2 %v944_v26, %s6991_s12  ;;  %v1345_v30 = vrot.slane %v1203_v27, 5  ;;  %v1213_v27 = vld [vmem:[%s7093_s11 + $0x80] sm:$0xf] }
  0x9b   : > { %1062 = vrot.lane.b32.xlu1 %v964_v19, %s6991_s12  ;;  %v1309_v19 = vrot.slane %v1191_v16, 5  ;;  %v1307_v35 = vsel %vm7362_vm7, %v1305_v20, %v1306_v13  ;;  %v378_v13 = vld [vmem:[%s7093_s11 + $0x8c] sm:$0xf]  ;;  %v1201_v16 = vld [vmem:[%s7093_s11 + $0x50] sm:$0xf] }
  0x9c   : > { %1060 = vrot.lane.b32.xlu0 %v954_v22, %s6991_s12  ;;  %v993_v38 = vpop.permute.xlu2 %992  ;;  %427 = vst.msk [vmem:[#allocation2 + $0x8c] sm:$0xf] %vm391_vm3, %v378_v13  ;;  %v1339_v25 = vrot.slane %v1201_v16, 5  ;;  %v385_v13 = vld [vmem:[%s7093_s11 + $0xa8] sm:$0xf] }
  0x9d   : > { %v977_v31 = vpop.permute.xlu1 %976  ;;  %1126 = vst.msk [vmem:[#allocation2 + $0x2c] sm:$0xf] %vm1114_vm4, %v993_v38  ;;  %v1317_v38 = vrot.slane %v1315_v33, 4  ;;  %v1311_v46 = vrot.slane %v1309_v19, 4  ;;  %v390_v16 = vld [vmem:[%s7093_s11 + $0xbc] sm:$0xf] }
  0x9e   : > { %1118 = vst.msk [vmem:[#allocation2 + $0xc] sm:$0xf] %vm1114_vm4, %v977_v31  ;;  %v973_v36 = vpop.permute.xlu0 %972  ;;  %v1310_v31 = vsel %vm7362_vm7, %v1308_v18, %v1309_v19  ;;  %v1329_v18 = vrot.slane %v1327_v57, 4  ;;  %v377_v19 = vld [vmem:[%s7093_s11 + $0x88] sm:$0xf] }
  0x9f   : > { %1116 = vst.msk [vmem:[#allocation2 + $0x4] sm:$0xf] %vm1114_vm4, %v973_v36  ;;  %v1194_v36 = vld [vmem:[%s7093_s11 + $0x34] sm:$0xf]  ;;  %v1313_v55 = vsel %vm7362_vm7, %v1311_v46, %v1312_v34  ;;  %v1206_v46 = vld [vmem:[%s7093_s11 + $0x64] sm:$0xf] }
  0xa0   : > { %v1318_v39 = vrot.slane %v1194_v36, 5  ;;  %426 = vst.msk [vmem:[#allocation2 + $0x88] sm:$0xf] %vm391_vm3, %v377_v19  ;;  %v1331_v28 = vsel %vm7362_vm7, %v1329_v18, %v1330_v6  ;;  %v1204_v36 = vld [vmem:[%s7093_s11 + $0x5c] sm:$0xf]  ;;  %v1354_v49 = vrot.slane %v1206_v46, 5 }
  0xa1   : > { %v1348_v44 = vrot.slane %v1204_v36, 5  ;;  %v1212_v18 = vld [vmem:[%s7093_s11 + $0x7c] sm:$0xf]  ;;  %v1366_v19 = vrot.slane %v1210_v8, 5  ;;  %434 = vst.msk [vmem:[#allocation2 + $0xa8] sm:$0xf] %vm391_vm3, %v385_v13 }
  0xa2   : > { %1064 = vrot.lane.b32.xlu2 %v969_v45, %s6991_s12  ;;  %v1320_v0 = vrot.slane %v1318_v39, 4  ;;  %439 = vst.msk [vmem:[#allocation2 + $0xbc] sm:$0xf] %vm391_vm3, %v390_v16  ;;  %v1216_v46 = vld [vmem:[%s7093_s11 + $0x8c] sm:$0xf] }
  0xa3   : > { %1423 = vrot.lane.b32.xlu1 %v1283_v40, %s6992_s17  ;;  %v1314_v40 = vrot.slane %v1312_v34, 4 }
  0xa4   : > { %1172 = vrot.lane.b32.xlu0 %v1171_v41, %s6991_s12  ;;  %v999_v56 = vpop.permute.xlu2 %998  ;;  %v372_v41 = vld [vmem:[%s7093_s11 + $0x74] sm:$0xf]  ;;  %v1322_v9 = vsel %vm7362_vm7, %v1320_v0, %v1321_v52  ;;  %v1209_v0 = vld [vmem:[%s7093_s11 + $0x70] sm:$0xf] }
  0xa5   : > { %v985_v50 = vpop.permute.xlu1 %984  ;;  %1129 = vst.msk [vmem:[#allocation2 + $0x38] sm:$0xf] %vm1114_vm4, %v999_v56  ;;  %v1326_v56 = vrot.slane %v1324_v51, 4  ;;  %v1363_v3 = vrot.slane %v1209_v0, 5 }
  0xa6   : > { %1122 = vst.msk [vmem:[#allocation2 + $0x1c] sm:$0xf] %vm1114_vm4, %v985_v50  ;;  %v983_v53 = vpop.permute.xlu0 %982  ;;  %v1319_v50 = vsel %vm7362_vm7, %v1317_v38, %v1318_v39  ;;  %v1338_v38 = vrot.slane %v1336_v11, 4  ;;  %v380_v39 = vld [vmem:[%s7093_s11 + $0x94] sm:$0xf] }
  0xa7   : > { %1121 = vst.msk [vmem:[#allocation2 + $0x18] sm:$0xf] %vm1114_vm4, %v983_v53  ;;  %v1316_v53 = vsel %vm7362_vm7, %v1314_v40, %v1315_v33  ;;  %v381_v33 = vld [vmem:[%s7093_s11 + $0x98] sm:$0xf] }
  0xa8   : > { %421 = vst.msk [vmem:[#allocation2 + $0x74] sm:$0xf] %vm391_vm3, %v372_v41  ;;  %v379_v41 = vld [vmem:[%s7093_s11 + $0x90] sm:$0xf]  ;;  %v1340_v47 = vsel %vm7362_vm7, %v1338_v38, %v1339_v25  ;;  %v1375_v38 = vrot.slane %v1213_v27, 5 }
  0xa9   : > { %430 = vst.msk [vmem:[#allocation2 + $0x98] sm:$0xf] %vm391_vm3, %v381_v33  ;;  %v388_v33 = vld [vmem:[%s7093_s11 + $0xb4] sm:$0xf] }
  0xaa   : > { %1425 = vrot.lane.b32.xlu2 %v1286_v63, %s6992_s17  ;;  %429 = vst.msk [vmem:[#allocation2 + $0x94] sm:$0xf] %vm391_vm3, %v380_v39 }
  0xab   : > { %1429 = vrot.lane.b32.xlu1 %v1292_v58, %s6992_s17  ;;  %v1323_v58 = vrot.slane %v1321_v52, 4  ;;  %428 = vst.msk [vmem:[#allocation2 + $0x90] sm:$0xf] %vm391_vm3, %v379_v41 }
  0xac   : > { %1427 = vrot.lane.b32.xlu0 %v1289_v61, %s6992_s17  ;;  %v1005_v10 = vpop.permute.xlu2 %1004  ;;  %v1199_v61 = vld [vmem:[%s7093_s11 + $0x48] sm:$0xf]  ;;  %437 = vst.msk [vmem:[#allocation2 + $0xb4] sm:$0xf] %vm391_vm3, %v388_v33 }
  0xad   : > { %v991_v4 = vpop.permute.xlu1 %990  ;;  %1132 = vst.msk [vmem:[#allocation2 + $0x44] sm:$0xf] %vm1114_vm4, %v1005_v10  ;;  %v1333_v5 = vrot.slane %v1199_v61, 5 }
  0xae   : > { %1125 = vst.msk [vmem:[#allocation2 + $0x28] sm:$0xf] %vm1114_vm4, %v991_v4  ;;  %v989_v7 = vpop.permute.xlu0 %988  ;;  %v1328_v4 = vsel %vm7362_vm7, %v1326_v56, %v1327_v57  ;;  %v1347_v56 = vrot.slane %v1345_v30, 4  ;;  %v383_v57 = vld [vmem:[%s7093_s11 + $0xa0] sm:$0xf] }
  0xaf   : > { %1124 = vst.msk [vmem:[#allocation2 + $0x24] sm:$0xf] %vm1114_vm4, %v989_v7  ;;  %v1325_v7 = vsel %vm7362_vm7, %v1323_v58, %v1324_v51  ;;  %v1335_v10 = vrot.slane %v1333_v5, 4  ;;  %v384_v51 = vld [vmem:[%s7093_s11 + $0xa4] sm:$0xf] }
  0xb0   : > { %433 = vst.msk [vmem:[#allocation2 + $0xa4] sm:$0xf] %vm391_vm3, %v384_v51  ;;  %v1349_v1 = vsel %vm7362_vm7, %v1347_v56, %v1348_v44 }
  0xb1   : > { %432 = vst.msk [vmem:[#allocation2 + $0xa0] sm:$0xf] %vm391_vm3, %v383_v57 }
  0xb2   : > { %1431 = vrot.lane.b32.xlu2 %v1295_v17, %s6992_s17 }
  0xb3   : > { %1435 = vrot.lane.b32.xlu1 %v1301_v12, %s6992_s17  ;;  %v1332_v12 = vrot.slane %v1330_v6, 4 }
  0xb4   : > { %1433 = vrot.lane.b32.xlu0 %v1298_v15, %s6992_s17  ;;  %v1011_v29 = vpop.permute.xlu2 %1010  ;;  %v1202_v15 = vld [vmem:[%s7093_s11 + $0x54] sm:$0xf] }
  0xb5   : > { %v997_v22 = vpop.permute.xlu1 %996  ;;  %1135 = vst.msk [vmem:[#allocation2 + $0x50] sm:$0xf] %vm1114_vm4, %v1011_v29  ;;  %v1342_v23 = vrot.slane %v1202_v15, 5 }
  0xb6   : > { %1128 = vst.msk [vmem:[#allocation2 + $0x34] sm:$0xf] %vm1114_vm4, %v997_v22  ;;  %v995_v26 = vpop.permute.xlu0 %994  ;;  %v1337_v22 = vsel %vm7362_vm7, %v1335_v10, %v1336_v11  ;;  %v1356_v10 = vrot.slane %v1354_v49, 4  ;;  %v386_v11 = vld [vmem:[%s7093_s11 + $0xac] sm:$0xf] }
  0xb7   : > { %1127 = vst.msk [vmem:[#allocation2 + $0x30] sm:$0xf] %vm1114_vm4, %v995_v26  ;;  %v1334_v26 = vsel %vm7362_vm7, %v1332_v12, %v1333_v5  ;;  %v1344_v29 = vrot.slane %v1342_v23, 4  ;;  %v387_v5 = vld [vmem:[%s7093_s11 + $0xb0] sm:$0xf] }
  0xb8   : > { %436 = vst.msk [vmem:[#allocation2 + $0xb0] sm:$0xf] %vm391_vm3, %v387_v5  ;;  %v1221_v5 = vld [vmem:[%s7093_s11 + $0xa0] sm:$0xf] }
  0xb9   : > { %435 = vst.msk [vmem:[#allocation2 + $0xac] sm:$0xf] %vm391_vm3, %v386_v11 }
  0xba   : > { %1437 = vrot.lane.b32.xlu2 %v1304_v37, %s6992_s17 }
  0xbb   : > { %1441 = vrot.lane.b32.xlu1 %v1310_v31, %s6992_s17  ;;  %v1341_v31 = vrot.slane %v1339_v25, 4  ;;  %v1368_v25 = vrot.slane %v1366_v19, 4 }
  0xbc   : > { %1439 = vrot.lane.b32.xlu0 %v1307_v35, %s6992_s17  ;;  %v1017_v48 = vpop.permute.xlu2 %1016  ;;  %v1205_v35 = vld [vmem:[%s7093_s11 + $0x60] sm:$0xf] }
  0xbd   : > { %v1003_v42 = vpop.permute.xlu1 %1002  ;;  %1138 = vst.msk [vmem:[#allocation2 + $0x5c] sm:$0xf] %vm1114_vm4, %v1017_v48  ;;  %v1351_v43 = vrot.slane %v1205_v35, 5 }
  0xbe   : > { %1131 = vst.msk [vmem:[#allocation2 + $0x40] sm:$0xf] %vm1114_vm4, %v1003_v42  ;;  %v1001_v45 = vpop.permute.xlu0 %1000  ;;  %v1346_v42 = vsel %vm7362_vm7, %v1344_v29, %v1345_v30  ;;  %v1365_v29 = vrot.slane %v1363_v3, 4  ;;  %v389_v30 = vld [vmem:[%s7093_s11 + $0xb8] sm:$0xf] }
  0xbf   : > { %1130 = vst.msk [vmem:[#allocation2 + $0x3c] sm:$0xf] %vm1114_vm4, %v1001_v45  ;;  %v1343_v45 = vsel %vm7362_vm7, %v1341_v31, %v1342_v23  ;;  %v1353_v48 = vrot.slane %v1351_v43, 4 }
  0xc0   : > { %438 = vst.msk [vmem:[#allocation2 + $0xb8] sm:$0xf] %vm391_vm3, %v389_v30  ;;  %v1367_v39 = vsel %vm7362_vm7, %v1365_v29, %v1366_v19  ;;  %v1225_v30 = vld [vmem:[%s7093_s11 + $0xb0] sm:$0xf]  ;;  %vm2589_vm3 = vmand %vm2543_vm1, %vm488_vm0 }
  0xc2   : > { %1443 = vrot.lane.b32.xlu2 %v1313_v55, %s6992_s17 }
  0xc3   : > { %1447 = vrot.lane.b32.xlu1 %v1319_v50, %s6992_s17  ;;  %v1350_v50 = vrot.slane %v1348_v44, 4  ;;  %v1217_v44 = vld [vmem:[%s7093_s11 + $0x90] sm:$0xf] }
  0xc4   : > { %1445 = vrot.lane.b32.xlu0 %v1316_v53, %s6992_s17  ;;  %v1023_v2 = vpop.permute.xlu2 %1022  ;;  %v1208_v53 = vld [vmem:[%s7093_s11 + $0x6c] sm:$0xf] }
  0xc5   : > { %v1009_v60 = vpop.permute.xlu1 %1008  ;;  %1141 = vst.msk [vmem:[#allocation2 + $0x68] sm:$0xf] %vm1114_vm4, %v1023_v2  ;;  %v1360_v61 = vrot.slane %v1208_v53, 5  ;;  %v1384_v53 = vrot.slane %v1216_v46, 5 }
  0xc6   : > { %1134 = vst.msk [vmem:[#allocation2 + $0x4c] sm:$0xf] %vm1114_vm4, %v1009_v60  ;;  %v1007_v63 = vpop.permute.xlu0 %1006  ;;  %v1355_v60 = vsel %vm7362_vm7, %v1353_v48, %v1354_v49 }
  0xc7   : > { %1133 = vst.msk [vmem:[#allocation2 + $0x48] sm:$0xf] %vm1114_vm4, %v1007_v63  ;;  %v1352_v63 = vsel %vm7362_vm7, %v1350_v50, %v1351_v43  ;;  %v1362_v2 = vrot.slane %v1360_v61, 4  ;;  %v1377_v43 = vrot.slane %v1375_v38, 4  ;;  %v1387_v50 = vrot.slane %v1217_v44, 5 }
  0xca   : > { %1449 = vrot.lane.b32.xlu2 %v1322_v9, %s6992_s17 }
  0xcb   : > { %1453 = vrot.lane.b32.xlu1 %v1328_v4, %s6992_s17  ;;  %v1359_v4 = vrot.slane %v1357_v62, 4 }
  0xcc   : > { %1451 = vrot.lane.b32.xlu0 %v1325_v7, %s6992_s17  ;;  %v1029_v20 = vpop.permute.xlu2 %1028  ;;  %v1211_v7 = vld [vmem:[%s7093_s11 + $0x78] sm:$0xf] }
  0xcd   : > { %v1015_v14 = vpop.permute.xlu1 %1014  ;;  %1144 = vst.msk [vmem:[#allocation2 + $0x74] sm:$0xf] %vm1114_vm4, %v1029_v20  ;;  %v1369_v15 = vrot.slane %v1211_v7, 5  ;;  %v1358_v20 = vsel %vm7362_vm7, %v1356_v10, %v1357_v62  ;;  %v1219_v62 = vld [vmem:[%s7093_s11 + $0x98] sm:$0xf] }
  0xce   : > { %1137 = vst.msk [vmem:[#allocation2 + $0x58] sm:$0xf] %vm1114_vm4, %v1015_v14  ;;  %v1013_v17 = vpop.permute.xlu0 %1012  ;;  %v1364_v14 = vsel %vm7362_vm7, %v1362_v2, %v1363_v3  ;;  %v1396_v2 = vrot.slane %v1220_v59, 5 }
  0xcf   : > { %1136 = vst.msk [vmem:[#allocation2 + $0x54] sm:$0xf] %vm1114_vm4, %v1013_v17  ;;  %v1361_v17 = vsel %vm7362_vm7, %v1359_v4, %v1360_v61  ;;  %v1371_v21 = vrot.slane %v1369_v15, 4  ;;  %v1370_v36 = vsel %vm7362_vm7, %v1368_v25, %v1369_v15 }
  0xd0   : > { %v1398_v8 = vrot.slane %v1396_v2, 4 }
  0xd2   : > { %1455 = vrot.lane.b32.xlu2 %v1331_v28, %s6992_s17 }
  0xd3   : > { %1459 = vrot.lane.b32.xlu1 %v1337_v22, %s6992_s17  ;;  %v1372_v22 = vrot.slane %v1212_v18, 5 }
  0xd4   : > { %1457 = vrot.lane.b32.xlu0 %v1334_v26, %s6992_s17  ;;  %v1035_v40 = vpop.permute.xlu2 %1034  ;;  %v1214_v26 = vld [vmem:[%s7093_s11 + $0x84] sm:$0xf] }
  0xd5   : > { %v1021_v34 = vpop.permute.xlu1 %1020  ;;  %1147 = vst.msk [vmem:[#allocation2 + $0x80] sm:$0xf] %vm1114_vm4, %v1035_v40  ;;  %v1378_v35 = vrot.slane %v1214_v26, 5 }
  0xd6   : > { %1140 = vst.msk [vmem:[#allocation2 + $0x64] sm:$0xf] %vm1114_vm4, %v1021_v34  ;;  %v1019_v37 = vpop.permute.xlu0 %1018  ;;  %v1373_v34 = vsel %vm7362_vm7, %v1371_v21, %v1372_v22 }
  0xd7   : > { %1139 = vst.msk [vmem:[#allocation2 + $0x60] sm:$0xf] %vm1114_vm4, %v1019_v37  ;;  %v1215_v37 = vld [vmem:[%s7093_s11 + $0x88] sm:$0xf]  ;;  %v1380_v40 = vrot.slane %v1378_v35, 4  ;;  %v1379_v51 = vsel %vm7362_vm7, %v1377_v43, %v1378_v35 }
  0xd8   : > { %v1381_v41 = vrot.slane %v1215_v37, 5  ;;  %v1227_v37 = vld [vmem:[%s7093_s11 + $0xb8] sm:$0xf] }
  0xda   : > { %1461 = vrot.lane.b32.xlu2 %v1340_v47, %s6992_s17  ;;  %v1374_v47 = vrot.slane %v1372_v22, 4  ;;  %v1382_v49 = vsel %vm7362_vm7, %v1380_v40, %v1381_v41 }
  0xdb   : > { %1465 = vrot.lane.b32.xlu1 %v1346_v42, %s6992_s17 }
  0xdc   : > { %1463 = vrot.lane.b32.xlu0 %v1343_v45, %s6992_s17  ;;  %v1041_v58 = vpop.permute.xlu2 %1040  ;;  %v1376_v54 = vsel %vm7362_vm7, %v1374_v47, %v1375_v38  ;;  %v1411_v38 = vrot.slane %v1225_v30, 5 }
  0xdd   : > { %v1027_v52 = vpop.permute.xlu1 %1026  ;;  %1150 = vst.msk [vmem:[#allocation2 + $0x8c] sm:$0xf] %vm1114_vm4, %v1041_v58  ;;  %v1386_v58 = vrot.slane %v1384_v53, 4 }
  0xde   : > { %1143 = vst.msk [vmem:[#allocation2 + $0x70] sm:$0xf] %vm1114_vm4, %v1027_v52  ;;  %v1025_v55 = vpop.permute.xlu0 %1024  ;;  %v1218_v52 = vld [vmem:[%s7093_s11 + $0x94] sm:$0xf]  ;;  %v1413_v44 = vrot.slane %v1411_v38, 4 }
  0xdf   : > { %1142 = vst.msk [vmem:[#allocation2 + $0x6c] sm:$0xf] %vm1114_vm4, %v1025_v55  ;;  %v1389_v55 = vrot.slane %v1387_v50, 4  ;;  %v1390_v56 = vrot.slane %v1218_v52, 5  ;;  %v1388_v4 = vsel %vm7362_vm7, %v1386_v58, %v1387_v50 }
  0xe1   : > { %v1392_v15 = vrot.slane %v1390_v56, 4 }
  0xe2   : > { %1467 = vrot.lane.b32.xlu2 %v1349_v1, %s6992_s17  ;;  %v1391_v1 = vsel %vm7362_vm7, %v1389_v55, %v1390_v56 }
  0xe3   : > { %1471 = vrot.lane.b32.xlu1 %v1355_v60, %s6992_s17  ;;  %v1164_v60 = vld [vmem:[#allocation2 + $0xbc] sm:$0xf] }
  0xe4   : > { %1469 = vrot.lane.b32.xlu0 %v1352_v63, %s6992_s17  ;;  %v1047_v12 = vpop.permute.xlu2 %1046  ;;  %v1383_v63 = vrot.slane %v1381_v41, 4 }
  0xe5   : > { %v1033_v6 = vpop.permute.xlu1 %1032  ;;  %1153 = vst.msk [vmem:[#allocation2 + $0x98] sm:$0xf] %vm1114_vm4, %v1047_v12  ;;  %v1223_v12 = vld [vmem:[%s7093_s11 + $0xa8] sm:$0xf] }
  0xe6   : > { %1146 = vst.msk [vmem:[#allocation2 + $0x7c] sm:$0xf] %vm1114_vm4, %v1033_v6  ;;  %v1031_v9 = vpop.permute.xlu0 %1030  ;;  %v1393_v6 = vrot.slane %v1219_v62, 5  ;;  %v1385_v7 = vsel %vm7362_vm7, %v1383_v63, %v1384_v53  ;;  %v1405_v18 = vrot.slane %v1223_v12, 5  ;;  %v1617_v53 = vld [vmem:[%s7342_s16] sm:$0x1] }
  0xe7   : > { %1145 = vst.msk [vmem:[#allocation2 + $0x78] sm:$0xf] %vm1114_vm4, %v1031_v9  ;;  %v1399_v9 = vrot.slane %v1221_v5, 5  ;;  %v1619_v58 = vrot.slane %v1617_v53, 5  ;;  %v1649_v53 = vld [vmem:[%s7093_s11 + $0x6c] sm:$0xf] }
  0xe8   : > { %v1395_v11 = vrot.slane %v1393_v6, 4  ;;  %v1394_v22 = vsel %vm7362_vm7, %v1392_v15, %v1393_v6  ;;  %v1631_v15 = vld [vmem:[%s7093_s11 + $0x24] sm:$0xf] }
  0xea   : > { %1473 = vrot.lane.b32.xlu2 %v1358_v20, %s6992_s17  ;;  %v1397_v19 = vsel %vm7362_vm7, %v1395_v11, %v1396_v2  ;;  %v1224_v20 = vld [vmem:[%s7093_s11 + $0xac] sm:$0xf]  ;;  %v1626_v2 = vld [vmem:[%s7093_s11 + $0x10] sm:$0xf] }
  0xeb   : > { %1477 = vrot.lane.b32.xlu1 %v1364_v14, %s6992_s17  ;;  %v1222_v14 = vld [vmem:[%s7093_s11 + $0xa4] sm:$0xf]  ;;  %v1408_v25 = vrot.slane %v1224_v20, 5  ;;  %v1635_v20 = vld [vmem:[%s7093_s11 + $0x34] sm:$0xf] }
  0xec   : > { %1475 = vrot.lane.b32.xlu0 %v1361_v17, %s6992_s17  ;;  %v1053_v31 = vpop.permute.xlu2 %1052  ;;  %v1400_v17 = vsel %vm7362_vm7, %v1398_v8, %v1399_v9  ;;  %v1402_v21 = vrot.slane %v1222_v14, 5  ;;  %v1629_v8 = vld [vmem:[%s7093_s11 + $0x1c] sm:$0xf]  ;;  %v1632_v14 = vld [vmem:[%s7093_s11 + $0x28] sm:$0xf] }
  0xed   : > { %v1039_v23 = vpop.permute.xlu1 %1038  ;;  %1156 = vst.msk [vmem:[#allocation2 + $0xa4] sm:$0xf] %vm1114_vm4, %v1053_v31  ;;  %v1401_v31 = vrot.slane %v1399_v9, 4  ;;  %v1410_v46 = vrot.slane %v1408_v25, 4  ;;  %v1628_v9 = vld [vmem:[%s7093_s11 + $0x18] sm:$0xf] }
  0xee   : > { %1149 = vst.msk [vmem:[#allocation2 + $0x88] sm:$0xf] %vm1114_vm4, %v1039_v23  ;;  %v1037_v28 = vpop.permute.xlu0 %1036  ;;  %v1407_v23 = vrot.slane %v1405_v18, 4  ;;  %v1404_v27 = vrot.slane %v1402_v21, 4 }
  0xef   : > { %1148 = vst.msk [vmem:[#allocation2 + $0x84] sm:$0xf] %vm1114_vm4, %v1037_v28  ;;  %v1226_v28 = vld [vmem:[%s7093_s11 + $0xb4] sm:$0xf]  ;;  %v1412_v52 = vsel %vm7362_vm7, %v1410_v46, %v1411_v38  ;;  %v1647_v46 = vld [vmem:[%s7093_s11 + $0x64] sm:$0xf] }
  0xf0   : > { %v1414_v35 = vrot.slane %v1226_v28, 5  ;;  %v1637_v28 = vld [vmem:[%s7093_s11 + $0x3c] sm:$0xf] }
  0xf2   : > { %1479 = vrot.lane.b32.xlu2 %v1367_v39, %s6992_s17  ;;  %v1403_v39 = vsel %vm7362_vm7, %v1401_v31, %v1402_v21  ;;  %v1416_v41 = vrot.slane %v1414_v35, 4  ;;  %v1415_v50 = vsel %vm7362_vm7, %v1413_v44, %v1414_v35  ;;  %v1634_v21 = vld [vmem:[%s7093_s11 + $0x30] sm:$0xf]  ;;  %v1640_v35 = vld [vmem:[%s7093_s11 + $0x48] sm:$0xf] }
  0xf3   : > { %1483 = vrot.lane.b32.xlu1 %v1373_v34, %s6992_s17  ;;  %v1409_v34 = vsel %vm7362_vm7, %v1407_v23, %v1408_v25 }
  0xf4   : > { %1481 = vrot.lane.b32.xlu0 %v1370_v36, %s6992_s17  ;;  %v1059_v48 = vpop.permute.xlu2 %1058  ;;  %v1406_v36 = vsel %vm7362_vm7, %v1404_v27, %v1405_v18  ;;  %v1638_v27 = vld [vmem:[%s7093_s11 + $0x40] sm:$0xf] }
  0xf5   : > { %v1045_v42 = vpop.permute.xlu1 %1044  ;;  %1159 = vst.msk [vmem:[#allocation2 + $0xb0] sm:$0xf] %vm1114_vm4, %v1059_v48 }
  0xf6   : > { %1152 = vst.msk [vmem:[#allocation2 + $0x94] sm:$0xf] %vm1114_vm4, %v1045_v42  ;;  %v1043_v45 = vpop.permute.xlu0 %1042  ;;  %v1417_v42 = vrot.slane %v1227_v37, 5 }
  0xf7   : > { %1151 = vst.msk [vmem:[#allocation2 + $0x90] sm:$0xf] %vm1114_vm4, %v1043_v45 }
  0xfa   : > { %1485 = vrot.lane.b32.xlu2 %v1376_v54, %s6992_s17 }
  0xfb   : > { %1489 = vrot.lane.b32.xlu1 %v1382_v49, %s6992_s17  ;;  %v1418_v49 = vsel %vm7362_vm7, %v1416_v41, %v1417_v42  ;;  %v1643_v41 = vld [vmem:[%s7093_s11 + $0x54] sm:$0xf] }
  0xfc   : > { %1487 = vrot.lane.b32.xlu0 %v1379_v51, %s6992_s17  ;;  %v1065_v0 = vpop.permute.xlu2 %1064  ;;  %v1228_v51 = vld [vmem:[%s7093_s11 + $0xbc] sm:$0xf] }
  0xfd   : > { %v1051_v57 = vpop.permute.xlu1 %1050  ;;  %v1165_v3 = vsel %vm1163_vm8, %v1065_v0, %v1164_v60  ;;  %v1420_v54 = vrot.slane %v1228_v51, 5  ;;  %v1651_v51 = vld [vmem:[%s7093_s11 + $0x74] sm:$0xf]  ;;  %vm3055_vm8 = vcmask 190624  }
  0xfe   : > { %1155 = vst.msk [vmem:[#allocation2 + $0xa0] sm:$0xf] %vm1114_vm4, %v1051_v57  ;;  %v1049_v61 = vpop.permute.xlu0 %1048  ;;  %v1419_v57 = vrot.slane %v1417_v42, 4 }
  0xff   : > { %1154 = vst.msk [vmem:[#allocation2 + $0x9c] sm:$0xf] %vm1114_vm4, %v1049_v61  ;;  %v1422_v60 = vrot.slane %v1420_v54, 4 }
 0x100   : > { %1166 = vst [vmem:[#allocation2 + $0xbc] sm:$0xf] %v1165_v3  ;;  %v1421_v61 = vsel %vm7362_vm7, %v1419_v57, %v1420_v54  ;;  %v1625_v3 = vld [vmem:[%s7093_s11 + $0xc] sm:$0xf]  ;;  %v1654_v57 = vld [vmem:[%s7093_s11 + $0x80] sm:$0xf] }
 0x102   : > { %1491 = vrot.lane.b32.xlu2 %v1385_v7, %s6992_s17  ;;  %v1630_v7 = vld [vmem:[%s7093_s11 + $0x20] sm:$0xf] }
 0x103   : > { %1495 = vrot.lane.b32.xlu1 %v1391_v1, %s6992_s17  ;;  %v1627_v1 = vld [vmem:[%s7093_s11 + $0x14] sm:$0xf] }
 0x104   : > { %1493 = vrot.lane.b32.xlu0 %v1388_v4, %s6992_s17  ;;  %v1426_v16 = vpop.permute.xlu2 %1425 }
 0x105   : > { %v1057_v10 = vpop.permute.xlu1 %1056  ;;  %1569 = vst.msk [vmem:[#allocation2 + $0x4] sm:$0xf] %vm1567_vm9, %v1426_v16 }
 0x106   : > { %1158 = vst.msk [vmem:[#allocation2 + $0xac] sm:$0xf] %vm1114_vm4, %v1057_v10  ;;  %v1055_v13 = vpop.permute.xlu0 %1054 }
 0x107   : > { %1157 = vst.msk [vmem:[#allocation2 + $0xa8] sm:$0xf] %vm1114_vm4, %v1055_v13  ;;  %v1178_v40 = vld [vmem:[#allocation2 + $0xbc] sm:$0x8]  ;;  %v1633_v13 = vld [vmem:[%s7093_s11 + $0x2c] sm:$0xf] }
 0x10a   : > { %1497 = vrot.lane.b32.xlu2 %v1394_v22, %s6992_s17 }
 0x10b   : > { %1501 = vrot.lane.b32.xlu1 %v1400_v17, %s6992_s17 }
 0x10c   : > { %1499 = vrot.lane.b32.xlu0 %v1397_v19, %s6992_s17  ;;  %v1432_v33 = vpop.permute.xlu2 %1431  ;;  %v1636_v19 = vld [vmem:[%s7093_s11 + $0x38] sm:$0xf] }
 0x10d   : > { %v1063_v26 = vpop.permute.xlu1 %1062  ;;  %1572 = vst.msk [vmem:[#allocation2 + $0x10] sm:$0xf] %vm1567_vm9, %v1432_v33  ;;  %v1642_v33 = vld [vmem:[%s7093_s11 + $0x50] sm:$0xf] }
 0x10e   : > { %1161 = vst.msk [vmem:[#allocation2 + $0xb8] sm:$0xf] %vm1114_vm4, %v1063_v26  ;;  %v1061_v29 = vpop.permute.xlu0 %1060  ;;  %v1639_v26 = vld [vmem:[%s7093_s11 + $0x44] sm:$0xf] }
 0x10f   : > { %1160 = vst.msk [vmem:[#allocation2 + $0xb4] sm:$0xf] %vm1114_vm4, %v1061_v29  ;;  %vm3010_vm4 = vcmask 191648  }
 0x112   : > { %1503 = vrot.lane.b32.xlu2 %v1403_v39, %s6992_s17  ;;  %v1645_v39 = vld [vmem:[%s7093_s11 + $0x5c] sm:$0xf] }
 0x113   : > { %1507 = vrot.lane.b32.xlu1 %v1409_v34, %s6992_s17  ;;  %v1641_v34 = vld [vmem:[%s7093_s11 + $0x4c] sm:$0xf] }
 0x114   : > { %1505 = vrot.lane.b32.xlu0 %v1406_v36, %s6992_s17  ;;  %v1438_v48 = vpop.permute.xlu2 %1437 }
 0x115   : > { %v1424_v43 = vpop.permute.xlu1 %1423  ;;  %1575 = vst.msk [vmem:[#allocation2 + $0x1c] sm:$0xf] %vm1567_vm9, %v1438_v48 }
 0x116   : > { %1568 = vst.msk [vmem:[#allocation2] sm:$0xf] %vm1567_vm9, %v1424_v43  ;;  %v1173_v45 = vpop.permute.xlu0 %1172 }
 0x117   : > { %v1179_v47 = vsel %vm1177_vm12, %v1173_v45, %v1178_v40  ;;  %v1644_v40 = vld [vmem:[%s7093_s11 + $0x58] sm:$0xf]  ;;  %v1648_v45 = vld [vmem:[%s7093_s11 + $0x68] sm:$0xf]  ;;  %vm4820_vm12 = vcmask 1041408  }
 0x118   : > { %1180 = vst [vmem:[#allocation2 + $0xbc] sm:$0x8] %v1179_v47  ;;  %v1646_v47 = vld [vmem:[%s7093_s11 + $0x60] sm:$0xf] }
 0x11a   : > { %1509 = vrot.lane.b32.xlu2 %v1412_v52, %s6992_s17  ;;  %v1650_v52 = vld [vmem:[%s7093_s11 + $0x70] sm:$0xf] }
 0x11b   : > { %1513 = vrot.lane.b32.xlu1 %v1418_v49, %s6992_s17 }
 0x11c   : > { %1511 = vrot.lane.b32.xlu0 %v1415_v50, %s6992_s17  ;;  %v1444_v59 = vpop.permute.xlu2 %1443 }
 0x11d   : > { %v1430_v55 = vpop.permute.xlu1 %1429  ;;  %1578 = vst.msk [vmem:[#allocation2 + $0x28] sm:$0xf] %vm1567_vm9, %v1444_v59  ;;  %v1652_v59 = vld [vmem:[%s7093_s11 + $0x78] sm:$0xf] }
 0x11e   : > { %1571 = vst.msk [vmem:[#allocation2 + $0xc] sm:$0xf] %vm1567_vm9, %v1430_v55  ;;  %v1428_v56 = vpop.permute.xlu0 %1427 }
 0x11f   : > { %1570 = vst.msk [vmem:[#allocation2 + $0x8] sm:$0xf] %vm1567_vm9, %v1428_v56 }
 0x122   : > { %1515 = vrot.lane.b32.xlu2 %v1421_v61, %s6992_s17 }
 0x123   : > { %1620 = vrot.lane.b32.xlu1 %v1619_v58, %s6992_s17  ;;  %v1653_v58 = vld [vmem:[%s7093_s11 + $0x7c] sm:$0xf] }
 0x124   : > { %1517 = vrot.lane.b32.xlu0 %v1422_v60, %s6992_s17  ;;  %v1450_v0 = vpop.permute.xlu2 %1449  ;;  %s6931_s17 = scalar_lea.hbm %s10556_s5, 384 }
 0x125   : > { %v1436_v62 = vpop.permute.xlu1 %1435  ;;  %1581 = vst.msk [vmem:[#allocation2 + $0x34] sm:$0xf] %vm1567_vm9, %v1450_v0  ;;  %v1656_v0 = vld [vmem:[%s7093_s11 + $0x88] sm:$0xf] }
 0x126   : > { %1574 = vst.msk [vmem:[#allocation2 + $0x18] sm:$0xf] %vm1567_vm9, %v1436_v62  ;;  %v1434_v63 = vpop.permute.xlu0 %1433 }
 0x127   : > { %1573 = vst.msk [vmem:[#allocation2 + $0x14] sm:$0xf] %vm1567_vm9, %v1434_v63  ;;  %v1657_v63 = vld [vmem:[%s7093_s11 + $0x8c] sm:$0xf] }
 0x12a   : > { %1715 = vrot.lane.b32.xlu2 %v1625_v3, %s6993_s24 }
 0x12b   : > { %1719 = vrot.lane.b32.xlu1 %v1627_v1, %s6993_s24  ;;  %v1655_v1 = vld [vmem:[%s7093_s11 + $0x84] sm:$0xf] }
 0x12c   : > { %1717 = vrot.lane.b32.xlu0 %v1626_v2, %s6993_s24  ;;  %v1456_v6 = vpop.permute.xlu2 %1455 }
 0x12d   : > { %v1442_v4 = vpop.permute.xlu1 %1441  ;;  %1584 = vst.msk [vmem:[#allocation2 + $0x40] sm:$0xf] %vm1567_vm9, %v1456_v6  ;;  %v1659_v6 = vld [vmem:[%s7093_s11 + $0x94] sm:$0xf] }
 0x12e   : > { %1577 = vst.msk [vmem:[#allocation2 + $0x24] sm:$0xf] %vm1567_vm9, %v1442_v4  ;;  %v1440_v5 = vpop.permute.xlu0 %1439 }
 0x12f   : > { %1576 = vst.msk [vmem:[#allocation2 + $0x20] sm:$0xf] %vm1567_vm9, %v1440_v5  ;;  %v1660_v5 = vld [vmem:[%s7093_s11 + $0x98] sm:$0xf] }
 0x132   : > { %1721 = vrot.lane.b32.xlu2 %v1628_v9, %s6993_s24 }
 0x133   : > { %1725 = vrot.lane.b32.xlu1 %v1630_v7, %s6993_s24  ;;  %v1658_v7 = vld [vmem:[%s7093_s11 + $0x90] sm:$0xf] }
 0x134   : > { %1723 = vrot.lane.b32.xlu0 %v1629_v8, %s6993_s24  ;;  %v1462_v12 = vpop.permute.xlu2 %1461 }
 0x135   : > { %v1448_v10 = vpop.permute.xlu1 %1447  ;;  %1587 = vst.msk [vmem:[#allocation2 + $0x4c] sm:$0xf] %vm1567_vm9, %v1462_v12  ;;  %v1662_v12 = vld [vmem:[%s7093_s11 + $0xa0] sm:$0xf] }
 0x136   : > { %1580 = vst.msk [vmem:[#allocation2 + $0x30] sm:$0xf] %vm1567_vm9, %v1448_v10  ;;  %v1446_v11 = vpop.permute.xlu0 %1445 }
 0x137   : > { %1579 = vst.msk [vmem:[#allocation2 + $0x2c] sm:$0xf] %vm1567_vm9, %v1446_v11  ;;  %v1663_v11 = vld [vmem:[%s7093_s11 + $0xa4] sm:$0xf] }
 0x13a   : > { %1727 = vrot.lane.b32.xlu2 %v1631_v15, %s6993_s24 }
 0x13b   : > { %1731 = vrot.lane.b32.xlu1 %v1633_v13, %s6993_s24  ;;  %v1661_v13 = vld [vmem:[%s7093_s11 + $0x9c] sm:$0xf] }
 0x13c   : > { %1729 = vrot.lane.b32.xlu0 %v1632_v14, %s6993_s24  ;;  %v1468_v18 = vpop.permute.xlu2 %1467 }
 0x13d   : > { %v1454_v16 = vpop.permute.xlu1 %1453  ;;  %1590 = vst.msk [vmem:[#allocation2 + $0x58] sm:$0xf] %vm1567_vm9, %v1468_v18  ;;  %v1665_v18 = vld [vmem:[%s7093_s11 + $0xac] sm:$0xf] }
 0x13e   : > { %1583 = vst.msk [vmem:[#allocation2 + $0x3c] sm:$0xf] %vm1567_vm9, %v1454_v16  ;;  %v1452_v17 = vpop.permute.xlu0 %1451 }
 0x13f   : > { %1582 = vst.msk [vmem:[#allocation2 + $0x38] sm:$0xf] %vm1567_vm9, %v1452_v17  ;;  %v1666_v17 = vld [vmem:[%s7093_s11 + $0xb0] sm:$0xf] }
 0x142   : > { %1733 = vrot.lane.b32.xlu2 %v1634_v21, %s6993_s24  ;;  %v1916_v21 = vld [vmem:[%s7093_s11 + $0x14] sm:$0xf] }
 0x143   : > { %1737 = vrot.lane.b32.xlu1 %v1636_v19, %s6993_s24  ;;  %v1664_v19 = vld [vmem:[%s7093_s11 + $0xa8] sm:$0xf] }
 0x144   : > { %1735 = vrot.lane.b32.xlu0 %v1635_v20, %s6993_s24  ;;  %v1474_v25 = vpop.permute.xlu2 %1473 }
 0x145   : > { %v1460_v22 = vpop.permute.xlu1 %1459  ;;  %1593 = vst.msk [vmem:[#allocation2 + $0x64] sm:$0xf] %vm1567_vm9, %v1474_v25 }
 0x146   : > { %1586 = vst.msk [vmem:[#allocation2 + $0x48] sm:$0xf] %vm1567_vm9, %v1460_v22  ;;  %v1458_v23 = vpop.permute.xlu0 %1457 }
 0x147   : > { %1585 = vst.msk [vmem:[#allocation2 + $0x44] sm:$0xf] %vm1567_vm9, %v1458_v23  ;;  %v1915_v23 = vld [vmem:[%s7093_s11 + $0x10] sm:$0xf] }
 0x14a   : > { %1739 = vrot.lane.b32.xlu2 %v1637_v28, %s6993_s24  ;;  %v1979_v28 = vshll.u32 %v1916_v21, 16 }
 0x14b   : > { %1743 = vrot.lane.b32.xlu1 %v1639_v26, %s6993_s24  ;;  %v1914_v26 = vld [vmem:[%s7093_s11 + $0xc] sm:$0xf] }
 0x14c   : > { %1741 = vrot.lane.b32.xlu0 %v1638_v27, %s6993_s24  ;;  %v1480_v31 = vpop.permute.xlu2 %1479  ;;  %v1669_v27 = vld [vmem:[%s7093_s11 + $0xbc] sm:$0xf] }
 0x14d   : > { %v1466_v29 = vpop.permute.xlu1 %1465  ;;  %1596 = vst.msk [vmem:[#allocation2 + $0x70] sm:$0xf] %vm1567_vm9, %v1480_v31  ;;  %v1969_v31 = vshll.u32 %v1915_v23, 16 }
 0x14e   : > { %1589 = vst.msk [vmem:[#allocation2 + $0x54] sm:$0xf] %vm1567_vm9, %v1466_v29  ;;  %v1464_v30 = vpop.permute.xlu0 %1463  ;;  %v1983_v29 = vshrl.u32 %v1916_v21, 16 }
 0x14f   : > { %1588 = vst.msk [vmem:[#allocation2 + $0x50] sm:$0xf] %vm1567_vm9, %v1464_v30  ;;  %v1668_v30 = vld [vmem:[%s7093_s11 + $0xb8] sm:$0xf] }
 0x152   : > { %1745 = vrot.lane.b32.xlu2 %v1640_v35, %s6993_s24  ;;  %v1960_v35 = vshrl.u32 %v1914_v26, 16 }
 0x153   : > { %1749 = vrot.lane.b32.xlu1 %v1642_v33, %s6993_s24  ;;  %v1973_v33 = vshrl.u32 %v1915_v23, 16 }
 0x154   : > { %1747 = vrot.lane.b32.xlu0 %v1641_v34, %s6993_s24  ;;  %v1486_v38 = vpop.permute.xlu2 %1485  ;;  %v1667_v34 = vld [vmem:[%s7093_s11 + $0xb4] sm:$0xf] }
 0x155   : > { %v1472_v36 = vpop.permute.xlu1 %1471  ;;  %1599 = vst.msk [vmem:[#allocation2 + $0x7c] sm:$0xf] %vm1567_vm9, %v1486_v38  ;;  %v1985_v38 = vrot.slane %v1983_v29, 4 }
 0x156   : > { %1592 = vst.msk [vmem:[#allocation2 + $0x60] sm:$0xf] %vm1567_vm9, %v1472_v36  ;;  %v1470_v37 = vpop.permute.xlu0 %1469  ;;  %v1963_v36 = vshll.u32 %v1914_v26, 16 }
 0x157   : > { %1591 = vst.msk [vmem:[#allocation2 + $0x5c] sm:$0xf] %vm1567_vm9, %v1470_v37  ;;  %v7811_v37 = vrot.slane %v1979_v28, 5 }
 0x15a   : > { %1751 = vrot.lane.b32.xlu2 %v1643_v41, %s6993_s24  ;;  %v1917_v41 = vld [vmem:[%s7093_s11 + $0x18] sm:$0xf] }
 0x15b   : > { %1755 = vrot.lane.b32.xlu1 %v1645_v39, %s6993_s24  ;;  %v1919_v39 = vld [vmem:[%s7093_s11 + $0x20] sm:$0xf] }
 0x15c   : > { %1753 = vrot.lane.b32.xlu0 %v1644_v40, %s6993_s24  ;;  %v1492_v44 = vpop.permute.xlu2 %1491 }
 0x15d   : > { %v1478_v42 = vpop.permute.xlu1 %1477  ;;  %1602 = vst.msk [vmem:[#allocation2 + $0x88] sm:$0xf] %vm1567_vm9, %v1492_v44  ;;  %v1918_v44 = vld [vmem:[%s7093_s11 + $0x1c] sm:$0xf] }
 0x15e   : > { %1595 = vst.msk [vmem:[#allocation2 + $0x6c] sm:$0xf] %vm1567_vm9, %v1478_v42  ;;  %v1476_v43 = vpop.permute.xlu0 %1475  ;;  %v7816_v42 = vrot.slane %v1969_v31, 5 }
 0x15f   : > { %1594 = vst.msk [vmem:[#allocation2 + $0x68] sm:$0xf] %vm1567_vm9, %v1476_v43  ;;  %v1975_v43 = vrot.slane %v1973_v33, 4  ;;  %v1923_v33 = vld [vmem:[%s7093_s11 + $0x30] sm:$0xf] }
 0x162   : > { %1757 = vrot.lane.b32.xlu2 %v1646_v47, %s6993_s24  ;;  %v1965_v47 = vrot.slane %v1963_v36, 5  ;;  %v1924_v36 = vld [vmem:[%s7093_s11 + $0x34] sm:$0xf] }
 0x163   : > { %1761 = vrot.lane.b32.xlu1 %v1648_v45, %s6993_s24 }
 0x164   : > { %1759 = vrot.lane.b32.xlu0 %v1647_v46, %s6993_s24  ;;  %v1498_v50 = vpop.permute.xlu2 %1497  ;;  %v1962_v46 = vrot.slane %v1960_v35, 4 }
 0x165   : > { %v1484_v48 = vpop.permute.xlu1 %1483  ;;  %1605 = vst.msk [vmem:[#allocation2 + $0x94] sm:$0xf] %vm1567_vm9, %v1498_v50  ;;  %v2009_v50 = vshll.u32 %v1919_v39, 16 }
 0x166   : > { %1598 = vst.msk [vmem:[#allocation2 + $0x78] sm:$0xf] %vm1567_vm9, %v1484_v48  ;;  %v1482_v49 = vpop.permute.xlu0 %1481  ;;  %v1898_v48 = vld [vmem:[%s7342_s16 + $0x8] sm:$0xf] }
 0x167   : > { %1597 = vst.msk [vmem:[#allocation2 + $0x74] sm:$0xf] %vm1567_vm9, %v1482_v49 }
 0x16a   : > { %1763 = vrot.lane.b32.xlu2 %v1649_v53, %s6993_s24  ;;  %v1989_v53 = vshll.u32 %v1917_v41, 16 }
 0x16b   : > { %1767 = vrot.lane.b32.xlu1 %v1651_v51, %s6993_s24  ;;  %v2013_v51 = vshrl.u32 %v1919_v39, 16 }
 0x16c   : > { %1765 = vrot.lane.b32.xlu0 %v1650_v52, %s6993_s24  ;;  %v1504_v56 = vpop.permute.xlu2 %1503  ;;  %v1986_v52 = vor.u32 %v1985_v38, %v7811_v37 }
 0x16d   : > { %v1490_v54 = vpop.permute.xlu1 %1489  ;;  %1608 = vst.msk [vmem:[#allocation2 + $0xa0] sm:$0xf] %vm1567_vm9, %v1504_v56  ;;  %v1897_v56 = vld [vmem:[%s7342_s16 + $0x4] sm:$0xf] }
 0x16e   : > { %1601 = vst.msk [vmem:[#allocation2 + $0x84] sm:$0xf] %vm1567_vm9, %v1490_v54  ;;  %v1488_v55 = vpop.permute.xlu0 %1487  ;;  %v1999_v54 = vshll.u32 %v1918_v44, 16 }
 0x16f   : > { %1600 = vst.msk [vmem:[#allocation2 + $0x80] sm:$0xf] %vm1567_vm9, %v1488_v55  ;;  %v2003_v55 = vshrl.u32 %v1918_v44, 16 }
 0x172   : > { %1769 = vrot.lane.b32.xlu2 %v1652_v59, %s6993_s24  ;;  %v1896_v59 = vld [vmem:[%s7342_s16] sm:$0xf] }
 0x173   : > { %1773 = vrot.lane.b32.xlu1 %v1654_v57, %s6993_s24  ;;  %v1976_v57 = vor.u32 %v1975_v43, %v7816_v42 }
 0x174   : > { %1771 = vrot.lane.b32.xlu0 %v1653_v58, %s6993_s24  ;;  %v1510_v62 = vpop.permute.xlu2 %1509  ;;  %v1993_v58 = vshrl.u32 %v1917_v41, 16 }
 0x175   : > { %v1496_v60 = vpop.permute.xlu1 %1495  ;;  %1611 = vst.msk [vmem:[#allocation2 + $0xac] sm:$0xf] %vm1567_vm9, %v1510_v62  ;;  %v2015_v62 = vrot.slane %v2013_v51, 4 }
 0x176   : > { %1604 = vst.msk [vmem:[#allocation2 + $0x90] sm:$0xf] %vm1567_vm9, %v1496_v60  ;;  %v1494_v61 = vpop.permute.xlu0 %1493  ;;  %v1966_v60 = vor.u32 %v1965_v47, %v1962_v46  ;;  %v2059_v46 = vshll.u32 %v1924_v36, 16  ;;  %v2063_v47 = vshrl.u32 %v1924_v36, 16 }
 0x177   : > { %1603 = vst.msk [vmem:[#allocation2 + $0x8c] sm:$0xf] %vm1567_vm9, %v1494_v61  ;;  %v7828_v61 = vrot.slane %v2009_v50, 5  ;;  %v2053_v50 = vshrl.u32 %v1923_v33, 16 }
 0x17a   : > { %1775 = vrot.lane.b32.xlu2 %v1655_v1, %s6993_s24  ;;  %v1920_v1 = vld [vmem:[%s7093_s11 + $0x24] sm:$0xf] }
 0x17b   : > { %1779 = vrot.lane.b32.xlu1 %v1657_v63, %s6993_s24  ;;  %v1987_v63 = vrot.slane %v1986_v52, 4  ;;  %v2023_v21 = vshrl.u32 %v1920_v1, 16 }
 0x17c   : > { %1777 = vrot.lane.b32.xlu0 %v1656_v0, %s6993_s24  ;;  %v1516_v4 = vpop.permute.xlu2 %1515  ;;  %v1991_v0 = vrot.slane %v1989_v53, 5 }
 0x17d   : > { %v1502_v2 = vpop.permute.xlu1 %1501  ;;  %1614 = vst.msk [vmem:[#allocation2 + $0xb8] sm:$0xf] %vm1567_vm9, %v1516_v4  ;;  %v2025_v39 = vrot.slane %v2023_v21, 4  ;;  %v1931_v21 = vld [vmem:[%s7093_s11 + $0x50] sm:$0xf] }
 0x17e   : > { %1607 = vst.msk [vmem:[#allocation2 + $0x9c] sm:$0xf] %vm1567_vm9, %v1502_v2  ;;  %v1500_v3 = vpop.permute.xlu0 %1499  ;;  %v7832_v2 = vrot.slane %v1999_v54, 5 }
 0x17f   : > { %1606 = vst.msk [vmem:[#allocation2 + $0x98] sm:$0xf] %vm1567_vm9, %v1500_v3  ;;  %v2005_v3 = vrot.slane %v2003_v55, 4 }
 0x182   : > { %1781 = vrot.lane.b32.xlu2 %v1658_v7, %s6993_s24 }
 0x183   : > { %1785 = vrot.lane.b32.xlu1 %v1660_v5, %s6993_s24  ;;  %v1977_v5 = vrot.slane %v1976_v57, 4  ;;  %v1926_v57 = vld [vmem:[%s7093_s11 + $0x3c] sm:$0xf] }
 0x184   : > { %1783 = vrot.lane.b32.xlu0 %v1659_v6, %s6993_s24  ;;  %v1716_v10 = vpop.permute.xlu2 %1715  ;;  %v1922_v6 = vld [vmem:[%s7093_s11 + $0x2c] sm:$0xf] }
 0x185   : > { %v1508_v8 = vpop.permute.xlu1 %1507  ;;  %1851 = vst.msk [vmem:[#allocation2] sm:$0xf] %vm1850_vm13, %v1716_v10  ;;  %v1995_v10 = vrot.slane %v1993_v58, 4  ;;  %v7878_v58 = vrot.slane %v2059_v46, 5 }
 0x186   : > { %1610 = vst.msk [vmem:[#allocation2 + $0xa8] sm:$0xf] %vm1567_vm9, %v1508_v8  ;;  %v1506_v9 = vpop.permute.xlu0 %1505  ;;  %v1967_v8 = vrot.slane %v1966_v60, 4 }
 0x187   : > { %1609 = vst.msk [vmem:[#allocation2 + $0xa4] sm:$0xf] %vm1567_vm9, %v1506_v9  ;;  %v1921_v9 = vld [vmem:[%s7093_s11 + $0x28] sm:$0xf]  ;;  %v1996_v23 = vor.u32 %v1995_v10, %v1991_v0 }
 0x189   : > { %v1997_v38 = vrot.slane %v1996_v23, 4  ;;  %v1929_v23 = vld [vmem:[%s7093_s11 + $0x48] sm:$0xf] }
 0x18a   : > { %1787 = vrot.lane.b32.xlu2 %v1661_v13, %s6993_s24 }
 0x18b   : > { %1791 = vrot.lane.b32.xlu1 %v1663_v11, %s6993_s24  ;;  %v2016_v11 = vor.u32 %v2015_v62, %v7828_v61  ;;  %v2002_v51 = vsel %vm7103_vm2, %v1997_v38, %v7832_v2  ;;  %v1928_v62 = vld [vmem:[%s7093_s11 + $0x44] sm:$0xf] }
 0x18c   : > { %1789 = vrot.lane.b32.xlu0 %v1662_v12, %s6993_s24  ;;  %v1722_v16 = vpop.permute.xlu2 %1721  ;;  %v2019_v12 = vshll.u32 %v1920_v1, 16  ;;  %v1927_v1 = vld [vmem:[%s7093_s11 + $0x40] sm:$0xf] }
 0x18d   : > { %v1514_v14 = vpop.permute.xlu1 %1513  ;;  %1854 = vst.msk [vmem:[#allocation2 + $0xc] sm:$0xf] %vm1850_vm13, %v1722_v16  ;;  %v2039_v16 = vshll.u32 %v1922_v6, 16 }
 0x18e   : > { %1613 = vst.msk [vmem:[#allocation2 + $0xb4] sm:$0xf] %vm1567_vm9, %v1514_v14  ;;  %v1512_v15 = vpop.permute.xlu0 %1511  ;;  %v1992_v14 = vsel %vm7103_vm2, %v1987_v63, %v1991_v0  ;;  %v2021_v26 = vrot.slane %v2019_v12, 5  ;;  %v2093_v12 = vshrl.u32 %v1927_v1, 16 }
 0x18f   : > { %1612 = vst.msk [vmem:[#allocation2 + $0xb0] sm:$0xf] %vm1567_vm9, %v1512_v15  ;;  %v2006_v15 = vor.u32 %v2005_v3, %v7832_v2  ;;  %v7852_v28 = vrot.slane %v2039_v16, 5  ;;  %v2055_v2 = vrot.slane %v2053_v50, 4  ;;  %vm3302_vm9 = vcmask 224448  }
 0x190   : > { %v2026_v52 = vor.u32 %v2025_v39, %v2021_v26 }
 0x192   : > { %1793 = vrot.lane.b32.xlu2 %v1664_v19, %s6993_s24  ;;  %v2029_v19 = vshll.u32 %v1921_v9, 16  ;;  %v2027_v0 = vrot.slane %v2026_v52, 4 }
 0x193   : > { %1797 = vrot.lane.b32.xlu1 %v1666_v17, %s6993_s24  ;;  %v2043_v17 = vshrl.u32 %v1922_v6, 16 }
 0x194   : > { %1795 = vrot.lane.b32.xlu0 %v1665_v18, %s6993_s24  ;;  %v1728_v25 = vpop.permute.xlu2 %1727  ;;  %v1982_v18 = vsel %vm7103_vm2, %v1977_v5, %v7811_v37 }
 0x195   : > { %v1621_v20 = vpop.permute.xlu1 %1620  ;;  %1857 = vst.msk [vmem:[#allocation2 + $0x18] sm:$0xf] %vm1850_vm13, %v1728_v25  ;;  %v2017_v25 = vrot.slane %v2016_v11, 4  ;;  %v2045_v29 = vrot.slane %v2043_v17, 4  ;;  %v2089_v11 = vshll.u32 %v1927_v1, 16 }
 0x196   : > { %1624 = vst.msk [vmem:[#allocation2 + $0xbc] sm:$0x8] %vm1623_vm14, %v1621_v20  ;;  %v1518_v22 = vpop.permute.xlu0 %1517  ;;  %v2033_v20 = vshrl.u32 %v1921_v9, 16  ;;  %v2103_v9 = vshrl.u32 %v1928_v62, 16  ;;  %vm4453_vm14 = vcmask 290048  }
 0x197   : > { %1616 = vst.msk [vmem:[#allocation2 + $0xbc] sm:$0x7] %vm1615_vm15, %v1518_v22  ;;  %v1972_v22 = vsel %vm7103_vm2, %v1967_v8, %v7816_v42  ;;  %v2046_v44 = vor.u32 %v2045_v29, %v7852_v28  ;;  %v2099_v8 = vshll.u32 %v1928_v62, 16  ;;  %vm4747_vm15 = vcmask 293888  }
 0x198   : > { %v2035_v35 = vrot.slane %v2033_v20, 4  ;;  %v2105_v20 = vrot.slane %v2103_v9, 4 }
 0x199   : > { %v2047_v55 = vrot.slane %v2046_v44, 4 }
 0x19a   : > { %1799 = vrot.lane.b32.xlu2 %v1667_v34, %s6993_s24  ;;  %v7857_v34 = vrot.slane %v2029_v19, 5  ;;  %v7898_v19 = vrot.slane %v2099_v8, 5 }
 0x19b   : > { %1803 = vrot.lane.b32.xlu1 %v1669_v27, %s6993_s24  ;;  %v2007_v27 = vrot.slane %v2006_v15, 4 }
 0x19c   : > { %1801 = vrot.lane.b32.xlu0 %v1668_v30, %s6993_s24  ;;  %v1734_v49 = vpop.permute.xlu2 %1733  ;;  %v1925_v30 = vld [vmem:[%s7093_s11 + $0x38] sm:$0xf]  ;;  %v2106_v36 = vor.u32 %v2105_v20, %v7898_v19 }
 0x19d   : > { %v1720_v40 = vpop.permute.xlu1 %1719  ;;  %1860 = vst.msk [vmem:[#allocation2 + $0x24] sm:$0xf] %vm1850_vm13, %v1734_v49  ;;  %v2069_v42 = vshll.u32 %v1925_v30, 16  ;;  %v2073_v43 = vshrl.u32 %v1925_v30, 16  ;;  %v2036_v49 = vor.u32 %v2035_v35, %v7857_v34  ;;  %v2133_v35 = vshrl.u32 %v1931_v21, 16 }
 0x19e   : > { %1853 = vst.msk [vmem:[#allocation2 + $0x8] sm:$0xf] %vm1850_vm13, %v1720_v40  ;;  %v1718_v45 = vpop.permute.xlu0 %1717  ;;  %v2022_v40 = vsel %vm7103_vm2, %v2017_v25, %v2021_v26  ;;  %v7903_v25 = vrot.slane %v2089_v11, 5  ;;  %v2095_v26 = vrot.slane %v2093_v12, 4 }
 0x19f   : > { %1852 = vst.msk [vmem:[#allocation2 + $0x4] sm:$0xf] %vm1850_vm13, %v1718_v45  ;;  %v2049_v45 = vshll.u32 %v1923_v33, 16  ;;  %v7874_v53 = vrot.slane %v2069_v42, 5  ;;  %v2075_v54 = vrot.slane %v2073_v43, 4  ;;  %v2113_v42 = vshrl.u32 %v1929_v23, 16 }
 0x1a0   : > { %v2135_v46 = vrot.slane %v2133_v35, 4 }
 0x1a1   : > { %v2076_v3 = vor.u32 %v2075_v54, %v7874_v53  ;;  %v1934_v54 = vld [vmem:[%s7093_s11 + $0x5c] sm:$0xf] }
 0x1a2   : > { %1902 = vrot.lane.b32.xlu2 %v1896_v59, %s6993_s24  ;;  %v2065_v59 = vrot.slane %v2063_v47, 4  ;;  %v2107_v47 = vrot.slane %v2106_v36, 4  ;;  %v2163_v1 = vshrl.u32 %v1934_v54, 16 }
 0x1a3   : > { %1906 = vrot.lane.b32.xlu1 %v1898_v48, %s6993_s24  ;;  %v2012_v48 = vsel %vm7103_vm2, %v2007_v27, %v7828_v61  ;;  %v2037_v61 = vrot.slane %v2036_v49, 4  ;;  %v2077_v16 = vrot.slane %v2076_v3, 4  ;;  %v1930_v27 = vld [vmem:[%s7093_s11 + $0x4c] sm:$0xf]  ;;  %v1932_v49 = vld [vmem:[%s7093_s11 + $0x54] sm:$0xf] }
 0x1a4   : > { %1904 = vrot.lane.b32.xlu0 %v1897_v56, %s6993_s24  ;;  %v1740_v13 = vpop.permute.xlu2 %1739  ;;  %v2051_v56 = vrot.slane %v2049_v45, 5  ;;  %v2119_v38 = vshll.u32 %v1930_v27, 16  ;;  %v2123_v39 = vshrl.u32 %v1930_v27, 16  ;;  %v2165_v12 = vrot.slane %v2163_v1, 4 }
 0x1a5   : > { %v1726_v4 = vpop.permute.xlu1 %1725  ;;  %1863 = vst.msk [vmem:[#allocation2 + $0x30] sm:$0xf] %vm1850_vm13, %v1740_v13  ;;  %v2042_v10 = vsel %vm7103_vm2, %v2037_v61, %v7852_v28  ;;  %v2083_v13 = vshrl.u32 %v1926_v57, 16 }
 0x1a6   : > { %1856 = vst.msk [vmem:[#allocation2 + $0x14] sm:$0xf] %vm1850_vm13, %v1726_v4  ;;  %v1724_v7 = vpop.permute.xlu0 %1723  ;;  %v2079_v4 = vshll.u32 %v1926_v57, 16  ;;  %v2052_v6 = vsel %vm7103_vm2, %v2047_v55, %v2051_v56  ;;  %v2056_v15 = vor.u32 %v2055_v2, %v2051_v56  ;;  %v7924_v50 = vrot.slane %v2119_v38, 5  ;;  %v1933_v57 = vld [vmem:[%s7093_s11 + $0x58] sm:$0xf] }
 0x1a7   : > { %1855 = vst.msk [vmem:[#allocation2 + $0x10] sm:$0xf] %vm1850_vm13, %v1724_v7  ;;  %v2066_v7 = vor.u32 %v2065_v59, %v7878_v58  ;;  %v2085_v30 = vrot.slane %v2083_v13, 4  ;;  %v2149_v3 = vshll.u32 %v1933_v57, 16  ;;  %v1937_v13 = vld [vmem:[%s7093_s11 + $0x68] sm:$0xf] }
 0x1a8   : > { %v2081_v17 = vrot.slane %v2079_v4, 5  ;;  %v2057_v29 = vrot.slane %v2056_v15, 4  ;;  %v2153_v4 = vshrl.u32 %v1933_v57, 16  ;;  %v1935_v15 = vld [vmem:[%s7093_s11 + $0x60] sm:$0xf] }
 0x1aa   : > { %2408 = vrot.lane.b32.xlu2 %v1972_v22, %s6994_s25  ;;  %v2062_v43 = vsel %vm7103_vm2, %v2057_v29, %v7878_v58  ;;  %v2086_v44 = vor.u32 %v2085_v30, %v2081_v17  ;;  %v2115_v58 = vrot.slane %v2113_v42, 4 }
 0x1ab   : > { %2412 = vrot.lane.b32.xlu1 %v1992_v14, %s6994_s25  ;;  %v2032_v14 = vsel %vm7103_vm2, %v2027_v0, %v7857_v34  ;;  %v2129_v34 = vshll.u32 %v1931_v21, 16  ;;  %v2159_v0 = vshll.u32 %v1934_v54, 16 }
 0x1ac   : > { %2410 = vrot.lane.b32.xlu0 %v1982_v18, %s6994_s25  ;;  %v1746_v41 = vpop.permute.xlu2 %1745  ;;  %v2067_v18 = vrot.slane %v2066_v7, 4  ;;  %v2087_v56 = vrot.slane %v2086_v44, 4 }
 0x1ad   : > { %v1732_v31 = vpop.permute.xlu1 %1731  ;;  %1866 = vst.msk [vmem:[#allocation2 + $0x3c] sm:$0xf] %vm1850_vm13, %v1746_v41  ;;  %v2096_v41 = vor.u32 %v2095_v26, %v7903_v25  ;;  %v7920_v45 = vrot.slane %v2129_v34, 5  ;;  %v7944_v11 = vrot.slane %v2159_v0, 5  ;;  %v2193_v26 = vshrl.u32 %v1937_v13, 16 }
 0x1ae   : > { %1859 = vst.msk [vmem:[#allocation2 + $0x20] sm:$0xf] %vm1850_vm13, %v1732_v31  ;;  %v1730_v37 = vpop.permute.xlu0 %1729  ;;  %v2082_v31 = vsel %vm7103_vm2, %v2077_v16, %v2081_v17  ;;  %v7949_v16 = vrot.slane %v2149_v3, 5  ;;  %v2155_v17 = vrot.slane %v2153_v4, 4  ;;  %v2173_v34 = vshrl.u32 %v1935_v15, 16 }
 0x1af   : > { %1858 = vst.msk [vmem:[#allocation2 + $0x1c] sm:$0xf] %vm1850_vm13, %v1730_v37  ;;  %v2109_v37 = vshll.u32 %v1929_v23, 16  ;;  %v2136_v59 = vor.u32 %v2135_v46, %v7920_v45  ;;  %v2166_v27 = vor.u32 %v2165_v12, %v7944_v11  ;;  %v2195_v38 = vrot.slane %v2193_v26, 4  ;;  %v1940_v46 = vld [vmem:[%s7093_s11 + $0x74] sm:$0xf] }
 0x1b0   : > { %v2223_v57 = vshrl.u32 %v1940_v46, 16 }
 0x1b1   : > { %v2137_v8 = vrot.slane %v2136_v59, 4 }
 0x1b2   : > { %2414 = vrot.lane.b32.xlu2 %v2002_v51, %s6994_s25  ;;  %v2125_v51 = vrot.slane %v2123_v39, 4  ;;  %v2167_v39 = vrot.slane %v2166_v27, 4  ;;  %v2225_v4 = vrot.slane %v2223_v57, 4 }
 0x1b3   : > { %2418 = vrot.lane.b32.xlu1 %v2022_v40, %s6994_s25  ;;  %v2072_v40 = vsel %vm7103_vm2, %v2067_v18, %v7874_v53  ;;  %v2097_v53 = vrot.slane %v2096_v41, 4  ;;  %v1936_v18 = vld [vmem:[%s7093_s11 + $0x64] sm:$0xf]  ;;  %v1938_v41 = vld [vmem:[%s7093_s11 + $0x6c] sm:$0xf] }
 0x1b4   : > { %2416 = vrot.lane.b32.xlu0 %v2012_v48, %s6994_s25  ;;  %v1752_v5 = vpop.permute.xlu2 %1751  ;;  %v2111_v48 = vrot.slane %v2109_v37, 5  ;;  %v2179_v29 = vshll.u32 %v1936_v18, 16  ;;  %v2183_v30 = vshrl.u32 %v1936_v18, 16 }
 0x1b5   : > { %v1738_v60 = vpop.permute.xlu1 %1737  ;;  %1869 = vst.msk [vmem:[#allocation2 + $0x48] sm:$0xf] %vm1850_vm13, %v1752_v5  ;;  %v2102_v2 = vsel %vm7103_vm2, %v2097_v53, %v7898_v19  ;;  %v2143_v5 = vshrl.u32 %v1932_v49, 16 }
 0x1b6   : > { %1862 = vst.msk [vmem:[#allocation2 + $0x2c] sm:$0xf] %vm1850_vm13, %v1738_v60  ;;  %v1736_v63 = vpop.permute.xlu0 %1735  ;;  %v2139_v60 = vshll.u32 %v1932_v49, 16  ;;  %v2112_v62 = vsel %vm7103_vm2, %v2107_v47, %v2111_v48  ;;  %v2116_v7 = vor.u32 %v2115_v58, %v2111_v48  ;;  %v7970_v42 = vrot.slane %v2179_v29, 5  ;;  %v1939_v49 = vld [vmem:[%s7093_s11 + $0x70] sm:$0xf] }
 0x1b7   : > { %1861 = vst.msk [vmem:[#allocation2 + $0x28] sm:$0xf] %vm1850_vm13, %v1736_v63  ;;  %v2126_v63 = vor.u32 %v2125_v51, %v7924_v50  ;;  %v2145_v21 = vrot.slane %v2143_v5, 4  ;;  %v2209_v59 = vshll.u32 %v1939_v49, 16  ;;  %v1943_v5 = vld [vmem:[%s7093_s11 + $0x80] sm:$0xf] }
 0x1b8   : > { %v2141_v9 = vrot.slane %v2139_v60, 5  ;;  %v2117_v20 = vrot.slane %v2116_v7, 4  ;;  %v2213_v60 = vshrl.u32 %v1939_v49, 16  ;;  %v1941_v7 = vld [vmem:[%s7093_s11 + $0x78] sm:$0xf] }
 0x1ba   : > { %2420 = vrot.lane.b32.xlu2 %v2032_v14, %s6994_s25  ;;  %v2122_v35 = vsel %vm7103_vm2, %v2117_v20, %v7924_v50  ;;  %v2146_v36 = vor.u32 %v2145_v21, %v2141_v9  ;;  %v2175_v50 = vrot.slane %v2173_v34, 4 }
 0x1bb   : > { %2424 = vrot.lane.b32.xlu1 %v2052_v6, %s6994_s25  ;;  %v2092_v6 = vsel %vm7103_vm2, %v2087_v56, %v7903_v25  ;;  %v2189_v25 = vshll.u32 %v1937_v13, 16  ;;  %v2219_v56 = vshll.u32 %v1940_v46, 16 }
 0x1bc   : > { %2422 = vrot.lane.b32.xlu0 %v2042_v10, %s6994_s25  ;;  %v1758_v33 = vpop.permute.xlu2 %1757  ;;  %v2127_v10 = vrot.slane %v2126_v63, 4  ;;  %v2147_v48 = vrot.slane %v2146_v36, 4 }
 0x1bd   : > { %v1744_v22 = vpop.permute.xlu1 %1743  ;;  %1872 = vst.msk [vmem:[#allocation2 + $0x54] sm:$0xf] %vm1850_vm13, %v1758_v33  ;;  %v2156_v33 = vor.u32 %v2155_v17, %v7949_v16  ;;  %v7966_v37 = vrot.slane %v2189_v25, 5  ;;  %v7990_v3 = vrot.slane %v2219_v56, 5  ;;  %v2253_v17 = vshrl.u32 %v1943_v5, 16 }
 0x1be   : > { %1865 = vst.msk [vmem:[#allocation2 + $0x38] sm:$0xf] %vm1850_vm13, %v1744_v22  ;;  %v1742_v28 = vpop.permute.xlu0 %1741  ;;  %v2142_v22 = vsel %vm7103_vm2, %v2137_v8, %v2141_v9  ;;  %v7995_v8 = vrot.slane %v2209_v59, 5  ;;  %v2215_v9 = vrot.slane %v2213_v60, 4  ;;  %v2233_v25 = vshrl.u32 %v1941_v7, 16 }
 0x1bf   : > { %1864 = vst.msk [vmem:[#allocation2 + $0x34] sm:$0xf] %vm1850_vm13, %v1742_v28  ;;  %v2169_v28 = vshll.u32 %v1935_v15, 16  ;;  %v2196_v51 = vor.u32 %v2195_v38, %v7966_v37  ;;  %v2226_v18 = vor.u32 %v2225_v4, %v7990_v3  ;;  %v2255_v29 = vrot.slane %v2253_v17, 4  ;;  %v1946_v38 = vld [vmem:[%s7093_s11 + $0x8c] sm:$0xf] }
 0x1c0   : > { %v2283_v49 = vshrl.u32 %v1946_v38, 16 }
 0x1c1   : > { %v2197_v0 = vrot.slane %v2196_v51, 4 }
 0x1c2   : > { %2426 = vrot.lane.b32.xlu2 %v2062_v43, %s6994_s25  ;;  %v2185_v43 = vrot.slane %v2183_v30, 4  ;;  %v2227_v30 = vrot.slane %v2226_v18, 4  ;;  %v2285_v60 = vrot.slane %v2283_v49, 4 }
 0x1c3   : > { %2430 = vrot.lane.b32.xlu1 %v2082_v31, %s6994_s25  ;;  %v2132_v31 = vsel %vm7103_vm2, %v2127_v10, %v7920_v45  ;;  %v2157_v45 = vrot.slane %v2156_v33, 4  ;;  %v1942_v10 = vld [vmem:[%s7093_s11 + $0x7c] sm:$0xf]  ;;  %v1944_v33 = vld [vmem:[%s7093_s11 + $0x84] sm:$0xf] }
 0x1c4   : > { %2428 = vrot.lane.b32.xlu0 %v2072_v40, %s6994_s25  ;;  %v1764_v61 = vpop.permute.xlu2 %1763  ;;  %v2171_v40 = vrot.slane %v2169_v28, 5  ;;  %v2239_v20 = vshll.u32 %v1942_v10, 16  ;;  %v2243_v21 = vshrl.u32 %v1942_v10, 16 }
 0x1c5   : > { %v1750_v52 = vpop.permute.xlu1 %1749  ;;  %1875 = vst.msk [vmem:[#allocation2 + $0x60] sm:$0xf] %vm1850_vm13, %v1764_v61  ;;  %v2162_v58 = vsel %vm7103_vm2, %v2157_v45, %v7944_v11  ;;  %v2203_v61 = vshrl.u32 %v1938_v41, 16 }
 0x1c6   : > { %1868 = vst.msk [vmem:[#allocation2 + $0x44] sm:$0xf] %vm1850_vm13, %v1750_v52  ;;  %v1748_v55 = vpop.permute.xlu0 %1747  ;;  %v2199_v52 = vshll.u32 %v1938_v41, 16  ;;  %v2172_v54 = vsel %vm7103_vm2, %v2167_v39, %v2171_v40  ;;  %v2176_v63 = vor.u32 %v2175_v50, %v2171_v40  ;;  %v8016_v34 = vrot.slane %v2239_v20, 5  ;;  %v1945_v41 = vld [vmem:[%s7093_s11 + $0x88] sm:$0xf] }
 0x1c7   : > { %1867 = vst.msk [vmem:[#allocation2 + $0x40] sm:$0xf] %vm1850_vm13, %v1748_v55  ;;  %v2186_v55 = vor.u32 %v2185_v43, %v7970_v42  ;;  %v2205_v13 = vrot.slane %v2203_v61, 4  ;;  %v2269_v51 = vshll.u32 %v1945_v41, 16  ;;  %v1949_v61 = vld [vmem:[%s7093_s11 + $0x98] sm:$0xf] }
 0x1c8   : > { %v2201_v1 = vrot.slane %v2199_v52, 5  ;;  %v2177_v12 = vrot.slane %v2176_v63, 4  ;;  %v2273_v52 = vshrl.u32 %v1945_v41, 16  ;;  %v1947_v63 = vld [vmem:[%s7093_s11 + $0x90] sm:$0xf] }
 0x1ca   : > { %2432 = vrot.lane.b32.xlu2 %v2092_v6, %s6994_s25  ;;  %v2182_v26 = vsel %vm7103_vm2, %v2177_v12, %v7970_v42  ;;  %v2206_v27 = vor.u32 %v2205_v13, %v2201_v1  ;;  %v2235_v42 = vrot.slane %v2233_v25, 4 }
 0x1cb   : > { %2436 = vrot.lane.b32.xlu1 %v2112_v62, %s6994_s25  ;;  %v2152_v62 = vsel %vm7103_vm2, %v2147_v48, %v7949_v16  ;;  %v2249_v16 = vshll.u32 %v1943_v5, 16  ;;  %v2279_v48 = vshll.u32 %v1946_v38, 16 }
 0x1cc   : > { %2434 = vrot.lane.b32.xlu0 %v2102_v2, %s6994_s25  ;;  %v1770_v23 = vpop.permute.xlu2 %1769  ;;  %v2187_v2 = vrot.slane %v2186_v55, 4  ;;  %v2207_v40 = vrot.slane %v2206_v27, 4 }
 0x1cd   : > { %v1756_v14 = vpop.permute.xlu1 %1755  ;;  %1878 = vst.msk [vmem:[#allocation2 + $0x6c] sm:$0xf] %vm1850_vm13, %v1770_v23  ;;  %v2216_v23 = vor.u32 %v2215_v9, %v7995_v8  ;;  %v8012_v28 = vrot.slane %v2249_v16, 5  ;;  %v8036_v59 = vrot.slane %v2279_v48, 5  ;;  %v2313_v9 = vshrl.u32 %v1949_v61, 16 }
 0x1ce   : > { %1871 = vst.msk [vmem:[#allocation2 + $0x50] sm:$0xf] %vm1850_vm13, %v1756_v14  ;;  %v1754_v19 = vpop.permute.xlu0 %1753  ;;  %v2202_v14 = vsel %vm7103_vm2, %v2197_v0, %v2201_v1  ;;  %v8041_v0 = vrot.slane %v2269_v51, 5  ;;  %v2275_v1 = vrot.slane %v2273_v52, 4  ;;  %v2293_v16 = vshrl.u32 %v1947_v63, 16 }
 0x1cf   : > { %1870 = vst.msk [vmem:[#allocation2 + $0x4c] sm:$0xf] %vm1850_vm13, %v1754_v19  ;;  %v2229_v19 = vshll.u32 %v1941_v7, 16  ;;  %v2256_v43 = vor.u32 %v2255_v29, %v8012_v28  ;;  %v2286_v10 = vor.u32 %v2285_v60, %v8036_v59  ;;  %v2315_v20 = vrot.slane %v2313_v9, 4  ;;  %v1952_v29 = vld [vmem:[%s7093_s11 + $0xa4] sm:$0xf] }
 0x1d0   : > { %v2343_v41 = vshrl.u32 %v1952_v29, 16  ;;  %v1954_v60 = vld [vmem:[%s7093_s11 + $0xac] sm:$0xf] }
 0x1d1   : > { %v2257_v56 = vrot.slane %v2256_v43, 4 }
 0x1d2   : > { %2438 = vrot.lane.b32.xlu2 %v2122_v35, %s6994_s25  ;;  %v2245_v35 = vrot.slane %v2243_v21, 4  ;;  %v2287_v21 = vrot.slane %v2286_v10, 4  ;;  %v2345_v52 = vrot.slane %v2343_v41, 4 }
 0x1d3   : > { %2442 = vrot.lane.b32.xlu1 %v2142_v22, %s6994_s25  ;;  %v2192_v22 = vsel %vm7103_vm2, %v2187_v2, %v7966_v37  ;;  %v2217_v37 = vrot.slane %v2216_v23, 4  ;;  %v1948_v2 = vld [vmem:[%s7093_s11 + $0x94] sm:$0xf]  ;;  %v1950_v23 = vld [vmem:[%s7093_s11 + $0x9c] sm:$0xf] }
 0x1d4   : > { %2440 = vrot.lane.b32.xlu0 %v2132_v31, %s6994_s25  ;;  %v1776_v53 = vpop.permute.xlu2 %1775  ;;  %v2231_v31 = vrot.slane %v2229_v19, 5  ;;  %v2299_v12 = vshll.u32 %v1948_v2, 16  ;;  %v2303_v13 = vshrl.u32 %v1948_v2, 16 }
 0x1d5   : > { %v1762_v44 = vpop.permute.xlu1 %1761  ;;  %1881 = vst.msk [vmem:[#allocation2 + $0x78] sm:$0xf] %vm1850_vm13, %v1776_v53  ;;  %v2222_v50 = vsel %vm7103_vm2, %v2217_v37, %v7990_v3  ;;  %v2263_v53 = vshrl.u32 %v1944_v33, 16 }
 0x1d6   : > { %1874 = vst.msk [vmem:[#allocation2 + $0x5c] sm:$0xf] %vm1850_vm13, %v1762_v44  ;;  %v1760_v47 = vpop.permute.xlu0 %1759  ;;  %v2259_v44 = vshll.u32 %v1944_v33, 16  ;;  %v2232_v46 = vsel %vm7103_vm2, %v2227_v30, %v2231_v31  ;;  %v2236_v55 = vor.u32 %v2235_v42, %v2231_v31  ;;  %v8062_v25 = vrot.slane %v2299_v12, 5  ;;  %v1951_v33 = vld [vmem:[%s7093_s11 + $0xa0] sm:$0xf] }
 0x1d7   : > { %1873 = vst.msk [vmem:[#allocation2 + $0x58] sm:$0xf] %vm1850_vm13, %v1760_v47  ;;  %v2246_v47 = vor.u32 %v2245_v35, %v8016_v34  ;;  %v2265_v5 = vrot.slane %v2263_v53, 4  ;;  %v2329_v43 = vshll.u32 %v1951_v33, 16 }
 0x1d8   : > { %v2261_v57 = vrot.slane %v2259_v44, 5  ;;  %v2237_v4 = vrot.slane %v2236_v55, 4  ;;  %v2333_v44 = vshrl.u32 %v1951_v33, 16 }
 0x1d9   : > { %v8086_v55 = vrot.slane %v2329_v43, 5 }
 0x1da   : > { %2444 = vrot.lane.b32.xlu2 %v2152_v62, %s6994_s25  ;;  %v2242_v17 = vsel %vm7103_vm2, %v2237_v4, %v8016_v34  ;;  %v2266_v18 = vor.u32 %v2265_v5, %v2261_v57  ;;  %v2295_v34 = vrot.slane %v2293_v16, 4 }
 0x1db   : > { %2448 = vrot.lane.b32.xlu1 %v2172_v54, %s6994_s25  ;;  %v2212_v54 = vsel %vm7103_vm2, %v2207_v40, %v7995_v8  ;;  %v2309_v8 = vshll.u32 %v1949_v61, 16  ;;  %v2339_v40 = vshll.u32 %v1952_v29, 16  ;;  %v1958_v29 = vld [vmem:[%s7093_s11 + $0xbc] sm:$0xf] }
 0x1dc   : > { %2446 = vrot.lane.b32.xlu0 %v2162_v58, %s6994_s25  ;;  %v1782_v15 = vpop.permute.xlu2 %1781  ;;  %v2247_v58 = vrot.slane %v2246_v47, 4  ;;  %v2267_v31 = vrot.slane %v2266_v18, 4 }
 0x1dd   : > { %v1768_v6 = vpop.permute.xlu1 %1767  ;;  %1884 = vst.msk [vmem:[#allocation2 + $0x84] sm:$0xf] %vm1850_vm13, %v1782_v15  ;;  %v2276_v15 = vor.u32 %v2275_v1, %v8041_v0  ;;  %v8058_v19 = vrot.slane %v2309_v8, 5  ;;  %v8082_v51 = vrot.slane %v2339_v40, 5 }
 0x1de   : > { %1877 = vst.msk [vmem:[#allocation2 + $0x68] sm:$0xf] %vm1850_vm13, %v1768_v6  ;;  %v1766_v11 = vpop.permute.xlu0 %1765  ;;  %v2262_v6 = vsel %vm7103_vm2, %v2257_v56, %v2261_v57  ;;  %v2335_v56 = vrot.slane %v2333_v44, 4  ;;  %v1955_v57 = vld [vmem:[%s7093_s11 + $0xb0] sm:$0xf] }
 0x1df   : > { %1876 = vst.msk [vmem:[#allocation2 + $0x64] sm:$0xf] %vm1850_vm13, %v1766_v11  ;;  %v2289_v11 = vshll.u32 %v1947_v63, 16  ;;  %v2316_v35 = vor.u32 %v2315_v20, %v8058_v19  ;;  %v2369_v2 = vshll.u32 %v1955_v57, 16 }
 0x1e0   : > { %v2336_v5 = vor.u32 %v2335_v56, %v8086_v55 }
 0x1e1   : > { %v2317_v48 = vrot.slane %v2316_v35, 4 }
 0x1e2   : > { %2450 = vrot.lane.b32.xlu2 %v2182_v26, %s6994_s25  ;;  %v2305_v26 = vrot.slane %v2303_v13, 4  ;;  %v2371_v13 = vrot.slane %v2369_v2, 5  ;;  %v2337_v16 = vrot.slane %v2336_v5, 4 }
 0x1e3   : > { %2454 = vrot.lane.b32.xlu1 %v2202_v14, %s6994_s25  ;;  %v2252_v14 = vsel %vm7103_vm2, %v2247_v58, %v8012_v28  ;;  %v2277_v28 = vrot.slane %v2276_v15, 4 }
 0x1e4   : > { %2452 = vrot.lane.b32.xlu0 %v2192_v22, %s6994_s25  ;;  %v1788_v45 = vpop.permute.xlu2 %1787  ;;  %v2291_v22 = vrot.slane %v2289_v11, 5 }
 0x1e5   : > { %v1774_v36 = vpop.permute.xlu1 %1773  ;;  %1887 = vst.msk [vmem:[#allocation2 + $0x90] sm:$0xf] %vm1850_vm13, %v1788_v45  ;;  %v2282_v42 = vsel %vm7103_vm2, %v2277_v28, %v8036_v59  ;;  %v2323_v45 = vshrl.u32 %v1950_v23, 16 }
 0x1e6   : > { %1880 = vst.msk [vmem:[#allocation2 + $0x74] sm:$0xf] %vm1850_vm13, %v1774_v36  ;;  %v1772_v39 = vpop.permute.xlu0 %1771  ;;  %v2319_v36 = vshll.u32 %v1950_v23, 16  ;;  %v2292_v38 = vsel %vm7103_vm2, %v2287_v21, %v2291_v22  ;;  %v2296_v47 = vor.u32 %v2295_v34, %v2291_v22  ;;  %v1957_v22 = vld [vmem:[%s7093_s11 + $0xb8] sm:$0xf] }
 0x1e7   : > { %1879 = vst.msk [vmem:[#allocation2 + $0x70] sm:$0xf] %vm1850_vm13, %v1772_v39  ;;  %v2306_v39 = vor.u32 %v2305_v26, %v8062_v25  ;;  %v2325_v61 = vrot.slane %v2323_v45, 4  ;;  %v2389_v33 = vshll.u32 %v1957_v22, 16  ;;  %v2393_v34 = vshrl.u32 %v1957_v22, 16 }
 0x1e8   : > { %v2321_v49 = vrot.slane %v2319_v36, 5  ;;  %v2297_v59 = vrot.slane %v2296_v47, 4 }
 0x1e9   : > { %v2391_v44 = vrot.slane %v2389_v33, 5  ;;  %v2395_v45 = vrot.slane %v2393_v34, 4 }
 0x1ea   : > { %2456 = vrot.lane.b32.xlu2 %v2212_v54, %s6994_s25  ;;  %v1953_v54 = vld [vmem:[%s7093_s11 + $0xa8] sm:$0xf]  ;;  %v2302_v9 = vsel %vm7103_vm2, %v2297_v59, %v8062_v25  ;;  %v2326_v10 = vor.u32 %v2325_v61, %v2321_v49 }
 0x1eb   : > { %2460 = vrot.lane.b32.xlu1 %v2232_v46, %s6994_s25  ;;  %v2272_v46 = vsel %vm7103_vm2, %v2267_v31, %v8041_v0  ;;  %v2346_v0 = vor.u32 %v2345_v52, %v8082_v51  ;;  %v2349_v1 = vshll.u32 %v1953_v54, 16  ;;  %v2353_v8 = vshrl.u32 %v1953_v54, 16 }
 0x1ec   : > { %2458 = vrot.lane.b32.xlu0 %v2222_v50, %s6994_s25  ;;  %v1794_v7 = vpop.permute.xlu2 %1793  ;;  %v2307_v50 = vrot.slane %v2306_v39, 4  ;;  %v2327_v21 = vrot.slane %v2326_v10, 4  ;;  %v2403_v39 = vshrl.u32 %v1958_v29, 16 }
 0x1ed   : > { %v1780_v62 = vpop.permute.xlu1 %1779  ;;  %1890 = vst.msk [vmem:[#allocation2 + $0x9c] sm:$0xf] %vm1850_vm13, %v1794_v7  ;;  %v2363_v7 = vshrl.u32 %v1954_v60, 16  ;;  %v2347_v11 = vrot.slane %v2346_v0, 4  ;;  %v2351_v12 = vrot.slane %v2349_v1, 5  ;;  %v2355_v23 = vrot.slane %v2353_v8, 4 }
 0x1ee   : > { %1883 = vst.msk [vmem:[#allocation2 + $0x80] sm:$0xf] %vm1850_vm13, %v1780_v62  ;;  %v1778_v3 = vpop.permute.xlu0 %1777  ;;  %v2322_v62 = vsel %vm7103_vm2, %v2317_v48, %v2321_v49  ;;  %v2312_v4 = vsel %vm7103_vm2, %v2307_v50, %v8058_v19  ;;  %v2332_v36 = vsel %vm7103_vm2, %v2327_v21, %v8086_v55  ;;  %v2593_v49 = vld [vmem:[%s7342_s16] sm:$0xf]  ;;  %v2405_v52 = vrot.slane %v2403_v39, 4 }
 0x1ef   : > { %1882 = vst.msk [vmem:[#allocation2 + $0x7c] sm:$0xf] %vm1850_vm13, %v1778_v3  ;;  %v2373_v3 = vshrl.u32 %v1955_v57, 16  ;;  %v2365_v19 = vrot.slane %v2363_v7, 4  ;;  %v2352_v26 = vsel %vm7103_vm2, %v2347_v11, %v2351_v12  ;;  %v2598_v59 = vshll.u32 %v2593_v49, 16 }
 0x1f0   : > { %v2652_v21 = vld [vmem:[%s7093_s11 + $0x10] sm:$0xf]  ;;  %v2655_v39 = vld [vmem:[%s7093_s11 + $0x1c] sm:$0xf] }
 0x1f1   : > { %v2600_v5 = vrot.slane %v2598_v59, 5 }
 0x1f2   : > { %2462 = vrot.lane.b32.xlu2 %v2242_v17, %s6994_s25  ;;  %v1956_v17 = vld [vmem:[%s7093_s11 + $0xb4] sm:$0xf] }
 0x1f3   : > { %2466 = vrot.lane.b32.xlu1 %v2262_v6, %s6994_s25  ;;  %v2359_v6 = vshll.u32 %v1954_v60, 16  ;;  %v2379_v28 = vshll.u32 %v1956_v17, 16  ;;  %v2383_v35 = vshrl.u32 %v1956_v17, 16  ;;  %v2601_v60 = vshrl.u32 %v2593_v49, 16 }
 0x1f4   : > { %2464 = vrot.lane.b32.xlu0 %v2252_v14, %s6994_s25  ;;  %v1800_v37 = vpop.permute.xlu2 %1799  ;;  %v2375_v14 = vrot.slane %v2373_v3, 4 }
 0x1f5   : > { %v1786_v27 = vpop.permute.xlu1 %1785  ;;  %1893 = vst.msk [vmem:[#allocation2 + $0xa8] sm:$0xf] %vm1850_vm13, %v1800_v37  ;;  %v2361_v18 = vrot.slane %v2359_v6, 5  ;;  %v2356_v37 = vor.u32 %v2355_v23, %v2351_v12  ;;  %v2381_v41 = vrot.slane %v2379_v28, 5  ;;  %v2385_v50 = vrot.slane %v2383_v35, 4 }
 0x1f6   : > { %1886 = vst.msk [vmem:[#allocation2 + $0x8c] sm:$0xf] %vm1850_vm13, %v1786_v27  ;;  %v1784_v30 = vpop.permute.xlu0 %1783  ;;  %v2376_v27 = vor.u32 %v2375_v14, %v2371_v13  ;;  %v2603_v6 = vrot.slane %v2601_v60, 4  ;;  %v2743_v28 = vrot.slane %v2652_v21, 5  ;;  %v2664_v21 = vld [vmem:[%s7093_s11 + $0x40] sm:$0xf] }
 0x1f7   : > { %1885 = vst.msk [vmem:[#allocation2 + $0x88] sm:$0xf] %vm1850_vm13, %v1784_v30  ;;  %v2342_v30 = vsel %vm7103_vm2, %v2337_v16, %v8082_v51  ;;  %v2366_v31 = vor.u32 %v2365_v19, %v2361_v18  ;;  %v2357_v48 = vrot.slane %v2356_v37, 4 }
 0x1f8   : > { %v2377_v40 = vrot.slane %v2376_v27, 4  ;;  %v2604_v14 = vor.u32 %v2603_v6, %v2600_v5  ;;  %v2745_v35 = vrot.slane %v2743_v28, 4  ;;  %v2661_v6 = vld [vmem:[%s7093_s11 + $0x34] sm:$0xf] }
 0x1f9   : > { %v2367_v43 = vrot.slane %v2366_v31, 4  ;;  %v2362_v61 = vsel %vm7103_vm2, %v2357_v48, %v2361_v18  ;;  %v2651_v31 = vld [vmem:[%s7093_s11 + $0xc] sm:$0xe]  ;;  %v2656_v48 = vld [vmem:[%s7093_s11 + $0x20] sm:$0xf] }
 0x1fa   : > { %2468 = vrot.lane.b32.xlu2 %v2272_v46, %s6994_s25  ;;  %v2594_v46 = vld [vmem:[%s7342_s16 + $0x4] sm:$0xf]  ;;  %v2382_v54 = vsel %vm7103_vm2, %v2377_v40, %v2381_v41 }
 0x1fb   : > { %2472 = vrot.lane.b32.xlu1 %v2292_v38, %s6994_s25  ;;  %v2399_v38 = vshll.u32 %v1958_v29, 16  ;;  %v2607_v55 = vshll.u32 %v2594_v46, 16  ;;  %v2611_v56 = vshrl.u32 %v2594_v46, 16  ;;  %v2372_v57 = vsel %vm7103_vm2, %v2367_v43, %v2371_v13 }
 0x1fc   : > { %2470 = vrot.lane.b32.xlu0 %v2282_v42, %s6994_s25  ;;  %v1903_v63 = vpop.permute.xlu2 %1902  ;;  %v2752_v46 = vrot.slane %v2655_v39, 5 }
 0x1fd   : > { %v1792_v53 = vpop.permute.xlu1 %1791  ;;  %1911 = vst.msk [vmem:[#allocation2 + $0xb4] sm:$0xf] %vm1850_vm13, %v1903_v63  ;;  %v2401_v51 = vrot.slane %v2399_v38, 5  ;;  %v2609_v0 = vrot.slane %v2607_v55, 5  ;;  %v2613_v1 = vrot.slane %v2611_v56, 4  ;;  %v6286_v38 = vrot.slane %v2651_v31, 9 }
 0x1fe   : > { %1889 = vst.msk [vmem:[#allocation2 + $0x98] sm:$0xf] %vm1850_vm13, %v1792_v53  ;;  %v1790_v58 = vpop.permute.xlu0 %1789  ;;  %v2658_v55 = vld [vmem:[%s7093_s11 + $0x28] sm:$0xf] }
 0x1ff   : > { %1888 = vst.msk [vmem:[#allocation2 + $0x94] sm:$0xf] %vm1850_vm13, %v1790_v58  ;;  %v2396_v58 = vor.u32 %v2395_v45, %v2391_v44  ;;  %v2406_v63 = vor.u32 %v2405_v52, %v2401_v51  ;;  %v2614_v11 = vor.u32 %v2613_v1, %v2609_v0  ;;  %v2755_v52 = vrot.slane %v2656_v48, 5 }
 0x201   : > { %v2397_v3 = vrot.slane %v2396_v58, 4  ;;  %v2615_v17 = vrot.slane %v2614_v11, 4 }
 0x202   : > { %2474 = vrot.lane.b32.xlu2 %v2302_v9, %s6994_s25  ;;  %v2407_v9 = vrot.slane %v2406_v63, 4  ;;  %v2659_v63 = vld [vmem:[%s7093_s11 + $0x2c] sm:$0xf] }
 0x203   : > { %2478 = vrot.lane.b32.xlu1 %v2322_v62, %s6994_s25  ;;  %v2386_v62 = vor.u32 %v2385_v50, %v2381_v41  ;;  %v2402_v13 = vsel %vm7103_vm2, %v2397_v3, %v2401_v51  ;;  %v2654_v41 = vld [vmem:[%s7093_s11 + $0x18] sm:$0xf]  ;;  %v2754_v51 = vrot.slane %v2752_v46, 4  ;;  %v2764_v3 = vrot.slane %v2659_v63, 5 }
 0x204   : > { %2476 = vrot.lane.b32.xlu0 %v2312_v4, %s6994_s25  ;;  %v2409_v25 = vpop.permute.xlu2 %2408  ;;  %v2595_v4 = vld [vmem:[%s7342_s16 + $0x8] sm:$0xf]  ;;  %v2749_v49 = vrot.slane %v2654_v41, 5 }
 0x205   : > { %v1798_v15 = vpop.permute.xlu1 %1797  ;;  %2544 = vst.msk [vmem:[#allocation2] sm:$0xf] %vm2543_vm1, %v2409_v25  ;;  %v2387_v8 = vrot.slane %v2386_v62, 4  ;;  %v2617_v12 = vshll.u32 %v2595_v4, 16  ;;  %v2756_v60 = vsel %vm7362_vm7, %v2754_v51, %v2755_v52 }
 0x206   : > { %1892 = vst.msk [vmem:[#allocation2 + $0xa4] sm:$0xf] %vm1850_vm13, %v1798_v15  ;;  %v1796_v20 = vpop.permute.xlu0 %1795  ;;  %v2621_v15 = vshrl.u32 %v2595_v4, 16 }
 0x207   : > { %1891 = vst.msk [vmem:[#allocation2 + $0xa0] sm:$0xf] %vm1850_vm13, %v1796_v20  ;;  %v2392_v16 = vsel %vm7103_vm2, %v2387_v8, %v2391_v44  ;;  %v2619_v18 = vrot.slane %v2617_v12, 5  ;;  %v2605_v20 = vrot.slane %v2604_v14, 4  ;;  %v2660_v8 = vld [vmem:[%s7093_s11 + $0x30] sm:$0xf] }
 0x208   : > { %v2623_v23 = vrot.slane %v2621_v15, 4  ;;  %v2770_v12 = vrot.slane %v2661_v6, 5  ;;  %v2662_v14 = vld [vmem:[%s7093_s11 + $0x38] sm:$0xf]  ;;  %v2767_v15 = vrot.slane %v2660_v8, 5 }
 0x209   : > { %v2620_v27 = vsel %vm7103_vm2, %v2615_v17, %v2619_v18  ;;  %v2610_v29 = vsel %vm7103_vm2, %v2605_v20, %v2609_v0  ;;  %v2672_v6 = vld [vmem:[%s7093_s11 + $0x60] sm:$0xf] }
 0x20a   : > { %2480 = vrot.lane.b32.xlu2 %v2332_v36, %s6994_s25  ;;  %v2624_v33 = vor.u32 %v2623_v23, %v2619_v18  ;;  %v2772_v17 = vrot.slane %v2770_v12, 4  ;;  %v2773_v18 = vrot.slane %v2662_v14, 5  ;;  %v2769_v20 = vrot.slane %v2767_v15, 4  ;;  %v2663_v23 = vld [vmem:[%s7093_s11 + $0x3c] sm:$0xf] }
 0x20b   : > { %2484 = vrot.lane.b32.xlu1 %v2352_v26, %s6994_s25  ;;  %v2596_v26 = vld [vmem:[%s7342_s16 + $0xc] sm:$0x1]  ;;  %v2776_v31 = vrot.slane %v2663_v23, 5 }
 0x20c   : > { %2482 = vrot.lane.b32.xlu0 %v2342_v30, %s6994_s25  ;;  %v2415_v53 = vpop.permute.xlu2 %2414  ;;  %v2653_v30 = vld [vmem:[%s7093_s11 + $0x14] sm:$0xf]  ;;  %v2627_v34 = vshll.u32 %v2596_v26, 16  ;;  %v2775_v41 = vrot.slane %v2773_v18, 4 }
 0x20d   : > { %v1804_v42 = vpop.permute.xlu1 %1803  ;;  %2547 = vst.msk [vmem:[#allocation2 + $0xc] sm:$0xf] %vm2543_vm1, %v2415_v53  ;;  %v2746_v36 = vrot.slane %v2653_v30, 5  ;;  %v2665_v30 = vld [vmem:[%s7093_s11 + $0x44] sm:$0xf] }
 0x20e   : > { %1895 = vst.msk [vmem:[#allocation2 + $0xb0] sm:$0xf] %vm1850_vm13, %v1804_v42  ;;  %v1802_v47 = vpop.permute.xlu0 %1801  ;;  %v2625_v42 = vrot.slane %v2624_v33, 4  ;;  %v2629_v43 = vrot.slane %v2627_v34, 5  ;;  %v2777_v48 = vsel %vm7362_vm7, %v2775_v41, %v2776_v31 }
 0x20f   : > { %1894 = vst.msk [vmem:[#allocation2 + $0xac] sm:$0xf] %vm1850_vm13, %v1802_v47  ;;  %v2747_v45 = vsel %vm7362_vm7, %v2745_v35, %v2746_v36  ;;  %v2744_v47 = vsel %vm7362_vm7, %v6286_v38, %v2743_v28  ;;  %v2748_v58 = vrot.slane %v2746_v36, 4  ;;  %v2779_v28 = vrot.slane %v2664_v21, 5  ;;  %v2667_v38 = vld [vmem:[%s7093_s11 + $0x4c] sm:$0xf] }
 0x210   : > { %v2630_v50 = vsel %vm7103_vm2, %v2625_v42, %v2629_v43  ;;  %v2782_v35 = vrot.slane %v2665_v30, 5  ;;  %v2675_v21 = vld [vmem:[%s7093_s11 + $0x6c] sm:$0xf] }
 0x211   : > { %v2750_v1 = vsel %vm7362_vm7, %v2748_v58, %v2749_v49  ;;  %v2781_v34 = vrot.slane %v2779_v28, 4 }
 0x212   : > { %2486 = vrot.lane.b32.xlu2 %v2362_v61, %s6994_s25  ;;  %v2761_v61 = vrot.slane %v2658_v55, 5  ;;  %v2669_v55 = vld [vmem:[%s7093_s11 + $0x54] sm:$0xf] }
 0x213   : > { %2490 = vrot.lane.b32.xlu1 %v2382_v54, %s6994_s25  ;;  %v2751_v54 = vrot.slane %v2749_v49, 4  ;;  %v2783_v43 = vsel %vm7362_vm7, %v2781_v34, %v2782_v35 }
 0x214   : > { %2488 = vrot.lane.b32.xlu0 %v2372_v57, %s6994_s25  ;;  %v2421_v10 = vpop.permute.xlu2 %2420  ;;  %v2657_v57 = vld [vmem:[%s7093_s11 + $0x24] sm:$0xf] }
 0x215   : > { %v1907_v2 = vpop.permute.xlu1 %1906  ;;  %2550 = vst.msk [vmem:[#allocation2 + $0x18] sm:$0xf] %vm2543_vm1, %v2421_v10  ;;  %v2753_v62 = vsel %vm7362_vm7, %v2751_v54, %v2752_v46  ;;  %v2758_v0 = vrot.slane %v2657_v57, 5  ;;  %v2668_v46 = vld [vmem:[%s7093_s11 + $0x50] sm:$0xf] }
 0x216   : > { %1913 = vst.msk [vmem:[#allocation2 + $0xbc] sm:$0xf] %vm1850_vm13, %v1907_v2  ;;  %v1905_v7 = vpop.permute.xlu0 %1904  ;;  %v2763_v2 = vrot.slane %v2761_v61, 4 }
 0x217   : > { %1912 = vst.msk [vmem:[#allocation2 + $0xb8] sm:$0xf] %vm1850_vm13, %v1905_v7  ;;  %vm3968_vm13 = vcmask 257248  }
 0x218   : > { %v2765_v11 = vsel %vm7362_vm7, %v2763_v2, %v2764_v3 }
 0x21a   : > { %2492 = vrot.lane.b32.xlu2 %v2392_v16, %s6994_s25 }
 0x21b   : > { %2496 = vrot.lane.b32.xlu1 %v2407_v9, %s6994_s25  ;;  %v2757_v9 = vrot.slane %v2755_v52, 4 }
 0x21c   : > { %2494 = vrot.lane.b32.xlu0 %v2402_v13, %s6994_s25  ;;  %v2427_v25 = vpop.permute.xlu2 %2426 }
 0x21d   : > { %v2413_v19 = vpop.permute.xlu1 %2412  ;;  %2553 = vst.msk [vmem:[#allocation2 + $0x24] sm:$0xf] %vm2543_vm1, %v2427_v25  ;;  %v2759_v16 = vsel %vm7362_vm7, %v2757_v9, %v2758_v0  ;;  %v2766_v25 = vrot.slane %v2764_v3, 4 }
 0x21e   : > { %2546 = vst.msk [vmem:[#allocation2 + $0x8] sm:$0xf] %vm2543_vm1, %v2413_v19  ;;  %v2411_v22 = vpop.permute.xlu0 %2410 }
 0x21f   : > { %2545 = vst.msk [vmem:[#allocation2 + $0x4] sm:$0xf] %vm2543_vm1, %v2411_v22  ;;  %v2768_v33 = vsel %vm7362_vm7, %v2766_v25, %v2767_v15 }
 0x222   : > { %2631 = vrot.lane.b32.xlu2 %v2600_v5, %s6994_s25  ;;  %v2760_v5 = vrot.slane %v2758_v0, 4 }
 0x223   : > { %2635 = vrot.lane.b32.xlu1 %v2620_v27, %s6994_s25  ;;  %v2774_v27 = vsel %vm7362_vm7, %v2772_v17, %v2773_v18 }
 0x224   : > { %2633 = vrot.lane.b32.xlu0 %v2610_v29, %s6994_s25  ;;  %v2433_v44 = vpop.permute.xlu2 %2432  ;;  %v2762_v13 = vsel %vm7362_vm7, %v2760_v5, %v2761_v61  ;;  %v2771_v29 = vsel %vm7362_vm7, %v2769_v20, %v2770_v12  ;;  %v2671_v61 = vld [vmem:[%s7093_s11 + $0x5c] sm:$0xf]  ;;  %v2674_v12 = vld [vmem:[%s7093_s11 + $0x68] sm:$0xf] }
 0x225   : > { %v2419_v37 = vpop.permute.xlu1 %2418  ;;  %2556 = vst.msk [vmem:[#allocation2 + $0x30] sm:$0xf] %vm2543_vm1, %v2433_v44  ;;  %v2788_v44 = vrot.slane %v2667_v38, 5  ;;  %v2678_v38 = vld [vmem:[%s7093_s11 + $0x78] sm:$0xf] }
 0x226   : > { %2549 = vst.msk [vmem:[#allocation2 + $0x14] sm:$0xf] %vm2543_vm1, %v2419_v37  ;;  %v2417_v40 = vpop.permute.xlu0 %2416  ;;  %v2778_v37 = vrot.slane %v2776_v31, 4 }
 0x227   : > { %2548 = vst.msk [vmem:[#allocation2 + $0x10] sm:$0xf] %vm2543_vm1, %v2417_v40  ;;  %v2666_v40 = vld [vmem:[%s7093_s11 + $0x48] sm:$0xf]  ;;  %v2790_v49 = vrot.slane %v2788_v44, 4 }
 0x22a   : > { %2637 = vrot.lane.b32.xlu2 %v2630_v50, %s6994_s25  ;;  %v2791_v50 = vrot.slane %v2668_v46, 5 }
 0x22b   : > { %2877 = vrot.lane.b32.xlu1 %v2747_v45, %s6995_s27  ;;  %v2780_v45 = vsel %vm7362_vm7, %v2778_v37, %v2779_v28  ;;  %v2677_v28 = vld [vmem:[%s7093_s11 + $0x74] sm:$0xf] }
 0x22c   : > { %2875 = vrot.lane.b32.xlu0 %v2744_v47, %s6995_s27  ;;  %v2439_v59 = vpop.permute.xlu2 %2438  ;;  %v2785_v47 = vrot.slane %v2666_v40, 5  ;;  %v2792_v58 = vsel %vm7362_vm7, %v2790_v49, %v2791_v50 }
 0x22d   : > { %v2425_v53 = vpop.permute.xlu1 %2424  ;;  %2559 = vst.msk [vmem:[#allocation2 + $0x3c] sm:$0xf] %vm2543_vm1, %v2439_v59 }
 0x22e   : > { %2552 = vst.msk [vmem:[#allocation2 + $0x20] sm:$0xf] %vm2543_vm1, %v2425_v53  ;;  %v2423_v56 = vpop.permute.xlu0 %2422  ;;  %v2787_v52 = vrot.slane %v2785_v47, 4  ;;  %v2670_v53 = vld [vmem:[%s7093_s11 + $0x58] sm:$0xf] }
 0x22f   : > { %2551 = vst.msk [vmem:[#allocation2 + $0x1c] sm:$0xf] %vm2543_vm1, %v2423_v56  ;;  %v2784_v56 = vrot.slane %v2782_v35, 4  ;;  %v2797_v59 = vrot.slane %v2670_v53, 5  ;;  %v2681_v53 = vld [vmem:[%s7093_s11 + $0x84] sm:$0xf] }
 0x231   : > { %v2786_v63 = vsel %vm7362_vm7, %v2784_v56, %v2785_v47  ;;  %v2799_v0 = vrot.slane %v2797_v59, 4 }
 0x232   : > { %2879 = vrot.lane.b32.xlu2 %v2750_v1, %s6995_s27  ;;  %v2800_v1 = vrot.slane %v2671_v61, 5 }
 0x233   : > { %2883 = vrot.lane.b32.xlu1 %v2756_v60, %s6995_s27  ;;  %v2789_v60 = vsel %vm7362_vm7, %v2787_v52, %v2788_v44  ;;  %v2680_v44 = vld [vmem:[%s7093_s11 + $0x80] sm:$0xf] }
 0x234   : > { %2881 = vrot.lane.b32.xlu0 %v2753_v62, %s6995_s27  ;;  %v2445_v10 = vpop.permute.xlu2 %2444  ;;  %v2794_v62 = vrot.slane %v2669_v55, 5  ;;  %v2801_v9 = vsel %vm7362_vm7, %v2799_v0, %v2800_v1 }
 0x235   : > { %v2431_v4 = vpop.permute.xlu1 %2430  ;;  %2562 = vst.msk [vmem:[#allocation2 + $0x48] sm:$0xf] %vm2543_vm1, %v2445_v10 }
 0x236   : > { %2555 = vst.msk [vmem:[#allocation2 + $0x2c] sm:$0xf] %vm2543_vm1, %v2431_v4  ;;  %v2429_v7 = vpop.permute.xlu0 %2428  ;;  %v2796_v3 = vrot.slane %v2794_v62, 4  ;;  %v2673_v4 = vld [vmem:[%s7093_s11 + $0x64] sm:$0xf] }
 0x237   : > { %2554 = vst.msk [vmem:[#allocation2 + $0x28] sm:$0xf] %vm2543_vm1, %v2429_v7  ;;  %v2793_v7 = vrot.slane %v2791_v50, 4  ;;  %v2806_v10 = vrot.slane %v2673_v4, 5  ;;  %v2684_v4 = vld [vmem:[%s7093_s11 + $0x90] sm:$0xf] }
 0x239   : > { %v2795_v14 = vsel %vm7362_vm7, %v2793_v7, %v2794_v62  ;;  %v2808_v15 = vrot.slane %v2806_v10, 4 }
 0x23a   : > { %2885 = vrot.lane.b32.xlu2 %v2759_v16, %s6995_s27  ;;  %v2809_v16 = vrot.slane %v2674_v12, 5 }
 0x23b   : > { %2889 = vrot.lane.b32.xlu1 %v2765_v11, %s6995_s27  ;;  %v2798_v11 = vsel %vm7362_vm7, %v2796_v3, %v2797_v59  ;;  %v2683_v59 = vld [vmem:[%s7093_s11 + $0x8c] sm:$0xf] }
 0x23c   : > { %2887 = vrot.lane.b32.xlu0 %v2762_v13, %s6995_s27  ;;  %v2451_v26 = vpop.permute.xlu2 %2450  ;;  %v2803_v13 = vrot.slane %v2672_v6, 5  ;;  %v2810_v25 = vsel %vm7362_vm7, %v2808_v15, %v2809_v16 }
 0x23d   : > { %v2437_v19 = vpop.permute.xlu1 %2436  ;;  %2565 = vst.msk [vmem:[#allocation2 + $0x54] sm:$0xf] %vm2543_vm1, %v2451_v26 }
 0x23e   : > { %2558 = vst.msk [vmem:[#allocation2 + $0x38] sm:$0xf] %vm2543_vm1, %v2437_v19  ;;  %v2435_v22 = vpop.permute.xlu0 %2434  ;;  %v2805_v18 = vrot.slane %v2803_v13, 4  ;;  %v2676_v19 = vld [vmem:[%s7093_s11 + $0x70] sm:$0xf] }
 0x23f   : > { %2557 = vst.msk [vmem:[#allocation2 + $0x34] sm:$0xf] %vm2543_vm1, %v2435_v22  ;;  %v2802_v22 = vrot.slane %v2800_v1, 4  ;;  %v2815_v26 = vrot.slane %v2676_v19, 5  ;;  %v2687_v19 = vld [vmem:[%s7093_s11 + $0x9c] sm:$0xf] }
 0x241   : > { %v2804_v30 = vsel %vm7362_vm7, %v2802_v22, %v2803_v13  ;;  %v2817_v31 = vrot.slane %v2815_v26, 4 }
 0x242   : > { %2891 = vrot.lane.b32.xlu2 %v2768_v33, %s6995_s27  ;;  %v2818_v33 = vrot.slane %v2677_v28, 5 }
 0x243   : > { %2895 = vrot.lane.b32.xlu1 %v2774_v27, %s6995_s27  ;;  %v2807_v27 = vsel %vm7362_vm7, %v2805_v18, %v2806_v10  ;;  %v2686_v10 = vld [vmem:[%s7093_s11 + $0x98] sm:$0xf] }
 0x244   : > { %2893 = vrot.lane.b32.xlu0 %v2771_v29, %s6995_s27  ;;  %v2457_v42 = vpop.permute.xlu2 %2456  ;;  %v2812_v29 = vrot.slane %v2675_v21, 5  ;;  %v2819_v41 = vsel %vm7362_vm7, %v2817_v31, %v2818_v33 }
 0x245   : > { %v2443_v36 = vpop.permute.xlu1 %2442  ;;  %2568 = vst.msk [vmem:[#allocation2 + $0x60] sm:$0xf] %vm2543_vm1, %v2457_v42 }
 0x246   : > { %2561 = vst.msk [vmem:[#allocation2 + $0x44] sm:$0xf] %vm2543_vm1, %v2443_v36  ;;  %v2441_v39 = vpop.permute.xlu0 %2440  ;;  %v2814_v35 = vrot.slane %v2812_v29, 4  ;;  %v2679_v36 = vld [vmem:[%s7093_s11 + $0x7c] sm:$0xf] }
 0x247   : > { %2560 = vst.msk [vmem:[#allocation2 + $0x40] sm:$0xf] %vm2543_vm1, %v2441_v39  ;;  %v2811_v39 = vrot.slane %v2809_v16, 4  ;;  %v2824_v42 = vrot.slane %v2679_v36, 5  ;;  %v2690_v36 = vld [vmem:[%s7093_s11 + $0xa8] sm:$0xf] }
 0x249   : > { %v2813_v46 = vsel %vm7362_vm7, %v2811_v39, %v2812_v29  ;;  %v2826_v47 = vrot.slane %v2824_v42, 4 }
 0x24a   : > { %2897 = vrot.lane.b32.xlu2 %v2777_v48, %s6995_s27  ;;  %v2827_v48 = vrot.slane %v2680_v44, 5 }
 0x24b   : > { %2901 = vrot.lane.b32.xlu1 %v2783_v43, %s6995_s27  ;;  %v2816_v43 = vsel %vm7362_vm7, %v2814_v35, %v2815_v26  ;;  %v2689_v26 = vld [vmem:[%s7093_s11 + $0xa4] sm:$0xf] }
 0x24c   : > { %2899 = vrot.lane.b32.xlu0 %v2780_v45, %s6995_s27  ;;  %v2463_v57 = vpop.permute.xlu2 %2462  ;;  %v2821_v45 = vrot.slane %v2678_v38, 5  ;;  %v2828_v56 = vsel %vm7362_vm7, %v2826_v47, %v2827_v48 }
 0x24d   : > { %v2449_v51 = vpop.permute.xlu1 %2448  ;;  %2571 = vst.msk [vmem:[#allocation2 + $0x6c] sm:$0xf] %vm2543_vm1, %v2463_v57 }
 0x24e   : > { %2564 = vst.msk [vmem:[#allocation2 + $0x50] sm:$0xf] %vm2543_vm1, %v2449_v51  ;;  %v2447_v54 = vpop.permute.xlu0 %2446  ;;  %v2823_v50 = vrot.slane %v2821_v45, 4  ;;  %v2682_v51 = vld [vmem:[%s7093_s11 + $0x88] sm:$0xf] }
 0x24f   : > { %2563 = vst.msk [vmem:[#allocation2 + $0x4c] sm:$0xf] %vm2543_vm1, %v2447_v54  ;;  %v2820_v54 = vrot.slane %v2818_v33, 4  ;;  %v2833_v57 = vrot.slane %v2682_v51, 5 }
 0x251   : > { %v2822_v61 = vsel %vm7362_vm7, %v2820_v54, %v2821_v45  ;;  %v2835_v62 = vrot.slane %v2833_v57, 4 }
 0x252   : > { %2903 = vrot.lane.b32.xlu2 %v2786_v63, %s6995_s27  ;;  %v2836_v63 = vrot.slane %v2683_v59, 5  ;;  %v2695_v59 = vld [vmem:[%s7093_s11 + $0xbc] sm:$0xf] }
 0x253   : > { %2907 = vrot.lane.b32.xlu1 %v2792_v58, %s6995_s27  ;;  %v2825_v58 = vsel %vm7362_vm7, %v2823_v50, %v2824_v42  ;;  %v2692_v42 = vld [vmem:[%s7093_s11 + $0xb0] sm:$0xf]  ;;  %v2694_v50 = vld [vmem:[%s7093_s11 + $0xb8] sm:$0xf] }
 0x254   : > { %2905 = vrot.lane.b32.xlu0 %v2789_v60, %s6995_s27  ;;  %v2469_v8 = vpop.permute.xlu2 %2468  ;;  %v2830_v60 = vrot.slane %v2681_v53, 5  ;;  %v2837_v7 = vsel %vm7362_vm7, %v2835_v62, %v2836_v63  ;;  %v2693_v53 = vld [vmem:[%s7093_s11 + $0xb4] sm:$0xf] }
 0x255   : > { %v2455_v2 = vpop.permute.xlu1 %2454  ;;  %2574 = vst.msk [vmem:[#allocation2 + $0x78] sm:$0xf] %vm2543_vm1, %v2469_v8 }
 0x256   : > { %2567 = vst.msk [vmem:[#allocation2 + $0x5c] sm:$0xf] %vm2543_vm1, %v2455_v2  ;;  %v2453_v5 = vpop.permute.xlu0 %2452  ;;  %v2832_v1 = vrot.slane %v2830_v60, 4  ;;  %v2685_v2 = vld [vmem:[%s7093_s11 + $0x94] sm:$0xf] }
 0x257   : > { %2566 = vst.msk [vmem:[#allocation2 + $0x58] sm:$0xf] %vm2543_vm1, %v2453_v5  ;;  %v2829_v5 = vrot.slane %v2827_v48, 4  ;;  %v2842_v8 = vrot.slane %v2685_v2, 5  ;;  %v2590_v48 = vld [vmem:[#allocation2 + $0xb0] sm:$0xf] }
 0x258   : > { %v3057_v2 = vld [vmem:[%s7342_s16] sm:$0xf] }
 0x259   : > { %v2831_v12 = vsel %vm7362_vm7, %v2829_v5, %v2830_v60  ;;  %v2844_v13 = vrot.slane %v2842_v8, 4  ;;  %v2866_v60 = vrot.slane %v2693_v53, 5 }
 0x25a   : > { %2909 = vrot.lane.b32.xlu2 %v2795_v14, %s6995_s27  ;;  %v2845_v14 = vrot.slane %v2686_v10, 5 }
 0x25b   : > { %2913 = vrot.lane.b32.xlu1 %v2801_v9, %s6995_s27  ;;  %v2834_v9 = vsel %vm7362_vm7, %v2832_v1, %v2833_v57  ;;  %v2869_v57 = vrot.slane %v2694_v50, 5  ;;  %v2868_v1 = vrot.slane %v2866_v60, 4  ;;  %v3100_v50 = vld [vmem:[%s7093_s11 + $0x38] sm:$0xf] }
 0x25c   : > { %2911 = vrot.lane.b32.xlu0 %v2798_v11, %s6995_s27  ;;  %v2475_v23 = vpop.permute.xlu2 %2474  ;;  %v2839_v11 = vrot.slane %v2684_v4, 5  ;;  %v2846_v22 = vsel %vm7362_vm7, %v2844_v13, %v2845_v14 }
 0x25d   : > { %v2461_v17 = vpop.permute.xlu1 %2460  ;;  %2577 = vst.msk [vmem:[#allocation2 + $0x84] sm:$0xf] %vm2543_vm1, %v2475_v23  ;;  %v2871_v62 = vrot.slane %v2869_v57, 4  ;;  %v2870_v10 = vsel %vm7362_vm7, %v2868_v1, %v2869_v57  ;;  %v3102_v57 = vld [vmem:[%s7093_s11 + $0x40] sm:$0xf] }
 0x25e   : > { %2570 = vst.msk [vmem:[#allocation2 + $0x68] sm:$0xf] %vm2543_vm1, %v2461_v17  ;;  %v2459_v20 = vpop.permute.xlu0 %2458  ;;  %v2841_v16 = vrot.slane %v2839_v11, 4  ;;  %v2688_v17 = vld [vmem:[%s7093_s11 + $0xa0] sm:$0xf] }
 0x25f   : > { %2569 = vst.msk [vmem:[#allocation2 + $0x64] sm:$0xf] %vm2543_vm1, %v2459_v20  ;;  %v2838_v20 = vrot.slane %v2836_v63, 4  ;;  %v2851_v23 = vrot.slane %v2688_v17, 5  ;;  %v2872_v63 = vrot.slane %v2695_v59, 5 }
 0x260   : > { %v3059_v17 = vld [vmem:[%s7342_s16 + $0x8] sm:$0xf] }
 0x261   : > { %v2840_v28 = vsel %vm7362_vm7, %v2838_v20, %v2839_v11  ;;  %v2853_v29 = vrot.slane %v2851_v23, 4  ;;  %v3058_v11 = vld [vmem:[%s7342_s16 + $0x4] sm:$0xf]  ;;  %v3070_v20 = vrot.slane %v3059_v17, 5  ;;  %v3114_v17 = vld [vmem:[%s7093_s11 + $0x70] sm:$0xf] }
 0x262   : > { %2915 = vrot.lane.b32.xlu2 %v2804_v30, %s6995_s27  ;;  %v2854_v30 = vrot.slane %v2689_v26, 5 }
 0x263   : > { %2919 = vrot.lane.b32.xlu1 %v2810_v25, %s6995_s27  ;;  %v2843_v25 = vsel %vm7362_vm7, %v2841_v16, %v2842_v8  ;;  %v2873_v8 = vsel %vm7362_vm7, %v2871_v62, %v2872_v63  ;;  %v3106_v62 = vld [vmem:[%s7093_s11 + $0x50] sm:$0xf] }
 0x264   : > { %2917 = vrot.lane.b32.xlu0 %v2807_v27, %s6995_s27  ;;  %v2481_v40 = vpop.permute.xlu2 %2480  ;;  %v2848_v27 = vrot.slane %v2687_v19, 5  ;;  %v2855_v39 = vsel %vm7362_vm7, %v2853_v29, %v2854_v30  ;;  %v2856_v54 = vrot.slane %v2854_v30, 4  ;;  %v3092_v30 = vld [vmem:[%s7093_s11 + $0x18] sm:$0xf] }
 0x265   : > { %v2467_v34 = vpop.permute.xlu1 %2466  ;;  %2580 = vst.msk [vmem:[#allocation2 + $0x90] sm:$0xf] %vm2543_vm1, %v2481_v40 }
 0x266   : > { %2573 = vst.msk [vmem:[#allocation2 + $0x74] sm:$0xf] %vm2543_vm1, %v2467_v34  ;;  %v2465_v37 = vpop.permute.xlu0 %2464  ;;  %v2850_v33 = vrot.slane %v2848_v27, 4  ;;  %v2691_v34 = vld [vmem:[%s7093_s11 + $0xac] sm:$0xf] }
 0x267   : > { %2572 = vst.msk [vmem:[#allocation2 + $0x70] sm:$0xf] %vm2543_vm1, %v2465_v37  ;;  %v2847_v37 = vrot.slane %v2845_v14, 4  ;;  %v2860_v40 = vrot.slane %v2691_v34, 5  ;;  %v3067_v14 = vrot.slane %v3058_v11, 5 }
 0x268   : > { %v3111_v11 = vld [vmem:[%s7093_s11 + $0x64] sm:$0xf] }
 0x269   : > { %v2849_v44 = vsel %vm7362_vm7, %v2847_v37, %v2848_v27  ;;  %v2862_v45 = vrot.slane %v2860_v40, 4  ;;  %v3095_v37 = vld [vmem:[%s7093_s11 + $0x24] sm:$0xf] }
 0x26a   : > { %2921 = vrot.lane.b32.xlu2 %v2813_v46, %s6995_s27  ;;  %v2863_v46 = vrot.slane %v2692_v42, 5 }
 0x26b   : > { %2925 = vrot.lane.b32.xlu1 %v2819_v41, %s6995_s27  ;;  %v2852_v41 = vsel %vm7362_vm7, %v2850_v33, %v2851_v23 }
 0x26c   : > { %2923 = vrot.lane.b32.xlu0 %v2816_v43, %s6995_s27  ;;  %v2487_v55 = vpop.permute.xlu2 %2486  ;;  %v2857_v43 = vrot.slane %v2690_v36, 5  ;;  %v2865_v5 = vrot.slane %v2863_v46, 4 }
 0x26d   : > { %v2473_v49 = vpop.permute.xlu1 %2472  ;;  %2583 = vst.msk [vmem:[#allocation2 + $0x9c] sm:$0xf] %vm2543_vm1, %v2487_v55 }
 0x26e   : > { %2576 = vst.msk [vmem:[#allocation2 + $0x80] sm:$0xf] %vm2543_vm1, %v2473_v49  ;;  %v2471_v52 = vpop.permute.xlu0 %2470  ;;  %v2859_v49 = vrot.slane %v2857_v43, 4 }
 0x26f   : > { %2575 = vst.msk [vmem:[#allocation2 + $0x7c] sm:$0xf] %vm2543_vm1, %v2471_v52 }
 0x272   : > { %2927 = vrot.lane.b32.xlu2 %v2822_v61, %s6995_s27  ;;  %v2858_v61 = vsel %vm7362_vm7, %v2856_v54, %v2857_v43  ;;  %v3098_v43 = vld [vmem:[%s7093_s11 + $0x30] sm:$0xf] }
 0x273   : > { %2931 = vrot.lane.b32.xlu1 %v2828_v56, %s6995_s27  ;;  %v2864_v56 = vsel %vm7362_vm7, %v2862_v45, %v2863_v46  ;;  %v3096_v45 = vld [vmem:[%s7093_s11 + $0x28] sm:$0xf] }
 0x274   : > { %2929 = vrot.lane.b32.xlu0 %v2825_v58, %s6995_s27  ;;  %v2493_v6 = vpop.permute.xlu2 %2492  ;;  %v2861_v58 = vsel %vm7362_vm7, %v2859_v49, %v2860_v40  ;;  %v3101_v49 = vld [vmem:[%s7093_s11 + $0x3c] sm:$0xf] }
 0x275   : > { %v2479_v0 = vpop.permute.xlu1 %2478  ;;  %2586 = vst.msk [vmem:[#allocation2 + $0xa8] sm:$0xf] %vm2543_vm1, %v2493_v6 }
 0x276   : > { %2579 = vst.msk [vmem:[#allocation2 + $0x8c] sm:$0xf] %vm2543_vm1, %v2479_v0  ;;  %v2477_v3 = vpop.permute.xlu0 %2476 }
 0x277   : > { %2578 = vst.msk [vmem:[#allocation2 + $0x88] sm:$0xf] %vm2543_vm1, %v2477_v3 }
 0x27a   : > { %2933 = vrot.lane.b32.xlu2 %v2831_v12, %s6995_s27  ;;  %v2867_v12 = vsel %vm7362_vm7, %v2865_v5, %v2866_v60  ;;  %v3108_v5 = vld [vmem:[%s7093_s11 + $0x58] sm:$0xf] }
 0x27b   : > { %2937 = vrot.lane.b32.xlu1 %v2837_v7, %s6995_s27 }
 0x27c   : > { %2935 = vrot.lane.b32.xlu0 %v2834_v9, %s6995_s27  ;;  %v8331_v21 = vpop.permute.xlu2 %2631  ;;  %v3065_v9 = vrot.slane %v3057_v2, 5 }
 0x27d   : > { %v2485_v15 = vpop.permute.xlu1 %2484 }
 0x27e   : > { %2582 = vst.msk [vmem:[#allocation2 + $0x98] sm:$0xf] %vm2543_vm1, %v2485_v15  ;;  %v2483_v18 = vpop.permute.xlu0 %2482  ;;  %v3066_v13 = vrot.slane %v3065_v9, 4 }
 0x27f   : > { %2581 = vst.msk [vmem:[#allocation2 + $0x94] sm:$0xf] %vm2543_vm1, %v2483_v18 }
 0x280   : > { %v3068_v19 = vsel %vm7362_vm7, %v3066_v13, %v3067_v14 }
 0x282   : > { %2939 = vrot.lane.b32.xlu2 %v2840_v28, %s6995_s27  ;;  %v3069_v28 = vrot.slane %v3067_v14, 4 }
 0x283   : > { %2943 = vrot.lane.b32.xlu1 %v2846_v22, %s6995_s27  ;;  %v3060_v22 = vld [vmem:[%s7342_s16 + $0xc] sm:$0x1] }
 0x284   : > { %2941 = vrot.lane.b32.xlu0 %v2843_v25, %s6995_s27  ;;  %v2638_v38 = vpop.permute.xlu2 %2637  ;;  %v3072_v25 = vrot.slane %v3070_v20, 4  ;;  %v3073_v26 = vrot.slane %v3060_v22, 5  ;;  %v3071_v33 = vsel %vm7362_vm7, %v3069_v28, %v3070_v20  ;;  %v3118_v22 = vld [vmem:[%s7093_s11 + $0x80] sm:$0xf]  ;;  %v3122_v28 = vld [vmem:[%s7093_s11 + $0x90] sm:$0xf] }
 0x285   : > { %v2491_v31 = vpop.permute.xlu1 %2490  ;;  %2650 = vst.msk [vmem:[#allocation2 + $0xbc] sm:$0xf] %vm2543_vm1, %v2638_v38  ;;  %v3094_v38 = vld [vmem:[%s7093_s11 + $0x20] sm:$0xf] }
 0x286   : > { %2585 = vst.msk [vmem:[#allocation2 + $0xa4] sm:$0xf] %vm2543_vm1, %v2491_v31  ;;  %v2489_v35 = vpop.permute.xlu0 %2488  ;;  %v3074_v31 = vsel %vm7362_vm7, %v3072_v25, %v3073_v26 }
 0x287   : > { %2584 = vst.msk [vmem:[#allocation2 + $0xa0] sm:$0xf] %vm2543_vm1, %v2489_v35 }
 0x28a   : > { %2945 = vrot.lane.b32.xlu2 %v2849_v44, %s6995_s27  ;;  %v3097_v44 = vld [vmem:[%s7093_s11 + $0x2c] sm:$0xf] }
 0x28b   : > { %2949 = vrot.lane.b32.xlu1 %v2855_v39, %s6995_s27  ;;  %v3093_v39 = vld [vmem:[%s7093_s11 + $0x1c] sm:$0xf] }
 0x28c   : > { %2947 = vrot.lane.b32.xlu0 %v2852_v41, %s6995_s27  ;;  %v2880_v55 = vpop.permute.xlu2 %2879 }
 0x28d   : > { %v2497_v47 = vpop.permute.xlu1 %2496  ;;  %3013 = vst.msk [vmem:[#allocation2 + $0x8] sm:$0xf] %vm3010_vm4, %v2880_v55  ;;  %v3104_v55 = vld [vmem:[%s7093_s11 + $0x48] sm:$0xf] }
 0x28e   : > { %v2591_v51 = vsel %vm2589_vm3, %v2497_v47, %v2590_v48  ;;  %v2495_v52 = vpop.permute.xlu0 %2494 }
 0x28f   : > { %2592 = vst [vmem:[#allocation2 + $0xb0] sm:$0xf] %v2591_v51  ;;  %v3099_v51 = vld [vmem:[%s7093_s11 + $0x34] sm:$0xf] }
 0x290   : > { %2587 = vst.msk [vmem:[#allocation2 + $0xac] sm:$0xf] %vm2543_vm1, %v2495_v52 }
 0x292   : > { %2951 = vrot.lane.b32.xlu2 %v2858_v61, %s6995_s27  ;;  %v3107_v61 = vld [vmem:[%s7093_s11 + $0x54] sm:$0xf] }
 0x293   : > { %2955 = vrot.lane.b32.xlu1 %v2864_v56, %s6995_s27  ;;  %v3103_v56 = vld [vmem:[%s7093_s11 + $0x44] sm:$0xf] }
 0x294   : > { %2953 = vrot.lane.b32.xlu0 %v2861_v58, %s6995_s27  ;;  %v2886_v7 = vpop.permute.xlu2 %2885 }
 0x295   : > { %v2636_v0 = vpop.permute.xlu1 %2635  ;;  %3016 = vst.msk [vmem:[#allocation2 + $0x14] sm:$0xf] %vm3010_vm4, %v2886_v7 }
 0x296   : > { %v2645_v3 = vld [vmem:[#allocation2 + $0xb0] sm:$0x8]  ;;  %2649 = vst.msk [vmem:[#allocation2 + $0xb8] sm:$0xf] %vm2543_vm1, %v2636_v0  ;;  %v2634_v4 = vpop.permute.xlu0 %2633 }
 0x297   : > { %v2646_v6 = vsel %vm2644_vm6, %v8331_v21, %v2645_v3  ;;  %2648 = vst.msk [vmem:[#allocation2 + $0xb4] sm:$0xf] %vm2543_vm1, %v2634_v4  ;;  %v2874_v21 = vrot.slane %v2872_v63, 4  ;;  %v3105_v63 = vld [vmem:[%s7093_s11 + $0x4c] sm:$0xf]  ;;  %vm9176_vm1 = vmand %vm3968_vm13, %vm488_vm0  ;;  %vm4107_vm0 = vcmask 257251  }
 0x298   : > { %2647 = vst [vmem:[#allocation2 + $0xb0] sm:$0x8] %v2646_v6  ;;  %v3110_v3 = vld [vmem:[%s7093_s11 + $0x60] sm:$0xf]  ;;  %v3109_v4 = vld [vmem:[%s7093_s11 + $0x5c] sm:$0xf]  ;;  %vm9238_vm3 = vmand %vm4107_vm0, %vm1176_vm11 }
 0x299   : > { %vm4495_vm11 = vcmask 289024  }
 0x29a   : > { %2957 = vrot.lane.b32.xlu2 %v2867_v12, %s6995_s27 }
 0x29b   : > { %2961 = vrot.lane.b32.xlu1 %v2873_v8, %s6995_s27 }
 0x29c   : > { %2959 = vrot.lane.b32.xlu0 %v2870_v10, %s6995_s27  ;;  %v2892_v18 = vpop.permute.xlu2 %2891  ;;  %v3112_v10 = vld [vmem:[%s7093_s11 + $0x68] sm:$0xf] }
 0x29d   : > { %v2878_v15 = vpop.permute.xlu1 %2877  ;;  %3019 = vst.msk [vmem:[#allocation2 + $0x20] sm:$0xf] %vm3010_vm4, %v2892_v18 }
 0x29e   : > { %3012 = vst.msk [vmem:[#allocation2 + $0x4] sm:$0xf] %vm3010_vm4, %v2878_v15  ;;  %v2876_v16 = vpop.permute.xlu0 %2875  ;;  %v3116_v15 = vld [vmem:[%s7093_s11 + $0x78] sm:$0xf] }
 0x29f   : > { %3011 = vst.msk [vmem:[#allocation2] sm:$0xf] %vm3010_vm4, %v2876_v16  ;;  %v3115_v16 = vld [vmem:[%s7093_s11 + $0x74] sm:$0xf] }
 0x2a2   : > { %2963 = vrot.lane.b32.xlu2 %v2874_v21, %s6995_s27  ;;  %v3119_v21 = vld [vmem:[%s7093_s11 + $0x84] sm:$0xf] }
 0x2a3   : > { %3077 = vrot.lane.b32.xlu1 %v3068_v19, %s6995_s27 }
 0x2a4   : > { %3075 = vrot.lane.b32.xlu0 %v3065_v9, %s6995_s27  ;;  %v2898_v29 = vpop.permute.xlu2 %2897  ;;  %v3113_v9 = vld [vmem:[%s7093_s11 + $0x6c] sm:$0xf] }
 0x2a5   : > { %v2884_v23 = vpop.permute.xlu1 %2883  ;;  %3022 = vst.msk [vmem:[#allocation2 + $0x2c] sm:$0xf] %vm3010_vm4, %v2898_v29  ;;  %v3121_v29 = vld [vmem:[%s7093_s11 + $0x8c] sm:$0xf] }
 0x2a6   : > { %3015 = vst.msk [vmem:[#allocation2 + $0x10] sm:$0xf] %vm3010_vm4, %v2884_v23  ;;  %v2882_v27 = vpop.permute.xlu0 %2881  ;;  %v3117_v23 = vld [vmem:[%s7093_s11 + $0x7c] sm:$0xf] }
 0x2a7   : > { %3014 = vst.msk [vmem:[#allocation2 + $0xc] sm:$0xf] %vm3010_vm4, %v2882_v27 }
 0x2aa   : > { %3079 = vrot.lane.b32.xlu2 %v3071_v33, %s6995_s27 }
 0x2ab   : > { %3176 = vrot.lane.b32.xlu1 %v3092_v30, %s6996_s29  ;;  %v3120_v30 = vld [vmem:[%s7093_s11 + $0x88] sm:$0xf] }
 0x2ac   : > { %3081 = vrot.lane.b32.xlu0 %v3074_v31, %s6995_s27  ;;  %v2904_v36 = vpop.permute.xlu2 %2903  ;;  %s309_s27 = sand.u32 1, %s6973_s19  }
 0x2ad   : > { %v2890_v34 = vpop.permute.xlu1 %2889  ;;  %3025 = vst.msk [vmem:[#allocation2 + $0x38] sm:$0xf] %vm3010_vm4, %v2904_v36  ;;  %v3124_v36 = vld [vmem:[%s7093_s11 + $0x98] sm:$0xf]  ;;  %s6114_s9 = scalar_lea.sflag [#allocation4], %s309_s27 }
 0x2ae   : > { %3018 = vst.msk [vmem:[#allocation2 + $0x1c] sm:$0xf] %vm3010_vm4, %v2890_v34  ;;  %v2888_v35 = vpop.permute.xlu0 %2887 }
 0x2af   : > { %3017 = vst.msk [vmem:[#allocation2 + $0x18] sm:$0xf] %vm3010_vm4, %v2888_v35  ;;  %v3125_v35 = vld [vmem:[%s7093_s11 + $0x9c] sm:$0xf] }
 0x2b2   : > { %3178 = vrot.lane.b32.xlu2 %v3093_v39, %s6996_s29 }
 0x2b3   : > { %3182 = vrot.lane.b32.xlu1 %v3095_v37, %s6996_s29  ;;  %v3123_v37 = vld [vmem:[%s7093_s11 + $0x94] sm:$0xf] }
 0x2b4   : > { %3180 = vrot.lane.b32.xlu0 %v3094_v38, %s6996_s29  ;;  %v2910_v42 = vpop.permute.xlu2 %2909 }
 0x2b5   : > { %v2896_v40 = vpop.permute.xlu1 %2895  ;;  %3028 = vst.msk [vmem:[#allocation2 + $0x44] sm:$0xf] %vm3010_vm4, %v2910_v42  ;;  %v3127_v42 = vld [vmem:[%s7093_s11 + $0xa4] sm:$0xf] }
 0x2b6   : > { %3021 = vst.msk [vmem:[#allocation2 + $0x28] sm:$0xf] %vm3010_vm4, %v2896_v40  ;;  %v2894_v41 = vpop.permute.xlu0 %2893 }
 0x2b7   : > { %3020 = vst.msk [vmem:[#allocation2 + $0x24] sm:$0xf] %vm3010_vm4, %v2894_v41  ;;  %v3128_v41 = vld [vmem:[%s7093_s11 + $0xa8] sm:$0xf] }
 0x2ba   : > { %3184 = vrot.lane.b32.xlu2 %v3096_v45, %s6996_s29  ;;  %v3406_v45 = vld [vmem:[%s7093_s11 + $0x7c] sm:$0xf] }
 0x2bb   : > { %3188 = vrot.lane.b32.xlu1 %v3098_v43, %s6996_s29  ;;  %v3126_v43 = vld [vmem:[%s7093_s11 + $0xa0] sm:$0xf] }
 0x2bc   : > { %3186 = vrot.lane.b32.xlu0 %v3097_v44, %s6996_s29  ;;  %v2916_v48 = vpop.permute.xlu2 %2915 }
 0x2bd   : > { %v2902_v46 = vpop.permute.xlu1 %2901  ;;  %3031 = vst.msk [vmem:[#allocation2 + $0x50] sm:$0xf] %vm3010_vm4, %v2916_v48 }
 0x2be   : > { %3024 = vst.msk [vmem:[#allocation2 + $0x34] sm:$0xf] %vm3010_vm4, %v2902_v46  ;;  %v2900_v47 = vpop.permute.xlu0 %2899 }
 0x2bf   : > { %3023 = vst.msk [vmem:[#allocation2 + $0x30] sm:$0xf] %vm3010_vm4, %v2900_v47  ;;  %v3405_v47 = vld [vmem:[%s7093_s11 + $0x78] sm:$0xf] }
 0x2c2   : > { %3190 = vrot.lane.b32.xlu2 %v3099_v51, %s6996_s29  ;;  %v3677_v51 = vshrl.u32 %v3406_v45, 16 }
 0x2c3   : > { %3194 = vrot.lane.b32.xlu1 %v3101_v49, %s6996_s29  ;;  %v3131_v49 = vld [vmem:[%s7093_s11 + $0xb4] sm:$0xf] }
 0x2c4   : > { %3192 = vrot.lane.b32.xlu0 %v3100_v50, %s6996_s29  ;;  %v2922_v54 = vpop.permute.xlu2 %2921  ;;  %v3673_v50 = vshll.u32 %v3406_v45, 16 }
 0x2c5   : > { %v2908_v52 = vpop.permute.xlu1 %2907  ;;  %3034 = vst.msk [vmem:[#allocation2 + $0x5c] sm:$0xf] %vm3010_vm4, %v2922_v54  ;;  %v3667_v54 = vshrl.u32 %v3405_v47, 16 }
 0x2c6   : > { %3027 = vst.msk [vmem:[#allocation2 + $0x40] sm:$0xf] %vm3010_vm4, %v2908_v52  ;;  %v2906_v53 = vpop.permute.xlu0 %2905  ;;  %v3130_v52 = vld [vmem:[%s7093_s11 + $0xb0] sm:$0xf] }
 0x2c7   : > { %3026 = vst.msk [vmem:[#allocation2 + $0x3c] sm:$0xf] %vm3010_vm4, %v2906_v53  ;;  %v3663_v53 = vshll.u32 %v3405_v47, 16 }
 0x2ca   : > { %3196 = vrot.lane.b32.xlu2 %v3102_v57, %s6996_s29  ;;  %v3679_v57 = vrot.slane %v3677_v51, 4 }
 0x2cb   : > { %3200 = vrot.lane.b32.xlu1 %v3104_v55, %s6996_s29  ;;  %v3129_v55 = vld [vmem:[%s7093_s11 + $0xac] sm:$0xf] }
 0x2cc   : > { %3198 = vrot.lane.b32.xlu0 %v3103_v56, %s6996_s29  ;;  %v2928_v60 = vpop.permute.xlu2 %2927  ;;  %v3675_v56 = vrot.slane %v3673_v50, 5 }
 0x2cd   : > { %v2914_v58 = vpop.permute.xlu1 %2913  ;;  %3037 = vst.msk [vmem:[#allocation2 + $0x68] sm:$0xf] %vm3010_vm4, %v2928_v60  ;;  %v8532_v60 = vrot.slane %v3663_v53, 5 }
 0x2ce   : > { %3030 = vst.msk [vmem:[#allocation2 + $0x4c] sm:$0xf] %vm3010_vm4, %v2914_v58  ;;  %v2912_v59 = vpop.permute.xlu0 %2911 }
 0x2cf   : > { %3029 = vst.msk [vmem:[#allocation2 + $0x48] sm:$0xf] %vm3010_vm4, %v2912_v59  ;;  %v8530_v59 = vld [vmem:[%s7093_s11 + $0x80] sm:$0xf] }
 0x2d2   : > { %3202 = vrot.lane.b32.xlu2 %v3105_v63, %s6996_s29 }
 0x2d3   : > { %3206 = vrot.lane.b32.xlu1 %v3107_v61, %s6996_s29  ;;  %v3669_v61 = vrot.slane %v3667_v54, 4 }
 0x2d4   : > { %3204 = vrot.lane.b32.xlu0 %v3106_v62, %s6996_s29  ;;  %v2934_v2 = vpop.permute.xlu2 %2933  ;;  %v3418_v62 = vld [vmem:[%s7093_s11 + $0xac] sm:$0xf] }
 0x2d5   : > { %v2920_v0 = vpop.permute.xlu1 %2919  ;;  %3040 = vst.msk [vmem:[#allocation2 + $0x74] sm:$0xf] %vm3010_vm4, %v2934_v2  ;;  %v3417_v2 = vld [vmem:[%s7093_s11 + $0xa8] sm:$0xf] }
 0x2d6   : > { %3033 = vst.msk [vmem:[#allocation2 + $0x58] sm:$0xf] %vm3010_vm4, %v2920_v0  ;;  %v2918_v1 = vpop.permute.xlu0 %2917  ;;  %v3345_v0 = vld [vmem:[%s7342_s16] sm:$0xf] }
 0x2d7   : > { %3032 = vst.msk [vmem:[#allocation2 + $0x54] sm:$0xf] %vm3010_vm4, %v2918_v1 }
 0x2da   : > { %3208 = vrot.lane.b32.xlu2 %v3108_v5, %s6996_s29  ;;  %v3793_v5 = vshll.u32 %v3418_v62, 16 }
 0x2db   : > { %3212 = vrot.lane.b32.xlu1 %v3110_v3, %s6996_s29  ;;  %v3680_v3 = vor.u32 %v3679_v57, %v3675_v56 }
 0x2dc   : > { %3210 = vrot.lane.b32.xlu0 %v3109_v4, %s6996_s29  ;;  %v2940_v8 = vpop.permute.xlu2 %2939  ;;  %v3683_v4 = vshll.u32 %v8530_v59, 16 }
 0x2dd   : > { %v2926_v6 = vpop.permute.xlu1 %2925  ;;  %3043 = vst.msk [vmem:[#allocation2 + $0x80] sm:$0xf] %vm3010_vm4, %v2940_v8  ;;  %v3670_v8 = vor.u32 %v3669_v61, %v8532_v60 }
 0x2de   : > { %3036 = vst.msk [vmem:[#allocation2 + $0x64] sm:$0xf] %vm3010_vm4, %v2926_v6  ;;  %v2924_v7 = vpop.permute.xlu0 %2923  ;;  %v3797_v6 = vshrl.u32 %v3418_v62, 16  ;;  %v8604_v62 = vld [vmem:[%s7093_s11 + $0x80] sm:$0xf] }
 0x2df   : > { %3035 = vst.msk [vmem:[#allocation2 + $0x60] sm:$0xf] %vm3010_vm4, %v2924_v7  ;;  %v3133_v7 = vld [vmem:[%s7093_s11 + $0xbc] sm:$0xf] }
 0x2e2   : > { %3214 = vrot.lane.b32.xlu2 %v3111_v11, %s6996_s29  ;;  %v3787_v11 = vshrl.u32 %v3417_v2, 16 }
 0x2e3   : > { %3218 = vrot.lane.b32.xlu1 %v3113_v9, %s6996_s29  ;;  %v3132_v9 = vld [vmem:[%s7093_s11 + $0xb8] sm:$0xf] }
 0x2e4   : > { %3216 = vrot.lane.b32.xlu0 %v3112_v10, %s6996_s29  ;;  %v2946_v14 = vpop.permute.xlu2 %2945  ;;  %v3783_v10 = vshll.u32 %v3417_v2, 16 }
 0x2e5   : > { %v2932_v12 = vpop.permute.xlu1 %2931  ;;  %3046 = vst.msk [vmem:[#allocation2 + $0x8c] sm:$0xf] %vm3010_vm4, %v2946_v14  ;;  %v8548_v14 = vld [vmem:[%s7093_s11 + $0x78] sm:$0xf] }
 0x2e6   : > { %3039 = vst.msk [vmem:[#allocation2 + $0x70] sm:$0xf] %vm3010_vm4, %v2932_v12  ;;  %v2930_v13 = vpop.permute.xlu0 %2929  ;;  %v3681_v12 = vrot.slane %v3680_v3, 4 }
 0x2e7   : > { %3038 = vst.msk [vmem:[#allocation2 + $0x6c] sm:$0xf] %vm3010_vm4, %v2930_v13  ;;  %v8545_v13 = vrot.slane %v3683_v4, 5  ;;  %v3394_v4 = vld [vmem:[%s7093_s11 + $0x4c] sm:$0xf] }
 0x2ea   : > { %3220 = vrot.lane.b32.xlu2 %v3114_v17, %s6996_s29 }
 0x2eb   : > { %3224 = vrot.lane.b32.xlu1 %v3116_v15, %s6996_s29  ;;  %v8550_v15 = vrot.slane %v3793_v5, 5  ;;  %v8614_v5 = vld [vmem:[%s7093_s11 + $0x20] sm:$0xf] }
 0x2ec   : > { %3222 = vrot.lane.b32.xlu0 %v3115_v16, %s6996_s29  ;;  %v2952_v20 = vpop.permute.xlu2 %2951  ;;  %v3799_v16 = vrot.slane %v3797_v6, 4 }
 0x2ed   : > { %v2938_v18 = vpop.permute.xlu1 %2937  ;;  %3049 = vst.msk [vmem:[#allocation2 + $0x98] sm:$0xf] %vm3010_vm4, %v2952_v20 }
 0x2ee   : > { %3042 = vst.msk [vmem:[#allocation2 + $0x7c] sm:$0xf] %vm3010_vm4, %v2938_v18  ;;  %v2936_v19 = vpop.permute.xlu0 %2935  ;;  %v3671_v18 = vrot.slane %v3670_v8, 4 }
 0x2ef   : > { %3041 = vst.msk [vmem:[#allocation2 + $0x78] sm:$0xf] %vm3010_vm4, %v2936_v19  ;;  %v8554_v19 = vld [vmem:[%s7093_s11 + $0xb0] sm:$0xf] }
 0x2f2   : > { %3226 = vrot.lane.b32.xlu2 %v3117_v23, %s6996_s29  ;;  %v4273_v23 = vrot.slane %v8548_v14, 5 }
 0x2f3   : > { %3230 = vrot.lane.b32.xlu1 %v3119_v21, %s6996_s29  ;;  %v8557_v21 = vrot.slane %v3783_v10, 5  ;;  %v4279_v10 = vrot.slane %v8604_v62, 5 }
 0x2f4   : > { %3228 = vrot.lane.b32.xlu0 %v3118_v22, %s6996_s29  ;;  %v2958_v27 = vpop.permute.xlu2 %2957  ;;  %v3789_v22 = vrot.slane %v3787_v11, 4 }
 0x2f5   : > { %v2944_v25 = vpop.permute.xlu1 %2943  ;;  %3052 = vst.msk [vmem:[#allocation2 + $0xa4] sm:$0xf] %vm3010_vm4, %v2958_v27  ;;  %v4143_v27 = vld [vmem:[%s7093_s11 + $0x7c] sm:$0xf] }
 0x2f6   : > { %3045 = vst.msk [vmem:[#allocation2 + $0x88] sm:$0xf] %vm3010_vm4, %v2944_v25  ;;  %v2942_v26 = vpop.permute.xlu0 %2941 }
 0x2f7   : > { %3044 = vst.msk [vmem:[#allocation2 + $0x84] sm:$0xf] %vm3010_vm4, %v2942_v26  ;;  %v3686_v26 = vsel %vm7103_vm2, %v3681_v12, %v8545_v13 }
 0x2fa   : > { %3232 = vrot.lane.b32.xlu2 %v3120_v30, %s6996_s29  ;;  %v3676_v30 = vsel %vm7103_vm2, %v3671_v18, %v3675_v56  ;;  %v3553_v18 = vshll.u32 %v3394_v4, 16 }
 0x2fb   : > { %3236 = vrot.lane.b32.xlu1 %v3122_v28, %s6996_s29  ;;  %v3800_v28 = vor.u32 %v3799_v16, %v8550_v15 }
 0x2fc   : > { %3234 = vrot.lane.b32.xlu0 %v3121_v29, %s6996_s29  ;;  %v2964_v34 = vpop.permute.xlu2 %2963  ;;  %v3803_v29 = vshll.u32 %v8554_v19, 16 }
 0x2fd   : > { %v2950_v31 = vpop.permute.xlu1 %2949  ;;  %3056 = vst.msk [vmem:[#allocation2 + $0xb0] sm:$0x7] %vm3055_vm8, %v2964_v34  ;;  %v4275_v34 = vrot.slane %v4273_v23, 4 }
 0x2fe   : > { %3048 = vst.msk [vmem:[#allocation2 + $0x94] sm:$0xf] %vm3010_vm4, %v2950_v31  ;;  %v2948_v33 = vpop.permute.xlu0 %2947  ;;  %v3346_v31 = vld [vmem:[%s7342_s16 + $0x4] sm:$0xf] }
 0x2ff   : > { %3047 = vst.msk [vmem:[#allocation2 + $0x90] sm:$0xf] %vm3010_vm4, %v2948_v33  ;;  %v3790_v33 = vor.u32 %v3789_v22, %v8557_v21 }
 0x302   : > { %3238 = vrot.lane.b32.xlu2 %v3123_v37, %s6996_s29  ;;  %v8576_v37 = vrot.slane %v3803_v29, 5 }
 0x303   : > { %3242 = vrot.lane.b32.xlu1 %v3125_v35, %s6996_s29  ;;  %v4276_v35 = vrot.slane %v4143_v27, 5 }
 0x304   : > { %3240 = vrot.lane.b32.xlu0 %v3124_v36, %s6996_s29  ;;  %v3080_v40 = vpop.permute.xlu2 %3079  ;;  %v3801_v36 = vrot.slane %v3800_v28, 4 }
 0x305   : > { %v2956_v38 = vpop.permute.xlu1 %2955  ;;  %3090 = vst.msk [vmem:[#allocation2 + $0xb8] sm:$0xf] %vm3010_vm4, %v3080_v40  ;;  %v8581_v40 = vld [vmem:[%s7093_s11 + $0xa8] sm:$0xf]  ;;  %v4277_v45 = vsel %vm7362_vm7, %v4275_v34, %v4276_v35 }
 0x306   : > { %3051 = vst.msk [vmem:[#allocation2 + $0xa0] sm:$0xf] %vm3010_vm4, %v2956_v38  ;;  %v2954_v39 = vpop.permute.xlu0 %2953  ;;  %v4309_v50 = vrot.slane %v8581_v40, 5  ;;  %v3806_v53 = vsel %vm7103_vm2, %v3801_v36, %v8576_v37 }
 0x307   : > { %3050 = vst.msk [vmem:[#allocation2 + $0x9c] sm:$0xf] %vm3010_vm4, %v2954_v39  ;;  %v4155_v39 = vld [vmem:[%s7093_s11 + $0xac] sm:$0xf] }
 0x30a   : > { %3244 = vrot.lane.b32.xlu2 %v3126_v43, %s6996_s29  ;;  %v3791_v43 = vrot.slane %v3790_v33, 4 }
 0x30b   : > { %3248 = vrot.lane.b32.xlu1 %v3128_v41, %s6996_s29  ;;  %v3393_v41 = vld [vmem:[%s7093_s11 + $0x48] sm:$0xf] }
 0x30c   : > { %3246 = vrot.lane.b32.xlu0 %v3127_v42, %s6996_s29  ;;  %v3179_v48 = vpop.permute.xlu2 %3178  ;;  %v3543_v51 = vshll.u32 %v3393_v41, 16  ;;  %v3796_v56 = vsel %vm7103_vm2, %v3791_v43, %v8550_v15  ;;  %v8641_v43 = vld [vmem:[%s7093_s11 + $0x50] sm:$0xf] }
 0x30d   : > { %v2962_v44 = vpop.permute.xlu1 %2961  ;;  %3304 = vst.msk [vmem:[#allocation2 + $0x4] sm:$0xf] %vm3302_vm9, %v3179_v48  ;;  %v3381_v48 = vld [vmem:[%s7093_s11 + $0x18] sm:$0xf] }
 0x30e   : > { %3054 = vst.msk [vmem:[#allocation2 + $0xac] sm:$0xf] %vm3010_vm4, %v2962_v44  ;;  %v2960_v46 = vpop.permute.xlu0 %2959  ;;  %v3382_v44 = vld [vmem:[%s7093_s11 + $0x1c] sm:$0xf]  ;;  %v3424_v57 = vshrl.u32 %v3381_v48, 16 }
 0x30f   : > { %3053 = vst.msk [vmem:[#allocation2 + $0xa8] sm:$0xf] %vm3010_vm4, %v2960_v46  ;;  %v8590_v46 = vld [vmem:[%s7093_s11 + $0xb0] sm:$0xf]  ;;  %v3433_v54 = vshll.u32 %v3382_v44, 16 }
 0x310   : > { %v4315_v61 = vrot.slane %v8590_v46, 5  ;;  %v3426_v11 = vrot.slane %v3424_v57, 4  ;;  %v4281_v46 = vrot.slane %v4279_v10, 4 }
 0x311   : > { %v3435_v6 = vrot.slane %v3433_v54, 5 }
 0x312   : > { %3250 = vrot.lane.b32.xlu2 %v3129_v55, %s6996_s29  ;;  %v3437_v55 = vshrl.u32 %v3382_v44, 16  ;;  %v3687_v44 = vshrl.u32 %v8530_v59, 16  ;;  %v3563_v59 = vshll.u32 %v8641_v43, 16 }
 0x313   : > { %3254 = vrot.lane.b32.xlu1 %v3131_v49, %s6996_s29  ;;  %v4312_v49 = vrot.slane %v4155_v39, 5 }
 0x314   : > { %3252 = vrot.lane.b32.xlu0 %v3130_v52, %s6996_s29  ;;  %v3185_v1 = vpop.permute.xlu2 %3184  ;;  %v3547_v52 = vshrl.u32 %v3393_v41, 16 }
 0x315   : > { %v3078_v58 = vpop.permute.xlu1 %3077  ;;  %3307 = vst.msk [vmem:[#allocation2 + $0x10] sm:$0xf] %vm3302_vm9, %v3185_v1  ;;  %v8609_v1 = vrot.slane %v3543_v51, 5 }
 0x316   : > { %3089 = vst.msk [vmem:[#allocation2 + $0xb4] sm:$0xf] %vm3010_vm4, %v3078_v58  ;;  %v3076_v63 = vpop.permute.xlu0 %3075  ;;  %v3427_v58 = vshll.u32 %v3381_v48, 16  ;;  %v3549_v2 = vrot.slane %v3547_v52, 4 }
 0x317   : > { %3088 = vst.msk [vmem:[#allocation2 + $0xb0] sm:$0x8] %vm3087_vm10, %v3076_v63  ;;  %v4314_v63 = vrot.slane %v4312_v49, 4 }
 0x318   : > { %v3429_v12 = vrot.slane %v3427_v58, 5  ;;  %v3408_v58 = vld [vmem:[%s7093_s11 + $0x84] sm:$0xf] }
 0x319   : > { %v4316_v16 = vsel %vm7362_vm7, %v4314_v63, %v4315_v61  ;;  %v3420_v63 = vld [vmem:[%s7093_s11 + $0xb4] sm:$0xf] }
 0x31a   : > { %3256 = vrot.lane.b32.xlu2 %v3132_v9, %s6996_s29  ;;  %v4278_v9 = vrot.slane %v4276_v35, 4  ;;  %v3430_v28 = vor.u32 %v3429_v12, %v3426_v11  ;;  %v3693_v11 = vshll.u32 %v3408_v58, 16  ;;  %v3813_v12 = vshll.u32 %v3420_v63, 16 }
 0x31b   : > { %3357 = vrot.lane.b32.xlu1 %v3345_v0, %s6996_s29  ;;  %v4311_v0 = vrot.slane %v4309_v50, 4 }
 0x31c   : > { %3258 = vrot.lane.b32.xlu0 %v3133_v7, %s6996_s29  ;;  %v3191_v25 = vpop.permute.xlu2 %3190  ;;  %v3439_v7 = vrot.slane %v3437_v55, 4  ;;  %v4280_v27 = vsel %vm7362_vm7, %v4278_v9, %v4279_v10  ;;  %v3689_v55 = vrot.slane %v3687_v44, 4 }
 0x31d   : > { %v3177_v17 = vpop.permute.xlu1 %3176  ;;  %3310 = vst.msk [vmem:[#allocation2 + $0x1c] sm:$0xf] %vm3302_vm9, %v3191_v25  ;;  %v3443_v25 = vshll.u32 %v8614_v5, 16 }
 0x31e   : > { %3303 = vst.msk [vmem:[#allocation2] sm:$0xf] %vm3302_vm9, %v3177_v17  ;;  %v3082_v20 = vpop.permute.xlu0 %3081  ;;  %v3550_v17 = vor.u32 %v3549_v2, %v8609_v1  ;;  %v3440_v22 = vor.u32 %v3439_v7, %v3435_v6  ;;  %v4131_v2 = vld [vmem:[%s7093_s11 + $0x4c] sm:$0xf]  ;;  %v3690_v9 = vor.u32 %v3689_v55, %v8545_v13 }
 0x31f   : > { %3091 = vst.msk [vmem:[#allocation2 + $0xbc] sm:$0xf] %vm3010_vm4, %v3082_v20  ;;  %v4313_v20 = vsel %vm7362_vm7, %v4311_v0, %v4312_v49  ;;  %v8635_v35 = vrot.slane %v3443_v25, 5  ;;  %v4118_v49 = vld [vmem:[%s7093_s11 + $0x18] sm:$0xe]  ;;  %vm4551_vm4 = vcmask 290051  }
 0x320   : > { %v3551_v29 = vrot.slane %v3550_v17, 4  ;;  %v3441_v34 = vrot.slane %v3440_v22, 4  ;;  %v6287_v57 = vrot.slane %v4118_v49, 9  ;;  %v8681_v22 = vld [vmem:[%s7093_s11 + $0x50] sm:$0xf] }
 0x322   : > { %3359 = vrot.lane.b32.xlu2 %v3346_v31, %s6996_s29  ;;  %v4119_v31 = vld [vmem:[%s7093_s11 + $0x1c] sm:$0xf]  ;;  %v3446_v48 = vsel %vm7103_vm2, %v3441_v34, %v8635_v35 }
 0x323   : > { %3892 = vrot.lane.b32.xlu1 %v3686_v26, %s6997_s7  ;;  %v3557_v26 = vshrl.u32 %v3394_v4, 16  ;;  %v4204_v41 = vrot.slane %v4119_v31, 5  ;;  %v8665_v4 = vrot.slane %v3563_v59, 5  ;;  %v4243_v31 = vrot.slane %v8681_v22, 5 }
 0x324   : > { %3890 = vrot.lane.b32.xlu0 %v3676_v30, %s6997_s7  ;;  %v3197_v47 = vpop.permute.xlu2 %3196  ;;  %v3555_v30 = vrot.slane %v3553_v18, 5  ;;  %v4240_v18 = vrot.slane %v4131_v2, 5 }
 0x325   : > { %v3183_v38 = vpop.permute.xlu1 %3182  ;;  %3313 = vst.msk [vmem:[#allocation2 + $0x28] sm:$0xf] %vm3302_vm9, %v3197_v47  ;;  %v3559_v39 = vrot.slane %v3557_v26, 4  ;;  %v8647_v47 = vld [vmem:[%s7093_s11 + $0x20] sm:$0xf]  ;;  %v4205_v17 = vsel %vm7362_vm7, %v6287_v57, %v4204_v41  ;;  %v3691_v26 = vrot.slane %v3690_v9, 4 }
 0x326   : > { %3306 = vst.msk [vmem:[#allocation2 + $0xc] sm:$0xf] %vm3302_vm9, %v3183_v38  ;;  %v3181_v42 = vpop.permute.xlu0 %3180  ;;  %v3431_v38 = vrot.slane %v3430_v28, 4  ;;  %v4207_v54 = vrot.slane %v8647_v47, 5  ;;  %v8834_v47 = vld [vmem:[%s7342_s16] sm:$0xf] }
 0x327   : > { %3305 = vst.msk [vmem:[#allocation2 + $0x8] sm:$0xf] %vm3302_vm9, %v3181_v42  ;;  %v3560_v52 = vor.u32 %v3559_v39, %v3555_v30 }
 0x328   : > { %v3436_v51 = vsel %vm7103_vm2, %v3431_v38, %v3435_v6 }
 0x32a   : > { %3914 = vrot.lane.b32.xlu2 %v3796_v56, %s6997_s7 }
 0x32b   : > { %4375 = vrot.lane.b32.xlu1 %v4277_v45, %s6998_s8  ;;  %v3556_v45 = vsel %vm7103_vm2, %v3551_v29, %v3555_v30  ;;  %v4242_v30 = vrot.slane %v4240_v18, 4 }
 0x32c   : > { %3916 = vrot.lane.b32.xlu0 %v3806_v53, %s6997_s7  ;;  %v3203_v15 = vpop.permute.xlu2 %3202  ;;  %v4206_v53 = vrot.slane %v4204_v41, 4 }
 0x32d   : > { %v3189_v3 = vpop.permute.xlu1 %3188  ;;  %3316 = vst.msk [vmem:[#allocation2 + $0x34] sm:$0xf] %vm3302_vm9, %v3203_v15  ;;  %v3817_v15 = vshrl.u32 %v3420_v63, 16  ;;  %v4244_v49 = vsel %vm7362_vm7, %v4242_v30, %v4243_v31  ;;  %v3384_v63 = vld [vmem:[%s7093_s11 + $0x24] sm:$0xf] }
 0x32e   : > { %3309 = vst.msk [vmem:[#allocation2 + $0x18] sm:$0xf] %vm3302_vm9, %v3189_v3  ;;  %v3187_v8 = vpop.permute.xlu0 %3186  ;;  %v3561_v3 = vrot.slane %v3560_v52, 4  ;;  %v4208_v6 = vsel %vm7362_vm7, %v4206_v53, %v4207_v54  ;;  %v3453_v9 = vshll.u32 %v3384_v63, 16  ;;  %v8745_v30 = vld [vmem:[%s7093_s11 + $0x28] sm:$0xf] }
 0x32f   : > { %3308 = vst.msk [vmem:[#allocation2 + $0x14] sm:$0xf] %vm3302_vm9, %v3187_v8  ;;  %v8673_v8 = vld [vmem:[%s7093_s11 + $0x48] sm:$0xf]  ;;  %v3819_v28 = vrot.slane %v3817_v15, 4 }
 0x330   : > { %v3566_v25 = vsel %vm7103_vm2, %v3561_v3, %v8665_v4  ;;  %v4237_v13 = vrot.slane %v8673_v8, 5 }
 0x332   : > { %4377 = vrot.lane.b32.xlu2 %v4280_v27, %s6998_s8  ;;  %v3815_v27 = vrot.slane %v3813_v12, 5  ;;  %v4239_v38 = vrot.slane %v4237_v13, 4  ;;  %v3447_v12 = vshrl.u32 %v8614_v5, 16  ;;  %v4317_v5 = vrot.slane %v4315_v61, 4  ;;  %v3396_v61 = vld [vmem:[%s7093_s11 + $0x54] sm:$0xf] }
 0x333   : > { %4401 = vrot.lane.b32.xlu1 %v4316_v16, %s6998_s8  ;;  %v3807_v16 = vshrl.u32 %v8554_v19, 16  ;;  %v3695_v19 = vrot.slane %v3693_v11, 5  ;;  %v3457_v11 = vshrl.u32 %v3384_v63, 16 }
 0x334   : > { %4399 = vrot.lane.b32.xlu0 %v4313_v20, %s6998_s8  ;;  %v3209_v42 = vpop.permute.xlu2 %3208  ;;  %v3697_v20 = vshrl.u32 %v3408_v58, 16  ;;  %v4241_v52 = vsel %vm7362_vm7, %v4239_v38, %v4240_v18  ;;  %v8733_v18 = vld [vmem:[%s7093_s11 + $0x88] sm:$0xf] }
 0x335   : > { %v3195_v33 = vpop.permute.xlu1 %3194  ;;  %3319 = vst.msk [vmem:[#allocation2 + $0x40] sm:$0xf] %vm3302_vm9, %v3209_v42  ;;  %v3809_v34 = vrot.slane %v3807_v16, 4  ;;  %v8699_v42 = vld [vmem:[%s7093_s11 + $0x88] sm:$0xf]  ;;  %v3696_v44 = vsel %vm7103_vm2, %v3691_v26, %v3695_v19  ;;  %v3455_v26 = vrot.slane %v3453_v9, 5 }
 0x336   : > { %3312 = vst.msk [vmem:[#allocation2 + $0x24] sm:$0xf] %vm3302_vm9, %v3195_v33  ;;  %v3193_v36 = vpop.permute.xlu0 %3192  ;;  %v8692_v33 = vld [vmem:[%s7093_s11 + $0xb8] sm:$0xf]  ;;  %v3699_v39 = vrot.slane %v3697_v20, 4  ;;  %v3703_v53 = vshll.u32 %v8699_v42, 16 }
 0x337   : > { %3311 = vst.msk [vmem:[#allocation2 + $0x20] sm:$0xf] %vm3302_vm9, %v3193_v36  ;;  %v4157_v16 = vld [vmem:[%s7093_s11 + $0xb4] sm:$0xf] }
 0x338   : > { %v3700_v59 = vor.u32 %v3699_v39, %v3695_v19  ;;  %v8721_v3 = vrot.slane %v3703_v53, 5  ;;  %v3459_v19 = vrot.slane %v3457_v11, 4 }
 0x33a   : > { %3842 = vrot.lane.b32.xlu2 %v3436_v51, %s6997_s7  ;;  %v3810_v51 = vor.u32 %v3809_v34, %v8576_v37  ;;  %v3701_v2 = vrot.slane %v3700_v59, 4  ;;  %v3449_v34 = vrot.slane %v3447_v12, 4 }
 0x33b   : > { %3866 = vrot.lane.b32.xlu1 %v3556_v45, %s6997_s7  ;;  %v3820_v45 = vor.u32 %v3819_v28, %v3815_v27 }
 0x33c   : > { %3844 = vrot.lane.b32.xlu0 %v3446_v48, %s6997_s7  ;;  %v3215_v7 = vpop.permute.xlu2 %3214  ;;  %v3823_v48 = vshll.u32 %v8692_v33, 16  ;;  %v3811_v58 = vrot.slane %v3810_v51, 4  ;;  %v3706_v20 = vsel %vm7103_vm2, %v3701_v2, %v8721_v3  ;;  %v3450_v10 = vor.u32 %v3449_v34, %v8635_v35 }
 0x33d   : > { %v3201_v56 = vpop.permute.xlu1 %3200  ;;  %3322 = vst.msk [vmem:[#allocation2 + $0x4c] sm:$0xf] %vm3302_vm9, %v3215_v7  ;;  %v3821_v55 = vrot.slane %v3820_v45, 4  ;;  %v3422_v45 = vld [vmem:[%s7093_s11 + $0xbc] sm:$0xf]  ;;  %v3567_v51 = vshrl.u32 %v8641_v43, 16 }
 0x33e   : > { %3315 = vst.msk [vmem:[#allocation2 + $0x30] sm:$0xf] %vm3302_vm9, %v3201_v56  ;;  %v3199_v0 = vpop.permute.xlu0 %3198  ;;  %v8715_v56 = vrot.slane %v3823_v48, 5  ;;  %v3816_v15 = vsel %vm7103_vm2, %v3811_v58, %v3815_v27  ;;  %v3573_v48 = vshll.u32 %v3396_v61, 16  ;;  %v3833_v59 = vshll.u32 %v3422_v45, 16 }
 0x33f   : > { %3314 = vst.msk [vmem:[#allocation2 + $0x2c] sm:$0xf] %vm3302_vm9, %v3199_v0  ;;  %v4145_v0 = vld [vmem:[%s7093_s11 + $0x84] sm:$0xf]  ;;  %v3837_v53 = vshrl.u32 %v3422_v45, 16  ;;  %v3451_v35 = vrot.slane %v3450_v10, 4 }
 0x340   : > { %v3826_v7 = vsel %vm7103_vm2, %v3821_v55, %v8715_v56  ;;  %v8767_v55 = vld [vmem:[%s7093_s11 + $0xb8] sm:$0xf]  ;;  %v3575_v43 = vrot.slane %v3573_v48, 5  ;;  %v3569_v9 = vrot.slane %v3567_v51, 4  ;;  %v8779_v11 = vrot.slane %v3833_v59, 5 }
 0x341   : > { %v3839_v12 = vrot.slane %v3837_v53, 4  ;;  %v3410_v53 = vld [vmem:[%s7093_s11 + $0x8c] sm:$0xf] }
 0x342   : > { %3868 = vrot.lane.b32.xlu2 %v3566_v25, %s6997_s7  ;;  %v4318_v25 = vrot.slane %v4157_v16, 5 }
 0x343   : > { %4329 = vrot.lane.b32.xlu1 %v4208_v6, %s6998_s8 }
 0x344   : > { %4327 = vrot.lane.b32.xlu0 %v4205_v17, %s6998_s8  ;;  %v3221_v41 = vpop.permute.xlu2 %3220  ;;  %v4282_v17 = vrot.slane %v4145_v0, 5  ;;  %v4319_v39 = vsel %vm7362_vm7, %v4317_v5, %v4318_v25 }
 0x345   : > { %v3207_v29 = vpop.permute.xlu1 %3206  ;;  %3325 = vst.msk [vmem:[#allocation2 + $0x58] sm:$0xf] %vm3302_vm9, %v3221_v41  ;;  %v3460_v41 = vor.u32 %v3459_v19, %v3455_v26  ;;  %v3570_v19 = vor.u32 %v3569_v9, %v8665_v4 }
 0x346   : > { %3318 = vst.msk [vmem:[#allocation2 + $0x3c] sm:$0xf] %vm3302_vm9, %v3207_v29  ;;  %v3205_v36 = vpop.permute.xlu0 %3204  ;;  %v4284_v28 = vrot.slane %v4282_v17, 4  ;;  %v4285_v29 = vrot.slane %v8733_v18, 5 }
 0x347   : > { %3317 = vst.msk [vmem:[#allocation2 + $0x38] sm:$0xf] %vm3302_vm9, %v3205_v36 }
 0x348   : > { %v4286_v62 = vsel %vm7362_vm7, %v4284_v28, %v4285_v29 }
 0x34a   : > { %4351 = vrot.lane.b32.xlu2 %v4241_v52, %s6998_s8  ;;  %v4283_v52 = vsel %vm7362_vm7, %v4281_v46, %v4282_v17  ;;  %v3456_v17 = vsel %vm7103_vm2, %v3451_v35, %v3455_v26  ;;  %v4121_v46 = vld [vmem:[%s7093_s11 + $0x24] sm:$0xf] }
 0x34b   : > { %3894 = vrot.lane.b32.xlu1 %v3696_v44, %s6997_s7  ;;  %v3463_v44 = vshll.u32 %v8745_v30, 16  ;;  %v4210_v45 = vrot.slane %v4121_v46, 5 }
 0x34c   : > { %4353 = vrot.lane.b32.xlu0 %v4244_v49, %s6998_s8  ;;  %v3227_v6 = vpop.permute.xlu2 %3226  ;;  %v3577_v49 = vshrl.u32 %v3396_v61, 16  ;;  %v3571_v61 = vrot.slane %v3570_v19, 4 }
 0x34d   : > { %v3213_v57 = vpop.permute.xlu1 %3212  ;;  %3328 = vst.msk [vmem:[#allocation2 + $0x64] sm:$0xf] %vm3302_vm9, %v3227_v6  ;;  %v8770_v58 = vrot.slane %v3463_v44, 5  ;;  %v4320_v6 = vrot.slane %v4318_v25, 4  ;;  %v4133_v44 = vld [vmem:[%s7093_s11 + $0x54] sm:$0xf] }
 0x34e   : > { %3321 = vst.msk [vmem:[#allocation2 + $0x48] sm:$0xf] %vm3302_vm9, %v3213_v57  ;;  %v3211_v37 = vpop.permute.xlu0 %3210  ;;  %v3461_v57 = vrot.slane %v3460_v41, 4  ;;  %v3579_v0 = vrot.slane %v3577_v49, 4  ;;  %v3576_v10 = vsel %vm7103_vm2, %v3571_v61, %v3575_v43  ;;  %v4246_v48 = vrot.slane %v4133_v44, 5 }
 0x34f   : > { %3320 = vst.msk [vmem:[#allocation2 + $0x44] sm:$0xf] %vm3302_vm9, %v3211_v37  ;;  %v8774_v37 = vld [vmem:[%s7093_s11 + $0x58] sm:$0xf]  ;;  %v4611_v61 = vld [vmem:[%s10553_s2 + $0x10] sm:$0x3] }
 0x350   : > { %v3466_v16 = vsel %vm7103_vm2, %v3461_v57, %v8770_v58  ;;  %v3583_v5 = vshll.u32 %v8774_v37, 16 }
 0x352   : > { %3896 = vrot.lane.b32.xlu2 %v3706_v20, %s6997_s7  ;;  %v3580_v20 = vor.u32 %v3579_v0, %v3575_v43  ;;  %v8796_v34 = vrot.slane %v3583_v5, 5  ;;  %v3713_v43 = vshll.u32 %v3410_v53, 16  ;;  %v3827_v0 = vshrl.u32 %v8692_v33, 16 }
 0x353   : > { %3920 = vrot.lane.b32.xlu1 %v3826_v7, %s6997_s7  ;;  %v4321_v7 = vrot.slane %v8767_v55, 5 }
 0x354   : > { %3918 = vrot.lane.b32.xlu0 %v3816_v15, %s6997_s7  ;;  %v3233_v38 = vpop.permute.xlu2 %3232  ;;  %v3581_v26 = vrot.slane %v3580_v20, 4  ;;  %v3715_v33 = vrot.slane %v3713_v43, 5  ;;  %v4248_v20 = vrot.slane %v4246_v48, 4 }
 0x355   : > { %v3219_v27 = vpop.permute.xlu1 %3218  ;;  %3331 = vst.msk [vmem:[#allocation2 + $0x70] sm:$0xf] %vm3302_vm9, %v3233_v38  ;;  %v4322_v25 = vsel %vm7362_vm7, %v4320_v6, %v4321_v7 }
 0x356   : > { %3324 = vst.msk [vmem:[#allocation2 + $0x54] sm:$0xf] %vm3302_vm9, %v3219_v27  ;;  %v3217_v36 = vpop.permute.xlu0 %3216  ;;  %v3840_v27 = vor.u32 %v3839_v12, %v8779_v11  ;;  %v3586_v41 = vsel %vm7103_vm2, %v3581_v26, %v8796_v34  ;;  %v4023_v12 = vshll.u32 %v8834_v47, 16 }
 0x357   : > { %3323 = vst.msk [vmem:[#allocation2 + $0x50] sm:$0xf] %vm3302_vm9, %v3217_v36 }
 0x358   : > { %v3841_v4 = vrot.slane %v3840_v27, 4  ;;  %v8849_v27 = vld [vmem:[%s7093_s11 + $0x90] sm:$0xf]  ;;  %v8853_v26 = vrot.slane %v4023_v12, 5 }
 0x359   : > { %v8903_v12 = vld [vmem:[%s7093_s11 + $0x30] sm:$0xf] }
 0x35a   : > { %4379 = vrot.lane.b32.xlu2 %v4283_v52, %s6998_s8  ;;  %v4212_v52 = vrot.slane %v4210_v45, 4 }
 0x35b   : > { %4403 = vrot.lane.b32.xlu1 %v4319_v39, %s6998_s8  ;;  %v3707_v39 = vshrl.u32 %v8699_v42, 16  ;;  %v4245_v42 = vrot.slane %v4243_v31, 4 }
 0x35c   : > { %4381 = vrot.lane.b32.xlu0 %v4286_v62, %s6998_s8  ;;  %v3239_v15 = vpop.permute.xlu2 %3238  ;;  %v8809_v62 = vld [vmem:[%s7093_s11 + $0x28] sm:$0xf] }
 0x35d   : > { %v3225_v63 = vpop.permute.xlu1 %3224  ;;  %3334 = vst.msk [vmem:[#allocation2 + $0x7c] sm:$0xf] %vm3302_vm9, %v3239_v15  ;;  %v3709_v49 = vrot.slane %v3707_v39, 4  ;;  %v4213_v59 = vrot.slane %v8809_v62, 5  ;;  %v4247_v31 = vsel %vm7362_vm7, %v4245_v42, %v4246_v48  ;;  %v3723_v39 = vshll.u32 %v8849_v27, 16 }
 0x35e   : > { %3327 = vst.msk [vmem:[#allocation2 + $0x60] sm:$0xf] %vm3302_vm9, %v3225_v63  ;;  %v3223_v2 = vpop.permute.xlu0 %3222  ;;  %v4209_v63 = vrot.slane %v4207_v54, 4  ;;  %v3717_v54 = vshrl.u32 %v3410_v53, 16  ;;  %v3386_v48 = vld [vmem:[%s7093_s11 + $0x2c] sm:$0xf] }
 0x35f   : > { %3326 = vst.msk [vmem:[#allocation2 + $0x5c] sm:$0xf] %vm3302_vm9, %v3223_v2  ;;  %v3710_v35 = vor.u32 %v3709_v49, %v8721_v3  ;;  %v4214_v2 = vsel %vm7362_vm7, %v4212_v52, %v4213_v59  ;;  %v8840_v3 = vld [vmem:[%s7093_s11 + $0x58] sm:$0xf]  ;;  %v8874_v52 = vrot.slane %v3723_v39, 5 }
 0x360   : > { %v4211_v6 = vsel %vm7362_vm7, %v4209_v63, %v4210_v45  ;;  %v4249_v5 = vrot.slane %v8840_v3, 5  ;;  %v4159_v63 = vld [vmem:[%s7093_s11 + $0xbc] sm:$0xf] }
 0x361   : > { %v3711_v9 = vrot.slane %v3710_v35, 4  ;;  %v3467_v35 = vshrl.u32 %v8745_v30, 16  ;;  %v6491_v30 = vld [vmem:[%s10553_s2] sm:$0xff] }
 0x362   : > { %4405 = vrot.lane.b32.xlu2 %v4322_v25, %s6998_s8  ;;  %v3719_v25 = vrot.slane %v3717_v54, 4  ;;  %v8893_v54 = vld [vmem:[%s7093_s11 + $0x90] sm:$0xf] }
 0x363   : > { %3848 = vrot.lane.b32.xlu1 %v3466_v16, %s6997_s7  ;;  %v3829_v16 = vrot.slane %v3827_v0, 4 }
 0x364   : > { %3846 = vrot.lane.b32.xlu0 %v3456_v17, %s6997_s7  ;;  %v3245_v38 = vpop.permute.xlu2 %3244 }
 0x365   : > { %v3231_v28 = vpop.permute.xlu1 %3230  ;;  %3337 = vst.msk [vmem:[#allocation2 + $0x88] sm:$0xf] %vm3302_vm9, %v3245_v38  ;;  %v3830_v46 = vor.u32 %v3829_v16, %v8715_v56  ;;  %v3720_v38 = vor.u32 %v3719_v25, %v3715_v33  ;;  %v4287_v56 = vrot.slane %v4285_v29, 4  ;;  %v6492_v29 = vld [vmem:[%s10553_s2 + $0x8] sm:$0xff]  ;;  %v3398_v25 = vld [vmem:[%s7093_s11 + $0x5c] sm:$0xf] }
 0x366   : > { %3330 = vst.msk [vmem:[#allocation2 + $0x6c] sm:$0xf] %vm3302_vm9, %v3231_v28  ;;  %v3229_v36 = vpop.permute.xlu0 %3228  ;;  %v3716_v28 = vsel %vm7103_vm2, %v3711_v9, %v3715_v33  ;;  %v4323_v33 = vrot.slane %v4321_v7, 4 }
 0x367   : > { %3329 = vst.msk [vmem:[#allocation2 + $0x68] sm:$0xf] %vm3302_vm9, %v3229_v36  ;;  %v4147_v36 = vld [vmem:[%s7093_s11 + $0x8c] sm:$0xf]  ;;  %v3831_v42 = vrot.slane %v3830_v46, 4 }
 0x368   : > { %v4288_v44 = vrot.slane %v4147_v36, 5 }
 0x369   : > { %v3836_v43 = vsel %vm7103_vm2, %v3831_v42, %v8779_v11 }
 0x36a   : > { %3870 = vrot.lane.b32.xlu2 %v3576_v10, %s6997_s7 }
 0x36b   : > { %3924 = vrot.lane.b32.xlu1 %v3841_v4, %s6997_s7  ;;  %v4250_v4 = vsel %vm7362_vm7, %v4248_v20, %v4249_v5  ;;  %v4291_v20 = vrot.slane %v8893_v54, 5 }
 0x36c   : > { %3872 = vrot.lane.b32.xlu0 %v3586_v41, %s6997_s7  ;;  %v3251_v22 = vpop.permute.xlu2 %3250  ;;  %v4741_v41 = vunpack.c.l.b16 %v4611_v61  ;;  %v3593_v61 = vshll.u32 %v3398_v25, 16 }
 0x36d   : > { %v3237_v51 = vpop.permute.xlu1 %3236  ;;  %3340 = vst.msk [vmem:[#allocation2 + $0x94] sm:$0xf] %vm3302_vm9, %v3251_v22  ;;  %v3473_v22 = vshll.u32 %v3386_v48, 16 }
 0x36e   : > { %3333 = vst.msk [vmem:[#allocation2 + $0x78] sm:$0xf] %vm3302_vm9, %v3237_v51  ;;  %v3235_v57 = vpop.permute.xlu0 %3234  ;;  %v4744_v45 = vpack.c.b16 %v4741_v41, %v4741_v41  ;;  %v3721_v51 = vrot.slane %v3720_v38, 4  ;;  %v3587_v38 = vshrl.u32 %v8774_v37, 16  ;;  %v3595_v37 = vrot.slane %v3593_v61, 5 }
 0x36f   : > { %3332 = vst.msk [vmem:[#allocation2 + $0x74] sm:$0xf] %vm3302_vm9, %v3235_v57  ;;  %v4289_v57 = vsel %vm7362_vm7, %v4287_v56, %v4288_v44 }
 0x370   : > { %v4822_v53 = vsel %vm4820_vm12, %v4744_v45, 0  ;;  %v3726_v0 = vsel %vm7103_vm2, %v3721_v51, %v8874_v52  ;;  %v8925_v45 = vld [vmem:[%s7093_s11 + $0x60] sm:$0xf] }
 0x371   : > { %6637 = vmatpush.bf16.msra.mxu2 %v4822_v53  ;;  %6638 = vmatpush.bf16.msra.mxu3 %v4822_v53 }
 0x372   : > { %4331 = vrot.lane.b32.xlu2 %v4211_v6, %s6998_s8  ;;  %4829 = vmatpush.bf16.msra.mxu0 %v4822_v53  ;;  %v3475_v6 = vrot.slane %v3473_v22, 5 }
 0x373   : > { %4355 = vrot.lane.b32.xlu1 %v4247_v31, %s6998_s8  ;;  %v3477_v31 = vshrl.u32 %v3386_v48, 16  ;;  %6636 = vmatpush.bf16.msra.mxu1 %v4822_v53  ;;  %v8929_v48 = vld [vmem:[%s7342_s16] sm:$0xf] }
 0x374   : > { %4333 = vrot.lane.b32.xlu0 %v4214_v2, %s6998_s8  ;;  %v3257_v19 = vpop.permute.xlu2 %3256  ;;  %v4324_v2 = vrot.slane %v4159_v63, 5  ;;  %v3603_v63 = vshll.u32 %v8925_v45, 16  ;;  %v4511_v22 = vrot.slane %v8929_v48, 5 }
 0x375   : > { %v3243_v15 = vpop.permute.xlu1 %3242  ;;  %3343 = vst.msk [vmem:[#allocation2 + $0xa0] sm:$0xf] %vm3302_vm9, %v3257_v19  ;;  %6640 = vmatpush.bf16.msra.mxu2 %v6492_v29  ;;  %v3479_v9 = vrot.slane %v3477_v31, 4  ;;  %6641 = vmatpush.bf16.msra.mxu3 %v6492_v29 }
 0x376   : > { %3336 = vst.msk [vmem:[#allocation2 + $0x84] sm:$0xf] %vm3302_vm9, %v3243_v15  ;;  %v3241_v17 = vpop.permute.xlu0 %3240  ;;  %v3469_v15 = vrot.slane %v3467_v35, 4  ;;  %4830 = vmatpush.bf16.msra.mxu0 %v6492_v29  ;;  %v4326_v19 = vrot.slane %v4324_v2, 4  ;;  %v4325_v36 = vsel %vm7362_vm7, %v4323_v33, %v4324_v2  ;;  %v4215_v35 = vrot.slane %v4213_v59, 4 }
 0x377   : > { %3335 = vst.msk [vmem:[#allocation2 + $0x80] sm:$0xf] %vm3302_vm9, %v3241_v17  ;;  %v4290_v17 = vrot.slane %v4288_v44, 4  ;;  %6639 = vmatpush.bf16.msra.mxu1 %v6492_v29  ;;  %v3480_v7 = vor.u32 %v3479_v9, %v3475_v6  ;;  %v4123_v29 = vld [vmem:[%s7093_s11 + $0x2c] sm:$0xf]  ;;  %v4026_v59 = vshrl.u32 %v8834_v47, 16 }
 0x378   : > { %v3470_v46 = vor.u32 %v3469_v15, %v8770_v58  ;;  %v4135_v9 = vld [vmem:[%s7093_s11 + $0x5c] sm:$0xf]  ;;  %v3727_v47 = vshrl.u32 %v8849_v27, 16  ;;  %v4016_v27 = vld [vmem:[%s7342_s16 + $0x4] sm:$0xf] }
 0x379   : > { %6643 = vmatpush.bf16.msra.mxu2 %v6491_v30  ;;  %6644 = vmatpush.bf16.msra.mxu3 %v6491_v30  ;;  %v4292_v39 = vsel %vm7362_vm7, %v4290_v17, %v4291_v20  ;;  %v3481_v41 = vrot.slane %v3480_v7, 4  ;;  %v4252_v15 = vrot.slane %v4135_v9, 5  ;;  %v8962_v17 = vld [vmem:[%s7093_s11 + $0x60] sm:$0xf]  ;;  %v8970_v7 = vld [vmem:[%s7093_s11 + $0x30] sm:$0xf] }
 0x37a   : > { %4357 = vrot.lane.b32.xlu2 %v4250_v4, %s6998_s8  ;;  %v3597_v4 = vshrl.u32 %v3398_v25, 16  ;;  %4831 = vmatpush.bf16.msra.mxu0 %v6491_v30  ;;  %v3471_v44 = vrot.slane %v3470_v46, 4  ;;  %v4251_v46 = vrot.slane %v4249_v5, 4  ;;  %v4028_v61 = vrot.slane %v4026_v59, 4  ;;  %v9008_v59 = vld [vmem:[%s7342_s16 + $0x8] sm:$0xf] }
 0x37b   : > { %3898 = vrot.lane.b32.xlu1 %v3716_v28, %s6997_s7  ;;  %v3483_v28 = vshll.u32 %v8903_v12, 16  ;;  %6642 = vmatpush.bf16.msra.mxu1 %v6491_v30 }
 0x37c   : > { %4086 = vrot.lane.b32.xlu0 %v8853_v26, %s6997_s7  ;;  %v3360_v18 = vpop.permute.xlu2 %3359 }
 0x37d   : > { %v3249_v10 = vpop.permute.xlu1 %3248  ;;  %3376 = vst.msk [vmem:[#allocation2 + $0xac] sm:$0xf] %vm3302_vm9, %v3360_v18  ;;  %v8921_v56 = vrot.slane %v3483_v28, 5  ;;  %v3476_v18 = vsel %vm7103_vm2, %v3471_v44, %v3475_v6  ;;  %v8945_v6 = vrot.slane %v3603_v63, 5  ;;  %v4254_v28 = vrot.slane %v4252_v15, 4 }
 0x37e   : > { %3339 = vst.msk [vmem:[#allocation2 + $0x90] sm:$0xf] %vm3302_vm9, %v3249_v10  ;;  %v3247_v49 = vpop.permute.xlu0 %3246  ;;  %v3599_v10 = vrot.slane %v3597_v4, 4 }
 0x37f   : > { %3338 = vst.msk [vmem:[#allocation2 + $0x8c] sm:$0xf] %vm3302_vm9, %v3247_v49  ;;  %v3589_v49 = vrot.slane %v3587_v38, 4  ;;  %v3486_v53 = vsel %vm7103_vm2, %v3481_v41, %v8921_v56  ;;  %v8979_v38 = vld [vmem:[%s7093_s11 + $0x98] sm:$0xf] }
 0x381   : > { %v3590_v31 = vor.u32 %v3589_v49, %v8796_v34  ;;  %v4032_v49 = vshll.u32 %v4016_v27, 16 }
 0x382   : > { %3900 = vrot.lane.b32.xlu2 %v3726_v0, %s6997_s7 }
 0x383   : > { %4383 = vrot.lane.b32.xlu1 %v4289_v57, %s6998_s8  ;;  %v3600_v57 = vor.u32 %v3599_v10, %v3595_v37  ;;  %v3591_v30 = vrot.slane %v3590_v31, 4  ;;  %v3729_v10 = vrot.slane %v3727_v47, 4  ;;  %v4034_v31 = vrot.slane %v4032_v49, 5 }
 0x384   : > { %3922 = vrot.lane.b32.xlu0 %v3836_v43, %s6997_s7  ;;  %v3915_v55 = vpop.permute.xlu2 %3914  ;;  %v4216_v43 = vrot.slane %v4123_v29, 5  ;;  %v4036_v29 = vshrl.u32 %v4016_v27, 16  ;;  %v3388_v27 = vld [vmem:[%s7093_s11 + $0x34] sm:$0xf] }
 0x385   : > { %v3255_v11 = vpop.permute.xlu1 %3254  ;;  %4005 = vst.msk [vmem:[#allocation2 + $0x90] sm:$0xf] %vm3968_vm13, %v3915_v55  ;;  %v3601_v2 = vrot.slane %v3600_v57, 4  ;;  %v3596_v55 = vsel %vm7103_vm2, %v3591_v30, %v3595_v37  ;;  %v4219_v37 = vrot.slane %v8970_v7, 5  ;;  %v3730_v63 = vor.u32 %v3729_v10, %v8874_v52 }
 0x386   : > { %3342 = vst.msk [vmem:[#allocation2 + $0x9c] sm:$0xf] %vm3302_vm9, %v3255_v11  ;;  %v3253_v16 = vpop.permute.xlu0 %3252  ;;  %v3412_v11 = vld [vmem:[%s7093_s11 + $0x94] sm:$0xf]  ;;  %v4217_v33 = vsel %vm7362_vm7, %v4215_v35, %v4216_v43  ;;  %v4218_v44 = vrot.slane %v4216_v43, 4  ;;  %v4038_v30 = vrot.slane %v4036_v29, 4 }
 0x387   : > { %3341 = vst.msk [vmem:[#allocation2 + $0x98] sm:$0xf] %vm3302_vm9, %v3253_v16  ;;  %v3606_v16 = vsel %vm7103_vm2, %v3601_v2, %v8945_v6  ;;  %v3733_v25 = vshll.u32 %v3412_v11, 16  ;;  %v4149_v35 = vld [vmem:[%s7093_s11 + $0x94] sm:$0xf] }
 0x388   : > { %v4220_v57 = vsel %vm7362_vm7, %v4218_v44, %v4219_v37  ;;  %v4039_v47 = vor.u32 %v4038_v30, %v4034_v31 }
 0x38a   : > { %4385 = vrot.lane.b32.xlu2 %v4292_v39, %s6998_s8  ;;  %v3735_v39 = vrot.slane %v3733_v25, 5  ;;  %v4040_v10 = vrot.slane %v4039_v47, 4 }
 0x38b   : > { %4409 = vrot.lane.b32.xlu1 %v4326_v19, %s6998_s8  ;;  %v3737_v19 = vshrl.u32 %v3412_v11, 16  ;;  %v4294_v11 = vrot.slane %v4149_v35, 5 }
 0x38c   : > { %4407 = vrot.lane.b32.xlu0 %v4325_v36, %s6998_s8  ;;  %v4378_v51 = vpop.permute.xlu2 %4377  ;;  %v4255_v36 = vrot.slane %v8962_v17, 5 }
 0x38d   : > { %v3358_v58 = vpop.permute.xlu1 %3357  ;;  %v3739_v41 = vrot.slane %v3737_v19, 4 }
 0x38e   : > { %3375 = vst.msk [vmem:[#allocation2 + $0xa8] sm:$0xf] %vm3302_vm9, %v3358_v58  ;;  %v3259_v42 = vpop.permute.xlu0 %3258  ;;  %v4256_v5 = vsel %vm7362_vm7, %v4254_v28, %v4255_v36 }
 0x38f   : > { %3344 = vst.msk [vmem:[#allocation2 + $0xa4] sm:$0xf] %vm3302_vm9, %v3259_v42  ;;  %v4029_v42 = vor.u32 %v4028_v61, %v8853_v26 }
 0x391   : > { %v4030_v26 = vrot.slane %v4029_v42, 4  ;;  %v3493_v42 = vshll.u32 %v3388_v27, 16 }
 0x392   : > { %4530 = vrot.lane.b32.xlu2 %v4511_v22, %s6998_s8 }
 0x393   : > { %3852 = vrot.lane.b32.xlu1 %v3486_v53, %s6997_s7  ;;  %v3740_v53 = vor.u32 %v3739_v41, %v3735_v39  ;;  %v4498_v41 = vld [vmem:[%s7342_s16 + $0x4] sm:$0xf] }
 0x394   : > { %3850 = vrot.lane.b32.xlu0 %v3476_v18, %s6997_s7  ;;  %v3843_v62 = vpop.permute.xlu2 %3842  ;;  %v3743_v18 = vshll.u32 %v8979_v38, 16  ;;  %v4513_v29 = vrot.slane %v4498_v41, 5 }
 0x395   : > { %v3893_v0 = vpop.permute.xlu1 %3892  ;;  %3969 = vst.msk [vmem:[#allocation2] sm:$0xf] %vm3968_vm13, %v3843_v62  ;;  %v3741_v2 = vrot.slane %v3740_v53, 4  ;;  %v3607_v53 = vshrl.u32 %v8925_v45, 16  ;;  %v3495_v45 = vrot.slane %v3493_v42, 5 }
 0x396   : > { %3994 = vst.msk [vmem:[#allocation2 + $0x64] sm:$0xf] %vm3968_vm13, %v3893_v0  ;;  %v3891_v34 = vpop.permute.xlu0 %3890  ;;  %v9001_v9 = vrot.slane %v3743_v18, 5  ;;  %v4137_v42 = vld [vmem:[%s7093_s11 + $0x64] sm:$0xf] }
 0x397   : > { %3993 = vst.msk [vmem:[#allocation2 + $0x60] sm:$0xf] %vm3968_vm13, %v3891_v34  ;;  %v3731_v34 = vrot.slane %v3730_v63, 4  ;;  %v9047_v63 = vld [vmem:[%s7342_s16 + $0x8] sm:$0xf] }
 0x398   : > { %4479 = vst.msk [vmem:[#allocation2 + $0x64] sm:$0xf] %vm4453_vm14, %v4378_v51  ;;  %v4253_v51 = vsel %vm7362_vm7, %v4251_v46, %v4252_v15  ;;  %v4035_v15 = vsel %vm7103_vm2, %v4030_v26, %v4034_v31  ;;  %v3746_v25 = vsel %vm7103_vm2, %v3741_v2, %v9001_v9  ;;  %v4293_v46 = vrot.slane %v4291_v20, 4 }
 0x399   : > { %v3736_v19 = vsel %vm7103_vm2, %v3731_v34, %v3735_v39  ;;  %v3400_v39 = vld [vmem:[%s7093_s11 + $0x64] sm:$0xf]  ;;  %v4516_v2 = vrot.slane %v9047_v63, 5  ;;  %v3609_v34 = vrot.slane %v3607_v53, 4 }
 0x39a   : > { %3874 = vrot.lane.b32.xlu2 %v3596_v55, %s6997_s7  ;;  %v4042_v55 = vshll.u32 %v9008_v59, 16  ;;  %v3613_v49 = vshll.u32 %v3400_v39, 16  ;;  %v4295_v18 = vsel %vm7362_vm7, %v4293_v46, %v4294_v11 }
 0x39b   : > { %4335 = vrot.lane.b32.xlu1 %v4217_v33, %s6998_s8  ;;  %v3487_v33 = vshrl.u32 %v8903_v12, 16  ;;  %v4296_v12 = vrot.slane %v4294_v11, 4  ;;  %v4512_v11 = vrot.slane %v4511_v22, 4  ;;  %v3610_v48 = vor.u32 %v3609_v34, %v8945_v6  ;;  %v4125_v6 = vld [vmem:[%s7093_s11 + $0x34] sm:$0xf] }
 0x39c   : > { %3876 = vrot.lane.b32.xlu0 %v3606_v16, %s6997_s7  ;;  %v3869_v3 = vpop.permute.xlu2 %3868  ;;  %v9014_v16 = vld [vmem:[%s7093_s11 + $0x98] sm:$0xf]  ;;  %v3615_v31 = vrot.slane %v3613_v49, 5  ;;  %v4222_v49 = vrot.slane %v4125_v6, 5  ;;  %v3347_v6 = vld [vmem:[%s7342_s16 + $0x8] sm:$0xf] }
 0x39d   : > { %v4376_v4 = vpop.permute.xlu1 %4375  ;;  %3982 = vst.msk [vmem:[#allocation2 + $0x34] sm:$0xf] %vm3968_vm13, %v3869_v3  ;;  %v4297_v28 = vrot.slane %v9014_v16, 5  ;;  %v3489_v61 = vrot.slane %v3487_v33, 4  ;;  %v9032_v3 = vrot.slane %v4042_v55, 5  ;;  %v4514_v22 = vsel %vm7362_vm7, %v4512_v11, %v4513_v29 }
 0x39e   : > { %4478 = vst.msk [vmem:[#allocation2 + $0x60] sm:$0xf] %vm4453_vm14, %v4376_v4  ;;  %v3917_v58 = vpop.permute.xlu0 %3916  ;;  %v3611_v41 = vrot.slane %v3610_v48, 4  ;;  %v9127_v11 = vld [vmem:[%s7093_s11 + $0x68] sm:$0xf] }
 0x39f   : > { %4006 = vst.msk [vmem:[#allocation2 + $0x94] sm:$0xf] %vm3968_vm13, %v3917_v58  ;;  %v4298_v54 = vsel %vm7362_vm7, %v4296_v12, %v4297_v28  ;;  %v4045_v26 = vsel %vm7103_vm2, %v4040_v10, %v9032_v3 }
 0x3a2   : > { %4337 = vrot.lane.b32.xlu2 %v4220_v57, %s6998_s8  ;;  %v3497_v57 = vshrl.u32 %v3388_v27, 16 }
 0x3a3   : > { %4361 = vrot.lane.b32.xlu1 %v4256_v5, %s6998_s8  ;;  %v3490_v5 = vor.u32 %v3489_v61, %v8921_v56 }
 0x3a4   : > { %4359 = vrot.lane.b32.xlu0 %v4253_v51, %s6998_s8  ;;  %v4352_v62 = vpop.permute.xlu2 %4351  ;;  %v3617_v51 = vshrl.u32 %v3400_v39, 16 }
 0x3a5   : > { %v4402_v43 = vpop.permute.xlu1 %4401  ;;  %v6479_v0 = vld [vmem:[#allocation2 + $0x60] sm:$0xff]  ;;  %v3491_v56 = vrot.slane %v3490_v5, 4  ;;  %v3616_v5 = vsel %vm7103_vm2, %v3611_v41, %v3615_v31 }
 0x3a6   : > { %4491 = vst.msk [vmem:[#allocation2 + $0x94] sm:$0xf] %vm4453_vm14, %v4402_v43  ;;  %v4400_v52 = vpop.permute.xlu0 %4399  ;;  %6404 = vmatmul.msk.bf16.vlgmr.msra.gmra.mxu2 %vm4747_vm15, %v6479_v0  ;;  %v3619_v35 = vrot.slane %v3617_v51, 4  ;;  %v4515_v0 = vrot.slane %v4513_v29, 4  ;;  %v9096_v51 = vld [vmem:[%s7093_s11 + $0x38] sm:$0xf] }
 0x3a7   : > { %4490 = vst.msk [vmem:[#allocation2 + $0x90] sm:$0xf] %vm4453_vm14, %v4400_v52  ;;  %v9057_v52 = vld [vmem:[%s7093_s11 + $0x68] sm:$0xf]  ;;  %v4258_v29 = vrot.slane %v4137_v42, 5 }
 0x3a8   : > { %v3623_v47 = vshll.u32 %v9057_v52, 16  ;;  %v4517_v55 = vsel %vm7362_vm7, %v4515_v0, %v4516_v2 }
 0x3a9   : > { %v4260_v48 = vrot.slane %v4258_v29, 4 }
 0x3aa   : > { %3902 = vrot.lane.b32.xlu2 %v3736_v19, %s6997_s7  ;;  %v3620_v19 = vor.u32 %v3619_v35, %v3615_v31  ;;  %v4221_v35 = vrot.slane %v4219_v37, 4 }
 0x3ab   : > { %4088 = vrot.lane.b32.xlu1 %v4035_v15, %s6997_s7  ;;  %v9064_v15 = vld [vmem:[%s7093_s11 + $0x38] sm:$0xf] }
 0x3ac   : > { %3904 = vrot.lane.b32.xlu0 %v3746_v25, %s6997_s7  ;;  %v3897_v20 = vpop.permute.xlu2 %3896  ;;  %v3496_v25 = vsel %vm7103_vm2, %v3491_v56, %v3495_v45  ;;  %v3503_v46 = vshll.u32 %v9064_v15, 16  ;;  %v3621_v61 = vrot.slane %v3620_v19, 4  ;;  %v4225_v56 = vrot.slane %v9096_v51, 5  ;;  %v9133_v19 = vld [vmem:[%s7093_s11 + $0xa0] sm:$0xf] }
 0x3ad   : > { %v3867_v4 = vpop.permute.xlu1 %3866  ;;  %3996 = vst.msk [vmem:[#allocation2 + $0x6c] sm:$0xf] %vm3968_vm13, %v3897_v20 }
 0x3ae   : > { %3981 = vst.msk [vmem:[#allocation2 + $0x30] sm:$0xf] %vm3968_vm13, %v3867_v4  ;;  %v3845_v58 = vpop.permute.xlu0 %3844  ;;  %v6485_v44 = vld [vmem:[#allocation2 + $0x90] sm:$0xff]  ;;  %v9079_v4 = vrot.slane %v3623_v47, 5  ;;  %v9084_v10 = vrot.slane %v3503_v46, 5 }
 0x3af   : > { %3970 = vst.msk [vmem:[#allocation2 + $0x4] sm:$0xf] %vm3968_vm13, %v3845_v58  ;;  %6410 = vmatmul.msk.bf16.vlgmr.msra.gmra.mxu3 %vm4747_vm15, %v6485_v44 }
 0x3b0   : > { %4466 = vst.msk [vmem:[#allocation2 + $0x30] sm:$0xf] %vm4453_vm14, %v4352_v62  ;;  %v3499_v62 = vrot.slane %v3497_v57, 4  ;;  %v3626_v20 = vsel %vm7103_vm2, %v3621_v61, %v9079_v4  ;;  %v3348_v61 = vld [vmem:[%s7342_s16 + $0xc] sm:$0xf] }
 0x3b2   : > { %4090 = vrot.lane.b32.xlu2 %v4045_v26, %s6997_s7  ;;  %v3500_v12 = vor.u32 %v3499_v62, %v3495_v45  ;;  %v4224_v26 = vrot.slane %v4222_v49, 4 }
 0x3b3   : > { %4389 = vrot.lane.b32.xlu1 %v4298_v54, %s6998_s8 }
 0x3b4   : > { %4387 = vrot.lane.b32.xlu0 %v4295_v18, %s6998_s8  ;;  %v4380_v33 = vpop.permute.xlu2 %4379  ;;  %v3501_v44 = vrot.slane %v3500_v12, 4  ;;  %v4257_v18 = vrot.slane %v4255_v36, 4  ;;  %v4046_v36 = vshrl.u32 %v9008_v59, 16  ;;  %v4226_v7 = vsel %vm7362_vm7, %v4224_v26, %v4225_v56 }
 0x3b5   : > { %v4330_v43 = vpop.permute.xlu1 %4329  ;;  %v3747_v59 = vshrl.u32 %v8979_v38, 16 }
 0x3b6   : > { %4455 = vst.msk [vmem:[#allocation2 + $0x4] sm:$0xf] %vm4453_vm14, %v4330_v43  ;;  %v4328_v30 = vpop.permute.xlu0 %4327  ;;  %v3506_v53 = vsel %vm7103_vm2, %v3501_v44, %v9084_v10  ;;  %v3414_v43 = vld [vmem:[%s7093_s11 + $0x9c] sm:$0xf]  ;;  %v4259_v0 = vsel %vm7362_vm7, %v4257_v18, %v4258_v29  ;;  %v4048_v62 = vrot.slane %v4046_v36, 4 }
 0x3b7   : > { %4454 = vst.msk [vmem:[#allocation2] sm:$0xf] %vm4453_vm14, %v4328_v30  ;;  %v3753_v37 = vshll.u32 %v3414_v43, 16  ;;  %v3757_v34 = vshrl.u32 %v3414_v43, 16  ;;  %v4223_v30 = vsel %vm7362_vm7, %v4221_v35, %v4222_v49  ;;  %v3749_v12 = vrot.slane %v3747_v59, 4 }
 0x3b8   : > { %v9157_v43 = vld [vmem:[%s7342_s16 + $0x10] sm:$0xf] }
 0x3b9   : > { %v3755_v47 = vrot.slane %v3753_v37, 5  ;;  %v3759_v38 = vrot.slane %v3757_v34, 4 }
 0x3ba   : > { %4532 = vrot.lane.b32.xlu2 %v4514_v22, %s6998_s8  ;;  %v4261_v22 = vrot.slane %v9127_v11, 5  ;;  %v4066_v11 = vshrl.u32 %v9157_v43, 16 }
 0x3bb   : > { %3854 = vrot.lane.b32.xlu1 %v3496_v25, %s6997_s7  ;;  %v4018_v25 = vld [vmem:[%s7342_s16 + $0xc] sm:$0xf] }
 0x3bc   : > { %4534 = vrot.lane.b32.xlu0 %v4517_v55, %s6998_s8  ;;  %v4406_v54 = vpop.permute.xlu2 %4405  ;;  %v4052_v41 = vshll.u32 %v4018_v25, 16  ;;  %v4056_v44 = vshrl.u32 %v4018_v25, 16 }
 0x3bd   : > { %v3895_v27 = vpop.permute.xlu1 %3894 }
 0x3be   : > { %3995 = vst.msk [vmem:[#allocation2 + $0x68] sm:$0xf] %vm3968_vm13, %v3895_v27  ;;  %v4354_v39 = vpop.permute.xlu0 %4353  ;;  %v6467_v58 = vld [vmem:[#allocation2] sm:$0xff]  ;;  %v4049_v27 = vor.u32 %v4048_v62, %v9032_v3  ;;  %v4054_v42 = vrot.slane %v4052_v41, 5  ;;  %v4151_v3 = vld [vmem:[%s7093_s11 + $0x9c] sm:$0xf] }
 0x3bf   : > { %4467 = vst.msk [vmem:[#allocation2 + $0x34] sm:$0xf] %vm4453_vm14, %v4354_v39  ;;  %6392 = vmatmul.msk.bf16.vlgmr.msra.gmra.mxu0 %vm4747_vm15, %v6467_v58  ;;  %v3760_v39 = vor.u32 %v3759_v38, %v3755_v47  ;;  %v3763_v58 = vshll.u32 %v9133_v19, 16  ;;  %v4299_v38 = vrot.slane %v4297_v28, 4 }
 0x3c0   : > { %4480 = vst.msk [vmem:[#allocation2 + $0x68] sm:$0xf] %vm4453_vm14, %v4380_v33 }
 0x3c1   : > { %v3761_v18 = vrot.slane %v3760_v39, 4  ;;  %v9150_v29 = vrot.slane %v3763_v58, 5 }
 0x3c2   : > { %3856 = vrot.lane.b32.xlu2 %v3506_v53, %s6997_s7 }
 0x3c3   : > { %3880 = vrot.lane.b32.xlu1 %v3626_v20, %s6997_s7  ;;  %v3750_v20 = vor.u32 %v3749_v12, %v9001_v9 }
 0x3c4   : > { %3878 = vrot.lane.b32.xlu0 %v3616_v5, %s6997_s7  ;;  %v3871_v17 = vpop.permute.xlu2 %3870  ;;  %v4050_v5 = vrot.slane %v4049_v27, 4 }
 0x3c5   : > { %v3921_v57 = vpop.permute.xlu1 %3920  ;;  %3983 = vst.msk [vmem:[#allocation2 + $0x38] sm:$0xf] %vm3968_vm13, %v3871_v17  ;;  %v3751_v26 = vrot.slane %v3750_v20, 4  ;;  %v3507_v17 = vshrl.u32 %v9064_v15, 16  ;;  %v4062_v15 = vshll.u32 %v9157_v43, 16 }
 0x3c6   : > { %4008 = vst.msk [vmem:[#allocation2 + $0x9c] sm:$0xf] %vm3968_vm13, %v3921_v57  ;;  %v3919_v45 = vpop.permute.xlu0 %3918  ;;  %v6473_v31 = vld [vmem:[#allocation2 + $0x30] sm:$0xff]  ;;  %v4055_v36 = vsel %vm7103_vm2, %v4050_v5, %v4054_v42 }
 0x3c7   : > { %4007 = vst.msk [vmem:[#allocation2 + $0x98] sm:$0xf] %vm3968_vm13, %v3919_v45  ;;  %6398 = vmatmul.msk.bf16.vlgmr.msra.gmra.mxu1 %vm4747_vm15, %v6473_v31  ;;  %v4058_v45 = vrot.slane %v4056_v44, 4  ;;  %v4300_v31 = vrot.slane %v4151_v3, 5  ;;  %v3756_v37 = vsel %vm7103_vm2, %v3751_v26, %v3755_v47  ;;  %v3509_v25 = vrot.slane %v3507_v17, 4 }
 0x3c8   : > { %4493 = vst.msk [vmem:[#allocation2 + $0x9c] sm:$0xf] %vm4453_vm14, %v4406_v54  ;;  %v4262_v54 = vsel %vm7362_vm7, %v4260_v48, %v4261_v22  ;;  %v3402_v48 = vld [vmem:[%s7093_s11 + $0x6c] sm:$0xf]  ;;  %v9190_v41 = vrot.slane %v4062_v15, 5 }
 0x3c9   : > { %v4059_v34 = vor.u32 %v4058_v45, %v4054_v42  ;;  %v3633_v58 = vshll.u32 %v3402_v48, 16  ;;  %v3637_v44 = vshrl.u32 %v3402_v48, 16  ;;  %v4301_v20 = vsel %vm7362_vm7, %v4299_v38, %v4300_v31  ;;  %v9203_v3 = vld [vmem:[%s7342_s16 + $0x10] sm:$0xf] }
 0x3ca   : > { %4339 = vrot.lane.b32.xlu2 %v4223_v30, %s6998_s8  ;;  %v4302_v30 = vrot.slane %v4300_v31, 4  ;;  %v4522_v26 = vrot.slane %v9203_v3, 5  ;;  %v9214_v45 = vld [vmem:[%s7093_s11 + $0x70] sm:$0xf] }
 0x3cb   : > { %4363 = vrot.lane.b32.xlu1 %v4259_v0, %s6998_s8  ;;  %v9165_v0 = vld [vmem:[%s7093_s11 + $0xa0] sm:$0xf]  ;;  %v4060_v27 = vrot.slane %v4059_v34, 4  ;;  %v3643_v59 = vshll.u32 %v9214_v45, 16  ;;  %v9290_v43 = vld [vmem:[%s7093_s11 + $0x70] sm:$0xf] }
 0x3cc   : > { %4341 = vrot.lane.b32.xlu0 %v4226_v7, %s6998_s8  ;;  %v4332_v46 = vpop.permute.xlu2 %4331  ;;  %v3766_v7 = vsel %vm7103_vm2, %v3761_v18, %v9150_v29  ;;  %v4303_v62 = vrot.slane %v9165_v0, 5  ;;  %v3639_v18 = vrot.slane %v3637_v44, 4 }
 0x3cd   : > { %v4404_v33 = vpop.permute.xlu1 %4403 }
 0x3ce   : > { %4492 = vst.msk [vmem:[#allocation2 + $0x98] sm:$0xf] %vm4453_vm14, %v4404_v33  ;;  %v4382_v55 = vpop.permute.xlu0 %4381  ;;  %v4012_v33 = vld [vmem:[#allocation2 + $0xa4] sm:$0xf]  ;;  %v4304_v16 = vsel %vm7362_vm7, %v4302_v30, %v4303_v62 }
 0x3cf   : > { %4481 = vst.msk [vmem:[#allocation2 + $0x6c] sm:$0xf] %vm4453_vm14, %v4382_v55  ;;  %v3390_v55 = vld [vmem:[%s7093_s11 + $0x3c] sm:$0xf] }
 0x3d0   : > { %v3513_v39 = vshll.u32 %v3390_v55, 16  ;;  %v3517_v5 = vshrl.u32 %v3390_v55, 16  ;;  %v9242_v55 = vrot.slane %v3643_v59, 5 }
 0x3d2   : > { %4365 = vrot.lane.b32.xlu2 %v4262_v54, %s6998_s8  ;;  %v3627_v54 = vshrl.u32 %v9057_v52, 16 }
 0x3d3   : > { %3363 = vrot.lane.b32.xlu1 %v3348_v61, %s6996_s29  ;;  %v4500_v61 = vld [vmem:[%s7342_s16 + $0xc] sm:$0xf] }
 0x3d4   : > { %3361 = vrot.lane.b32.xlu0 %v3347_v6, %s6996_s29  ;;  %v4358_v35 = vpop.permute.xlu2 %4357  ;;  %v3510_v6 = vor.u32 %v3509_v25, %v9084_v10  ;;  %v4519_v42 = vrot.slane %v4500_v61, 5  ;;  %v4065_v10 = vsel %vm7103_vm2, %v4060_v27, %v9190_v41  ;;  %v3629_v31 = vrot.slane %v3627_v54, 4 }
 0x3d5   : > { %v3849_v49 = vpop.permute.xlu1 %3848  ;;  %v6486_v53 = vld [vmem:[#allocation2 + $0x98] sm:$0xff] }
 0x3d6   : > { %3972 = vst.msk [vmem:[#allocation2 + $0xc] sm:$0xf] %vm3968_vm13, %v3849_v49  ;;  %v3847_v57 = vpop.permute.xlu0 %3846  ;;  %v6480_v9 = vld [vmem:[#allocation2 + $0x68] sm:$0xff]  ;;  %6411 = vmatmul.msk.bf16.gmra.mxu3 %vm4747_vm15, %v6486_v53  ;;  %v3511_v52 = vrot.slane %v3510_v6, 4  ;;  %v3515_v49 = vrot.slane %v3513_v39, 5  ;;  %v3635_v53 = vrot.slane %v3633_v58, 5 }
 0x3d7   : > { %3971 = vst.msk [vmem:[#allocation2 + $0x8] sm:$0xf] %vm3968_vm13, %v3847_v57  ;;  %6405 = vmatmul.msk.bf16.gmra.mxu2 %vm4747_vm15, %v6480_v9  ;;  %v4521_v9 = vrot.slane %v4519_v42, 4 }
 0x3d8   : > { %4456 = vst.msk [vmem:[#allocation2 + $0x8] sm:$0xf] %vm4453_vm14, %v4332_v46  ;;  %v3516_v34 = vsel %vm7103_vm2, %v3511_v52, %v3515_v49  ;;  %v3640_v15 = vor.u32 %v3639_v18, %v3635_v53  ;;  %v4263_v52 = vrot.slane %v4261_v22, 4 }
 0x3d9   : > { %v4523_v63 = vsel %vm7362_vm7, %v4521_v9, %v4522_v26 }
 0x3da   : > { %3906 = vrot.lane.b32.xlu2 %v3756_v37, %s6997_s7  ;;  %v9221_v37 = vld [vmem:[%s7093_s11 + $0x40] sm:$0xf]  ;;  %v3641_v38 = vrot.slane %v3640_v15, 4  ;;  %v4068_v15 = vrot.slane %v4066_v11, 4 }
 0x3db   : > { %4092 = vrot.lane.b32.xlu1 %v4055_v36, %s6997_s7  ;;  %v4518_v36 = vrot.slane %v4516_v2, 4  ;;  %v3630_v2 = vor.u32 %v3629_v31, %v9079_v4  ;;  %v3523_v25 = vshll.u32 %v9221_v37, 16  ;;  %v4227_v31 = vrot.slane %v4225_v56, 4 }
 0x3dc   : > { %3908 = vrot.lane.b32.xlu0 %v3766_v7, %s6997_s7  ;;  %v3901_v28 = vpop.permute.xlu2 %3900  ;;  %v3646_v44 = vsel %vm7103_vm2, %v3641_v38, %v9242_v55  ;;  %v3767_v56 = vshrl.u32 %v9133_v19, 16 }
 0x3dd   : > { %v3925_v47 = vpop.permute.xlu1 %3924  ;;  %3998 = vst.msk [vmem:[#allocation2 + $0x74] sm:$0xf] %vm3968_vm13, %v3901_v28  ;;  %v9247_v6 = vrot.slane %v3523_v25, 5 }
 0x3de   : > { %v4013_v12 = vsel %vm9176_vm1, %v3925_v47, %v4012_v33  ;;  %v3873_v46 = vpop.permute.xlu0 %3872  ;;  %v4520_v33 = vsel %vm7362_vm7, %v4518_v36, %v4519_v42  ;;  %v9261_v42 = vld [vmem:[%s7093_s11 + $0x40] sm:$0xf]  ;;  %v4267_v47 = vrot.slane %v9290_v43, 5  ;;  %v3769_v38 = vrot.slane %v3767_v56, 4  ;;  %v3404_v56 = vld [vmem:[%s7093_s11 + $0x74] sm:$0xf] }
 0x3df   : > { %4014 = vst [vmem:[#allocation2 + $0xa4] sm:$0xf] %v4013_v12  ;;  %v3631_v12 = vrot.slane %v3630_v2, 4  ;;  %v4020_v2 = vld [vmem:[%s7342_s16 + $0x14] sm:$0xf] }
 0x3e0   : > { %3984 = vst.msk [vmem:[#allocation2 + $0x3c] sm:$0xf] %vm3968_vm13, %v3873_v46  ;;  %v4127_v46 = vld [vmem:[%s7093_s11 + $0x3c] sm:$0xf] }
 0x3e1   : > { %4469 = vst.msk [vmem:[#allocation2 + $0x3c] sm:$0xf] %vm4453_vm14, %v4358_v35  ;;  %v3519_v35 = vrot.slane %v3517_v5, 4  ;;  %v3636_v54 = vsel %vm7103_vm2, %v3631_v12, %v3635_v53  ;;  %v4228_v5 = vrot.slane %v4127_v46, 5  ;;  %v4069_v12 = vor.u32 %v4068_v15, %v9190_v41  ;;  %v4502_v15 = vld [vmem:[%s7342_s16 + $0x14] sm:$0xf] }
 0x3e2   : > { %4094 = vrot.lane.b32.xlu2 %v4065_v10, %s6997_s7  ;;  %v4072_v46 = vshll.u32 %v4020_v2, 16 }
 0x3e3   : > { %4393 = vrot.lane.b32.xlu1 %v4304_v16, %s6998_s8  ;;  %v3520_v30 = vor.u32 %v3519_v35, %v3515_v49  ;;  %v4230_v18 = vrot.slane %v4228_v5, 4  ;;  %v3416_v35 = vld [vmem:[%s7093_s11 + $0xa4] sm:$0xf] }
 0x3e4   : > { %4391 = vrot.lane.b32.xlu0 %v4301_v20, %s6998_s8  ;;  %v4386_v7 = vpop.permute.xlu2 %4385  ;;  %v4139_v20 = vld [vmem:[%s7093_s11 + $0x6c] sm:$0xf]  ;;  %v3777_v51 = vshrl.u32 %v3416_v35, 16 }
 0x3e5   : > { %v4356_v57 = vpop.permute.xlu1 %4355  ;;  %4483 = vst.msk [vmem:[#allocation2 + $0x74] sm:$0xf] %vm4453_vm14, %v4386_v7  ;;  %v3521_v61 = vrot.slane %v3520_v30, 4  ;;  %v4264_v49 = vrot.slane %v4139_v20, 5  ;;  %v3773_v7 = vshll.u32 %v3416_v35, 16 }
 0x3e6   : > { %4468 = vst.msk [vmem:[#allocation2 + $0x38] sm:$0xf] %vm4453_vm14, %v4356_v57  ;;  %v4334_v17 = vpop.permute.xlu0 %4333  ;;  %v4109_v16 = vld [vmem:[#allocation2 + $0xa4] sm:$0x8]  ;;  %v4231_v57 = vrot.slane %v9261_v42, 5  ;;  %v3779_v19 = vrot.slane %v3777_v51, 4 }
 0x3e7   : > { %4457 = vst.msk [vmem:[#allocation2 + $0xc] sm:$0xf] %vm4453_vm14, %v4334_v17  ;;  %v3526_v10 = vsel %vm7103_vm2, %v3521_v61, %v9247_v6  ;;  %v4265_v22 = vsel %vm7362_vm7, %v4263_v52, %v4264_v49  ;;  %v3775_v30 = vrot.slane %v3773_v7, 5  ;;  %v4266_v25 = vrot.slane %v4264_v49, 4  ;;  %v3349_v61 = vld [vmem:[%s7342_s16 + $0x10] sm:$0xf] }
 0x3e8   : > { %v4232_v36 = vsel %vm7362_vm7, %v4230_v18, %v4231_v57  ;;  %v4021_v18 = vld [vmem:[%s7342_s16 + $0x18] sm:$0x1]  ;;  %v4305_v51 = vrot.slane %v4303_v62, 4  ;;  %v9402_v42 = vld [vmem:[%s10555_s4] ss:$0 sm:$0xff] }
 0x3e9   : > { %v4082_v11 = vshll.u32 %v4021_v18, 16 }
 0x3ea   : > { %4536 = vrot.lane.b32.xlu2 %v4520_v33, %s6998_s8 }
 0x3eb   : > { %3858 = vrot.lane.b32.xlu1 %v3516_v34, %s6997_s7  ;;  %v4229_v34 = vsel %vm7362_vm7, %v4227_v31, %v4228_v5 }
 0x3ec   : > { %4538 = vrot.lane.b32.xlu0 %v4523_v63, %s6998_s8  ;;  %v4531_v58 = vpop.permute.xlu2 %4530 }
 0x3ed   : > { %v3899_v48 = vpop.permute.xlu1 %3898  ;;  %v6474_v4 = vld [vmem:[#allocation2 + $0x38] sm:$0xff] }
 0x3ee   : > { %3997 = vst.msk [vmem:[#allocation2 + $0x70] sm:$0xf] %vm3968_vm13, %v3899_v48  ;;  %v4087_v27 = vpop.permute.xlu0 %4086  ;;  %v6468_v28 = vld [vmem:[#allocation2 + $0x8] sm:$0xff]  ;;  %6399 = vmatmul.msk.bf16.gmra.mxu1 %vm4747_vm15, %v6474_v4  ;;  %v3350_v4 = vld [vmem:[%s7342_s16 + $0x14] sm:$0xf] }
 0x3ef   : > { %v4110_v39 = vsel %vm9238_vm3, %v4087_v27, %v4109_v16  ;;  %6393 = vmatmul.msk.bf16.gmra.mxu0 %vm4747_vm15, %v6468_v28  ;;  %v3780_v27 = vor.u32 %v3779_v19, %v3775_v30  ;;  %v4076_v16 = vshrl.u32 %v4020_v2, 16  ;;  %v4268_v28 = vsel %vm7362_vm7, %v4266_v25, %v4267_v47 }
 0x3f0   : > { %4111 = vst [vmem:[#allocation2 + $0xa4] sm:$0x8] %v4110_v39  ;;  %v3770_v39 = vor.u32 %v3769_v38, %v9150_v29  ;;  %v3653_v19 = vshll.u32 %v3404_v56, 16  ;;  %v3647_v25 = vshrl.u32 %v9214_v45, 16 }
 0x3f1   : > { %4552 = vst.msk [vmem:[#allocation2 + $0xa4] sm:$0x8] %vm4551_vm4, %v4531_v58  ;;  %v4070_v58 = vrot.slane %v4069_v12, 4  ;;  %v3781_v20 = vrot.slane %v3780_v27, 4  ;;  %v4078_v49 = vrot.slane %v4076_v16, 4 }
 0x3f2   : > { %3860 = vrot.lane.b32.xlu2 %v3526_v10, %s6997_s7  ;;  %v3771_v52 = vrot.slane %v3770_v39, 4  ;;  %v4503_v12 = vld [vmem:[%s7342_s16 + $0x18] sm:$0x1]  ;;  %v3649_v39 = vrot.slane %v3647_v25, 4  ;;  %s6648_s16 = smul.u32 192, %s6981_s21 }
 0x3f3   : > { %3884 = vrot.lane.b32.xlu1 %v3646_v44, %s6997_s7  ;;  %v4074_v44 = vrot.slane %v4072_v46, 5  ;;  %v3786_v35 = vsel %vm7103_vm2, %v3781_v20, %v8557_v21  ;;  %v3392_v21 = vld [vmem:[%s7093_s11 + $0x44] sm:$0xf]  ;;  %v3655_v46 = vrot.slane %v3653_v19, 5 }
 0x3f4   : > { %3882 = vrot.lane.b32.xlu0 %v3636_v54, %s6997_s7  ;;  %v3875_v17 = vpop.permute.xlu2 %3874  ;;  %v4153_v54 = vld [vmem:[%s7093_s11 + $0xa4] sm:$0xf]  ;;  %s6128_s21 = scalar_lea.hbm %s10556_s5, %s6648_s16 }
 0x3f5   : > { %v4384_v53 = vpop.permute.xlu1 %4383  ;;  %3985 = vst.msk [vmem:[#allocation2 + $0x40] sm:$0xf] %vm3968_vm13, %v3875_v17  ;;  %v4306_v29 = vrot.slane %v4153_v54, 5  ;;  %v4075_v31 = vsel %vm7103_vm2, %v4070_v58, %v4074_v44  ;;  %v3776_v17 = vsel %vm7103_vm2, %v3771_v52, %v3775_v30  ;;  %v3533_v30 = vshll.u32 %v3392_v21, 16 }
 0x3f6   : > { %4482 = vst.msk [vmem:[#allocation2 + $0x70] sm:$0xf] %vm4453_vm14, %v4384_v53  ;;  %v3923_v9 = vpop.permute.xlu0 %3922  ;;  %v3650_v52 = vor.u32 %v3649_v39, %v9242_v55 }
 0x3f7   : > { %4009 = vst.msk [vmem:[#allocation2 + $0xa0] sm:$0xf] %vm3968_vm13, %v3923_v9  ;;  %v3527_v9 = vshrl.u32 %v9221_v37, 16  ;;  %v4079_v37 = vor.u32 %v4078_v49, %v4074_v44  ;;  %v4307_v38 = vsel %vm7362_vm7, %v4305_v51, %v4306_v29  ;;  %v4524_v44 = vrot.slane %v4522_v26, 4 }
 0x3fa   : > { %4343 = vrot.lane.b32.xlu2 %v4229_v34, %s6998_s8 }
 0x3fb   : > { %4367 = vrot.lane.b32.xlu1 %v4265_v22, %s6998_s8  ;;  %v4308_v22 = vrot.slane %v4306_v29, 4 }
 0x3fc   : > { %4345 = vrot.lane.b32.xlu0 %v4232_v36, %s6998_s8  ;;  %v4338_v48 = vpop.permute.xlu2 %4337  ;;  %v3529_v36 = vrot.slane %v3527_v9, 4 }
 0x3fd   : > { %v4410_v59 = vpop.permute.xlu1 %4409  ;;  %v6481_v63 = vld [vmem:[#allocation2 + $0x70] sm:$0xff]  ;;  %v4310_v2 = vsel %vm7362_vm7, %v4308_v22, %v4309_v50 }
 0x3fe   : > { %4496 = vst.msk [vmem:[#allocation2 + $0xa4] sm:$0x7] %vm4495_vm11, %v4410_v59  ;;  %v4408_v33 = vpop.permute.xlu0 %4407  ;;  %6406 = vmatmul.msk.bf16.gmra.mxu2 %vm4747_vm15, %v6481_v63  ;;  %v4080_v59 = vrot.slane %v4079_v37, 4  ;;  %v4084_v63 = vrot.slane %v4082_v11, 5  ;;  %v3530_v62 = vor.u32 %v3529_v36, %v9247_v6  ;;  %v3535_v6 = vrot.slane %v3533_v30, 5 }
 0x3ff   : > { %4494 = vst.msk [vmem:[#allocation2 + $0xa0] sm:$0xf] %vm4453_vm14, %v4408_v33  ;;  %v3657_v33 = vshrl.u32 %v3404_v56, 16  ;;  %v4141_v11 = vld [vmem:[%s7093_s11 + $0x74] sm:$0xf] }
 0x400   : > { %v4085_v40 = vsel %vm7103_vm2, %v4080_v59, %v4084_v63  ;;  %v3531_v50 = vrot.slane %v3530_v62, 4 }
 0x402   : > { %4369 = vrot.lane.b32.xlu2 %v4268_v28, %s6998_s8  ;;  %v4528_v28 = vrot.slane %v4503_v12, 5  ;;  %v3536_v20 = vsel %vm7103_vm2, %v3531_v50, %v3535_v6 }
 0x403   : > { %3367 = vrot.lane.b32.xlu1 %v3350_v4, %s6996_s29  ;;  %v3537_v4 = vshrl.u32 %v3392_v21, 16 }
 0x404   : > { %3365 = vrot.lane.b32.xlu0 %v3349_v61, %s6996_s29  ;;  %v3903_v53 = vpop.permute.xlu2 %3902  ;;  %v3659_v61 = vrot.slane %v3657_v33, 4  ;;  %s9510_s29 = smul.u32 192, %s309_s27 }
 0x405   : > { %v3853_v41 = vpop.permute.xlu1 %3852  ;;  %3999 = vst.msk [vmem:[#allocation2 + $0x78] sm:$0xf] %vm3968_vm13, %v3903_v53  ;;  %v3539_v54 = vrot.slane %v3537_v4, 4  ;;  %v3651_v53 = vrot.slane %v3650_v52, 4 }
 0x406   : > { %3974 = vst.msk [vmem:[#allocation2 + $0x14] sm:$0xf] %vm3968_vm13, %v3853_v41  ;;  %v3851_v5 = vpop.permute.xlu0 %3850  ;;  %v6487_v10 = vld [vmem:[#allocation2 + $0xa0] sm:$0xff] }
 0x407   : > { %3973 = vst.msk [vmem:[#allocation2 + $0x10] sm:$0xf] %vm3968_vm13, %v3851_v5  ;;  %6412 = vmatmul.msk.bf16.gmra.mxu3 %vm4747_vm15, %v6487_v10  ;;  %v3660_v5 = vor.u32 %v3659_v61, %v3655_v46  ;;  %v3540_v26 = vor.u32 %v3539_v54, %v3535_v6  ;;  %v3656_v37 = vsel %vm7103_vm2, %v3651_v53, %v3655_v46 }
 0x408   : > { %4459 = vst.msk [vmem:[#allocation2 + $0x14] sm:$0xf] %vm4453_vm14, %v4338_v48  ;;  %v4525_v48 = vrot.slane %v4502_v15, 5 }
 0x409   : > { %v3661_v49 = vrot.slane %v3660_v5, 4  ;;  %v3541_v55 = vrot.slane %v3540_v26, 4 }
 0x40a   : > { %3910 = vrot.lane.b32.xlu2 %v3776_v17, %s6997_s7  ;;  %v4527_v45 = vrot.slane %v4525_v48, 4  ;;  %v4526_v3 = vsel %vm7362_vm7, %v4524_v44, %v4525_v48 }
 0x40b   : > { %4096 = vrot.lane.b32.xlu1 %v4075_v31, %s6997_s7  ;;  %v4129_v31 = vld [vmem:[%s7093_s11 + $0x44] sm:$0xf]  ;;  %v3666_v17 = vsel %vm7103_vm2, %v3661_v49, %v8532_v60  ;;  %v3546_v36 = vsel %vm7103_vm2, %v3541_v55, %v8609_v1  ;;  %v4269_v60 = vrot.slane %v4267_v47, 4 }
 0x40c   : > { %3912 = vrot.lane.b32.xlu0 %v3786_v35, %s6997_s7  ;;  %v4091_v0 = vpop.permute.xlu2 %4090  ;;  %v4529_v10 = vsel %vm7362_vm7, %v4527_v45, %v4528_v28  ;;  %v4234_v22 = vrot.slane %v4129_v31, 5 }
 0x40d   : > { %v4336_v7 = vpop.permute.xlu1 %4335  ;;  %4113 = vst.msk [vmem:[#allocation2 + $0xac] sm:$0xf] %vm3968_vm13, %v4091_v0 }
 0x40e   : > { %4458 = vst.msk [vmem:[#allocation2 + $0x10] sm:$0xf] %vm4453_vm14, %v4336_v7  ;;  %v3877_v34 = vpop.permute.xlu0 %3876  ;;  %v4270_v7 = vrot.slane %v4141_v11, 5  ;;  %v4236_v21 = vrot.slane %v4234_v22, 4 }
 0x40f   : > { %3986 = vst.msk [vmem:[#allocation2 + $0x44] sm:$0xf] %vm3968_vm13, %v3877_v34  ;;  %v4233_v34 = vrot.slane %v4231_v57, 4 }
 0x410   : > { %v4271_v43 = vsel %vm7362_vm7, %v4269_v60, %v4270_v7  ;;  %v4238_v47 = vsel %vm7362_vm7, %v4236_v21, %v4237_v13  ;;  %v4272_v0 = vrot.slane %v4270_v7, 4 }
 0x411   : > { %v4235_v15 = vsel %vm7362_vm7, %v4233_v34, %v4234_v22 }
 0x412   : > { %4098 = vrot.lane.b32.xlu2 %v4085_v40, %s6997_s7  ;;  %v4274_v33 = vsel %vm7362_vm7, %v4272_v0, %v4273_v23 }
 0x413   : > { %4397 = vrot.lane.b32.xlu1 %v4310_v2, %s6998_s8 }
 0x414   : > { %4395 = vrot.lane.b32.xlu0 %v4307_v38, %s6998_s8  ;;  %v4533_v41 = vpop.permute.xlu2 %4532 }
 0x415   : > { %v4362_v27 = vpop.permute.xlu1 %4361  ;;  %v6469_v16 = vld [vmem:[#allocation2 + $0x10] sm:$0xff] }
 0x416   : > { %4471 = vst.msk [vmem:[#allocation2 + $0x44] sm:$0xf] %vm4453_vm14, %v4362_v27  ;;  %v4360_v58 = vpop.permute.xlu0 %4359  ;;  %6394 = vmatmul.msk.bf16.gmra.mxu0 %vm4747_vm15, %v6469_v16 }
 0x417   : > { %4470 = vst.msk [vmem:[#allocation2 + $0x40] sm:$0xf] %vm4453_vm14, %v4360_v58 }
 0x41a   : > { %4540 = vrot.lane.b32.xlu2 %v4526_v3, %s6998_s8 }
 0x41b   : > { %3862 = vrot.lane.b32.xlu1 %v3536_v20, %s6997_s7 }
 0x41c   : > { %4542 = vrot.lane.b32.xlu0 %v4529_v10, %s6998_s8  ;;  %v3857_v35 = vpop.permute.xlu2 %3856 }
 0x41d   : > { %v4089_v29 = vpop.permute.xlu1 %4088  ;;  %3976 = vst.msk [vmem:[#allocation2 + $0x1c] sm:$0xf] %vm3968_vm13, %v3857_v35 }
 0x41e   : > { %4112 = vst.msk [vmem:[#allocation2 + $0xa8] sm:$0xf] %vm3968_vm13, %v4089_v29  ;;  %v3905_v18 = vpop.permute.xlu0 %3904  ;;  %v6475_v9 = vld [vmem:[#allocation2 + $0x40] sm:$0xff] }
 0x41f   : > { %4000 = vst.msk [vmem:[#allocation2 + $0x7c] sm:$0xf] %vm3968_vm13, %v3905_v18  ;;  %6400 = vmatmul.msk.bf16.gmra.mxu1 %vm4747_vm15, %v6475_v9 }
 0x420   : > { %4553 = vst.msk [vmem:[#allocation2 + $0xa8] sm:$0xf] %vm4453_vm14, %v4533_v41 }
 0x422   : > { %3864 = vrot.lane.b32.xlu2 %v3546_v36, %s6997_s7 }
 0x423   : > { %3888 = vrot.lane.b32.xlu1 %v3666_v17, %s6997_s7 }
 0x424   : > { %3886 = vrot.lane.b32.xlu0 %v3656_v37, %s6997_s7  ;;  %v4340_v1 = vpop.permute.xlu2 %4339  ;;  %s9545_s7 = scalar_lea.vmem [#allocation3], %s9510_s29 }
 0x425   : > { %v4390_v51 = vpop.permute.xlu1 %4389  ;;  %s6129_s29 = sshll.u32 %s9545_s7, 4  ;;  %s6130_s29 = int_to_ptr.vmem [resolvable:$true] %s6129_s29 }
 0x426   : > { %4485 = vst.msk [vmem:[#allocation2 + $0x7c] sm:$0xf] %vm4453_vm14, %v4390_v51  ;;  %v4388_v56 = vpop.permute.xlu0 %4387 }
 0x427   : > { %4484 = vst.msk [vmem:[#allocation2 + $0x78] sm:$0xf] %vm4453_vm14, %v4388_v56 }
 0x429   : > { %v4893_v57 = vpop.f32.mrf.mxu2 }
 0x42a   : > { %v4981_v59 = vmul.f32 %v9391_v24, %v4893_v57  ;;  %4347 = vrot.lane.b32.xlu2 %v4235_v15, %s6998_s8 }
 0x42b   : > { %4371 = vrot.lane.b32.xlu1 %v4271_v43, %s6998_s8 }
 0x42c   : > { %4349 = vrot.lane.b32.xlu0 %v4238_v47, %s6998_s8  ;;  %v9410_v8 = vadd.f32 %v9402_v42, %v4981_v59  ;;  %v4366_v30 = vpop.permute.xlu2 %4365 }
 0x42d   : > { %v3855_v63 = vpop.permute.xlu1 %3854 }
 0x42e   : > { %3975 = vst.msk [vmem:[#allocation2 + $0x18] sm:$0xf] %vm3968_vm13, %v3855_v63  ;;  %v4535_v13 = vpop.permute.xlu0 %4534  ;;  %v6482_v2 = vld [vmem:[#allocation2 + $0x78] sm:$0xff]  ;;  %v6440_v62 = vmul.f32 -1.442695, %v9410_v8 }
 0x42f   : > { %4554 = vst.msk [vmem:[#allocation2 + $0xac] sm:$0xf] %vm4453_vm14, %v4535_v13  ;;  %6407 = vmatmul.msk.bf16.gmra.mxu2 %vm4747_vm15, %v6482_v2 }
 0x430   : > { %4460 = vst.msk [vmem:[#allocation2 + $0x18] sm:$0xf] %vm4453_vm14, %v4340_v1  ;;  %6715 = vpow2.f32 %v6440_v62 }
 0x431   : > { %v4895_v19 = vpop.f32.mrf.mxu2 }
 0x432   : > { %v4982_v25 = vmul.f32 %v9391_v24, %v4895_v19  ;;  %v4923_v38 = vpop.f32.mrf.mxu3  ;;  %4373 = vrot.lane.b32.xlu2 %v4274_v33, %s6998_s8  ;;  %s6131_s8 = sshll.u32 %s6128_s21, 4  ;;  %s6132_s8 = int_to_ptr.hbm [resolvable:$true] %s6131_s8 }
 0x433   : > { %v4993_v48 = vmul.f32 %v9391_v24, %v4923_v38  ;;  %s6925_s10 = sshra.s32 %s6132_s8, 4  ;;  %s6926_s10 = int_to_ptr.hbm [resolvable:$true] %s6925_s10 }
 0x434   : > { %v9425_v4 = vadd.f32 %v9402_v42, %v4982_v25  ;;  %v3907_v6 = vpop.permute.xlu2 %3906  ;;  %s6927_s13 = scalar_lea.hbm %s6926_s10, 192  ;;  %p6932_p1 = scmp.lt.s32.totalorder %s6926_s10, %s10556_s5 }
 0x435   : > { %v3881_v12 = vpop.permute.xlu1 %3880  ;;  %v9429_v40 = vadd.f32 %v9402_v42, %v4993_v48  ;;  %4001 = vst.msk [vmem:[#allocation2 + $0x80] sm:$0xf] %vm3968_vm13, %v3907_v6  ;;  %p6928_p12 = scmp.ne.s32.totalorder %s6926_s10, %s6927_s13  ;;  %p6933_p2 = scmp.lt.s32.totalorder %s6931_s17, %s6927_s13 }
 0x436   : > { %3988 = vst.msk [vmem:[#allocation2 + $0x4c] sm:$0xf] %vm3968_vm13, %v3881_v12  ;;  %v3879_v14 = vpop.permute.xlu0 %3878  ;;  %v6488_v50 = vld [vmem:[#allocation2 + $0xa8] sm:$0xff]  ;;  %v6716_v32 = vpop.eup %6715  ;;  %v6441_v23 = vmul.f32 -1.442695, %v9425_v4 }
 0x437   : > { %3987 = vst.msk [vmem:[#allocation2 + $0x48] sm:$0xf] %vm3968_vm13, %v3879_v14  ;;  %v9434_v46 = vadd.f32 1.0, %v6716_v32  ;;  %v6452_v61 = vmul.f32 -1.442695, %v9429_v40  ;;  %6413 = vmatmul.msk.bf16.gmra.mxu3 %vm4747_vm15, %v6488_v50  ;;  %p6929_p13 = pnand %p6928_p12, %p7070_p4  ;;  %p6934_p3 = por %p6933_p2, %p6932_p1 }
 0x438   : > { %4473 = vst.msk [vmem:[#allocation2 + $0x4c] sm:$0xf] %vm4453_vm14, %v4366_v30  ;;  %6717 = vpow2.f32 %v6441_v23 }
 0x439   : > { %6719 = vrcp.f32 %v9434_v46  ;;  %vm5614_vm7 = vweird.f32 %v9434_v46  ;;  %v5620_v1 = vand.u32 2147483648, %v9434_v46  ;;  %v5618_v59 = vand.u32 2147483647, %v9434_v46  ;;  %p6930_p0 = pneg %p6929_p13 }
 0x43a   : > { %6721 = vpow2.f32 %v6452_v61  ;;  %v4925_v27 = vpop.f32.mrf.mxu3 }
 0x43b   : > { %v4994_v16 = vmul.f32 %v9391_v24, %v4925_v27  ;;  %v5621_v48 = vor.u32 1.1754944e-38, %v5620_v1  ;;  %vm5619_vm8 = vcmp.eq.f32.partialorder %v5618_v59, 8.507059e+37  ;;  %p6935_p5 = pnand %p6934_p3, %p6930_p0 }
 0x43c   : > { %v4833_v28 = vpop.f32.mrf.mxu0  ;;  %v4095_v41 = vpop.permute.xlu2 %4094 }
 0x43d   : > { %v4364_v45 = vpop.permute.xlu1 %4363  ;;  %v9443_v39 = vadd.f32 %v9402_v42, %v4994_v16  ;;  %v4957_v44 = vmul.f32 %v9391_v24, %v4833_v28 }
 0x43e   : > { %4472 = vst.msk [vmem:[#allocation2 + $0x48] sm:$0xf] %vm4453_vm14, %v4364_v45  ;;  %v4342_v58 = vpop.permute.xlu0 %4341  ;;  %v6718_v54 = vpop.eup %6717 }
 0x43f   : > { %4461 = vst.msk [vmem:[#allocation2 + $0x1c] sm:$0xf] %vm4453_vm14, %v4342_v58  ;;  %v9448_v20 = vpop.eup %6719  ;;  %v9450_v5 = vadd.f32 1.0, %v6718_v54  ;;  %v6453_v10 = vmul.f32 -1.442695, %v9443_v39  ;;  %v9454_v52 = vadd.f32 %v9402_v42, %v4957_v44 }
 0x440   : > { %v6722_v3 = vpop.eup %6721  ;;  %v5610_v26 = vmul.f32 %v9448_v20, %v9434_v46  ;;  %vm5615_vm2 = vweird.f32 %v9448_v20 }
 0x441   : > { %6723 = vrcp.f32 %v9450_v5  ;;  %v9459_v29 = vadd.f32 1.0, %v6722_v3  ;;  %v6416_v53 = vmul.f32 -1.442695, %v9454_v52  ;;  %vm9487_vm5 = vmor %vm5614_vm7, %vm5615_vm2  ;;  %v5633_v13 = vand.u32 2147483647, %v9450_v5 }
 0x442   : > { %v5611_v49 = vsub.f32 1.0, %v5610_v26  ;;  %6725 = vpow2.f32 %v6453_v10  ;;  %v5635_v62 = vand.u32 2147483648, %v9450_v5  ;;  %vm5629_vm10 = vweird.f32 %v9450_v5 }
 0x443   : > { %6727 = vrcp.f32 %v9459_v29  ;;  %vm5634_vm1 = vcmp.eq.f32.partialorder %v5633_v13, 8.507059e+37  ;;  %v5800_v16 = vand.u32 2147483648, %v9459_v29  ;;  %vm5794_vm3 = vweird.f32 %v9459_v29 }
 0x444   : > { %v5612_v18 = vmul.f32 %v9448_v20, %v5611_v49  ;;  %v4835_v31 = vpop.f32.mrf.mxu0  ;;  %6729 = vpow2.f32 %v6416_v53  ;;  %v4863_v37 = vpop.f32.mrf.mxu1  ;;  %v5636_v46 = vor.u32 1.1754944e-38, %v5635_v62  ;;  %v5798_v3 = vand.u32 2147483647, %v9459_v29 }
 0x445   : > { %v3364_v9 = vpop.permute.xlu1 %3363  ;;  %v6476_v55 = vld [vmem:[#allocation2 + $0x48] sm:$0xff]  ;;  %v4958_v17 = vmul.f32 %v9391_v24, %v4835_v31  ;;  %v4969_v22 = vmul.f32 %v9391_v24, %v4863_v37  ;;  %v4537_v36 = vpop.permute.xlu2 %4536 }
 0x446   : > { %3378 = vst.msk [vmem:[#allocation2 + $0xb4] sm:$0xf] %vm3302_vm9, %v3364_v9  ;;  %v3362_v35 = vpop.permute.xlu0 %3361  ;;  %v6470_v11 = vld [vmem:[#allocation2 + $0x18] sm:$0xff]  ;;  %6401 = vmatmul.msk.bf16.gmra.mxu1 %vm4747_vm15, %v6476_v55  ;;  %v5613_v7 = vadd.f32 %v9448_v20, %v5612_v18  ;;  %vm5799_vm2 = vcmp.eq.f32.partialorder %v5798_v3, 8.507059e+37 }
 0x447   : > { %3377 = vst.msk [vmem:[#allocation2 + $0xb0] sm:$0xf] %vm3302_vm9, %v3362_v35  ;;  %v6724_v60 = vpop.eup %6723  ;;  %v9472_v51 = vadd.f32 %v9402_v42, %v4958_v17  ;;  %6395 = vmatmul.msk.bf16.gmra.mxu0 %vm4747_vm15, %v6470_v11  ;;  %v9478_v34 = vadd.f32 %v9402_v42, %v4969_v22 }
 0x448   : > { %4115 = vst.msk [vmem:[#allocation2 + $0xb4] sm:$0xf] %vm3968_vm13, %v4095_v41  ;;  %v6726_v21 = vpop.eup %6725  ;;  %v5625_v56 = vmul.f32 %v6724_v60, %v9450_v5  ;;  %v5617_v0 = vsel %vm9487_vm5, %v9448_v20, %v5613_v7  ;;  %vm5630_vm6 = vweird.f32 %v6724_v60 }
 0x449   : > { %v9482_v43 = vadd.f32 1.0, %v6726_v21  ;;  %v6417_v47 = vmul.f32 -1.442695, %v9472_v51  ;;  %v9485_v57 = vpop.eup %6727  ;;  %v6428_v25 = vmul.f32 -1.442695, %v9478_v34  ;;  %v5622_v6 = vsel %vm5619_vm8, %v5621_v48, %v5617_v0  ;;  %vm5631_vm12 = vmor %vm5629_vm10, %vm5630_vm6 }
 0x44a   : > { %v5626_v63 = vsub.f32 1.0, %v5625_v56  ;;  %v6730_v2 = vpop.eup %6729  ;;  %v5790_v30 = vmul.f32 %v9485_v57, %v9459_v29  ;;  %vm5795_vm0 = vweird.f32 %v9485_v57  ;;  %v5993_v54 = vmul.f32 %v5622_v6, %v9410_v8 }
 0x44b   : > { %6731 = vrcp.f32 %v9482_v43  ;;  %v9501_v33 = vadd.f32 1.0, %v6730_v2  ;;  %vm9530_vm4 = vmor %vm5794_vm3, %vm5795_vm0  ;;  %v5801_v8 = vor.u32 1.1754944e-38, %v5800_v16  ;;  %v5815_v55 = vand.u32 2147483648, %v9482_v43 }
 0x44c   : > { %v5627_v19 = vmul.f32 %v6724_v60, %v5626_v63  ;;  %v5791_v12 = vsub.f32 1.0, %v5790_v30  ;;  %6733 = vpow2.f32 %v6417_v47  ;;  %v4865_v50 = vpop.f32.mrf.mxu1  ;;  %v5813_v22 = vand.u32 2147483647, %v9482_v43 }
 0x44d   : > { %v4093_v38 = vpop.permute.xlu1 %4092  ;;  %6735 = vrcp.f32 %v9501_v33  ;;  %v3861_v23 = vpop.permute.xlu2 %3860  ;;  %v4970_v45 = vmul.f32 %v9391_v24, %v4865_v50  ;;  %vm5809_vm7 = vweird.f32 %v9482_v43  ;;  %v5816_v1 = vor.u32 1.1754944e-38, %v5815_v55 }
 0x44e   : > { %4114 = vst.msk [vmem:[#allocation2 + $0xb0] sm:$0xf] %vm3968_vm13, %v4093_v38  ;;  %v3909_v14 = vpop.permute.xlu0 %3908  ;;  %v5628_v32 = vadd.f32 %v6724_v60, %v5627_v19  ;;  %v5792_v61 = vmul.f32 %v9485_v57, %v5791_v12  ;;  %6737 = vpow2.f32 %v6428_v25  ;;  %vm5814_vm6 = vcmp.eq.f32.partialorder %v5813_v22, 8.507059e+37 }
 0x44f   : > { %4002 = vst.msk [vmem:[#allocation2 + $0x84] sm:$0xf] %vm3968_vm13, %v3909_v14  ;;  %v9524_v5 = vadd.f32 %v9402_v42, %v4970_v45  ;;  %v5260_v0 = vand.u32 2147483648, %v9501_v33  ;;  %v5258_v12 = vand.u32 2147483647, %v9501_v33  ;;  %vm5254_vm10 = vweird.f32 %v9501_v33 }
 0x450   : > { %4555 = vst.msk [vmem:[#allocation2 + $0xb0] sm:$0xf] %vm4453_vm14, %v4537_v36  ;;  %v5632_v27 = vsel %vm5631_vm12, %v6724_v60, %v5628_v32  ;;  %v5793_v44 = vadd.f32 %v9485_v57, %v5792_v61 }
 0x451   : > { %3978 = vst.msk [vmem:[#allocation2 + $0x24] sm:$0xf] %vm3968_vm13, %v3861_v23  ;;  %v6732_v28 = vpop.eup %6731  ;;  %v5637_v58 = vsel %vm5634_vm1, %v5636_v46, %v5632_v27  ;;  %v6429_v35 = vmul.f32 -1.442695, %v9524_v5  ;;  %v5261_v16 = vor.u32 1.1754944e-38, %v5260_v0  ;;  %vm5259_vm0 = vcmp.eq.f32.partialorder %v5258_v12, 8.507059e+37 }
 0x452   : > { %v5994_v41 = vmul.f32 %v5637_v58, %v9425_v4  ;;  %v5805_v20 = vmul.f32 %v6732_v28, %v9482_v43  ;;  %v6734_v10 = vpop.eup %6733  ;;  %v5797_v31 = vsel %vm9530_vm4, %v9485_v57, %v5793_v44  ;;  %vm5810_vm11 = vweird.f32 %v6732_v28 }
 0x453   : > { %v9528_v26 = vpop.eup %6735  ;;  %v9534_v18 = vadd.f32 1.0, %v6734_v10  ;;  %v5802_v21 = vsel %vm5799_vm2, %v5801_v8, %v5797_v31  ;;  %vm5811_vm5 = vmor %vm5809_vm7, %vm5810_vm11 }
 0x454   : > { %v6556_v49 = vpack.c.bf16 %v5994_v41, %v5993_v54  ;;  %v5806_v4 = vsub.f32 1.0, %v5805_v20  ;;  %v5250_v29 = vmul.f32 %v9528_v26, %v9501_v33  ;;  %v6738_v37 = vpop.eup %6737  ;;  %v6005_v13 = vmul.f32 %v5802_v21, %v9429_v40 }
 0x455   : > { %v4394_v9 = vpop.permute.xlu1 %4393  ;;  %6739 = vrcp.f32 %v9534_v18  ;;  %v4344_v36 = vpop.permute.xlu2 %4343  ;;  %v9550_v7 = vadd.f32 1.0, %v6738_v37  ;;  %vm5255_vm8 = vweird.f32 %v9528_v26  ;;  %v5275_v58 = vand.u32 2147483648, %v9534_v18 }
 0x456   : > { %4487 = vst.msk [vmem:[#allocation2 + $0x84] sm:$0xf] %vm4453_vm14, %v4394_v9  ;;  %v4392_v17 = vpop.permute.xlu0 %4391  ;;  %v5807_v11 = vmul.f32 %v6732_v28, %v5806_v4  ;;  %v5251_v60 = vsub.f32 1.0, %v5250_v29  ;;  %6741 = vpow2.f32 %v6429_v35  ;;  %vm9581_vm12 = vmor %vm5254_vm10, %vm5255_vm8  ;;  %v5273_v41 = vand.u32 2147483647, %v9534_v18 }
 0x457   : > { %6624 = vst [vmem:[%s9545_s7 + $0x60] sm:$0xff] %v6556_v49   ;;  %6743 = vrcp.f32 %v9550_v7  ;;  %vm5269_vm3 = vweird.f32 %v9534_v18  ;;  %v5276_v4 = vor.u32 1.1754944e-38, %v5275_v58  ;;  %vm5434_vm7 = vweird.f32 %v9550_v7 }
 0x458   : > { %4486 = vst.msk [vmem:[#allocation2 + $0x80] sm:$0xf] %vm4453_vm14, %v4392_v17  ;;  %v5808_v56 = vadd.f32 %v6732_v28, %v5807_v11  ;;  %v5252_v47 = vmul.f32 %v9528_v26, %v5251_v60  ;;  %vm5274_vm11 = vcmp.eq.f32.partialorder %v5273_v41, 8.507059e+37 }
 0x459   : > { %v4928_v57 = vpop.f32.mrf.mxu3 }
 0x45a   : > { %v5812_v15 = vsel %vm5811_vm5, %v6732_v28, %v5808_v56  ;;  %v4898_v59 = vpop.f32.mrf.mxu2  ;;  %v4995_v63 = vmul.f32 %v9391_v24, %v4928_v57  ;;  %v5253_v19 = vadd.f32 %v9528_v26, %v5252_v47 }
 0x45b   : > { %v5817_v2 = vsel %vm5814_vm6, %v5816_v1, %v5812_v15  ;;  %v4983_v62 = vmul.f32 %v9391_v24, %v4898_v59  ;;  %v6740_v43 = vpop.eup %6739  ;;  %v5440_v15 = vand.u32 2147483648, %v9550_v7 }
 0x45c   : > { %v6006_v30 = vmul.f32 %v5817_v2, %v9443_v39  ;;  %v9564_v25 = vadd.f32 %v9402_v42, %v4995_v63  ;;  %v6742_v48 = vpop.eup %6741  ;;  %v5265_v40 = vmul.f32 %v6740_v43, %v9534_v18  ;;  %v5257_v28 = vsel %vm9581_vm12, %v9528_v26, %v5253_v19 }
 0x45d   : > { %v3859_v38 = vpop.permute.xlu1 %3858  ;;  %v9569_v14 = vadd.f32 %v9402_v42, %v4983_v62  ;;  %v9573_v32 = vadd.f32 1.0, %v6742_v48  ;;  %v4370_v46 = vpop.permute.xlu2 %4369  ;;  %vm5270_vm1 = vweird.f32 %v6740_v43  ;;  %v5262_v49 = vsel %vm5259_vm0, %v5261_v16, %v5257_v28 }
 0x45e   : > { %3977 = vst.msk [vmem:[#allocation2 + $0x20] sm:$0xf] %vm3968_vm13, %v3859_v38  ;;  %v4539_v39 = vpop.permute.xlu0 %4538  ;;  %v6586_v50 = vpack.c.bf16 %v6006_v30, %v6005_v13  ;;  %v6454_v23 = vmul.f32 -1.442695, %v9564_v25  ;;  %v9577_v61 = vpop.eup %6743  ;;  %v5266_v45 = vsub.f32 1.0, %v5265_v40  ;;  %vm5271_vm4 = vmor %vm5269_vm3, %vm5270_vm1  ;;  %v5969_v11 = vmul.f32 %v5262_v49, %v9454_v52 }
 0x45f   : > { %4556 = vst.msk [vmem:[#allocation2 + $0xb4] sm:$0xf] %vm4453_vm14, %v4539_v39  ;;  %v6483_v6 = vld [vmem:[#allocation2 + $0x80] sm:$0xff]  ;;  %v6442_v33 = vmul.f32 -1.442695, %v9569_v14  ;;  %v5430_v44 = vmul.f32 %v9577_v61, %v9550_v7  ;;  %6745 = vrcp.f32 %v9573_v32  ;;  %vm5435_vm2 = vweird.f32 %v9577_v61 }
 0x460   : > { %4462 = vst.msk [vmem:[#allocation2 + $0x20] sm:$0xf] %vm4453_vm14, %v4344_v36  ;;  %6408 = vmatmul.msk.bf16.gmra.mxu2 %vm4747_vm15, %v6483_v6  ;;  %v5267_v54 = vmul.f32 %v6740_v43, %v5266_v45  ;;  %v5438_v36 = vand.u32 2147483647, %v9550_v7  ;;  %vm9626_vm5 = vmor %vm5434_vm7, %vm5435_vm2  ;;  %v5453_v62 = vand.u32 2147483647, %v9573_v32  ;;  %vm5449_vm10 = vweird.f32 %v9573_v32 }
 0x461   : > { %6630 = vst [vmem:[%s9545_s7 + $0x90] sm:$0xff] %v6586_v50   ;;  %6747 = vpow2.f32 %v6442_v33  ;;  %v4930_v20 = vpop.f32.mrf.mxu3  ;;  %v5431_v10 = vsub.f32 1.0, %v5430_v44  ;;  %v5441_v38 = vor.u32 1.1754944e-38, %v5440_v15 }
 0x462   : > { %6749 = vpow2.f32 %v6454_v23  ;;  %v4900_v3 = vpop.f32.mrf.mxu2  ;;  %v4996_v26 = vmul.f32 %v9391_v24, %v4930_v20  ;;  %v5268_v53 = vadd.f32 %v6740_v43, %v5267_v54  ;;  %vm5439_vm8 = vcmp.eq.f32.partialorder %v5438_v36, 8.507059e+37 }
 0x463   : > { %v4984_v8 = vmul.f32 %v9391_v24, %v4900_v3  ;;  %v5432_v9 = vmul.f32 %v9577_v61, %v5431_v10  ;;  %vm5454_vm1 = vcmp.eq.f32.partialorder %v5453_v62, 8.507059e+37 }
 0x464   : > { %v9602_v31 = vadd.f32 %v9402_v42, %v4996_v26  ;;  %v5272_v29 = vsel %vm5271_vm4, %v6740_v43, %v5268_v53  ;;  %v5455_v43 = vand.u32 2147483648, %v9573_v32 }
 0x465   : > { %v3885_v55 = vpop.permute.xlu1 %3884  ;;  %v9605_v35 = vadd.f32 %v9402_v42, %v4984_v8  ;;  %v6746_v18 = vpop.eup %6745  ;;  %v5277_v22 = vsel %vm5274_vm11, %v5276_v4, %v5272_v29  ;;  %v5433_v47 = vadd.f32 %v9577_v61, %v5432_v9 }
 0x466   : > { %3990 = vst.msk [vmem:[#allocation2 + $0x54] sm:$0xf] %vm3968_vm13, %v3885_v55  ;;  %v3883_v17 = vpop.permute.xlu0 %3882  ;;  %v6489_v37 = vld [vmem:[#allocation2 + $0xb0] sm:$0xff]  ;;  %v6455_v60 = vmul.f32 -1.442695, %v9602_v31  ;;  %v3911_v21 = vpop.permute.xlu2 %3910  ;;  %v5970_v1 = vmul.f32 %v5277_v22, %v9472_v51  ;;  %v5445_v57 = vmul.f32 %v6746_v18, %v9573_v32  ;;  %vm5450_vm6 = vweird.f32 %v6746_v18 }
 0x467   : > { %3989 = vst.msk [vmem:[#allocation2 + $0x50] sm:$0xf] %vm3968_vm13, %v3883_v17  ;;  %v6748_v56 = vpop.eup %6747  ;;  %6414 = vmatmul.msk.bf16.gmra.mxu3 %vm4747_vm15, %v6489_v37  ;;  %v6443_v63 = vmul.f32 -1.442695, %v9605_v35  ;;  %v5437_v30 = vsel %vm9626_vm5, %v9577_v61, %v5433_v47  ;;  %vm5451_vm12 = vmor %vm5449_vm10, %vm5450_vm6  ;;  %v5456_v61 = vor.u32 1.1754944e-38, %v5455_v43 }
 0x468   : > { %4475 = vst.msk [vmem:[#allocation2 + $0x54] sm:$0xf] %vm4453_vm14, %v4370_v46  ;;  %v6750_v52 = vpop.eup %6749  ;;  %v9619_v59 = vadd.f32 1.0, %v6748_v56  ;;  %6751 = vpow2.f32 %v6455_v60  ;;  %v6496_v51 = vpack.c.bf16 %v5970_v1, %v5969_v11  ;;  %v5446_v13 = vsub.f32 1.0, %v5445_v57 }
 0x469   : > { %4003 = vst.msk [vmem:[#allocation2 + $0x88] sm:$0xf] %vm3968_vm13, %v3911_v21  ;;  %v9624_v2 = vadd.f32 1.0, %v6750_v52  ;;  %v5442_v46 = vsel %vm5439_vm8, %v5441_v38, %v5437_v30 }
 0x46a   : > { %6753 = vrcp.f32 %v9619_v59  ;;  %6497 = vst [vmem:[%s9545_s7] sm:$0xff] %v6496_v51   ;;  %v5447_v19 = vmul.f32 %v6746_v18, %v5446_v13  ;;  %v5981_v54 = vmul.f32 %v5442_v46, %v9478_v34  ;;  %vm5644_vm0 = vweird.f32 %v9619_v59 }
 0x46b   : > { %6755 = vrcp.f32 %v9624_v2  ;;  %v4868_v7 = vpop.f32.mrf.mxu1  ;;  %v5828_v55 = vand.u32 2147483647, %v9624_v2  ;;  %v5830_v29 = vand.u32 2147483648, %v9624_v2  ;;  %v5648_v11 = vand.u32 2147483647, %v9619_v59 }
 0x46c   : > { %6757 = vpow2.f32 %v6443_v63  ;;  %v4838_v12 = vpop.f32.mrf.mxu0  ;;  %v5448_v40 = vadd.f32 %v6746_v18, %v5447_v19  ;;  %v4971_v23 = vmul.f32 %v9391_v24, %v4868_v7  ;;  %v5650_v22 = vand.u32 2147483648, %v9619_v59 }
 0x46d   : > { %v4368_v48 = vpop.permute.xlu1 %4367  ;;  %v4959_v50 = vmul.f32 %v9391_v24, %v4838_v12  ;;  %vm5824_vm3 = vweird.f32 %v9624_v2  ;;  %vm9690_vm11 = vcmp.eq.f32.partialorder %v5828_v55, 8.507059e+37  ;;  %v5831_v51 = vor.u32 1.1754944e-38, %v5830_v29 }
 0x46e   : > { %4474 = vst.msk [vmem:[#allocation2 + $0x50] sm:$0xf] %vm4453_vm14, %v4368_v48  ;;  %v4346_v39 = vpop.permute.xlu0 %4345  ;;  %v6752_v6 = vpop.eup %6751  ;;  %v5452_v16 = vsel %vm5451_vm12, %v6746_v18, %v5448_v40  ;;  %v9652_v58 = vadd.f32 %v9402_v42, %v4971_v23 }
 0x46f   : > { %4463 = vst.msk [vmem:[#allocation2 + $0x24] sm:$0xf] %vm4453_vm14, %v4346_v39  ;;  %v4099_v27 = vpop.permute.xlu2 %4098  ;;  %v9644_v45 = vadd.f32 1.0, %v6752_v6  ;;  %v5457_v33 = vsel %vm5454_vm1, %v5456_v61, %v5452_v16  ;;  %v9649_v28 = vadd.f32 %v9402_v42, %v4959_v50  ;;  %vm5649_vm1 = vcmp.eq.f32.partialorder %v5648_v11, 8.507059e+37 }
 0x470   : > { %v9646_v32 = vpop.eup %6753  ;;  %v5982_v41 = vmul.f32 %v5457_v33, %v9524_v5  ;;  %v6430_v34 = vmul.f32 -1.442695, %v9652_v58 }
 0x471   : > { %v9654_v44 = vpop.eup %6755  ;;  %v5640_v20 = vmul.f32 %v9646_v32, %v9619_v59  ;;  %6759 = vrcp.f32 %v9644_v45  ;;  %v6418_v4 = vmul.f32 -1.442695, %v9649_v28  ;;  %v5843_v47 = vand.u32 2147483647, %v9644_v45 }
 0x472   : > { %v6758_v10 = vpop.eup %6757  ;;  %v5820_v3 = vmul.f32 %v9654_v44, %v9624_v2  ;;  %v6526_v26 = vpack.c.bf16 %v5982_v41, %v5981_v54  ;;  %vm5825_vm4 = vweird.f32 %v9654_v44  ;;  %vm5839_vm2 = vweird.f32 %v9644_v45 }
 0x473   : > { %v5641_v49 = vsub.f32 1.0, %v5640_v20  ;;  %v9663_v53 = vadd.f32 1.0, %v6758_v10  ;;  %v4870_v60 = vpop.f32.mrf.mxu1  ;;  %v5845_v62 = vand.u32 2147483648, %v9644_v45  ;;  %vm9702_vm7 = vmor %vm5824_vm3, %vm5825_vm4  ;;  %vm9706_vm5 = vcmp.eq.f32.partialorder %v5843_v47, 8.507059e+37 }
 0x474   : > { %v5821_v8 = vsub.f32 1.0, %v5820_v3  ;;  %v4840_v5 = vpop.f32.mrf.mxu0  ;;  %6618 = vst [vmem:[%s9545_s7 + $0x30] sm:$0xff] %v6526_v26   ;;  %v4972_v0 = vmul.f32 %v9391_v24, %v4870_v60 }
 0x475   : > { %v3368_v9 = vpop.permute.xlu1 %3367  ;;  %6761 = vrcp.f32 %v9663_v53  ;;  %v6477_v18 = vld [vmem:[#allocation2 + $0x50] sm:$0xff]  ;;  %v5642_v1 = vmul.f32 %v9646_v32, %v5641_v49  ;;  %v4960_v57 = vmul.f32 %v9391_v24, %v4840_v5  ;;  %v5663_v46 = vand.u32 2147483647, %v9663_v53 }
 0x476   : > { %v3366_v17 = vpop.permute.xlu0 %3365  ;;  %v6471_v37 = vld [vmem:[#allocation2 + $0x20] sm:$0xff]  ;;  %v5822_v36 = vmul.f32 %v9654_v44, %v5821_v8  ;;  %6763 = vpow2.f32 %v6418_v4  ;;  %3380 = vst.msk [vmem:[#allocation2 + $0xbc] sm:$0xf] %vm3302_vm9, %v3368_v9  ;;  %6402 = vmatmul.msk.bf16.gmra.mxu1 %vm4747_vm15, %v6477_v18  ;;  %v9712_v48 = vadd.f32 %v9402_v42, %v4972_v0  ;;  %v5665_v61 = vand.u32 2147483648, %v9663_v53 }
 0x477   : > { %v4541_v21 = vpop.permute.xlu2 %4540  ;;  %v9676_v56 = vpop.eup %6759  ;;  %6765 = vpow2.f32 %v6430_v34  ;;  %3379 = vst.msk [vmem:[#allocation2 + $0xb8] sm:$0xf] %vm3302_vm9, %v3366_v17  ;;  %6396 = vmatmul.msk.bf16.gmra.mxu0 %vm4747_vm15, %v6471_v37  ;;  %v9695_v13 = vadd.f32 %v9402_v42, %v4960_v57  ;;  %vm5645_vm9 = vweird.f32 %v9646_v32  ;;  %v5643_v30 = vadd.f32 %v9646_v32, %v5642_v1 }
 0x478   : > { %v5823_v52 = vadd.f32 %v9654_v44, %v5822_v36  ;;  %v5835_v15 = vmul.f32 %v9676_v56, %v9644_v45  ;;  %4117 = vst.msk [vmem:[#allocation2 + $0xbc] sm:$0xf] %vm3968_vm13, %v4099_v27  ;;  %vm5840_vm6 = vweird.f32 %v9676_v56  ;;  %vm9729_vm8 = vmor %vm5644_vm0, %vm5645_vm9  ;;  %v6431_v20 = vmul.f32 -1.442695, %v9712_v48 }
 0x479   : > { %v6419_v38 = vmul.f32 -1.442695, %v9695_v13  ;;  %v5647_v3 = vsel %vm9729_vm8, %v9646_v32, %v5643_v30  ;;  %vm5841_vm10 = vmor %vm5839_vm2, %vm5840_vm6  ;;  %v5846_v49 = vor.u32 1.1754944e-38, %v5845_v62  ;;  %v5651_v45 = vor.u32 1.1754944e-38, %v5650_v22 }
 0x47a   : > { %v5836_v2 = vsub.f32 1.0, %v5835_v15  ;;  %v5827_v40 = vsel %vm9702_vm7, %v9654_v44, %v5823_v52  ;;  %vm5659_vm0 = vweird.f32 %v9663_v53  ;;  %v5666_v37 = vor.u32 1.1754944e-38, %v5665_v61 }
 0x47b   : > { %v6762_v43 = vpop.eup %6761  ;;  %6767 = vpow2.f32 %v6419_v38  ;;  %v5832_v26 = vsel %vm9690_vm11, %v5831_v51, %v5827_v40  ;;  %v5652_v17 = vsel %vm5649_vm1, %v5651_v45, %v5647_v3  ;;  %vm5664_vm4 = vcmp.eq.f32.partialorder %v5663_v46, 8.507059e+37 }
 0x47c   : > { %v6764_v12 = vpop.eup %6763  ;;  %v5655_v39 = vmul.f32 %v6762_v43, %v9663_v53  ;;  %v5837_v50 = vmul.f32 %v9676_v56, %v5836_v2  ;;  %vm5660_vm12 = vweird.f32 %v6762_v43  ;;  %v6007_v9 = vmul.f32 %v5832_v26, %v9564_v25 }
 0x47d   : > { %v4097_v23 = vpop.permute.xlu1 %4096  ;;  %v6766_v6 = vpop.eup %6765  ;;  %v9722_v27 = vadd.f32 1.0, %v6764_v12  ;;  %vm5661_vm3 = vmor %vm5659_vm0, %vm5660_vm12 }
 0x47e   : > { %4116 = vst.msk [vmem:[#allocation2 + $0xb8] sm:$0xf] %vm3968_vm13, %v4097_v23  ;;  %v3913_v16 = vpop.permute.xlu0 %3912  ;;  %v5656_v44 = vsub.f32 1.0, %v5655_v39  ;;  %v5838_v54 = vadd.f32 %v9676_v56, %v5837_v50  ;;  %v9734_v41 = vadd.f32 1.0, %v6766_v6 }
 0x47f   : > { %4004 = vst.msk [vmem:[#allocation2 + $0x8c] sm:$0xf] %vm3968_vm13, %v3913_v16  ;;  %v3865_v10 = vpop.permute.xlu2 %3864  ;;  %6769 = vrcp.f32 %v9722_v27  ;;  %v5288_v57 = vand.u32 2147483647, %v9722_v27  ;;  %vm5284_vm2 = vweird.f32 %v9722_v27 }
 0x480   : > { %4557 = vst.msk [vmem:[#allocation2 + $0xb8] sm:$0xf] %vm4453_vm14, %v4541_v21  ;;  %v5657_v8 = vmul.f32 %v6762_v43, %v5656_v44  ;;  %v5842_v4 = vsel %vm5841_vm10, %v9676_v56, %v5838_v54  ;;  %6771 = vrcp.f32 %v9734_v41  ;;  %v5995_v56 = vmul.f32 %v5652_v17, %v9569_v14 }
 0x481   : > { %3980 = vst.msk [vmem:[#allocation2 + $0x2c] sm:$0xf] %vm3968_vm13, %v3865_v10  ;;  %v5847_v32 = vsel %vm9706_vm5, %v5846_v49, %v5842_v4  ;;  %v4903_v34 = vpop.f32.mrf.mxu2  ;;  %6773 = vpow2.f32 %v6431_v20  ;;  %v6768_v29 = vpop.eup %6767  ;;  %v5290_v14 = vand.u32 2147483648, %v9722_v27  ;;  %vm9790_vm11 = vcmp.eq.f32.partialorder %v5288_v57, 8.507059e+37 }
 0x482   : > { %v5658_v5 = vadd.f32 %v6762_v43, %v5657_v8  ;;  %v6008_v55 = vmul.f32 %v5847_v32, %v9602_v31  ;;  %v4985_v59 = vmul.f32 %v9391_v24, %v4903_v34  ;;  %v9763_v11 = vadd.f32 1.0, %v6768_v29 }
 0x483   : > { %v5291_v40 = vor.u32 1.1754944e-38, %v5290_v14  ;;  %v5468_v61 = vand.u32 2147483647, %v9734_v41  ;;  %v5470_v44 = vand.u32 2147483648, %v9734_v41  ;;  %vm5464_vm7 = vweird.f32 %v9734_v41 }
 0x484   : > { %v5662_v18 = vsel %vm5661_vm3, %v6762_v43, %v5658_v5  ;;  %v6591_v53 = vpack.c.bf16 %v6008_v55, %v6007_v9  ;;  %v9768_v31 = vadd.f32 %v9402_v42, %v4985_v59  ;;  %6775 = vrcp.f32 %v9763_v11 }
 0x485   : > { %v4398_v22 = vpop.permute.xlu1 %4397  ;;  %v9765_v36 = vpop.eup %6769  ;;  %v5667_v25 = vsel %vm5664_vm4, %v5666_v37, %v5662_v18  ;;  %v5303_v26 = vand.u32 2147483647, %v9763_v11  ;;  %v5305_v49 = vand.u32 2147483648, %v9763_v11  ;;  %vm9836_vm10 = vcmp.eq.f32.partialorder %v5468_v61, 8.507059e+37 }
 0x486   : > { %4489 = vst.msk [vmem:[#allocation2 + $0x8c] sm:$0xf] %vm4453_vm14, %v4398_v22  ;;  %v4396_v60 = vpop.permute.xlu0 %4395  ;;  %v9771_v21 = vpop.eup %6771  ;;  %v5996_v1 = vmul.f32 %v5667_v25, %v9605_v35  ;;  %v5280_v47 = vmul.f32 %v9765_v36, %v9722_v27  ;;  %v6444_v35 = vmul.f32 -1.442695, %v9768_v31  ;;  %vm5285_vm9 = vweird.f32 %v9765_v36 }
 0x487   : > { %6631 = vst [vmem:[%s9545_s7 + $0x98] sm:$0xff] %v6591_v53   ;;  %v5460_v52 = vmul.f32 %v9771_v21, %v9734_v41  ;;  %v6774_v15 = vpop.eup %6773  ;;  %v4348_v7 = vpop.permute.xlu2 %4347  ;;  %vm9821_vm5 = vmor %vm5284_vm2, %vm5285_vm9  ;;  %vm5465_vm6 = vweird.f32 %v9771_v21  ;;  %vm5299_vm12 = vweird.f32 %v9763_v11  ;;  %vm9849_vm0 = vcmp.eq.f32.partialorder %v5303_v26, 8.507059e+37 }
 0x488   : > { %4488 = vst.msk [vmem:[#allocation2 + $0x88] sm:$0xf] %vm4453_vm14, %v4396_v60  ;;  %v6561_v63 = vpack.c.bf16 %v5996_v1, %v5995_v56  ;;  %v5281_v51 = vsub.f32 1.0, %v5280_v47  ;;  %v9785_v2 = vadd.f32 1.0, %v6774_v15  ;;  %6777 = vpow2.f32 %v6444_v35  ;;  %vm9844_vm1 = vmor %vm5464_vm7, %vm5465_vm6 }
 0x489   : > { %v5461_v0 = vsub.f32 1.0, %v5460_v52  ;;  %v4905_v62 = vpop.f32.mrf.mxu2  ;;  %v5306_v53 = vor.u32 1.1754944e-38, %v5305_v49 }
 0x48a   : > { %6625 = vst [vmem:[%s9545_s7 + $0x68] sm:$0xff] %v6561_v63   ;;  %v5282_v43 = vmul.f32 %v9765_v36, %v5281_v51  ;;  %v4986_v30 = vmul.f32 %v9391_v24, %v4905_v62  ;;  %v4933_v19 = vpop.f32.mrf.mxu3  ;;  %6779 = vrcp.f32 %v9785_v2  ;;  %v9795_v12 = vpop.eup %6775  ;;  %v5483_v57 = vand.u32 2147483647, %v9785_v2 }
 0x48b   : > { %v5462_v39 = vmul.f32 %v9771_v21, %v5461_v0  ;;  %v4997_v23 = vmul.f32 %v9391_v24, %v4933_v19  ;;  %v5295_v16 = vmul.f32 %v9795_v12, %v9763_v11  ;;  %vm5300_vm8 = vweird.f32 %v9795_v12 }
 0x48c   : > { %v9799_v50 = vadd.f32 %v9402_v42, %v4986_v30  ;;  %v5283_v46 = vadd.f32 %v9765_v36, %v5282_v43  ;;  %vm5301_vm3 = vmor %vm5299_vm12, %vm5300_vm8  ;;  %v5485_v52 = vand.u32 2147483648, %v9785_v2  ;;  %v5471_v0 = vor.u32 1.1754944e-38, %v5470_v44 }
 0x48d   : > { %v3863_v6 = vpop.permute.xlu1 %3862  ;;  %v9812_v20 = vadd.f32 %v9402_v42, %v4997_v23  ;;  %v5296_v3 = vsub.f32 1.0, %v5295_v16  ;;  %v5463_v4 = vadd.f32 %v9771_v21, %v5462_v39  ;;  %vm5484_vm9 = vcmp.eq.f32.partialorder %v5483_v57, 8.507059e+37 }
 0x48e   : > { %3979 = vst.msk [vmem:[#allocation2 + $0x28] sm:$0xf] %vm3968_vm13, %v3863_v6  ;;  %v4543_v33 = vpop.permute.xlu0 %4542  ;;  %v6445_v54 = vmul.f32 -1.442695, %v9799_v50  ;;  %v6778_v27 = vpop.eup %6777  ;;  %v5287_v34 = vsel %vm9821_vm5, %v9765_v36, %v5283_v46 }
 0x48f   : > { %4558 = vst.msk [vmem:[#allocation2 + $0xbc] sm:$0xf] %vm4453_vm14, %v4543_v33  ;;  %v6484_v10 = vld [vmem:[#allocation2 + $0x88] sm:$0xff]  ;;  %v6456_v45 = vmul.f32 -1.442695, %v9812_v20  ;;  %v5297_v9 = vmul.f32 %v9795_v12, %v5296_v3  ;;  %v9834_v5 = vadd.f32 1.0, %v6778_v27  ;;  %v5292_v22 = vsel %vm9790_vm11, %v5291_v40, %v5287_v34  ;;  %v4374_v56 = vpop.permute.xlu2 %4373 }
 0x490   : > { %4464 = vst.msk [vmem:[#allocation2 + $0x28] sm:$0xf] %vm4453_vm14, %v4348_v7  ;;  %6781 = vpow2.f32 %v6445_v54  ;;  %6409 = vmatmul.msk.bf16.gmra.mxu2 %vm4747_vm15, %v6484_v10  ;;  %v6780_v32 = vpop.eup %6779  ;;  %v5467_v1 = vsel %vm9844_vm1, %v9771_v21, %v5463_v4  ;;  %v5971_v21 = vmul.f32 %v5292_v22, %v9649_v28  ;;  %vm5479_vm11 = vweird.f32 %v9785_v2  ;;  %v9882_v28 = vld [vmem:[%s10555_s4] ss:$0 sm:$0xff] }
 0x491   : > { %v5475_v29 = vmul.f32 %v6780_v32, %v9785_v2  ;;  %6783 = vpow2.f32 %v6456_v45  ;;  %v5298_v59 = vadd.f32 %v9795_v12, %v5297_v9  ;;  %vm5480_vm4 = vweird.f32 %v6780_v32 }
 0x492   : > { %v4935_v17 = vpop.f32.mrf.mxu3  ;;  %6785 = vrcp.f32 %v9834_v5  ;;  %v5472_v38 = vsel %vm9836_vm10, %v5471_v0, %v5467_v1  ;;  %v5486_v40 = vor.u32 1.1754944e-38, %v5485_v52  ;;  %v5678_v9 = vand.u32 2147483647, %v9834_v5 }
 0x493   : > { %v4843_v11 = vpop.f32.mrf.mxu0  ;;  %v5476_v36 = vsub.f32 1.0, %v5475_v29  ;;  %v4998_v41 = vmul.f32 %v9391_v24, %v4935_v17  ;;  %v5302_v47 = vsel %vm5301_vm3, %v9795_v12, %v5298_v59  ;;  %v5983_v61 = vmul.f32 %v5472_v38, %v9652_v58  ;;  %v9908_v58 = vld [vmem:[%s10554_s3] ss:$0 sm:$0xff] }
 0x494   : > { %v4961_v60 = vmul.f32 %v9391_v24, %v4843_v11  ;;  %v5307_v14 = vsel %vm9849_vm0, %v5306_v53, %v5302_v47  ;;  %v5680_v55 = vand.u32 2147483648, %v9834_v5  ;;  %vm5679_vm6 = vcmp.eq.f32.partialorder %v5678_v9, 8.507059e+37 }
 0x495   : > { %v3889_v25 = vpop.permute.xlu1 %3888  ;;  %v5477_v24 = vmul.f32 %v6780_v32, %v5476_v36  ;;  %v9868_v35 = vadd.f32 %v9402_v42, %v4998_v41  ;;  %v5972_v62 = vmul.f32 %v5307_v14, %v9695_v13 }
 0x496   : > { %3992 = vst.msk [vmem:[#allocation2 + $0x5c] sm:$0xf] %vm3968_vm13, %v3889_v25  ;;  %v3887_v15 = vpop.permute.xlu0 %3886  ;;  %v6490_v63 = vld [vmem:[#allocation2 + $0xb8] sm:$0xff]  ;;  %v6782_v51 = vpop.eup %6781  ;;  %v9885_v13 = vadd.f32 %v9882_v28, %v4961_v60  ;;  %v5681_v47 = vor.u32 1.1754944e-38, %v5680_v55 }
 0x497   : > { %3991 = vst.msk [vmem:[#allocation2 + $0x58] sm:$0xf] %vm3968_vm13, %v3887_v15  ;;  %v9873_v43 = vadd.f32 1.0, %v6782_v51  ;;  %6415 = vmatmul.msk.bf16.gmra.mxu3 %vm4747_vm15, %v6490_v63  ;;  %v6784_v30 = vpop.eup %6783  ;;  %v5478_v19 = vadd.f32 %v6780_v32, %v5477_v24  ;;  %v6457_v42 = vmul.f32 -1.442695, %v9868_v35  ;;  %v6501_v12 = vpack.c.bf16 %v5972_v62, %v5971_v21  ;;  %vm5481_vm13 = vmor %vm5479_vm11, %vm5480_vm4 }
 0x498   : > { %4477 = vst.msk [vmem:[#allocation2 + $0x5c] sm:$0xf] %vm4453_vm14, %v4374_v56  ;;  %v9887_v7 = vpop.eup %6785  ;;  %v9896_v6 = vadd.f32 1.0, %v6784_v30  ;;  %v6420_v44 = vmul.f32 -1.442695, %v9885_v13 }
 0x499   : > { %6787 = vrcp.f32 %v9873_v43  ;;  %v5482_v2 = vsel %vm5481_vm13, %v6780_v32, %v5478_v19  ;;  %v5670_v39 = vmul.f32 %v9887_v7, %v9834_v5  ;;  %6613 = vst [vmem:[%s9545_s7 + $0x8] sm:$0xff] %v6501_v12   ;;  %vm5675_vm2 = vweird.f32 %v9887_v7 }
 0x49a   : > { %v5487_v23 = vsel %vm5484_vm9, %v5486_v40, %v5482_v2  ;;  %6789 = vpow2.f32 %v6457_v42  ;;  %v5693_v11 = vand.u32 2147483647, %v9873_v43  ;;  %v5695_v22 = vand.u32 2147483648, %v9873_v43 }
 0x49b   : > { %v4845_v46 = vpop.f32.mrf.mxu0  ;;  %v5984_v16 = vmul.f32 %v5487_v23, %v9712_v48  ;;  %v5671_v33 = vsub.f32 1.0, %v5670_v39  ;;  %6791 = vrcp.f32 %v9896_v6  ;;  %vm5689_vm8 = vweird.f32 %v9873_v43 }
 0x49c   : > { %v4873_v10 = vpop.f32.mrf.mxu1  ;;  %6793 = vpow2.f32 %v6420_v44  ;;  %v4962_v48 = vmul.f32 %v9908_v58, %v4845_v46  ;;  %v5696_v14 = vor.u32 1.1754944e-38, %v5695_v22  ;;  %vm5694_vm12 = vcmp.eq.f32.partialorder %v5693_v11, 8.507059e+37 }
 0x49d   : > { %v4372_v54 = vpop.permute.xlu1 %4371  ;;  %v6531_v26 = vpack.c.bf16 %v5984_v16, %v5983_v61  ;;  %v5672_v49 = vmul.f32 %v9887_v7, %v5671_v33  ;;  %v4973_v8 = vmul.f32 %v9908_v58, %v4873_v10  ;;  %v5860_v42 = vand.u32 2147483648, %v9896_v6 }
 0x49e   : > { %4476 = vst.msk [vmem:[#allocation2 + $0x58] sm:$0xf] %vm4453_vm14, %v4372_v54  ;;  %v4350_v3 = vpop.permute.xlu0 %4349  ;;  %v9917_v32 = vadd.f32 %v9882_v28, %v4962_v48  ;;  %vm5854_vm1 = vweird.f32 %v9896_v6 }
 0x49f   : > { %4465 = vst.msk [vmem:[#allocation2 + $0x2c] sm:$0xf] %vm4453_vm14, %v4350_v3  ;;  %v6788_v27 = vpop.eup %6787  ;;  %v5673_v4 = vadd.f32 %v9887_v7, %v5672_v49  ;;  %v9922_v29 = vadd.f32 %v9882_v28, %v4973_v8  ;;  %vm5674_vm14 = vweird.f32 %v9834_v5  ;;  %v5861_v61 = vor.u32 1.1754944e-38, %v5860_v42 }
 0x4a0   : > { %6619 = vst [vmem:[%s9545_s7 + $0x38] sm:$0xff] %v6531_v26   ;;  %v5685_v45 = vmul.f32 %v6788_v27, %v9873_v43  ;;  %v6790_v34 = vpop.eup %6789  ;;  %v6421_v59 = vmul.f32 -1.442695, %v9917_v32  ;;  %vm9930_vm7 = vmor %vm5674_vm14, %vm5675_vm2  ;;  %vm5690_vm5 = vweird.f32 %v6788_v27 }
 0x4a1   : > { %v9925_v37 = vadd.f32 1.0, %v6790_v34  ;;  %v9928_v18 = vpop.eup %6791  ;;  %v6432_v36 = vmul.f32 -1.442695, %v9922_v29  ;;  %v5677_v5 = vsel %vm9930_vm7, %v9887_v7, %v5673_v4  ;;  %vm5691_vm10 = vmor %vm5689_vm8, %vm5690_vm5 }
 0x4a2   : > { %v5686_v17 = vsub.f32 1.0, %v5685_v45  ;;  %v6794_v41 = vpop.eup %6793  ;;  %v5850_v60 = vmul.f32 %v9928_v18, %v9896_v6  ;;  %v5682_v51 = vsel %vm5679_vm6, %v5681_v47, %v5677_v5 }
 0x4a3   : > { %6795 = vrcp.f32 %v9925_v37  ;;  %v9944_v63 = vadd.f32 1.0, %v6794_v41  ;;  %v5997_v30 = vmul.f32 %v5682_v51, %v9768_v31  ;;  %v5858_v31 = vand.u32 2147483647, %v9896_v6 }
 0x4a4   : > { %v5687_v25 = vmul.f32 %v6788_v27, %v5686_v17  ;;  %v4875_v56 = vpop.f32.mrf.mxu1  ;;  %v5851_v15 = vsub.f32 1.0, %v5850_v60  ;;  %6797 = vpow2.f32 %v6421_v59  ;;  %v5875_v54 = vand.u32 2147483648, %v9925_v37 }
 0x4a5   : > { %v6478_v1 = vld [vmem:[#allocation2 + $0x58] sm:$0xff]  ;;  %6799 = vpow2.f32 %v6432_v36  ;;  %v4974_v24 = vmul.f32 %v9908_v58, %v4875_v56  ;;  %v5873_v3 = vand.u32 2147483647, %v9925_v37  ;;  %vm5859_vm4 = vcmp.eq.f32.partialorder %v5858_v31, 8.507059e+37 }
 0x4a6   : > { %v6472_v57 = vld [vmem:[#allocation2 + $0x28] sm:$0xff]  ;;  %v5688_v52 = vadd.f32 %v6788_v27, %v5687_v25  ;;  %6403 = vmatmul.msk.bf16.gmra.mxu1 %vm4747_vm15, %v6478_v1  ;;  %v5852_v0 = vmul.f32 %v9928_v18, %v5851_v15  ;;  %6801 = vrcp.f32 %v9944_v63  ;;  %vm5869_vm11 = vweird.f32 %v9925_v37 }
 0x4a7   : > { %6397 = vmatmul.msk.bf16.gmra.mxu0 %vm4747_vm15, %v6472_v57  ;;  %v9953_v43 = vadd.f32 %v9882_v28, %v4974_v24  ;;  %vm5855_vm15 = vweird.f32 %v9928_v18  ;;  %v5876_v4 = vor.u32 1.1754944e-38, %v5875_v54  ;;  %v5318_v34 = vand.u32 2147483647, %v9944_v63 }
 0x4a8   : > { %v5692_v21 = vsel %vm5691_vm10, %v6788_v27, %v5688_v52  ;;  %v5853_v38 = vadd.f32 %v9928_v18, %v5852_v0  ;;  %vm5856_vm0 = vmor %vm5854_vm1, %vm5855_vm15  ;;  %vm5874_vm9 = vcmp.eq.f32.partialorder %v5873_v3, 8.507059e+37  ;;  %v5320_v17 = vand.u32 2147483648, %v9944_v63 }
 0x4a9   : > { %v5697_v62 = vsel %vm5694_vm12, %v5696_v14, %v5692_v21  ;;  %v6796_v7 = vpop.eup %6795  ;;  %v6433_v12 = vmul.f32 -1.442695, %v9953_v43  ;;  %vm5314_vm14 = vweird.f32 %v9944_v63  ;;  %vm9997_vm7 = vcmp.eq.f32.partialorder %v5318_v34, 8.507059e+37 }
 0x4aa   : > { %v5998_v19 = vmul.f32 %v5697_v62, %v9799_v50  ;;  %v6798_v40 = vpop.eup %6797  ;;  %v5865_v39 = vmul.f32 %v6796_v7, %v9925_v37  ;;  %v5857_v44 = vsel %vm5856_vm0, %v9928_v18, %v5853_v38  ;;  %vm5870_vm3 = vweird.f32 %v6796_v7 }
 0x4ab   : > { %v6800_v23 = vpop.eup %6799  ;;  %v9964_v46 = vadd.f32 1.0, %v6798_v40  ;;  %6803 = vpow2.f32 %v6433_v12  ;;  %v5862_v49 = vsel %vm5859_vm4, %v5861_v61, %v5857_v44  ;;  %vm5871_vm13 = vmor %vm5869_vm11, %vm5870_vm3  ;;  %v5321_v56 = vor.u32 1.1754944e-38, %v5320_v17 }
 0x4ac   : > { %v6566_v2 = vpack.c.bf16 %v5998_v19, %v5997_v30  ;;  %v9966_v50 = vpop.eup %6801  ;;  %v5866_v16 = vsub.f32 1.0, %v5865_v39  ;;  %v9969_v33 = vadd.f32 1.0, %v6800_v23  ;;  %v6009_v53 = vmul.f32 %v5862_v49, %v9812_v20 }
 0x4ad   : > { %v5310_v10 = vmul.f32 %v9966_v50, %v9944_v63  ;;  %6805 = vrcp.f32 %v9964_v46  ;;  %vm5315_vm2 = vweird.f32 %v9966_v50  ;;  %vm5329_vm6 = vweird.f32 %v9964_v46 }
 0x4ae   : > { %6626 = vst [vmem:[%s9545_s7 + $0x70] sm:$0xff] %v6566_v2   ;;  %v5867_v6 = vmul.f32 %v6796_v7, %v5866_v16  ;;  %6807 = vrcp.f32 %v9969_v33  ;;  %vm10004_vm5 = vmor %vm5314_vm14, %vm5315_vm2  ;;  %v5333_v57 = vand.u32 2147483647, %v9964_v46  ;;  %vm5494_vm10 = vweird.f32 %v9969_v33 }
 0x4af   : > { %v5311_v26 = vsub.f32 1.0, %v5310_v10  ;;  %v5498_v0 = vand.u32 2147483647, %v9969_v33  ;;  %v5500_v23 = vand.u32 2147483648, %v9969_v33 }
 0x4b0   : > { %v5868_v48 = vadd.f32 %v6796_v7, %v5867_v6  ;;  %vm5334_vm1 = vcmp.eq.f32.partialorder %v5333_v57, 8.507059e+37 }
 0x4b1   : > { %v6804_v8 = vpop.eup %6803  ;;  %v5312_v45 = vmul.f32 %v9966_v50, %v5311_v26  ;;  %vm5499_vm4 = vcmp.eq.f32.partialorder %v5498_v0, 8.507059e+37 }
 0x4b2   : > { %v4908_v27 = vpop.f32.mrf.mxu2  ;;  %v5872_v55 = vsel %vm5871_vm13, %v6796_v7, %v5868_v48  ;;  %v9983_v59 = vadd.f32 1.0, %v6804_v8  ;;  %v5501_v48 = vor.u32 1.1754944e-38, %v5500_v23 }
 0x4b3   : > { %v4987_v9 = vmul.f32 %v9908_v58, %v4908_v27  ;;  %v6806_v18 = vpop.eup %6805  ;;  %v5877_v37 = vsel %vm5874_vm9, %v5876_v4, %v5872_v55  ;;  %v5313_v41 = vadd.f32 %v9966_v50, %v5312_v45 }
 0x4b4   : > { %v9990_v22 = vpop.eup %6807  ;;  %v6010_v36 = vmul.f32 %v5877_v37, %v9868_v35  ;;  %v5325_v5 = vmul.f32 %v6806_v18, %v9964_v46  ;;  %6809 = vrcp.f32 %v9983_v59  ;;  %v5335_v35 = vand.u32 2147483648, %v9964_v46 }
 0x4b5   : > { %v9988_v11 = vadd.f32 %v9882_v28, %v4987_v9  ;;  %v5490_v25 = vmul.f32 %v9990_v22, %v9969_v33  ;;  %v5317_v63 = vsel %vm10004_vm5, %v9966_v50, %v5313_v41  ;;  %vm5330_vm8 = vweird.f32 %v6806_v18 }
 0x4b6   : > { %v6596_v60 = vpack.c.bf16 %v6010_v36, %v6009_v53  ;;  %v5326_v1 = vsub.f32 1.0, %v5325_v5  ;;  %v5336_v42 = vor.u32 1.1754944e-38, %v5335_v35  ;;  %vm5495_vm12 = vweird.f32 %v9990_v22  ;;  %vm5331_vm15 = vmor %vm5329_vm6, %vm5330_vm8 }
 0x4b7   : > { %v5491_v52 = vsub.f32 1.0, %v5490_v25  ;;  %v6446_v15 = vmul.f32 -1.442695, %v9988_v11  ;;  %v5322_v38 = vsel %vm9997_vm7, %v5321_v56, %v5317_v63  ;;  %v5513_v16 = vand.u32 2147483647, %v9983_v59  ;;  %vm10042_vm0 = vmor %vm5494_vm10, %vm5495_vm12 }
 0x4b8   : > { %6632 = vst [vmem:[%s9545_s7 + $0xa0] sm:$0xff] %v6596_v60   ;;  %v5327_v51 = vmul.f32 %v6806_v18, %v5326_v1  ;;  %v5973_v44 = vmul.f32 %v5322_v38, %v9885_v13  ;;  %v5515_v6 = vand.u32 2147483648, %v9983_v59  ;;  %vm5509_vm11 = vweird.f32 %v9983_v59 }
 0x4b9   : > { %v5492_v21 = vmul.f32 %v9990_v22, %v5491_v52  ;;  %6811 = vpow2.f32 %v6446_v15  ;;  %vm5514_vm9 = vcmp.eq.f32.partialorder %v5513_v16, 8.507059e+37 }
 0x4ba   : > { %v4910_v14 = vpop.f32.mrf.mxu2  ;;  %v4938_v24 = vpop.f32.mrf.mxu3  ;;  %v5328_v19 = vadd.f32 %v6806_v18, %v5327_v51  ;;  %v5516_v9 = vor.u32 1.1754944e-38, %v5515_v6 }
 0x4bb   : > { %v4988_v62 = vmul.f32 %v9908_v58, %v4910_v14  ;;  %v6810_v30 = vpop.eup %6809  ;;  %v4999_v7 = vmul.f32 %v9908_v58, %v4938_v24  ;;  %v5493_v12 = vadd.f32 %v9990_v22, %v5492_v21 }
 0x4bc   : > { %v5505_v40 = vmul.f32 %v6810_v30, %v9983_v59  ;;  %v5332_v39 = vsel %vm5331_vm15, %v6806_v18, %v5328_v19  ;;  %vm5510_vm3 = vweird.f32 %v6810_v30 }
 0x4bd   : > { %v10028_v2 = vadd.f32 %v9882_v28, %v4988_v62  ;;  %v10032_v31 = vadd.f32 %v9882_v28, %v4999_v7  ;;  %v5337_v50 = vsel %vm5334_vm1, %v5336_v42, %v5332_v39  ;;  %v5497_v13 = vsel %vm10042_vm0, %v9990_v22, %v5493_v12  ;;  %vm5511_vm13 = vmor %vm5509_vm11, %vm5510_vm3 }
 0x4be   : > { %v5506_v61 = vsub.f32 1.0, %v5505_v40  ;;  %v5974_v54 = vmul.f32 %v5337_v50, %v9917_v32  ;;  %v5502_v34 = vsel %vm5499_vm4, %v5501_v48, %v5497_v13 }
 0x4bf   : > { %v6447_v46 = vmul.f32 -1.442695, %v10028_v2  ;;  %v6458_v3 = vmul.f32 -1.442695, %v10032_v31  ;;  %v6812_v26 = vpop.eup %6811  ;;  %v5985_v36 = vmul.f32 %v5502_v34, %v9922_v29 }
 0x4c0   : > { %v5507_v49 = vmul.f32 %v6810_v30, %v5506_v61  ;;  %v6506_v32 = vpack.c.bf16 %v5974_v54, %v5973_v44  ;;  %v10051_v33 = vadd.f32 1.0, %v6812_v26 }
 0x4c1   : > { %6813 = vpow2.f32 %v6447_v46 }
 0x4c2   : > { %6815 = vpow2.f32 %v6458_v3  ;;  %v4940_v27 = vpop.f32.mrf.mxu3  ;;  %v5508_v8 = vadd.f32 %v6810_v30, %v5507_v49  ;;  %6614 = vst [vmem:[%s9545_s7 + $0x10] sm:$0xff] %v6506_v32   ;;  %v5708_v12 = vand.u32 2147483647, %v10051_v33  ;;  %v5710_v40 = vand.u32 2147483648, %v10051_v33 }
 0x4c3   : > { %v5000_v4 = vmul.f32 %v9908_v58, %v4940_v27  ;;  %v4878_v45 = vpop.f32.mrf.mxu1  ;;  %6817 = vrcp.f32 %v10051_v33  ;;  %vm5704_vm14 = vweird.f32 %v10051_v33 }
 0x4c4   : > { %v4848_v55 = vpop.f32.mrf.mxu0  ;;  %v5512_v17 = vsel %vm5511_vm13, %v6810_v30, %v5508_v8  ;;  %v4975_v37 = vmul.f32 %v9908_v58, %v4878_v45  ;;  %vm5709_vm6 = vcmp.eq.f32.partialorder %v5708_v12, 8.507059e+37  ;;  %v5711_v13 = vor.u32 1.1754944e-38, %v5710_v40 }
 0x4c5   : > { %v10058_v18 = vadd.f32 %v9882_v28, %v5000_v4  ;;  %v4963_v53 = vmul.f32 %v9908_v58, %v4848_v55  ;;  %v5517_v59 = vsel %vm5514_vm9, %v5516_v9, %v5512_v17 }
 0x4c6   : > { %v5986_v41 = vmul.f32 %v5517_v59, %v9953_v43  ;;  %v10069_v56 = vadd.f32 %v9882_v28, %v4975_v37 }
 0x4c7   : > { %v6814_v22 = vpop.eup %6813  ;;  %v6459_v5 = vmul.f32 -1.442695, %v10058_v18  ;;  %v10066_v20 = vadd.f32 %v9882_v28, %v4963_v53 }
 0x4c8   : > { %v6816_v25 = vpop.eup %6815  ;;  %v5232_v60 = vadd.f32 1.0, %v6814_v22  ;;  %v6536_v1 = vpack.c.bf16 %v5986_v41, %v5985_v36  ;;  %v6434_v15 = vmul.f32 -1.442695, %v10069_v56 }
 0x4c9   : > { %v10071_v35 = vadd.f32 1.0, %v6816_v25  ;;  %6819 = vpow2.f32 %v6459_v5  ;;  %v6422_v47 = vmul.f32 -1.442695, %v10066_v20  ;;  %v6818_v57 = vpop.eup %6817 }
 0x4ca   : > { %6821 = vrcp.f32 %v5232_v60  ;;  %6620 = vst [vmem:[%s9545_s7 + $0x40] sm:$0xff] %v6536_v1   ;;  %v5700_v29 = vmul.f32 %v6818_v57, %v10051_v33  ;;  %vm5705_vm2 = vweird.f32 %v6818_v57  ;;  %v5723_v61 = vand.u32 2147483647, %v5232_v60 }
 0x4cb   : > { %6823 = vrcp.f32 %v10071_v35  ;;  %v4880_v51 = vpop.f32.mrf.mxu1  ;;  %v5725_v16 = vand.u32 2147483648, %v5232_v60  ;;  %vm10094_vm7 = vmor %vm5704_vm14, %vm5705_vm2  ;;  %vm5719_vm8 = vweird.f32 %v5232_v60  ;;  %vm5884_vm10 = vweird.f32 %v10071_v35 }
 0x4cc   : > { %v4850_v43 = vpop.f32.mrf.mxu0  ;;  %v5701_v52 = vsub.f32 1.0, %v5700_v29  ;;  %6825 = vpow2.f32 %v6422_v47  ;;  %v4976_v30 = vmul.f32 %v9908_v58, %v4880_v51  ;;  %vm5724_vm15 = vcmp.eq.f32.partialorder %v5723_v61, 8.507059e+37 }
 0x4cd   : > { %v4964_v63 = vmul.f32 %v9908_v58, %v4850_v43  ;;  %6827 = vpow2.f32 %v6434_v15  ;;  %v5726_v8 = vor.u32 1.1754944e-38, %v5725_v16  ;;  %v5888_v53 = vand.u32 2147483647, %v10071_v35 }
 0x4ce   : > { %v5702_v24 = vmul.f32 %v6818_v57, %v5701_v52  ;;  %v10101_v10 = vadd.f32 %v9882_v28, %v4976_v30  ;;  %v5890_v37 = vand.u32 2147483648, %v10071_v35 }
 0x4cf   : > { %v6820_v14 = vpop.eup %6819  ;;  %v10080_v21 = vadd.f32 %v9882_v28, %v4964_v63  ;;  %vm5889_vm4 = vcmp.eq.f32.partialorder %v5888_v53, 8.507059e+37 }
 0x4d0   : > { %v6822_v0 = vpop.eup %6821  ;;  %v10082_v62 = vadd.f32 1.0, %v6820_v14  ;;  %v5703_v42 = vadd.f32 %v6818_v57, %v5702_v24  ;;  %v6435_v4 = vmul.f32 -1.442695, %v10101_v10 }
 0x4d1   : > { %v10085_v19 = vpop.eup %6823  ;;  %v5715_v7 = vmul.f32 %v6822_v0, %v5232_v60  ;;  %v6423_v38 = vmul.f32 -1.442695, %v10080_v21  ;;  %vm5720_vm5 = vweird.f32 %v6822_v0 }
 0x4d2   : > { %v5880_v39 = vmul.f32 %v10085_v19, %v10071_v35  ;;  %6829 = vrcp.f32 %v10082_v62  ;;  %v6826_v23 = vpop.eup %6825  ;;  %v5707_v3 = vsel %vm10094_vm7, %v6818_v57, %v5703_v42  ;;  %vm5721_vm12 = vmor %vm5719_vm8, %vm5720_vm5  ;;  %vm5885_vm1 = vweird.f32 %v10085_v19 }
 0x4d3   : > { %v5716_v50 = vsub.f32 1.0, %v5715_v7  ;;  %v10098_v54 = vadd.f32 1.0, %v6826_v23  ;;  %6831 = vpow2.f32 %v6423_v38  ;;  %v6828_v6 = vpop.eup %6827  ;;  %v5712_v27 = vsel %vm5709_vm6, %v5711_v13, %v5707_v3  ;;  %vm10124_vm0 = vmor %vm5884_vm10, %vm5885_vm1 }
 0x4d4   : > { %v5881_v44 = vsub.f32 1.0, %v5880_v39  ;;  %v10108_v48 = vadd.f32 1.0, %v6828_v6  ;;  %v5999_v59 = vmul.f32 %v5712_v27, %v9988_v11  ;;  %v5903_v41 = vand.u32 2147483647, %v10082_v62 }
 0x4d5   : > { %v5717_v26 = vmul.f32 %v6822_v0, %v5716_v50  ;;  %6833 = vrcp.f32 %v10098_v54  ;;  %v5905_v60 = vand.u32 2147483648, %v10082_v62  ;;  %v5891_v35 = vor.u32 1.1754944e-38, %v5890_v37 }
 0x4d6   : > { %v5882_v49 = vmul.f32 %v10085_v19, %v5881_v44  ;;  %6835 = vrcp.f32 %v10108_v48  ;;  %vm5899_vm11 = vweird.f32 %v10082_v62  ;;  %vm5904_vm9 = vcmp.eq.f32.partialorder %v5903_v41, 8.507059e+37 }
 0x4d7   : > { %v5718_v32 = vadd.f32 %v6822_v0, %v5717_v26  ;;  %6837 = vpow2.f32 %v6435_v4  ;;  %v5906_v63 = vor.u32 1.1754944e-38, %v5905_v60  ;;  %v5348_v12 = vand.u32 2147483647, %v10098_v54 }
 0x4d8   : > { %v6830_v33 = vpop.eup %6829  ;;  %v5883_v34 = vadd.f32 %v10085_v19, %v5882_v49  ;;  %vm5344_vm14 = vweird.f32 %v10098_v54  ;;  %vm5524_vm8 = vweird.f32 %v10108_v48 }
 0x4d9   : > { %v5722_v45 = vsel %vm5721_vm12, %v6822_v0, %v5718_v32  ;;  %v5895_v9 = vmul.f32 %v6830_v33, %v10082_v62  ;;  %v6832_v55 = vpop.eup %6831  ;;  %vm5900_vm3 = vweird.f32 %v6830_v33  ;;  %vm10163_vm5 = vcmp.eq.f32.partialorder %v5348_v12, 8.507059e+37 }
 0x4da   : > { %v5727_v17 = vsel %vm5724_vm15, %v5726_v8, %v5722_v45  ;;  %v10129_v1 = vadd.f32 1.0, %v6832_v55  ;;  %vm5901_vm13 = vmor %vm5899_vm11, %vm5900_vm3 }
 0x4db   : > { %v6000_v22 = vmul.f32 %v5727_v17, %v10028_v2  ;;  %v5896_v36 = vsub.f32 1.0, %v5895_v9  ;;  %v10120_v5 = vpop.eup %6833  ;;  %v5887_v2 = vsel %vm10124_vm0, %v10085_v19, %v5883_v34 }
 0x4dc   : > { %v5340_v57 = vmul.f32 %v10120_v5, %v10098_v54  ;;  %6839 = vrcp.f32 %v10129_v1  ;;  %v10139_v52 = vpop.eup %6835  ;;  %v5892_v15 = vsel %vm5889_vm4, %v5891_v35, %v5887_v2  ;;  %vm5345_vm2 = vweird.f32 %v10120_v5 }
 0x4dd   : > { %v6571_v11 = vpack.c.bf16 %v6000_v22, %v5999_v59  ;;  %v5897_v47 = vmul.f32 %v6830_v33, %v5896_v36  ;;  %v5520_v24 = vmul.f32 %v10139_v52, %v10108_v48  ;;  %v6838_v0 = vpop.eup %6837  ;;  %v6011_v19 = vmul.f32 %v5892_v15, %v10032_v31  ;;  %vm10159_vm7 = vmor %vm5344_vm14, %vm5345_vm2 }
 0x4de   : > { %v5341_v43 = vsub.f32 1.0, %v5340_v57  ;;  %v10147_v42 = vadd.f32 1.0, %v6838_v0  ;;  %v5350_v31 = vand.u32 2147483648, %v10098_v54  ;;  %v5365_v16 = vand.u32 2147483648, %v10129_v1 }
 0x4df   : > { %6627 = vst [vmem:[%s9545_s7 + $0x78] sm:$0xff] %v6571_v11   ;;  %v5898_v29 = vadd.f32 %v6830_v33, %v5897_v47  ;;  %v5521_v40 = vsub.f32 1.0, %v5520_v24  ;;  %v5363_v13 = vand.u32 2147483647, %v10129_v1  ;;  %vm5359_vm10 = vweird.f32 %v10129_v1 }
 0x4e0   : > { %v5342_v14 = vmul.f32 %v10120_v5, %v5341_v43  ;;  %6841 = vrcp.f32 %v10147_v42  ;;  %v5351_v49 = vor.u32 1.1754944e-38, %v5350_v31  ;;  %vm5525_vm12 = vweird.f32 %v10139_v52 }
 0x4e1   : > { %v5902_v51 = vsel %vm5901_vm13, %v6830_v33, %v5898_v29  ;;  %v5522_v6 = vmul.f32 %v10139_v52, %v5521_v40  ;;  %v5366_v8 = vor.u32 1.1754944e-38, %v5365_v16  ;;  %vm5364_vm1 = vcmp.eq.f32.partialorder %v5363_v13, 8.507059e+37  ;;  %vm10199_vm0 = vmor %vm5524_vm8, %vm5525_vm12 }
 0x4e2   : > { %v5907_v30 = vsel %vm5904_vm9, %v5906_v63, %v5902_v51  ;;  %v6840_v38 = vpop.eup %6839  ;;  %v5343_v50 = vadd.f32 %v10120_v5, %v5342_v14  ;;  %v5528_v22 = vand.u32 2147483647, %v10108_v48  ;;  %v5530_v36 = vand.u32 2147483648, %v10108_v48 }
 0x4e3   : > { %v6012_v62 = vmul.f32 %v5907_v30, %v10058_v18  ;;  %v4913_v7 = vpop.f32.mrf.mxu2  ;;  %v5355_v61 = vmul.f32 %v6840_v38, %v10129_v1  ;;  %vm5360_vm6 = vweird.f32 %v6840_v38  ;;  %v5523_v55 = vadd.f32 %v10139_v52, %v5522_v6 }
 0x4e4   : > { %v4989_v39 = vmul.f32 %v9908_v58, %v4913_v7  ;;  %v5347_v54 = vsel %vm10159_vm7, %v10120_v5, %v5343_v50  ;;  %vm5361_vm15 = vmor %vm5359_vm10, %vm5360_vm6  ;;  %v5545_v57 = vand.u32 2147483648, %v10147_v42  ;;  %vm5529_vm4 = vcmp.eq.f32.partialorder %v5528_v22, 8.507059e+37 }
 0x4e5   : > { %v6601_v23 = vpack.c.bf16 %v6012_v62, %v6011_v19  ;;  %v5356_v18 = vsub.f32 1.0, %v5355_v61  ;;  %v5352_v9 = vsel %vm10163_vm5, %v5351_v49, %v5347_v54  ;;  %v5527_v47 = vsel %vm10199_vm0, %v10139_v52, %v5523_v55 }
 0x4e6   : > { %v10169_v3 = vadd.f32 %v9882_v28, %v4989_v39  ;;  %v6842_v34 = vpop.eup %6841  ;;  %v5975_v25 = vmul.f32 %v5352_v9, %v10066_v20  ;;  %v5543_v20 = vand.u32 2147483647, %v10147_v42  ;;  %vm5539_vm11 = vweird.f32 %v10147_v42 }
 0x4e7   : > { %6633 = vst [vmem:[%s9545_s7 + $0xa8] sm:$0xff] %v6601_v23   ;;  %v5357_v26 = vmul.f32 %v6840_v38, %v5356_v18  ;;  %v5535_v37 = vmul.f32 %v6842_v34, %v10147_v42  ;;  %vm5540_vm3 = vweird.f32 %v6842_v34  ;;  %v5546_v24 = vor.u32 1.1754944e-38, %v5545_v57 }
 0x4e8   : > { %v6448_v32 = vmul.f32 -1.442695, %v10169_v3  ;;  %vm5541_vm13 = vmor %vm5539_vm11, %vm5540_vm3  ;;  %vm5544_vm9 = vcmp.eq.f32.partialorder %v5543_v20, 8.507059e+37 }
 0x4e9   : > { %v5358_v27 = vadd.f32 %v6840_v38, %v5357_v26  ;;  %v5536_v11 = vsub.f32 1.0, %v5535_v37 }
 0x4ea   : > { %v4943_v33 = vpop.f32.mrf.mxu3  ;;  %6843 = vpow2.f32 %v6448_v32 }
 0x4eb   : > { %v4915_v4 = vpop.f32.mrf.mxu2  ;;  %v5001_v45 = vmul.f32 %v9908_v58, %v4943_v33  ;;  %v5362_v53 = vsel %vm5361_vm15, %v6840_v38, %v5358_v27  ;;  %v5537_v29 = vmul.f32 %v6842_v34, %v5536_v11 }
 0x4ec   : > { %v4990_v17 = vmul.f32 %v9908_v58, %v4915_v4  ;;  %v5367_v41 = vsel %vm5364_vm1, %v5366_v8, %v5362_v53 }
 0x4ed   : > { %v10187_v59 = vadd.f32 %v9882_v28, %v5001_v45  ;;  %v5976_v1 = vmul.f32 %v5367_v41, %v10080_v21  ;;  %v5531_v21 = vor.u32 1.1754944e-38, %v5530_v36  ;;  %v5538_v63 = vadd.f32 %v6842_v34, %v5537_v29 }
 0x4ee   : > { %v10192_v5 = vadd.f32 %v9882_v28, %v4990_v17 }
 0x4ef   : > { %v6460_v2 = vmul.f32 -1.442695, %v10187_v59  ;;  %v6511_v35 = vpack.c.bf16 %v5976_v1, %v5975_v25  ;;  %v5532_v14 = vsel %vm5529_vm4, %v5531_v21, %v5527_v47  ;;  %v5542_v19 = vsel %vm5541_vm13, %v6842_v34, %v5538_v63 }
 0x4f0   : > { %v6449_v48 = vmul.f32 -1.442695, %v10192_v5  ;;  %v6844_v43 = vpop.eup %6843  ;;  %v5547_v62 = vsel %vm5544_vm9, %v5546_v24, %v5542_v19  ;;  %v5987_v12 = vmul.f32 %v5532_v14, %v10069_v56 }
 0x4f1   : > { %6845 = vpow2.f32 %v6460_v2  ;;  %6615 = vst [vmem:[%s9545_s7 + $0x18] sm:$0xff] %v6511_v35   ;;  %v10213_v52 = vadd.f32 1.0, %v6844_v43  ;;  %v5988_v40 = vmul.f32 %v5547_v62, %v10101_v10 }
 0x4f2   : > { %6847 = vpow2.f32 %v6449_v48  ;;  %v4945_v15 = vpop.f32.mrf.mxu3 }
 0x4f3   : > { %v5002_v51 = vmul.f32 %v9908_v58, %v4945_v15  ;;  %v4883_v30 = vpop.f32.mrf.mxu1  ;;  %6849 = vrcp.f32 %v10213_v52  ;;  %v6541_v61 = vpack.c.bf16 %v5988_v40, %v5987_v12  ;;  %v5738_v37 = vand.u32 2147483647, %v10213_v52 }
 0x4f4   : > { %v4853_v0 = vpop.f32.mrf.mxu0  ;;  %v4977_v39 = vmul.f32 %v9908_v58, %v4883_v30  ;;  %v5740_v22 = vand.u32 2147483648, %v10213_v52  ;;  %vm5734_vm14 = vweird.f32 %v10213_v52 }
 0x4f5   : > { %v10218_v7 = vadd.f32 %v9882_v28, %v5002_v51  ;;  %v4965_v42 = vmul.f32 %v9908_v58, %v4853_v0  ;;  %6621 = vst [vmem:[%s9545_s7 + $0x48] sm:$0xff] %v6541_v61   ;;  %vm5739_vm6 = vcmp.eq.f32.partialorder %v5738_v37, 8.507059e+37 }
 0x4f6   : > { %v10234_v46 = vadd.f32 %v9882_v28, %v4977_v39  ;;  %v5741_v35 = vor.u32 1.1754944e-38, %v5740_v22 }
 0x4f7   : > { %v6846_v38 = vpop.eup %6845  ;;  %v6461_v18 = vmul.f32 -1.442695, %v10218_v7  ;;  %v10230_v16 = vadd.f32 %v9882_v28, %v4965_v42 }
 0x4f8   : > { %v6848_v23 = vpop.eup %6847  ;;  %v10224_v50 = vadd.f32 1.0, %v6846_v38  ;;  %v6436_v13 = vmul.f32 -1.442695, %v10234_v46 }
 0x4f9   : > { %v10226_v31 = vadd.f32 1.0, %v6848_v23  ;;  %v6850_v56 = vpop.eup %6849  ;;  %v6424_v54 = vmul.f32 -1.442695, %v10230_v16 }
 0x4fa   : > { %6851 = vrcp.f32 %v10224_v50  ;;  %v5730_v10 = vmul.f32 %v6850_v56, %v10213_v52  ;;  %vm5735_vm2 = vweird.f32 %v6850_v56  ;;  %v5920_v51 = vand.u32 2147483648, %v10224_v50 }
 0x4fb   : > { %6853 = vrcp.f32 %v10226_v31  ;;  %v4885_v6 = vpop.f32.mrf.mxu1  ;;  %vm10261_vm7 = vmor %vm5734_vm14, %vm5735_vm2  ;;  %v5753_v11 = vand.u32 2147483647, %v10226_v31  ;;  %v5755_v2 = vand.u32 2147483648, %v10226_v31  ;;  %vm5749_vm8 = vweird.f32 %v10226_v31 }
 0x4fc   : > { %v4855_v44 = vpop.f32.mrf.mxu0  ;;  %6855 = vpow2.f32 %v6461_v18  ;;  %v5731_v26 = vsub.f32 1.0, %v5730_v10  ;;  %v4978_v32 = vmul.f32 %v9908_v58, %v4885_v6  ;;  %vm5914_vm1 = vweird.f32 %v10224_v50 }
 0x4fd   : > { %v4966_v49 = vmul.f32 %v9908_v58, %v4855_v44  ;;  %6857 = vpow2.f32 %v6424_v54  ;;  %v5756_v52 = vor.u32 1.1754944e-38, %v5755_v2  ;;  %vm5754_vm15 = vcmp.eq.f32.partialorder %v5753_v11, 8.507059e+37 }
 0x4fe   : > { %v5732_v27 = vmul.f32 %v6850_v56, %v5731_v26  ;;  %6859 = vpow2.f32 %v6436_v13  ;;  %v10249_v4 = vadd.f32 %v9882_v28, %v4978_v32  ;;  %v5918_v0 = vand.u32 2147483647, %v10224_v50 }
 0x4ff   : > { %v10246_v8 = vadd.f32 %v9882_v28, %v4966_v49  ;;  %v5921_v40 = vor.u32 1.1754944e-38, %v5920_v51 }
 0x500   : > { %v10243_v33 = vpop.eup %6851  ;;  %v5733_v9 = vadd.f32 %v6850_v56, %v5732_v27  ;;  %v6437_v41 = vmul.f32 -1.442695, %v10249_v4  ;;  %vm5919_vm3 = vcmp.eq.f32.partialorder %v5918_v0, 8.507059e+37 }
 0x501   : > { %v6854_v45 = vpop.eup %6853  ;;  %v5910_v34 = vmul.f32 %v10243_v33, %v10224_v50  ;;  %v6425_v17 = vmul.f32 -1.442695, %v10246_v8  ;;  %vm5915_vm10 = vweird.f32 %v10243_v33 }
 0x502   : > { %v5745_v55 = vmul.f32 %v6854_v45, %v10226_v31  ;;  %v6856_v53 = vpop.eup %6855  ;;  %v5737_v57 = vsel %vm10261_vm7, %v6850_v56, %v5733_v9  ;;  %vm5750_vm5 = vweird.f32 %v6854_v45  ;;  %vm5916_vm0 = vmor %vm5914_vm1, %vm5915_vm10 }
 0x503   : > { %v5911_v36 = vsub.f32 1.0, %v5910_v34  ;;  %v10259_v25 = vadd.f32 1.0, %v6856_v53  ;;  %6861 = vpow2.f32 %v6425_v17  ;;  %v6858_v60 = vpop.eup %6857  ;;  %v5742_v63 = vsel %vm5739_vm6, %v5741_v35, %v5737_v57  ;;  %vm5751_vm12 = vmor %vm5749_vm8, %vm5750_vm5 }
 0x504   : > { %v5746_v28 = vsub.f32 1.0, %v5745_v55  ;;  %6863 = vpow2.f32 %v6437_v41  ;;  %v6860_v20 = vpop.eup %6859  ;;  %v10272_v29 = vadd.f32 1.0, %v6858_v60  ;;  %v6001_v42 = vmul.f32 %v5742_v63, %v10169_v3 }
 0x505   : > { %v5912_v47 = vmul.f32 %v10243_v33, %v5911_v36  ;;  %6865 = vrcp.f32 %v10259_v25  ;;  %v10276_v15 = vadd.f32 1.0, %v6860_v20  ;;  %v5933_v10 = vand.u32 2147483647, %v10259_v25 }
 0x506   : > { %v5747_v48 = vmul.f32 %v6854_v45, %v5746_v28  ;;  %6867 = vrcp.f32 %v10272_v29  ;;  %v5935_v3 = vand.u32 2147483648, %v10259_v25  ;;  %v5378_v44 = vand.u32 2147483647, %v10272_v29 }
 0x507   : > { %v5913_v21 = vadd.f32 %v10243_v33, %v5912_v47  ;;  %6869 = vrcp.f32 %v10276_v15  ;;  %v5380_v6 = vand.u32 2147483648, %v10272_v29  ;;  %v5560_v13 = vand.u32 2147483648, %v10276_v15  ;;  %v10331_v47 = vld [vmem:[%s10555_s4] ss:$0 sm:$0xff] }
 0x508   : > { %v5748_v43 = vadd.f32 %v6854_v45, %v5747_v48  ;;  %vm5929_vm11 = vweird.f32 %v10259_v25  ;;  %vm5934_vm13 = vcmp.eq.f32.partialorder %v5933_v10, 8.507059e+37  ;;  %vm5374_vm9 = vweird.f32 %v10272_v29 }
 0x509   : > { %v6862_v14 = vpop.eup %6861  ;;  %v5917_v12 = vsel %vm5916_vm0, %v10243_v33, %v5913_v21  ;;  %v5558_v33 = vand.u32 2147483647, %v10276_v15  ;;  %vm10313_vm14 = vcmp.eq.f32.partialorder %v5378_v44, 8.507059e+37  ;;  %v5381_v36 = vor.u32 1.1754944e-38, %v5380_v6 }
 0x50a   : > { %v5752_v24 = vsel %vm5751_vm12, %v6854_v45, %v5748_v43  ;;  %v6864_v30 = vpop.eup %6863  ;;  %v10287_v61 = vadd.f32 1.0, %v6862_v14  ;;  %v5922_v18 = vsel %vm5919_vm3, %v5921_v40, %v5917_v12  ;;  %v5936_v45 = vor.u32 1.1754944e-38, %v5935_v3 }
 0x50b   : > { %v5757_v19 = vsel %vm5754_vm15, %v5756_v52, %v5752_v24  ;;  %v6866_v62 = vpop.eup %6865  ;;  %v10289_v50 = vadd.f32 1.0, %v6864_v30  ;;  %v6013_v9 = vmul.f32 %v5922_v18, %v10187_v59  ;;  %vm5554_vm7 = vweird.f32 %v10276_v15 }
 0x50c   : > { %v6002_v38 = vmul.f32 %v5757_v19, %v10192_v5  ;;  %v5925_v39 = vmul.f32 %v6866_v62, %v10259_v25  ;;  %v10291_v31 = vpop.eup %6867  ;;  %6871 = vrcp.f32 %v10287_v61  ;;  %vm5930_vm4 = vweird.f32 %v6866_v62 }
 0x50d   : > { %v5370_v5 = vmul.f32 %v10291_v31, %v10272_v29  ;;  %v10301_v54 = vpop.eup %6869  ;;  %6873 = vrcp.f32 %v10289_v50  ;;  %vm5931_vm2 = vmor %vm5929_vm11, %vm5930_vm4  ;;  %v5561_v41 = vor.u32 1.1754944e-38, %v5560_v13  ;;  %vm5375_vm5 = vweird.f32 %v10291_v31 }
 0x50e   : > { %v6576_v23 = vpack.c.bf16 %v6002_v38, %v6001_v42  ;;  %v5926_v56 = vsub.f32 1.0, %v5925_v39  ;;  %v5550_v32 = vmul.f32 %v10301_v54, %v10276_v15  ;;  %vm10320_vm6 = vcmp.eq.f32.partialorder %v5558_v33, 8.507059e+37  ;;  %vm10346_vm12 = vmor %vm5374_vm9, %vm5375_vm5  ;;  %v10367_v42 = vld [vmem:[%s10554_s3] ss:$0 sm:$0xff] }
 0x50f   : > { %v5371_v49 = vsub.f32 1.0, %v5370_v5  ;;  %vm5389_vm8 = vweird.f32 %v10287_v61  ;;  %vm5555_vm10 = vweird.f32 %v10301_v54  ;;  %v5393_v48 = vand.u32 2147483647, %v10287_v61 }
 0x510   : > { %6628 = vst [vmem:[%s9545_s7 + $0x80] sm:$0xff] %v6576_v23   ;;  %v5927_v26 = vmul.f32 %v6866_v62, %v5926_v56  ;;  %v5551_v17 = vsub.f32 1.0, %v5550_v32  ;;  %v5395_v21 = vand.u32 2147483648, %v10287_v61  ;;  %v5573_v14 = vand.u32 2147483647, %v10289_v50  ;;  %vm10360_vm1 = vmor %vm5554_vm7, %vm5555_vm10 }
 0x511   : > { %v5372_v55 = vmul.f32 %v10291_v31, %v5371_v49  ;;  %v5575_v24 = vand.u32 2147483648, %v10289_v50  ;;  %vm5394_vm3 = vcmp.eq.f32.partialorder %v5393_v48, 8.507059e+37  ;;  %vm5569_vm4 = vweird.f32 %v10289_v50 }
 0x512   : > { %v5928_v27 = vadd.f32 %v6866_v62, %v5927_v26  ;;  %v6872_v28 = vpop.eup %6871  ;;  %v5552_v59 = vmul.f32 %v10301_v54, %v5551_v17  ;;  %v5396_v18 = vor.u32 1.1754944e-38, %v5395_v21  ;;  %vm5574_vm9 = vcmp.eq.f32.partialorder %v5573_v14, 8.507059e+37 }
 0x513   : > { %v4918_v34 = vpop.f32.mrf.mxu2  ;;  %v5373_v11 = vadd.f32 %v10291_v31, %v5372_v55  ;;  %v5385_v2 = vmul.f32 %v6872_v28, %v10287_v61  ;;  %vm5390_vm15 = vweird.f32 %v6872_v28 }
 0x514   : > { %v4991_v53 = vmul.f32 %v9908_v58, %v4918_v34  ;;  %v5932_v37 = vsel %vm5931_vm2, %v6866_v62, %v5928_v27  ;;  %v6874_v58 = vpop.eup %6873  ;;  %v5553_v57 = vadd.f32 %v10301_v54, %v5552_v59  ;;  %vm5391_vm11 = vmor %vm5389_vm8, %vm5390_vm15 }
 0x515   : > { %v5937_v25 = vsel %vm5934_vm13, %v5936_v45, %v5932_v37  ;;  %v5386_v43 = vsub.f32 1.0, %v5385_v2  ;;  %v5377_v30 = vsel %vm10346_vm12, %v10291_v31, %v5373_v11  ;;  %vm5570_vm0 = vweird.f32 %v6874_v58 }
 0x516   : > { %v6014_v1 = vmul.f32 %v5937_v25, %v10218_v7  ;;  %v10334_v20 = vadd.f32 %v10331_v47, %v4991_v53  ;;  %v5565_v7 = vmul.f32 %v6874_v58, %v10289_v50  ;;  %v5557_v12 = vsel %vm10360_vm1, %v10301_v54, %v5553_v57  ;;  %vm5571_vm13 = vmor %vm5569_vm4, %vm5570_vm0 }
 0x517   : > { %v5387_v19 = vmul.f32 %v6872_v28, %v5386_v43  ;;  %v5382_v31 = vsel %vm10313_vm14, %v5381_v36, %v5377_v30  ;;  %v5562_v3 = vsel %vm10320_vm6, %v5561_v41, %v5557_v12  ;;  %v5576_v50 = vor.u32 1.1754944e-38, %v5575_v24 }
 0x518   : > { %v6606_v35 = vpack.c.bf16 %v6014_v1, %v6013_v9  ;;  %v6450_v63 = vmul.f32 -1.442695, %v10334_v20  ;;  %v5566_v51 = vsub.f32 1.0, %v5565_v7  ;;  %v5977_v13 = vmul.f32 %v5382_v31, %v10230_v16 }
 0x519   : > { %v5388_v39 = vadd.f32 %v6872_v28, %v5387_v19  ;;  %v5989_v33 = vmul.f32 %v5562_v3, %v10234_v46 }
 0x51a   : > { %v4948_v0 = vpop.f32.mrf.mxu3  ;;  %6634 = vst [vmem:[%s9545_s7 + $0xb0] sm:$0xff] %v6606_v35   ;;  %6875 = vpow2.f32 %v6450_v63  ;;  %v5567_v40 = vmul.f32 %v6874_v58, %v5566_v51 }
 0x51b   : > { %v4920_v62 = vpop.f32.mrf.mxu2  ;;  %v5003_v38 = vmul.f32 %v10367_v42, %v4948_v0  ;;  %v5392_v5 = vsel %vm5391_vm11, %v6872_v28, %v5388_v39 }
 0x51c   : > { %v4992_v15 = vmul.f32 %v10367_v42, %v4920_v62  ;;  %v5568_v56 = vadd.f32 %v6874_v58, %v5567_v40  ;;  %v5397_v6 = vsel %vm5394_vm3, %v5396_v18, %v5392_v5 }
 0x51d   : > { %v10376_v23 = vadd.f32 %v10331_v47, %v5003_v38  ;;  %v5978_v49 = vmul.f32 %v5397_v6, %v10246_v8 }
 0x51e   : > { %v10384_v10 = vadd.f32 %v10331_v47, %v4992_v15  ;;  %v5572_v54 = vsel %vm5571_vm13, %v6874_v58, %v5568_v56 }
 0x51f   : > { %v6462_v44 = vmul.f32 -1.442695, %v10376_v23  ;;  %v5577_v32 = vsel %vm5574_vm9, %v5576_v50, %v5572_v54  ;;  %v6516_v9 = vpack.c.bf16 %v5978_v49, %v5977_v13 }
 0x520   : > { %v6451_v26 = vmul.f32 -1.442695, %v10384_v10  ;;  %v6876_v61 = vpop.eup %6875  ;;  %v5990_v27 = vmul.f32 %v5577_v32, %v10249_v4 }
 0x521   : > { %6877 = vpow2.f32 %v6462_v44  ;;  %v10394_v45 = vadd.f32 1.0, %v6876_v61  ;;  %6616 = vst [vmem:[%s9545_s7 + $0x20] sm:$0xff] %v6516_v9  }
 0x522   : > { %6879 = vpow2.f32 %v6451_v26  ;;  %v4950_v34 = vpop.f32.mrf.mxu3  ;;  %v6546_v53 = vpack.c.bf16 %v5990_v27, %v5989_v33 }
 0x523   : > { %v5004_v55 = vmul.f32 %v10367_v42, %v4950_v34  ;;  %v4888_v17 = vpop.f32.mrf.mxu1  ;;  %6881 = vrcp.f32 %v10394_v45  ;;  %v5768_v24 = vand.u32 2147483647, %v10394_v45  ;;  %vm5764_vm14 = vweird.f32 %v10394_v45 }
 0x524   : > { %v4858_v16 = vpop.f32.mrf.mxu0  ;;  %v4979_v4 = vmul.f32 %v10367_v42, %v4888_v17  ;;  %6622 = vst [vmem:[%s9545_s7 + $0x50] sm:$0xff] %v6546_v53   ;;  %v5770_v38 = vand.u32 2147483648, %v10394_v45 }
 0x525   : > { %v10400_v8 = vadd.f32 %v10331_v47, %v5004_v55  ;;  %v4967_v46 = vmul.f32 %v10367_v42, %v4858_v16  ;;  %vm10448_vm5 = vcmp.eq.f32.partialorder %v5768_v24, 8.507059e+37 }
 0x526   : > { %v10410_v41 = vadd.f32 %v10331_v47, %v4979_v4 }
 0x527   : > { %v6878_v37 = vpop.eup %6877  ;;  %v6463_v22 = vmul.f32 -1.442695, %v10400_v8  ;;  %v10407_v36 = vadd.f32 %v10331_v47, %v4967_v46 }
 0x528   : > { %v6880_v28 = vpop.eup %6879  ;;  %v10412_v25 = vadd.f32 1.0, %v6878_v37  ;;  %v6438_v1 = vmul.f32 -1.442695, %v10410_v41 }
 0x529   : > { %v10414_v59 = vadd.f32 1.0, %v6880_v28  ;;  %6883 = vpow2.f32 %v6463_v22  ;;  %v6426_v60 = vmul.f32 -1.442695, %v10407_v36  ;;  %v6882_v58 = vpop.eup %6881 }
 0x52a   : > { %6885 = vrcp.f32 %v10412_v25  ;;  %v5760_v11 = vmul.f32 %v6882_v58, %v10394_v45  ;;  %vm5765_vm2 = vweird.f32 %v6882_v58  ;;  %vm5944_vm8 = vweird.f32 %v10412_v25 }
 0x52b   : > { %6887 = vrcp.f32 %v10414_v59  ;;  %v4890_v7 = vpop.f32.mrf.mxu1  ;;  %vm10444_vm7 = vmor %vm5764_vm14, %vm5765_vm2  ;;  %v5783_v3 = vand.u32 2147483647, %v10414_v59  ;;  %v5948_v6 = vand.u32 2147483647, %v10412_v25  ;;  %vm5779_vm10 = vweird.f32 %v10414_v59 }
 0x52c   : > { %v4860_v2 = vpop.f32.mrf.mxu0  ;;  %v5761_v57 = vsub.f32 1.0, %v5760_v11  ;;  %6889 = vpow2.f32 %v6426_v60  ;;  %v4980_v51 = vmul.f32 %v10367_v42, %v4890_v7  ;;  %v5950_v9 = vand.u32 2147483648, %v10412_v25 }
 0x52d   : > { %v4968_v48 = vmul.f32 %v10367_v42, %v4860_v2  ;;  %6891 = vpow2.f32 %v6438_v1  ;;  %v5785_v42 = vand.u32 2147483648, %v10414_v59  ;;  %vm5784_vm1 = vcmp.eq.f32.partialorder %v5783_v3, 8.507059e+37 }
 0x52e   : > { %v5762_v43 = vmul.f32 %v6882_v58, %v5761_v57  ;;  %v10442_v31 = vadd.f32 %v10331_v47, %v4980_v51  ;;  %v5951_v1 = vor.u32 1.1754944e-38, %v5950_v9  ;;  %vm5949_vm4 = vcmp.eq.f32.partialorder %v5948_v6, 8.507059e+37 }
 0x52f   : > { %v6884_v35 = vpop.eup %6883  ;;  %v10423_v21 = vadd.f32 %v10331_v47, %v4968_v48  ;;  %v5771_v47 = vor.u32 1.1754944e-38, %v5770_v38  ;;  %v5786_v13 = vor.u32 1.1754944e-38, %v5785_v42 }
 0x530   : > { %v10425_v63 = vpop.eup %6885  ;;  %v10427_v52 = vadd.f32 1.0, %v6884_v35  ;;  %v5763_v29 = vadd.f32 %v6882_v58, %v5762_v43  ;;  %v6439_v49 = vmul.f32 -1.442695, %v10442_v31 }
 0x531   : > { %v6888_v14 = vpop.eup %6887  ;;  %v5940_v0 = vmul.f32 %v10425_v63, %v10412_v25  ;;  %v6427_v30 = vmul.f32 -1.442695, %v10423_v21  ;;  %vm5945_vm15 = vweird.f32 %v10425_v63 }
 0x532   : > { %v5775_v19 = vmul.f32 %v6888_v14, %v10414_v59  ;;  %6893 = vrcp.f32 %v10427_v52  ;;  %v6890_v62 = vpop.eup %6889  ;;  %v5767_v50 = vsel %vm10444_vm7, %v6882_v58, %v5763_v29  ;;  %vm5780_vm6 = vweird.f32 %v6888_v14  ;;  %vm10476_vm0 = vmor %vm5944_vm8, %vm5945_vm15 }
 0x533   : > { %v5941_v12 = vsub.f32 1.0, %v5940_v0  ;;  %v6892_v40 = vpop.eup %6891  ;;  %v10439_v39 = vadd.f32 1.0, %v6890_v62  ;;  %6895 = vpow2.f32 %v6427_v30  ;;  %v5772_v32 = vsel %vm10448_vm5, %v5771_v47, %v5767_v50  ;;  %vm5781_vm12 = vmor %vm5779_vm10, %vm5780_vm6 }
 0x534   : > { %v5776_v15 = vsub.f32 1.0, %v5775_v19  ;;  %v10459_v54 = vadd.f32 1.0, %v6892_v40  ;;  %v5963_v53 = vand.u32 2147483647, %v10427_v52  ;;  %v5965_v16 = vand.u32 2147483648, %v10427_v52 }
 0x535   : > { %v5942_v5 = vmul.f32 %v10425_v63, %v5941_v12  ;;  %6897 = vrcp.f32 %v10439_v39  ;;  %v6003_v4 = vmul.f32 %v5772_v32, %v10334_v20  ;;  %vm5959_vm11 = vweird.f32 %v10427_v52 }
 0x536   : > { %v5777_v44 = vmul.f32 %v6888_v14, %v5776_v15  ;;  %6899 = vrcp.f32 %v10459_v54  ;;  %v5966_v57 = vor.u32 1.1754944e-38, %v5965_v16  ;;  %vm5964_vm9 = vcmp.eq.f32.partialorder %v5963_v53, 8.507059e+37 }
 0x537   : > { %v5943_v33 = vadd.f32 %v10425_v63, %v5942_v5  ;;  %6901 = vpow2.f32 %v6439_v49  ;;  %v5410_v62 = vand.u32 2147483648, %v10439_v39  ;;  %vm5404_vm14 = vweird.f32 %v10439_v39 }
 0x538   : > { %v6894_v26 = vpop.eup %6893  ;;  %v5778_v61 = vadd.f32 %v6888_v14, %v5777_v44  ;;  %v5408_v38 = vand.u32 2147483647, %v10439_v39  ;;  %v5590_v6 = vand.u32 2147483648, %v10459_v54 }
 0x539   : > { %v5955_v27 = vmul.f32 %v6894_v26, %v10427_v52  ;;  %v6896_v45 = vpop.eup %6895  ;;  %v5947_v59 = vsel %vm10476_vm0, %v10425_v63, %v5943_v33  ;;  %vm5960_vm3 = vweird.f32 %v6894_v26  ;;  %v5411_v18 = vor.u32 1.1754944e-38, %v5410_v62 }
 0x53a   : > { %v5782_v34 = vsel %vm5781_vm12, %v6888_v14, %v5778_v61  ;;  %v5212_v28 = vadd.f32 1.0, %v6896_v45  ;;  %v5952_v2 = vsel %vm5949_vm4, %v5951_v1, %v5947_v59  ;;  %vm5961_vm13 = vmor %vm5959_vm11, %vm5960_vm3  ;;  %vm5409_vm6 = vcmp.eq.f32.partialorder %v5408_v38, 8.507059e+37 }
 0x53b   : > { %v5787_v55 = vsel %vm5784_vm1, %v5786_v13, %v5782_v34  ;;  %v5956_v17 = vsub.f32 1.0, %v5955_v27  ;;  %v6898_v46 = vpop.eup %6897  ;;  %v6015_v51 = vmul.f32 %v5952_v2, %v10376_v23  ;;  %vm5584_vm1 = vweird.f32 %v10459_v54 }
 0x53c   : > { %v6004_v37 = vmul.f32 %v5787_v55, %v10384_v10  ;;  %v5400_v58 = vmul.f32 %v6898_v46, %v10439_v39  ;;  %6903 = vrcp.f32 %v5212_v28  ;;  %v10485_v11 = vpop.eup %6899  ;;  %vm5405_vm2 = vweird.f32 %v6898_v46 }
 0x53d   : > { %v5957_v60 = vmul.f32 %v6894_v26, %v5956_v17  ;;  %v5580_v35 = vmul.f32 %v10485_v11, %v10459_v54  ;;  %v6902_v43 = vpop.eup %6901  ;;  %vm5406_vm7 = vmor %vm5404_vm14, %vm5405_vm2  ;;  %v5423_v23 = vand.u32 2147483647, %v5212_v28  ;;  %v5425_v12 = vand.u32 2147483648, %v5212_v28 }
 0x53e   : > { %v6581_v20 = vpack.c.bf16 %v6004_v37, %v6003_v4  ;;  %v5401_v25 = vsub.f32 1.0, %v5400_v58  ;;  %v5224_v14 = vadd.f32 1.0, %v6902_v43  ;;  %vm5419_vm8 = vweird.f32 %v5212_v28 }
 0x53f   : > { %v5958_v10 = vadd.f32 %v6894_v26, %v5957_v60  ;;  %v5581_v29 = vsub.f32 1.0, %v5580_v35  ;;  %vm5585_vm10 = vweird.f32 %v10485_v11  ;;  %v5426_v39 = vor.u32 1.1754944e-38, %v5425_v12 }
 0x540   : > { %6629 = vst [vmem:[%s9545_s7 + $0x88] sm:$0xff] %v6581_v20   ;;  %v5402_v7 = vmul.f32 %v6898_v46, %v5401_v25  ;;  %6905 = vrcp.f32 %v5224_v14  ;;  %vm5424_vm15 = vcmp.eq.f32.partialorder %v5423_v23, 8.507059e+37  ;;  %v5588_v13 = vand.u32 2147483647, %v10459_v54  ;;  %vm5586_vm0 = vmor %vm5584_vm1, %vm5585_vm10 }
 0x541   : > { %v5962_v48 = vsel %vm5961_vm13, %v6894_v26, %v5958_v10  ;;  %v5582_v40 = vmul.f32 %v10485_v11, %v5581_v29  ;;  %v5603_v33 = vand.u32 2147483647, %v5224_v14  ;;  %v5605_v27 = vand.u32 2147483648, %v5224_v14 }
 0x542   : > { %v5967_v63 = vsel %vm5964_vm9, %v5966_v57, %v5962_v48  ;;  %v6904_v24 = vpop.eup %6903  ;;  %v5403_v30 = vadd.f32 %v6898_v46, %v5402_v7  ;;  %v5591_v55 = vor.u32 1.1754944e-38, %v5590_v6  ;;  %vm5589_vm4 = vcmp.eq.f32.partialorder %v5588_v13, 8.507059e+37 }
 0x543   : > { %v6016_v52 = vmul.f32 %v5967_v63, %v10400_v8  ;;  %v5415_v19 = vmul.f32 %v6904_v24, %v5212_v28  ;;  %vm5420_vm5 = vweird.f32 %v6904_v24  ;;  %v5583_v50 = vadd.f32 %v10485_v11, %v5582_v40 }
 0x544   : > { %v5407_v8 = vsel %vm5406_vm7, %v6898_v46, %v5403_v30  ;;  %vm5421_vm12 = vmor %vm5419_vm8, %vm5420_vm5  ;;  %vm5599_vm11 = vweird.f32 %v5224_v14  ;;  %v5606_v54 = vor.u32 1.1754944e-38, %v5605_v27  ;;  %vm5604_vm9 = vcmp.eq.f32.partialorder %v5603_v33, 8.507059e+37 }
 0x545   : > { %v6611_v0 = vpack.c.bf16 %v6016_v52, %v6015_v51  ;;  %v5416_v42 = vsub.f32 1.0, %v5415_v19  ;;  %v5412_v5 = vsel %vm5409_vm6, %v5411_v18, %v5407_v8  ;;  %v5587_v45 = vsel %vm5586_vm0, %v10485_v11, %v5583_v50 }
 0x546   : > { %v6906_v3 = vpop.eup %6905  ;;  %v5979_v61 = vmul.f32 %v5412_v5, %v10407_v36 }
 0x547   : > { %6635 = vst [vmem:[%s9545_s7 + $0xb8] sm:$0xff] %v6611_v0   ;;  %v5417_v15 = vmul.f32 %v6904_v24, %v5416_v42  ;;  %v5595_v47 = vmul.f32 %v6906_v3, %v5224_v14  ;;  %vm5600_vm3 = vweird.f32 %v6906_v3 }
 0x548   : > { %vm5601_vm13 = vmor %vm5599_vm11, %vm5600_vm3 }
 0x549   : > { %v5418_v56 = vadd.f32 %v6904_v24, %v5417_v15  ;;  %v5596_v32 = vsub.f32 1.0, %v5595_v47 }
 0x54b   : > { %v5422_v44 = vsel %vm5421_vm12, %v6904_v24, %v5418_v56  ;;  %v5597_v9 = vmul.f32 %v6906_v3, %v5596_v32 }
 0x54c   : > { %v5427_v26 = vsel %vm5424_vm15, %v5426_v39, %v5422_v44 }
 0x54d   : > { %v5980_v49 = vmul.f32 %v5427_v26, %v10423_v21  ;;  %v5598_v36 = vadd.f32 %v6906_v3, %v5597_v9  ;;  %v5592_v21 = vsel %vm5589_vm4, %v5591_v55, %v5587_v45 }
 0x54e   : > { %v5991_v16 = vmul.f32 %v5592_v21, %v10410_v41 }
 0x54f   : > { %v6521_v34 = vpack.c.bf16 %v5980_v49, %v5979_v61  ;;  %v5602_v17 = vsel %vm5601_vm13, %v6906_v3, %v5598_v36 }
 0x550   : > { %v5607_v53 = vsel %vm5604_vm9, %v5606_v54, %v5602_v17 }
 0x551   : > { %6617 = vst [vmem:[%s9545_s7 + $0x28] sm:$0xff] %v6521_v34   ;;  %v5992_v46 = vmul.f32 %v5607_v53, %v10442_v31 }
 0x553   : > { %v6551_v4 = vpack.c.bf16 %v5992_v46, %v5991_v16 }
 0x555   : > { %6623 = vst [vmem:[%s9545_s7 + $0x58] sm:$0xff] %v6551_v4  }
 0x556   : > { %6938 = shalt.err (!%p6935_p5)
}
 0x557   : > { %s6999_s27 = smov 64  }
 0x558   : > { %6649 = dma.vmem_to_hbm [thread:$0]  (%p7070_p4), %s6130_s29, 3072, %s6132_s8, %s6114_s9, %s6999_s27, %s6999_s27, %s6991_s12  }
 0x559 PF: > { %p6655_p6 = scmp.ge.s32.totalorder %s6989_s23, 2  ;;  %s6146_s7 = sand.u32 1, %s6969_s18  }
 0x55a   : > { %s6147_s24 = scalar_lea.sflag [#allocation4], %s6146_s7 }
 0x55b   : > { %p6652_p7 = pnand %p6655_p6, %p7077_p8 }
 0x55d   : > { %p6653_p9 = pneg %p6652_p7 }
 0x55f   : > { %6964 = dma.done.wait (%p6653_p9), %s6147_s24, 3072  }
 0x560   : > { %6966 = vsyncadd (%p6653_p9), %s6147_s24, 4294964224  ;;  %s18_s23 = sadd.s32 1, %s6989_s23   ;;  %s10627_s18 = smov %s6973_s19 }
 0x561   : > { %p15_p10 = scmp.ge.s32.totalorder %s18_s23, 4   ;;  %s10628_s19 = smov %s6977_s20 }
 0x562   : > { %s10629_s20 = smov %s7083_s6  ;;  %s10630_s21 = smov %s6985_s22 }
 0x563   : > { %s10631_s22 = smov %s10633_s26  ;;  %17 = sbr.rel (!%p15_p10) target bundleno = 4 (0x4), region = 87 }
 0x568   :  { %6153 = vsyncpa [#allocation4], 1 }
 0x569   :  { %6155 = vsyncpa [#allocation4 + $0x1], 1 }

</bundles_post_ra>
